<compile_context>
chip_gen: v7x
topology: tpu7x:2x2x1
jax: 0.10.0
libtpu: 0.0.40
codegen_flags: <defaults>
</compile_context>

<pallas_src>
import functools

import jax
import jax.numpy as jnp
from jax import lax
from jax.experimental import pallas as pl
from jax.experimental.pallas import tpu as pltpu


def _pick_batch_tile(batch, seq_len, embed_dim, vmem_budget_bytes=8 << 20):
    """Largest divisor of `batch` whose x/out tiles fit a conservative VMEM budget.

    At demo size this returns `batch` itself -> grid=(1,), i.e. one grid step
    with M = B*S projection rows.  A single step is the right call on v5e/v6e
    (one TensorCore: each extra step is ~0.35 us fixed overhead on a few-us
    kernel); on v7x it is worth measuring batch//2 (grid=(2,), megacore split)
    against batch (one TC, fuller 256-row MXU) — take the min over >=3 runs.
    """
    bytes_per_b = seq_len * embed_dim * 4 * 2 * 2   # x + out tiles, f32, 2x buffered
    limit = max(1, vmem_budget_bytes // bytes_per_b)
    best = 1
    for d in range(1, batch + 1):
        if batch % d == 0 and d <= limit:
            best = d
    return best


def _mhsa_kernel(x_ref, wqkv_ref, bqkv_ref, o_ref, *, num_heads, head_dim,
                 batch_tile, mxu_dtype, approx_recip):
    """One grid step = `batch_tile` batch elements.

    x_ref    : (TB, S, E)   VMEM (input dtype; cast to mxu_dtype for the MXU)
    wqkv_ref : (E, 3E)      VMEM (mxu_dtype; fused [Wq*scale | Wk | Wv])
    bqkv_ref : (1, 3E)      VMEM (f32;       fused [bq*scale | bk | bv])
    o_ref    : (TB, S*E)    VMEM lane-dense output slab (multiple of 128 lanes)
    """
    H, D, TB = num_heads, head_dim, batch_tile
    S = D                      # module constraint: seq_len == head_dim
    E = H * D

    # ---- fused QKV projection: one MXU matmul with M = TB*S rows -----------
    x2d = x_ref[...].reshape(TB * S, E).astype(mxu_dtype)
    qkv = jnp.dot(x2d, wqkv_ref[...], preferred_element_type=jnp.float32)
    qkv = (qkv + bqkv_ref[...]).reshape(TB, S, 3 * E).astype(mxu_dtype)

    # ---- per-head attention (H is a compile-time constant) -----------------
    head_outs = []
    for h in range(H):
        qh = qkv[:, :, h * D:(h + 1) * D]                    # (TB, S, D), pre-scaled
        kh = qkv[:, :, E + h * D:E + (h + 1) * D]            # (TB, S, D)
        vh = qkv[:, :, 2 * E + h * D:2 * E + (h + 1) * D]    # (TB, S, D)

        # scores[b, s, t] = sum_d q[b,s,d] * k[b,t,d]   (einsum 'bsd,btd->bst')
        scores = lax.dot_general(
            qh, kh, dimension_numbers=(((2,), (2,)), ((0,), (0,))),
            preferred_element_type=jnp.float32)              # (TB, S, S) f32
        scores = scores - jnp.max(scores, axis=-1, keepdims=True)
        e = jnp.exp(scores)
        denom = jnp.sum(e, axis=-1, keepdims=True)
        if approx_recip:
            probs = e * pl.reciprocal(denom, approx=True)    # EUP slot, f32 softmax
        else:
            probs = e / denom                                # exact (accuracy mode)

        # Reference epilogue stores (probs @ v).transpose(2, 3).  Fold that
        # transpose into the matmul: with V on the LHS the dot_general's
        # natural output order is already (b, d, s)  (einsum 'btd,bst->bds').
        head_outs.append(lax.dot_general(
            vh, probs.astype(mxu_dtype),
            dimension_numbers=(((1,), (2,)), ((0,), (0,))),
            preferred_element_type=jnp.float32))             # (TB, D, S)

    # ---- lane-dense epilogue ------------------------------------------------
    # out3[b, d, h*S + s] = (probs_h @ v_h)[b, s, d], which is exactly the
    # reference output[b, d, h*S + s].  Flatten the trailing (D, H*S) dims
    # into one S*E-lane axis using static sublane slices + lane concats
    # (well-supported Mosaic ops; avoids a minor-dims reshape), so the final
    # store is a full-width unmasked vst with zero lane padding in the tile.
    out3 = jnp.concatenate(head_outs, axis=-1)               # (TB, D, H*S)
    flat = jnp.concatenate([out3[:, d, :] for d in range(D)], axis=-1)
    o_ref[...] = flat.astype(o_ref.dtype)                    # (TB, S*E)


def multi_head_sparse_attention(x, wq, wk, wv, bq, bk, bv, *, num_heads,
                                block_size=64, mask=None, batch_tile=None,
                                mxu_dtype=jnp.bfloat16, out_dtype=jnp.float32):
    """Mirrors MultiHeadSparseAttention.forward(x, mask=None).

    Default: bf16 MXU operands (the native fast path on v5e/v6e/v7x) with f32
    accumulation and f32 softmax.  mxu_dtype=jnp.float32 is a tight-accuracy
    mode and also switches softmax normalization to an exact divide.
    """
    # TODO(synk): the optional `mask` argument of the PyTorch forward is not
    # supported (the default call path uses mask=None).
    assert mask is None
    B, S, E = x.shape
    assert E % num_heads == 0
    D = E // num_heads
    # The reference module's index-assignment / final reshape only type-check
    # when seq_len == head_dim and there is a single sparse block.
    assert S == D, "reference module requires seq_len == head_dim"
    assert S <= block_size, "reference module requires a single sparse block"

    if batch_tile is None:
        batch_tile = _pick_batch_tile(B, S, E)
    TB = batch_tile
    assert B % TB == 0

    # Fuse Q/K/V into one (E, 3E) weight / (3E,) bias and fold the 1/sqrt(D)
    # score scale into Wq AND bq (weights are constants in a real model, so
    # this is free at trace/compile time).
    scale = 1.0 / jnp.sqrt(jnp.float32(D))
    wqkv = jnp.concatenate([wq * scale, wk, wv], axis=1).astype(mxu_dtype)
    bqkv = jnp.concatenate([bq * scale, bk, bv]).reshape(1, 3 * E)
    bqkv = bqkv.astype(jnp.float32)

    approx_recip = jnp.dtype(mxu_dtype) != jnp.dtype(jnp.float32)
    kernel = functools.partial(_mhsa_kernel, num_heads=num_heads, head_dim=D,
                               batch_tile=TB, mxu_dtype=mxu_dtype,
                               approx_recip=approx_recip)

    # Lane-dense output: (B, S*E) puts a multiple-of-128 lane dim on the store
    # (256 lanes here) instead of E = 32 masked lanes; the reshape back to
    # (B, S, E) below is a free trailing-dim split at the XLA level.
    #
    # grid = (B // TB,): one step at demo size.  Scale-up notes: with a large
    # embed_dim, K/N-tile the fused (E, 3E) weight over an extra grid axis,
    # mark its BlockSpec pipeline_mode=pl.Buffered(1) (constant block index),
    # and set pltpu.CompilerParams(vmem_limit_bytes=...) sized for v7x's
    # 64 MiB physical VMEM; at this demo size everything fits the defaults.
    out_flat = pl.pallas_call(
        kernel,
        out_shape=jax.ShapeDtypeStruct((B, S * E), out_dtype),
        grid=(B // TB,),
        in_specs=[
            pl.BlockSpec((TB, S, E), lambda b: (b, 0, 0)),   # x
            pl.BlockSpec((E, 3 * E), lambda b: (0, 0)),      # fused W_qkv
            pl.BlockSpec((1, 3 * E), lambda b: (0, 0)),      # fused b_qkv
        ],
        out_specs=pl.BlockSpec((TB, S * E), lambda b: (b, 0)),
        compiler_params=pltpu.CompilerParams(
            dimension_semantics=("parallel",)),
    )(x, wqkv, bqkv)
    return out_flat.reshape(B, S, E)


def _reference(x, wq, wk, wv, bq, bk, bv, num_heads):
    """Pure-JAX transcription of the PyTorch forward (mask=None, one block)."""
    B, S, E = x.shape
    D = E // num_heads
    q = (x @ wq + bq).reshape(B, S, num_heads, D).transpose(0, 2, 1, 3)
    k = (x @ wk + bk).reshape(B, S, num_heads, D).transpose(0, 2, 1, 3)
    v = (x @ wv + bv).reshape(B, S, num_heads, D).transpose(0, 2, 1, 3)
    scores = (q @ jnp.swapaxes(k, -1, -2)) * (1.0 / jnp.sqrt(jnp.float32(D)))
    probs = jax.nn.softmax(scores, axis=-1)
    out = probs @ v                                             # (B, H, S, D)
    attn_output = jnp.swapaxes(out, 2, 3)                       # (B, H, D, S)
    return jnp.swapaxes(attn_output, 1, 2).reshape(B, S, E)     # (B, S, E)


if __name__ == "__main__":
    # Shapes consistent with the module's constraints:
    #   num_heads=4, head_dim=8 -> embed_dim=32, and seq_len must equal
    #   head_dim for the reference epilogue to type-check.  batch=32 so the
    #   default single-step grid runs one 256-row fused projection matmul.
    B, H, S = 32, 4, 8
    D = S
    E = H * D  # 32

    key = jax.random.PRNGKey(0)
    kx, kq, kk, kv, kbq, kbk, kbv = jax.random.split(key, 7)
    x = jax.random.normal(kx, (B, S, E), dtype=jnp.float32)
    wq = jax.random.normal(kq, (E, E), dtype=jnp.float32) * 0.1
    wk = jax.random.normal(kk, (E, E), dtype=jnp.float32) * 0.1
    wv = jax.random.normal(kv, (E, E), dtype=jnp.float32) * 0.1
    bq = jax.random.normal(kbq, (E,), dtype=jnp.float32) * 0.01
    bk = jax.random.normal(kbk, (E,), dtype=jnp.float32) * 0.01
    bv = jax.random.normal(kbv, (E,), dtype=jnp.float32) * 0.01

    ref = _reference(x, wq, wk, wv, bq, bk, bv, num_heads=H)

    # Default fast path: bf16 MXU operands, f32 accumulation + f32 softmax.
    out = multi_head_sparse_attention(x, wq, wk, wv, bq, bk, bv, num_heads=H)
    out = jax.block_until_ready(out)
    assert out.shape == (B, S, E), out.shape
    assert jnp.allclose(out, ref, atol=2e-2, rtol=2e-2), "bf16 path mismatch"

    # Tight-accuracy mode: f32 MXU operands + exact softmax normalization.
    out_f32 = multi_head_sparse_attention(x, wq, wk, wv, bq, bk, bv,
                                          num_heads=H, mxu_dtype=jnp.float32)
    out_f32 = jax.block_until_ready(out_f32)
    assert jnp.allclose(out_f32, ref, atol=2e-3, rtol=2e-3), "f32 path mismatch"

    print("KERNEL_OK")
</pallas_src>

<mosaic_0001>
module attributes {stable_mosaic.version = 11 : i64} {
  func.func @_mhsa_kernel(%arg0: i32, %arg1: memref<32x8x32xf32, #tpu.memory_space<vmem>>, %arg2: memref<32x96xbf16, #tpu.memory_space<vmem>>, %arg3: memref<1x96xf32, #tpu.memory_space<vmem>>, %arg4: memref<32x256xf32, #tpu.memory_space<vmem>>) attributes {dimension_semantics = [#tpu.dimension_semantics<parallel>], iteration_bounds = array<i64: 1>, scalar_prefetch = 0 : i64, scratch_operands = 0 : i64, tpu.core_type = #tpu.core_type<tc>, window_params = [{transform_indices = @transform_0, window_bounds = array<i64: 32, 8, 32>}, {pipeline_mode = #tpu.pipeline_mode<synchronous>, transform_indices = @transform_1, window_bounds = array<i64: 32, 96>}, {pipeline_mode = #tpu.pipeline_mode<synchronous>, transform_indices = @transform_2, window_bounds = array<i64: 1, 96>}, {transform_indices = @transform_3, window_bounds = array<i64: 32, 256>}]} {
    %c0 = arith.constant 0 : index
    %c0_0 = arith.constant 0 : index
    %c0_1 = arith.constant 0 : index
    %0 = vector.load %arg1[%c0, %c0_0, %c0_1] : memref<32x8x32xf32, #tpu.memory_space<vmem>>, vector<32x8x32xf32>
    %1 = vector.shape_cast %0 : vector<32x8x32xf32> to vector<256x32xf32>
    %2 = arith.truncf %1 : vector<256x32xf32> to vector<256x32xbf16>
    %c0_2 = arith.constant 0 : index
    %c0_3 = arith.constant 0 : index
    %3 = vector.load %arg2[%c0_2, %c0_3] : memref<32x96xbf16, #tpu.memory_space<vmem>>, vector<32x96xbf16>
    %cst = arith.constant dense<0.000000e+00> : vector<256x96xf32>
    %4 = tpu.matmul %2, %3, %cst {dimension_numbers = #tpu.dot_dimension_numbers<[1], [0], [0], [1], [0, 0, 1, 1], [], []>} : vector<256x32xbf16>, vector<32x96xbf16>, vector<256x96xf32> -> vector<256x96xf32>
    %c0_4 = arith.constant 0 : index
    %c0_5 = arith.constant 0 : index
    %5 = vector.load %arg3[%c0_4, %c0_5] : memref<1x96xf32, #tpu.memory_space<vmem>>, vector<1x96xf32>
    %6 = vector.broadcast %5 : vector<1x96xf32> to vector<256x96xf32>
    %7 = arith.addf %4, %6 : vector<256x96xf32>
    %8 = vector.shape_cast %7 : vector<256x96xf32> to vector<32x8x96xf32>
    %9 = arith.truncf %8 : vector<32x8x96xf32> to vector<32x8x96xbf16>
    %10 = vector.extract_strided_slice %9 {offsets = [0, 0, 0], sizes = [32, 8, 8], strides = [1, 1, 1]} : vector<32x8x96xbf16> to vector<32x8x8xbf16>
    %11 = vector.extract_strided_slice %9 {offsets = [0, 0, 32], sizes = [32, 8, 8], strides = [1, 1, 1]} : vector<32x8x96xbf16> to vector<32x8x8xbf16>
    %12 = vector.extract_strided_slice %9 {offsets = [0, 0, 64], sizes = [32, 8, 8], strides = [1, 1, 1]} : vector<32x8x96xbf16> to vector<32x8x8xbf16>
    %cst_6 = arith.constant dense<0.000000e+00> : vector<32x8x8xf32>
    %13 = tpu.matmul %10, %11, %cst_6 {dimension_numbers = #tpu.dot_dimension_numbers<[2], [2], [1], [1], [0, 0, 0, 1, 1, 1], [0], [0]>} : vector<32x8x8xbf16>, vector<32x8x8xbf16>, vector<32x8x8xf32> -> vector<32x8x8xf32>
    %cst_7 = arith.constant dense<0xFF800000> : vector<32x8xf32>
    %14 = vector.multi_reduction <maximumf>, %13, %cst_7 [2] : vector<32x8x8xf32> to vector<32x8xf32>
    %15 = vector.shape_cast %14 : vector<32x8xf32> to vector<32x8x1xf32>
    %16 = vector.broadcast %15 : vector<32x8x1xf32> to vector<32x8x8xf32>
    %17 = arith.subf %13, %16 : vector<32x8x8xf32>
    %18 = math.exp %17 : vector<32x8x8xf32>
    %cst_8 = arith.constant dense<0.000000e+00> : vector<32x8xf32>
    %19 = vector.multi_reduction <add>, %18, %cst_8 [2] : vector<32x8x8xf32> to vector<32x8xf32>
    %20 = vector.shape_cast %19 : vector<32x8xf32> to vector<32x8x1xf32>
    %21 = tpu.reciprocal %20 {approx = true} : vector<32x8x1xf32> -> vector<32x8x1xf32>
    %22 = vector.broadcast %21 : vector<32x8x1xf32> to vector<32x8x8xf32>
    %23 = arith.mulf %18, %22 : vector<32x8x8xf32>
    %24 = arith.truncf %23 : vector<32x8x8xf32> to vector<32x8x8xbf16>
    %cst_9 = arith.constant dense<0.000000e+00> : vector<32x8x8xf32>
    %25 = tpu.matmul %12, %24, %cst_9 {dimension_numbers = #tpu.dot_dimension_numbers<[1], [2], [2], [1], [0, 0, 0, 2, 1, 1], [0], [0]>} : vector<32x8x8xbf16>, vector<32x8x8xbf16>, vector<32x8x8xf32> -> vector<32x8x8xf32>
    %26 = vector.extract_strided_slice %9 {offsets = [0, 0, 8], sizes = [32, 8, 8], strides = [1, 1, 1]} : vector<32x8x96xbf16> to vector<32x8x8xbf16>
    %27 = vector.extract_strided_slice %9 {offsets = [0, 0, 40], sizes = [32, 8, 8], strides = [1, 1, 1]} : vector<32x8x96xbf16> to vector<32x8x8xbf16>
    %28 = vector.extract_strided_slice %9 {offsets = [0, 0, 72], sizes = [32, 8, 8], strides = [1, 1, 1]} : vector<32x8x96xbf16> to vector<32x8x8xbf16>
    %cst_10 = arith.constant dense<0.000000e+00> : vector<32x8x8xf32>
    %29 = tpu.matmul %26, %27, %cst_10 {dimension_numbers = #tpu.dot_dimension_numbers<[2], [2], [1], [1], [0, 0, 0, 1, 1, 1], [0], [0]>} : vector<32x8x8xbf16>, vector<32x8x8xbf16>, vector<32x8x8xf32> -> vector<32x8x8xf32>
    %cst_11 = arith.constant dense<0xFF800000> : vector<32x8xf32>
    %30 = vector.multi_reduction <maximumf>, %29, %cst_11 [2] : vector<32x8x8xf32> to vector<32x8xf32>
    %31 = vector.shape_cast %30 : vector<32x8xf32> to vector<32x8x1xf32>
    %32 = vector.broadcast %31 : vector<32x8x1xf32> to vector<32x8x8xf32>
    %33 = arith.subf %29, %32 : vector<32x8x8xf32>
    %34 = math.exp %33 : vector<32x8x8xf32>
    %cst_12 = arith.constant dense<0.000000e+00> : vector<32x8xf32>
    %35 = vector.multi_reduction <add>, %34, %cst_12 [2] : vector<32x8x8xf32> to vector<32x8xf32>
    %36 = vector.shape_cast %35 : vector<32x8xf32> to vector<32x8x1xf32>
    %37 = tpu.reciprocal %36 {approx = true} : vector<32x8x1xf32> -> vector<32x8x1xf32>
    %38 = vector.broadcast %37 : vector<32x8x1xf32> to vector<32x8x8xf32>
    %39 = arith.mulf %34, %38 : vector<32x8x8xf32>
    %40 = arith.truncf %39 : vector<32x8x8xf32> to vector<32x8x8xbf16>
    %cst_13 = arith.constant dense<0.000000e+00> : vector<32x8x8xf32>
    %41 = tpu.matmul %28, %40, %cst_13 {dimension_numbers = #tpu.dot_dimension_numbers<[1], [2], [2], [1], [0, 0, 0, 2, 1, 1], [0], [0]>} : vector<32x8x8xbf16>, vector<32x8x8xbf16>, vector<32x8x8xf32> -> vector<32x8x8xf32>
    %42 = vector.extract_strided_slice %9 {offsets = [0, 0, 16], sizes = [32, 8, 8], strides = [1, 1, 1]} : vector<32x8x96xbf16> to vector<32x8x8xbf16>
    %43 = vector.extract_strided_slice %9 {offsets = [0, 0, 48], sizes = [32, 8, 8], strides = [1, 1, 1]} : vector<32x8x96xbf16> to vector<32x8x8xbf16>
    %44 = vector.extract_strided_slice %9 {offsets = [0, 0, 80], sizes = [32, 8, 8], strides = [1, 1, 1]} : vector<32x8x96xbf16> to vector<32x8x8xbf16>
    %cst_14 = arith.constant dense<0.000000e+00> : vector<32x8x8xf32>
    %45 = tpu.matmul %42, %43, %cst_14 {dimension_numbers = #tpu.dot_dimension_numbers<[2], [2], [1], [1], [0, 0, 0, 1, 1, 1], [0], [0]>} : vector<32x8x8xbf16>, vector<32x8x8xbf16>, vector<32x8x8xf32> -> vector<32x8x8xf32>
    %cst_15 = arith.constant dense<0xFF800000> : vector<32x8xf32>
    %46 = vector.multi_reduction <maximumf>, %45, %cst_15 [2] : vector<32x8x8xf32> to vector<32x8xf32>
    %47 = vector.shape_cast %46 : vector<32x8xf32> to vector<32x8x1xf32>
    %48 = vector.broadcast %47 : vector<32x8x1xf32> to vector<32x8x8xf32>
    %49 = arith.subf %45, %48 : vector<32x8x8xf32>
    %50 = math.exp %49 : vector<32x8x8xf32>
    %cst_16 = arith.constant dense<0.000000e+00> : vector<32x8xf32>
    %51 = vector.multi_reduction <add>, %50, %cst_16 [2] : vector<32x8x8xf32> to vector<32x8xf32>
    %52 = vector.shape_cast %51 : vector<32x8xf32> to vector<32x8x1xf32>
    %53 = tpu.reciprocal %52 {approx = true} : vector<32x8x1xf32> -> vector<32x8x1xf32>
    %54 = vector.broadcast %53 : vector<32x8x1xf32> to vector<32x8x8xf32>
    %55 = arith.mulf %50, %54 : vector<32x8x8xf32>
    %56 = arith.truncf %55 : vector<32x8x8xf32> to vector<32x8x8xbf16>
    %cst_17 = arith.constant dense<0.000000e+00> : vector<32x8x8xf32>
    %57 = tpu.matmul %44, %56, %cst_17 {dimension_numbers = #tpu.dot_dimension_numbers<[1], [2], [2], [1], [0, 0, 0, 2, 1, 1], [0], [0]>} : vector<32x8x8xbf16>, vector<32x8x8xbf16>, vector<32x8x8xf32> -> vector<32x8x8xf32>
    %58 = vector.extract_strided_slice %9 {offsets = [0, 0, 24], sizes = [32, 8, 8], strides = [1, 1, 1]} : vector<32x8x96xbf16> to vector<32x8x8xbf16>
    %59 = vector.extract_strided_slice %9 {offsets = [0, 0, 56], sizes = [32, 8, 8], strides = [1, 1, 1]} : vector<32x8x96xbf16> to vector<32x8x8xbf16>
    %60 = vector.extract_strided_slice %9 {offsets = [0, 0, 88], sizes = [32, 8, 8], strides = [1, 1, 1]} : vector<32x8x96xbf16> to vector<32x8x8xbf16>
    %cst_18 = arith.constant dense<0.000000e+00> : vector<32x8x8xf32>
    %61 = tpu.matmul %58, %59, %cst_18 {dimension_numbers = #tpu.dot_dimension_numbers<[2], [2], [1], [1], [0, 0, 0, 1, 1, 1], [0], [0]>} : vector<32x8x8xbf16>, vector<32x8x8xbf16>, vector<32x8x8xf32> -> vector<32x8x8xf32>
    %cst_19 = arith.constant dense<0xFF800000> : vector<32x8xf32>
    %62 = vector.multi_reduction <maximumf>, %61, %cst_19 [2] : vector<32x8x8xf32> to vector<32x8xf32>
    %63 = vector.shape_cast %62 : vector<32x8xf32> to vector<32x8x1xf32>
    %64 = vector.broadcast %63 : vector<32x8x1xf32> to vector<32x8x8xf32>
    %65 = arith.subf %61, %64 : vector<32x8x8xf32>
    %66 = math.exp %65 : vector<32x8x8xf32>
    %cst_20 = arith.constant dense<0.000000e+00> : vector<32x8xf32>
    %67 = vector.multi_reduction <add>, %66, %cst_20 [2] : vector<32x8x8xf32> to vector<32x8xf32>
    %68 = vector.shape_cast %67 : vector<32x8xf32> to vector<32x8x1xf32>
    %69 = tpu.reciprocal %68 {approx = true} : vector<32x8x1xf32> -> vector<32x8x1xf32>
    %70 = vector.broadcast %69 : vector<32x8x1xf32> to vector<32x8x8xf32>
    %71 = arith.mulf %66, %70 : vector<32x8x8xf32>
    %72 = arith.truncf %71 : vector<32x8x8xf32> to vector<32x8x8xbf16>
    %cst_21 = arith.constant dense<0.000000e+00> : vector<32x8x8xf32>
    %73 = tpu.matmul %60, %72, %cst_21 {dimension_numbers = #tpu.dot_dimension_numbers<[1], [2], [2], [1], [0, 0, 0, 2, 1, 1], [0], [0]>} : vector<32x8x8xbf16>, vector<32x8x8xbf16>, vector<32x8x8xf32> -> vector<32x8x8xf32>
    %74 = tpu.concatenate %25, %41, %57, %73 in 2 : vector<32x8x8xf32>, vector<32x8x8xf32>, vector<32x8x8xf32>, vector<32x8x8xf32> -> vector<32x8x32xf32>
    %75 = vector.extract_strided_slice %74 {offsets = [0, 0, 0], sizes = [32, 1, 32], strides = [1, 1, 1]} : vector<32x8x32xf32> to vector<32x1x32xf32>
    %76 = vector.shape_cast %75 : vector<32x1x32xf32> to vector<32x32xf32>
    %77 = vector.extract_strided_slice %74 {offsets = [0, 1, 0], sizes = [32, 1, 32], strides = [1, 1, 1]} : vector<32x8x32xf32> to vector<32x1x32xf32>
    %78 = vector.shape_cast %77 : vector<32x1x32xf32> to vector<32x32xf32>
    %79 = vector.extract_strided_slice %74 {offsets = [0, 2, 0], sizes = [32, 1, 32], strides = [1, 1, 1]} : vector<32x8x32xf32> to vector<32x1x32xf32>
    %80 = vector.shape_cast %79 : vector<32x1x32xf32> to vector<32x32xf32>
    %81 = vector.extract_strided_slice %74 {offsets = [0, 3, 0], sizes = [32, 1, 32], strides = [1, 1, 1]} : vector<32x8x32xf32> to vector<32x1x32xf32>
    %82 = vector.shape_cast %81 : vector<32x1x32xf32> to vector<32x32xf32>
    %83 = vector.extract_strided_slice %74 {offsets = [0, 4, 0], sizes = [32, 1, 32], strides = [1, 1, 1]} : vector<32x8x32xf32> to vector<32x1x32xf32>
    %84 = vector.shape_cast %83 : vector<32x1x32xf32> to vector<32x32xf32>
    %85 = vector.extract_strided_slice %74 {offsets = [0, 5, 0], sizes = [32, 1, 32], strides = [1, 1, 1]} : vector<32x8x32xf32> to vector<32x1x32xf32>
    %86 = vector.shape_cast %85 : vector<32x1x32xf32> to vector<32x32xf32>
    %87 = vector.extract_strided_slice %74 {offsets = [0, 6, 0], sizes = [32, 1, 32], strides = [1, 1, 1]} : vector<32x8x32xf32> to vector<32x1x32xf32>
    %88 = vector.shape_cast %87 : vector<32x1x32xf32> to vector<32x32xf32>
    %89 = vector.extract_strided_slice %74 {offsets = [0, 7, 0], sizes = [32, 1, 32], strides = [1, 1, 1]} : vector<32x8x32xf32> to vector<32x1x32xf32>
    %90 = vector.shape_cast %89 : vector<32x1x32xf32> to vector<32x32xf32>
    %91 = tpu.concatenate %76, %78, %80, %82, %84, %86, %88, %90 in 1 : vector<32x32xf32>, vector<32x32xf32>, vector<32x32xf32>, vector<32x32xf32>, vector<32x32xf32>, vector<32x32xf32>, vector<32x32xf32>, vector<32x32xf32> -> vector<32x256xf32>
    %c0_22 = arith.constant 0 : index
    %c0_23 = arith.constant 0 : index
    %92 = vector.load %arg4[%c0_22, %c0_23] : memref<32x256xf32, #tpu.memory_space<vmem>>, vector<32x256xf32>
    tpu.vector_store %arg4[%c0_22, %c0_23], %91 {strides = array<i32>} : memref<32x256xf32, #tpu.memory_space<vmem>>, vector<32x256xf32>,
    return
  }
  func.func @transform_0(%arg0: i32) -> (i32, i32, i32) {
    %c0_i32 = arith.constant 0 : i32
    %c0_i32_0 = arith.constant 0 : i32
    %c0_i32_1 = arith.constant 0 : i32
    return %arg0, %c0_i32, %c0_i32_0 : i32, i32, i32
  }
  func.func @transform_1(%arg0: i32) -> (i32, i32) {
    %c0_i32 = arith.constant 0 : i32
    %c0_i32_0 = arith.constant 0 : i32
    %c0_i32_1 = arith.constant 0 : i32
    return %c0_i32, %c0_i32_0 : i32, i32
  }
  func.func @transform_2(%arg0: i32) -> (i32, i32) {
    %c0_i32 = arith.constant 0 : i32
    %c0_i32_0 = arith.constant 0 : i32
    %c0_i32_1 = arith.constant 0 : i32
    return %c0_i32, %c0_i32_0 : i32, i32
  }
  func.func @transform_3(%arg0: i32) -> (i32, i32) {
    %c0_i32 = arith.constant 0 : i32
    %c0_i32_0 = arith.constant 0 : i32
    return %arg0, %c0_i32 : i32, i32
  }
}

</mosaic_0001>

<bundles_post_ra>
// kernel: tpu_custom_call.1
= control target key start
LH: loop header
LB: loop body
LE: loop exit
PB: predicated region body
PF: predicated region fallthrough
CT: control target
= control target key end

     0   :  { %8 = vsyncpa [#allocation3], 0  ;;  %s26051_s0 = inlined_call_operand.hbm [shape: f32[32,8,32], index: 0, kind: input, shape index: {}]   ;;  %s26052_s1 = inlined_call_operand.hbm [shape: bf16[32,96], index: 1, kind: input, shape index: {}]   ;;  %s26053_s2 = inlined_call_operand.vmem [shape: f32[1,96], index: 2, kind: input, shape index: {}]   ;;  %s26054_s3 = inlined_call_operand.hbm [shape: f32[32,256], index: 3, kind: output, shape index: {}]  }
   0x1   :  { %9 = vsyncpa [#allocation6], 0 }
   0x2   :  { %10 = vsyncpa [#allocation4], 0  ;;  %s20670_s12 = smov [#allocation2]   ;;  %s20598_s16 = scalar_lea.hbm %s26051_s0, 4096 }
   0x3   :  { %s16_s13 = sshll.u32 %s20670_s12, 4  ;;  %p20599_p0 = scmp.ne.s32.totalorder %s26051_s0, %s20598_s16  ;;  %s17_s13 = int_to_ptr.vmem [resolvable:$true] %s16_s13 }
   0x4   :  { %p20602_p1 = scmp.lt.u32.totalorder %s20598_s16, %s26051_s0 }
   0x6   :  { %p20604_p2 = pnand %p20602_p1, %p20599_p0 }
   0x8   :  { %20607 = shalt.err (!%p20604_p2)
}
   0x9   :  { %s20608_s21 = scalar_lea.vmem %s17_s13, 4096  ;;  %p20613_p4 = scmp.lt.s32.totalorder %s17_s13, %s17_s13 }
   0xa   :  { %p20609_p3 = scmp.ne.s32.totalorder %s17_s13, %s20608_s21  ;;  %p20614_p5 = scmp.lt.s32.totalorder %s20608_s21, %s20608_s21 }
   0xc   :  { %p20615_p6 = por %p20614_p5, %p20613_p4 }
   0xe   :  { %p20616_p7 = pnand %p20615_p6, %p20609_p3 }
  0x10   :  { %20619 = shalt.err (!%p20616_p7)
}
  0x11   :  { %s20671_s22 = smov 128   ;;  %s20672_s23 = smov 8  }
  0x12   :  { %22 = dma.hbm_to_vmem [thread:$0]  %s26051_s0, 4096, %s17_s13, [#allocation3], %s20671_s22, %s20671_s22, %s20672_s23  }
  0x13   :  { %s20673_s26 = smov [#allocation5]   ;;  %s20620_s30 = scalar_lea.hbm %s26052_s1, 256 }
  0x14   :  { %s28_s27 = sshll.u32 %s20673_s26, 4  ;;  %p20621_p8 = scmp.ne.s32.totalorder %s26052_s1, %s20620_s30  ;;  %s29_s27 = int_to_ptr.vmem [resolvable:$true] %s28_s27 }
  0x15   :  { %p20624_p9 = scmp.lt.u32.totalorder %s20620_s30, %s26052_s1 }
  0x17   :  { %p20626_p10 = pnand %p20624_p9, %p20621_p8 }
  0x19   :  { %20629 = shalt.err (!%p20626_p10)
}
  0x1a   :  { %s20630_s8 = scalar_lea.vmem %s29_s27, 256  ;;  %p20635_p12 = scmp.lt.s32.totalorder %s29_s27, %s29_s27 }
  0x1b   :  { %p20631_p11 = scmp.ne.s32.totalorder %s29_s27, %s20630_s8  ;;  %p20636_p13 = scmp.lt.s32.totalorder %s20630_s8, %s20630_s8 }
  0x1d   :  { %p20637_p0 = por %p20636_p13, %p20635_p12 }
  0x1f   :  { %p20638_p1 = pnand %p20637_p0, %p20631_p11 }
  0x21   :  { %20641 = shalt.err (!%p20638_p1)
}
  0x22   :  { %s20674_s0 = smov 64   ;;  %s20675_s9 = smov 4  }
  0x23   :  { %34 = dma.hbm_to_vmem [thread:$0]  %s26052_s1, 256, %s29_s27, [#allocation6], %s20674_s0, %s20674_s0, %s20675_s9  }
  0x24   :  { %20664 = dma.done.wait [#allocation3], 4096  }
  0x25   :  { %20665 = vsyncadd [#allocation3], 4294963200 }
  0x26   :  { %20666 = dma.done.wait [#allocation6], 256  }
  0x27   :  { %20667 = vsyncadd [#allocation6], 4294967040  ;;  %v20084_v0 = vld [vmem:[#allocation5] sm:$0xff]   ;;  %v20085_v1 = vld [vmem:[#allocation5 + $0x8] sm:$0xff]   ;;  %vm115_vm0 = vcmask 261120   ;;  %v26055_v50 = vmov 0.0  }
  0x28   :  { %18488 = vmatprep.subr.bf16.mxu0 %v20084_v0  ;;  %v44_v2 = vld [vmem:[#allocation2] sm:$0xff]  ;;  %v45_v3 = vld [vmem:[#allocation2 + $0x8] sm:$0xff]  ;;  %v46_v5 = vld [vmem:[#allocation2 + $0x10] sm:$0xff]  ;;  %18524 = vmatprep.subr.bf16.mxu1 %v26055_v50  ;;  %vm20677_vm1 = vmmov 0   ;;  %vm360_vm2 = vcmask 64512   ;;  %s20679_s13 = smov 120  }
  0x29   :  { %18489 = vmatpush3.bf16.msra.mxu0 %v20084_v0  ;;  %v76_v4 = vpack.c.bf16 %v45_v3, %v44_v2  ;;  %v47_v6 = vld [vmem:[#allocation2 + $0x18] sm:$0xff]  ;;  %v48_v7 = vld [vmem:[#allocation2 + $0x20] sm:$0xff]  ;;  %v49_v8 = vld [vmem:[#allocation2 + $0x28] sm:$0xff]  ;;  %18526 = vmatprep.mubr.msk.bf16.mxu1 %vm20677_vm1, %v26055_v50  ;;  %s20680_s14 = smov 56   ;;  %s20681_s15 = smov 88   ;;  %vm16998_vm3 = vcmask 130048  }
  0x2a   :  { %18490 = vmatprep.subr.bf16.mxu0 %v20085_v1  ;;  %v77_v9 = vpack.c.bf16 %v47_v6, %v46_v5  ;;  %v78_v10 = vpack.c.bf16 %v49_v8, %v48_v7  ;;  %v50_v11 = vld [vmem:[#allocation2 + $0x30] sm:$0xff]  ;;  %v51_v12 = vld [vmem:[#allocation2 + $0x38] sm:$0xff]  ;;  %v52_v13 = vld [vmem:[#allocation2 + $0x40] sm:$0xff]  ;;  %s20682_s16 = smov 112   ;;  %s20683_s17 = smov 80   ;;  %vm17031_vm4 = vcmask 195584  }
  0x2b   :  { %18492 = vmatprep.mubr.msk.bf16.mxu0 %vm115_vm0, %v76_v4  ;;  %v53_v14 = vld [vmem:[#allocation2 + $0x48] sm:$0xff]  ;;  %v79_v15 = vpack.c.bf16 %v51_v12, %v50_v11  ;;  %v54_v17 = vld [vmem:[#allocation2 + $0x50] sm:$0xff]  ;;  %v55_v18 = vld [vmem:[#allocation2 + $0x58] sm:$0xff]  ;;  %s20684_s18 = smov 48   ;;  %s20685_s19 = smov 104   ;;  %vm17097_vm5 = vcmask 1041409  }
  0x2c   :  { %v80_v16 = vpack.c.bf16 %v53_v14, %v52_v13  ;;  %v56_v19 = vld [vmem:[#allocation2 + $0x60] sm:$0xff]  ;;  %v57_v20 = vld [vmem:[#allocation2 + $0x68] sm:$0xff]  ;;  %v81_v21 = vpack.c.bf16 %v55_v18, %v54_v17  ;;  %v58_v23 = vld [vmem:[#allocation2 + $0x70] sm:$0xff]  ;;  %s20686_s20 = smov 40   ;;  %s20687_s21 = smov 72   ;;  %vm17100_vm6 = vcmask 1042434  }
  0x2d   :  { %18491 = vmatpush3.bf16.msra.mxu0 %v20085_v1  ;;  %v82_v22 = vpack.c.bf16 %v57_v20, %v56_v19  ;;  %v59_v24 = vld [vmem:[#allocation2 + $0x78] sm:$0xff]  ;;  %v60_v25 = vld [vmem:[#allocation2 + $0x80] sm:$0xff]  ;;  %v61_v26 = vld [vmem:[#allocation2 + $0x88] sm:$0xff]  ;;  %s20688_s22 = smov 16   ;;  %vm17103_vm7 = vcmask 1043459   ;;  %vm17106_vm8 = vcmask 1044484  }
  0x2e   :  { %v83_v27 = vpack.c.bf16 %v59_v24, %v58_v23  ;;  %v84_v28 = vpack.c.bf16 %v61_v26, %v60_v25  ;;  %v62_v29 = vld [vmem:[#allocation2 + $0x90] sm:$0xff]  ;;  %v63_v30 = vld [vmem:[#allocation2 + $0x98] sm:$0xff]  ;;  %v64_v31 = vld [vmem:[#allocation2 + $0xa0] sm:$0xff]  ;;  %18572 = vmatprep.subr.bf16.mxu0 %v26055_v50  ;;  %vm17109_vm9 = vcmask 1045509   ;;  %vm17112_vm10 = vcmask 1046534   ;;  %s20690_s24 = smov 32  }
  0x2f   :  { %v65_v32 = vld [vmem:[#allocation2 + $0xa8] sm:$0xff]  ;;  %v85_v33 = vpack.c.bf16 %v63_v30, %v62_v29  ;;  %v66_v35 = vld [vmem:[#allocation2 + $0xb0] sm:$0xff]  ;;  %v67_v36 = vld [vmem:[#allocation2 + $0xb8] sm:$0xff]  ;;  %vm17115_vm11 = vcmask 1047559   ;;  %vm17635_vm12 = vcmask 523264   ;;  %vm17640_vm13 = vcmask 785408  }
  0x30   :  { %18493 = vmatmul.mubr.msk.bf16.vlgmr.msra.gmra.mrb[0].mxu0 %vm115_vm0, %v77_v9  ;;  %v86_v34 = vpack.c.bf16 %v65_v32, %v64_v31  ;;  %v68_v37 = vld [vmem:[#allocation2 + $0xc0] sm:$0xff]  ;;  %v69_v38 = vld [vmem:[#allocation2 + $0xc8] sm:$0xff]  ;;  %v87_v39 = vpack.c.bf16 %v67_v36, %v66_v35  ;;  %v70_v41 = vld [vmem:[#allocation2 + $0xd0] sm:$0xff]  ;;  %s20691_s25 = smov [#allocation7]  }
  0x31   :  { %18496 = vmatprep.mubr.msk.bf16.mxu0 %vm115_vm0, %v78_v10  ;;  %v88_v40 = vpack.c.bf16 %v69_v38, %v68_v37  ;;  %v71_v42 = vld [vmem:[#allocation2 + $0xd8] sm:$0xff]  ;;  %v72_v43 = vld [vmem:[#allocation2 + $0xe0] sm:$0xff]  ;;  %v73_v44 = vld [vmem:[#allocation2 + $0xe8] sm:$0xff]  ;;  %s17670_s26 = sshll.u32 %s20691_s25, 4  ;;  %s17671_s26 = int_to_ptr.vmem [resolvable:$true] %s17670_s26 }
  0x32   :  { %v89_v45 = vpack.c.bf16 %v71_v42, %v70_v41  ;;  %v90_v46 = vpack.c.bf16 %v73_v44, %v72_v43  ;;  %v74_v47 = vld [vmem:[#allocation2 + $0xf0] sm:$0xff]  ;;  %v75_v48 = vld [vmem:[#allocation2 + $0xf8] sm:$0xff]  ;;  %v20761_v51 = vld [vmem:[%s26053_s2] ss:$0 sm:$0xff]  ;;  %s20678_s2 = smov 96   ;;  %s20642_s27 = scalar_lea.vmem %s17671_s26, 1024 }
  0x33   :  { %v91_v49 = vpack.c.bf16 %v75_v48, %v74_v47  ;;  %p20643_p2 = scmp.ne.s32.totalorder %s17671_s26, %s20642_s27  ;;  %p20647_p3 = scmp.lt.s32.totalorder %s17671_s26, %s17671_s26 }
  0x34   :  { %p20648_p4 = scmp.lt.s32.totalorder %s20642_s27, %s20642_s27 }
  0x36   :  { %p20649_p5 = por %p20648_p4, %p20647_p3 }
  0x38   :  { %18497 = vmatmul.mubr.msk.bf16.gmra.mrb[4].mxu0 %vm115_vm0, %v79_v15  ;;  %p20650_p6 = pnand %p20649_p5, %p20643_p2 }
  0x39   :  { %18500 = vmatprep.mubr.msk.bf16.mxu0 %vm115_vm0, %v80_v16 }
  0x40   :  { %18501 = vmatmul.mubr.msk.bf16.gmra.mrb[8].mxu0 %vm115_vm0, %v81_v21 }
  0x41   :  { %18504 = vmatprep.mubr.msk.bf16.mxu0 %vm115_vm0, %v82_v22 }
  0x48   :  { %18505 = vmatmul.mubr.msk.bf16.gmra.mrb[12].mxu0 %vm115_vm0, %v83_v27 }
  0x49   :  { %18508 = vmatprep.mubr.msk.bf16.mxu0 %vm115_vm0, %v84_v28 }
  0x50   :  { %18509 = vmatmul.mubr.msk.bf16.gmra.mrb[16].mxu0 %vm115_vm0, %v85_v33 }
  0x51   :  { %18512 = vmatprep.mubr.msk.bf16.mxu0 %vm115_vm0, %v86_v34 }
  0x58   :  { %18513 = vmatmul.mubr.msk.bf16.gmra.mrb[20].mxu0 %vm115_vm0, %v87_v39 }
  0x59   :  { %18516 = vmatprep.mubr.msk.bf16.mxu0 %vm115_vm0, %v88_v40 }
  0x60   :  { %18517 = vmatmul.mubr.msk.bf16.gmra.mrb[24].mxu0 %vm115_vm0, %v89_v45 }
  0x61   :  { %18520 = vmatprep.mubr.msk.bf16.mxu0 %vm115_vm0, %v90_v46 }
  0x68   :  { %18521 = vmatmul.mubr.msk.bf16.gmra.mrb[28].mxu0 %vm115_vm0, %v91_v49 }
  0x69   :  { %18574 = vmatprep.mubr.msk.bf16.mxu0 %vm20677_vm1, %v26055_v50 }
 0x103   :  { %v18494_v52 = vpop.f32.mrb[0].mxu0 }
 0x104   :  { %v207_v53 = vadd.f32 %v18494_v52, %v20761_v51  ;;  %v198_v54 = vpop.f32.mrb[1].mxu0 }
 0x105   :  { %v18495_v55 = vpop.f32.mrb[2].mxu0  ;;  %v199_v57 = vadd.f32 %v20761_v51, %v198_v54 }
 0x106   :  { %v20768_v56 = vpack.c.bf16 %v207_v53, %v207_v53  ;;  %v201_v58 = vpop.f32.mrb[3].mxu0  ;;  %v210_v60 = vadd.f32 %v18495_v55, %v20761_v51 }
 0x107   :  { %v20775_v59 = vpack.c.bf16 %v199_v57, %v199_v57  ;;  %v202_v1 = vadd.f32 %v20761_v51, %v201_v58 }
 0x108   :  { %26178 = vst [vmem:[#allocation11_spill] sm:$0xff] %v20768_v56  ;;  %2440 = vrot.lane.b32.xlu0 %v20768_v56, %s20674_s0  ;;  %457 = vrot.lane.b32.xlu1 %v20768_v56, %s20678_s2  ;;  %v20782_v0 = vpack.c.bf16 %v210_v60, %v210_v60 }
 0x109   :  { %26179 = vst [vmem:[#allocation12_spill] sm:$0xff] %v20775_v59  ;;  %v20791_v5 = vpack.c.bf16 %v202_v1, %v202_v1 }
 0x10a   :  { %26180 = vst [vmem:[#allocation13_spill] sm:$0xff] %v20782_v0 }
 0x10b   :  { %v18498_v61 = vpop.f32.mrb[4].mxu0  ;;  %26181 = vst [vmem:[#allocation14_spill] sm:$0xff] %v20791_v5 }
 0x10c   :  { %2310 = vrot.lane.b32.xlu1 %v20775_v59, %s20674_s0  ;;  %358 = vrot.lane.b32.xlu0 %v20775_v59, %s20678_s2  ;;  %v214_v62 = vpop.f32.mrb[5].mxu0  ;;  %v223_v3 = vadd.f32 %v18498_v61, %v20761_v51 }
 0x10d   :  { %v18499_v63 = vpop.f32.mrb[6].mxu0  ;;  %v215_v14 = vadd.f32 %v20761_v51, %v214_v62 }
 0x10e   :  { %v217_v2 = vpop.f32.mrb[7].mxu0  ;;  %v226_v4 = vadd.f32 %v18499_v63, %v20761_v51  ;;  %v20793_v7 = vpack.c.bf16 %v223_v3, %v223_v3 }
 0x10f   :  { %v218_v11 = vadd.f32 %v20761_v51, %v217_v2  ;;  %v20823_v23 = vpack.c.bf16 %v215_v14, %v215_v14 }
 0x110   :  { %506 = vrot.lane.b32.xlu1 %v20782_v0, %s20678_s2  ;;  %2505 = vrot.lane.b32.xlu0 %v20782_v0, %s20674_s0  ;;  %26182 = vst [vmem:[#allocation15_spill] sm:$0xff] %v20793_v7  ;;  %v20795_v8 = vpack.c.bf16 %v226_v4, %v226_v4 }
 0x111   :  { %v20808_v15 = vpack.c.bf16 %v218_v11, %v218_v11  ;;  %26186 = vst [vmem:[#allocation19_spill] sm:$0xff] %v20823_v23 }
 0x112   :  { %26183 = vst [vmem:[#allocation16_spill] sm:$0xff] %v20795_v8 }
 0x113   :  { %v18502_v6 = vpop.f32.mrb[8].mxu0  ;;  %26184 = vst [vmem:[#allocation17_spill] sm:$0xff] %v20808_v15 }
 0x114   :  { %2375 = vrot.lane.b32.xlu1 %v20791_v5, %s20674_s0  ;;  %408 = vrot.lane.b32.xlu0 %v20791_v5, %s20678_s2  ;;  %v230_v9 = vpop.f32.mrb[9].mxu0  ;;  %v239_v35 = vadd.f32 %v18502_v6, %v20761_v51 }
 0x115   :  { %v18503_v10 = vpop.f32.mrb[10].mxu0  ;;  %v231_v49 = vadd.f32 %v20761_v51, %v230_v9 }
 0x116   :  { %v233_v12 = vpop.f32.mrb[11].mxu0  ;;  %v242_v13 = vadd.f32 %v18503_v10, %v20761_v51  ;;  %v20853_v38 = vpack.c.bf16 %v239_v35, %v239_v35 }
 0x117   :  { %v234_v18 = vadd.f32 %v20761_v51, %v233_v12  ;;  %v20887_v61 = vpack.c.bf16 %v231_v49, %v231_v49 }
 0x118   :  { %702 = vrot.lane.b32.xlu1 %v20795_v8, %s20678_s2  ;;  %653 = vrot.lane.b32.xlu0 %v20793_v7, %s20678_s2  ;;  %v20814_v17 = vpack.c.bf16 %v242_v13, %v242_v13  ;;  %26190 = vst [vmem:[#allocation23_spill] sm:$0xff] %v20853_v38 }
 0x119   :  { %v20827_v25 = vpack.c.bf16 %v234_v18, %v234_v18  ;;  %26194 = vst [vmem:[#allocation27_spill] sm:$0xff] %v20887_v61 }
 0x11a   :  { %26185 = vst [vmem:[#allocation18_spill] sm:$0xff] %v20814_v17 }
 0x11b   :  { %v18506_v16 = vpop.f32.mrb[12].mxu0  ;;  %26187 = vst [vmem:[#allocation20_spill] sm:$0xff] %v20827_v25 }
 0x11c   :  { %604 = vrot.lane.b32.xlu1 %v20808_v15, %s20678_s2  ;;  %2700 = vrot.lane.b32.xlu0 %v20793_v7, %s20674_s0  ;;  %v20818_v19 = vadd.f32 %v18506_v16, %v20761_v51  ;;  %v246_v20 = vpop.f32.mrb[13].mxu0 }
 0x11d   :  { %v20821_v21 = vadd.f32 %v20761_v51, %v246_v20  ;;  %v18507_v22 = vpop.f32.mrb[14].mxu0 }
 0x11e   :  { %v249_v24 = vpop.f32.mrb[15].mxu0  ;;  %v258_v26 = vadd.f32 %v18507_v22, %v20761_v51  ;;  %v20919_v18 = vpack.c.bf16 %v20818_v19, %v20818_v19 }
 0x11f   :  { %v250_v29 = vadd.f32 %v20761_v51, %v249_v24  ;;  %v20939_v19 = vpack.c.bf16 %v20821_v21, %v20821_v21 }
 0x120   :  { %555 = vrot.lane.b32.xlu0 %v20823_v23, %s20678_s2  ;;  %898 = vrot.lane.b32.xlu1 %v20814_v17, %s20678_s2  ;;  %v20834_v28 = vpack.c.bf16 %v258_v26, %v258_v26  ;;  %26198 = vst [vmem:[#allocation31_spill] sm:$0xff] %v20919_v18 }
 0x121   :  { %v20848_v36 = vpack.c.bf16 %v250_v29, %v250_v29  ;;  %26201 = vst [vmem:[#allocation34_spill] sm:$0xff] %v20939_v19 }
 0x122   :  { %26188 = vst [vmem:[#allocation21_spill] sm:$0xff] %v20834_v28 }
 0x123   :  { %v18510_v27 = vpop.f32.mrb[16].mxu0  ;;  %26189 = vst [vmem:[#allocation22_spill] sm:$0xff] %v20848_v36 }
 0x124   :  { %2570 = vrot.lane.b32.xlu0 %v20823_v23, %s20674_s0  ;;  %800 = vrot.lane.b32.xlu1 %v20827_v25, %s20678_s2  ;;  %v20840_v30 = vadd.f32 %v18510_v27, %v20761_v51  ;;  %v262_v31 = vpop.f32.mrb[17].mxu0 }
 0x125   :  { %v20843_v32 = vadd.f32 %v20761_v51, %v262_v31  ;;  %v18511_v33 = vpop.f32.mrb[18].mxu0 }
 0x126   :  { %v265_v34 = vpop.f32.mrb[19].mxu0  ;;  %v274_v37 = vadd.f32 %v18511_v33, %v20761_v51  ;;  %v20949_v22 = vpack.c.bf16 %v20840_v30, %v20840_v30 }
 0x127   :  { %v266_v41 = vadd.f32 %v20761_v51, %v265_v34  ;;  %v20959_v21 = vpack.c.bf16 %v20843_v32, %v20843_v32 }
 0x128   :  { %2765 = vrot.lane.b32.xlu0 %v20795_v8, %s20674_s0  ;;  %1094 = vrot.lane.b32.xlu1 %v20834_v28, %s20678_s2  ;;  %v20857_v40 = vpack.c.bf16 %v274_v37, %v274_v37  ;;  %26202 = vst [vmem:[#allocation35_spill] sm:$0xff] %v20949_v22 }
 0x129   :  { %v20868_v47 = vpack.c.bf16 %v266_v41, %v266_v41  ;;  %26203 = vst [vmem:[#allocation36_spill] sm:$0xff] %v20959_v21 }
 0x12a   :  { %26191 = vst [vmem:[#allocation24_spill] sm:$0xff] %v20857_v40 }
 0x12b   :  { %v18514_v39 = vpop.f32.mrb[20].mxu0  ;;  %26192 = vst [vmem:[#allocation25_spill] sm:$0xff] %v20868_v47 }
 0x12c   :  { %2635 = vrot.lane.b32.xlu0 %v20808_v15, %s20674_s0  ;;  %996 = vrot.lane.b32.xlu1 %v20848_v36, %s20678_s2  ;;  %v287_v42 = vadd.f32 %v18514_v39, %v20761_v51  ;;  %v278_v43 = vpop.f32.mrb[21].mxu0 }
 0x12d   :  { %v20864_v44 = vadd.f32 %v20761_v51, %v278_v43  ;;  %v18515_v45 = vpop.f32.mrb[22].mxu0 }
 0x12e   :  { %v281_v46 = vpop.f32.mrb[23].mxu0  ;;  %v290_v48 = vadd.f32 %v18515_v45, %v20761_v51  ;;  %v20967_v24 = vpack.c.bf16 %v287_v42, %v287_v42 }
 0x12f   :  { %v282_v54 = vadd.f32 %v20761_v51, %v281_v46  ;;  %v20977_v29 = vpack.c.bf16 %v20864_v44, %v20864_v44 }
 0x130   :  { %849 = vrot.lane.b32.xlu0 %v20853_v38, %s20678_s2  ;;  %1290 = vrot.lane.b32.xlu1 %v20857_v40, %s20678_s2  ;;  %v20876_v53 = vpack.c.bf16 %v290_v48, %v290_v48  ;;  %26204 = vst [vmem:[#allocation37_spill] sm:$0xff] %v20967_v24 }
 0x131   :  { %v20891_v63 = vpack.c.bf16 %v282_v54, %v282_v54  ;;  %26205 = vst [vmem:[#allocation38_spill] sm:$0xff] %v20977_v29 }
 0x132   :  { %26193 = vst [vmem:[#allocation26_spill] sm:$0xff] %v20876_v53 }
 0x133   :  { %v18518_v52 = vpop.f32.mrb[24].mxu0  ;;  %26195 = vst [vmem:[#allocation28_spill] sm:$0xff] %v20891_v63 }
 0x134   :  { %2960 = vrot.lane.b32.xlu0 %v20853_v38, %s20674_s0  ;;  %1192 = vrot.lane.b32.xlu1 %v20868_v47, %s20678_s2  ;;  %v20882_v55 = vadd.f32 %v18518_v52, %v20761_v51  ;;  %v294_v57 = vpop.f32.mrb[25].mxu0 }
 0x135   :  { %v20885_v58 = vadd.f32 %v20761_v51, %v294_v57  ;;  %v18519_v60 = vpop.f32.mrb[26].mxu0 }
 0x136   :  { %v297_v62 = vpop.f32.mrb[27].mxu0  ;;  %v306_v1 = vadd.f32 %v18519_v60, %v20761_v51  ;;  %v20997_v42 = vpack.c.bf16 %v20882_v55, %v20882_v55 }
 0x137   :  { %v298_v4 = vadd.f32 %v20761_v51, %v297_v62  ;;  %v21013_v46 = vpack.c.bf16 %v20885_v58, %v20885_v58 }
 0x138   :  { %751 = vrot.lane.b32.xlu0 %v20887_v61, %s20678_s2  ;;  %1486 = vrot.lane.b32.xlu1 %v20876_v53, %s20678_s2  ;;  %v20898_v3 = vpack.c.bf16 %v306_v1, %v306_v1  ;;  %26206 = vst [vmem:[#allocation39_spill] sm:$0xff] %v20997_v42 }
 0x139   :  { %v20913_v16 = vpack.c.bf16 %v298_v4, %v298_v4  ;;  %26207 = vst [vmem:[#allocation40_spill] sm:$0xff] %v21013_v46 }
 0x13a   :  { %26196 = vst [vmem:[#allocation29_spill] sm:$0xff] %v20898_v3 }
 0x13b   :  { %v18522_v2 = vpop.f32.mrb[28].mxu0  ;;  %26197 = vst [vmem:[#allocation30_spill] sm:$0xff] %v20913_v16 }
 0x13c   :  { %2830 = vrot.lane.b32.xlu0 %v20887_v61, %s20674_s0  ;;  %1388 = vrot.lane.b32.xlu1 %v20891_v63, %s20678_s2  ;;  %v20904_v6 = vadd.f32 %v18522_v2, %v20761_v51  ;;  %v310_v9 = vpop.f32.mrb[29].mxu0 }
 0x13d   :  { %v20907_v10 = vadd.f32 %v20761_v51, %v310_v9  ;;  %v18523_v11 = vpop.f32.mrb[30].mxu0 }
 0x13e   :  { %v322_v12 = vadd.f32 %v18523_v11, %v20761_v51  ;;  %v313_v13 = vpop.f32.mrb[31].mxu0  ;;  %v21035_v60 = vpack.c.bf16 %v20904_v6, %v20904_v6 }
 0x13f   :  { %v314_v14 = vadd.f32 %v20761_v51, %v313_v13  ;;  %v21049_v4 = vpack.c.bf16 %v20907_v10, %v20907_v10 }
 0x140   :  { %3025 = vrot.lane.b32.xlu0 %v20814_v17, %s20674_s0  ;;  %1682 = vrot.lane.b32.xlu1 %v20898_v3, %s20678_s2  ;;  %v20923_v20 = vpack.c.bf16 %v322_v12, %v322_v12  ;;  %26208 = vst [vmem:[#allocation41_spill] sm:$0xff] %v21035_v60 }
 0x141   :  { %v20929_v51 = vpack.c.bf16 %v314_v14, %v314_v14  ;;  %26209 = vst [vmem:[#allocation42_spill] sm:$0xff] %v21049_v4 }
 0x142   :  { %26199 = vst [vmem:[#allocation32_spill] sm:$0xff] %v20923_v20 }
 0x143   :  { %26200 = vst [vmem:[#allocation33_spill] sm:$0xff] %v20929_v51 }
 0x144   :  { %2895 = vrot.lane.b32.xlu0 %v20827_v25, %s20674_s0  ;;  %1584 = vrot.lane.b32.xlu1 %v20913_v16, %s20678_s2 }
 0x148   :  { %1045 = vrot.lane.b32.xlu0 %v20919_v18, %s20678_s2  ;;  %1878 = vrot.lane.b32.xlu1 %v20923_v20, %s20678_s2 }
 0x14c   :  { %3220 = vrot.lane.b32.xlu0 %v20919_v18, %s20674_s0  ;;  %1780 = vrot.lane.b32.xlu1 %v20929_v51, %s20678_s2 }
 0x150   :  { %947 = vrot.lane.b32.xlu0 %v20939_v19, %s20678_s2 }
 0x154   :  { %3090 = vrot.lane.b32.xlu0 %v20939_v19, %s20674_s0 }
 0x158   :  { %3285 = vrot.lane.b32.xlu0 %v20834_v28, %s20674_s0 }
 0x15c   :  { %3155 = vrot.lane.b32.xlu0 %v20848_v36, %s20674_s0 }
 0x160   :  { %1241 = vrot.lane.b32.xlu0 %v20949_v22, %s20678_s2 }
 0x164   :  { %3480 = vrot.lane.b32.xlu0 %v20949_v22, %s20674_s0 }
 0x168   :  { %1143 = vrot.lane.b32.xlu0 %v20959_v21, %s20678_s2 }
 0x16c   :  { %3350 = vrot.lane.b32.xlu0 %v20959_v21, %s20674_s0 }
 0x170   :  { %3545 = vrot.lane.b32.xlu0 %v20857_v40, %s20674_s0 }
 0x174   :  { %3415 = vrot.lane.b32.xlu0 %v20868_v47, %s20674_s0 }
 0x178   :  { %1437 = vrot.lane.b32.xlu0 %v20967_v24, %s20678_s2 }
 0x17a   :  { %v2441_v26 = vpop.permute.xlu0 %2440  ;;  %v458_v27 = vpop.permute.xlu1 %457 }
 0x17b   :  { %2443 = vxpose.xlu1.c.b16.start.end [1/1] (short) (narrow) %v2441_v26, 16  ;;  %v463_v44 = vsel %vm360_vm2, %v458_v27, 0 }
 0x17c   :  { %3740 = vrot.lane.b32.xlu0 %v20967_v24, %s20674_s0 }
 0x17e   :  { %v20979_v30 = vpop.permute.xlu1 %2310  ;;  %v359_v31 = vpop.permute.xlu0 %358 }
 0x17f   :  { %v365_v32 = vsel %vm360_vm2, %v359_v31, 0 }
 0x180   :  { %1339 = vrot.lane.b32.xlu0 %v20977_v29, %s20678_s2  ;;  %18525 = vmatpush3.bf16.xpose.msra.mxu1 %v365_v32 }
 0x181   :  { %18530 = vmatprep.subr.bf16.mxu1 %v26055_v50 }
 0x182   :  { %v507_v33 = vpop.permute.xlu1 %506  ;;  %v2506_v34 = vpop.permute.xlu0 %2505 }
 0x183   :  { %2508 = vxpose.xlu1.c.b16.start.end [1/1] (short) (narrow) %v2506_v34, 16  ;;  %v512_v49 = vsel %vm360_vm2, %v507_v33, 0 }
 0x184   :  { %3610 = vrot.lane.b32.xlu0 %v20977_v29, %s20674_s0 }
 0x186   :  { %v2376_v35 = vpop.permute.xlu1 %2375  ;;  %v409_v37 = vpop.permute.xlu0 %408 }
 0x187   :  { %v414_v39 = vsel %vm360_vm2, %v409_v37, 0  ;;  %18527 = vmatmul.mubr.msk.bf16.vlgmr.msra.gmra.mrb[0].mxu1 %vm360_vm2, %v20775_v59  ;;  %2378 = vxpose.xlu1.c.b16.start.end [1/1] (short) (narrow) %v2376_v35, 16 }
 0x188   :  { %3805 = vrot.lane.b32.xlu0 %v20876_v53, %s20674_s0  ;;  %18531 = vmatpush3.bf16.xpose.msra.mxu1 %v414_v39 }
 0x189   :  { %18532 = vmatprep.mubr.msk.bf16.mxu1 %vm20677_vm1, %v26055_v50  ;;  %18536 = vmatprep.subr.bf16.mxu1 %v26055_v50 }
 0x18a   :  { %v654_v41 = vpop.permute.xlu0 %653  ;;  %v703_v54 = vpop.permute.xlu1 %702 }
 0x18b   :  { %v659_v12 = vsel %vm360_vm2, %v654_v41, 0  ;;  %v708_v27 = vsel %vm360_vm2, %v703_v54, 0 }
 0x18c   :  { %3675 = vrot.lane.b32.xlu0 %v20891_v63, %s20674_s0 }
 0x18e   :  { %v2701_v43 = vpop.permute.xlu0 %2700  ;;  %v605_v62 = vpop.permute.xlu1 %604 }
 0x18f   :  { %18533 = vmatmul.mubr.msk.bf16.vlgmr.msra.gmra.mrb[4].mxu1 %vm360_vm2, %v20791_v5  ;;  %2703 = vxpose.xlu1.c.b16.start.end [1/1] (short) (narrow) %v2701_v43, 16  ;;  %v610_v2 = vsel %vm360_vm2, %v605_v62, 0 }
 0x190   :  { %1633 = vrot.lane.b32.xlu0 %v20997_v42, %s20678_s2  ;;  %18537 = vmatpush3.bf16.xpose.msra.mxu1 %v463_v44 }
 0x191   :  { %18538 = vmatprep.mubr.msk.bf16.mxu1 %vm20677_vm1, %v26055_v50  ;;  %18542 = vmatprep.subr.bf16.mxu1 %v26055_v50 }
 0x192   :  { %v556_v45 = vpop.permute.xlu0 %555  ;;  %v899_v14 = vpop.permute.xlu1 %898 }
 0x193   :  { %v561_v57 = vsel %vm360_vm2, %v556_v45, 0  ;;  %v904_v43 = vsel %vm360_vm2, %v899_v14, 0 }
 0x194   :  { %4000 = vrot.lane.b32.xlu0 %v20997_v42, %s20674_s0 }
 0x196   :  { %v2571_v48 = vpop.permute.xlu0 %2570  ;;  %v801_v32 = vpop.permute.xlu1 %800 }
 0x197   :  { %18539 = vmatmul.mubr.msk.bf16.vlgmr.msra.gmra.mrb[8].mxu1 %vm360_vm2, %v20768_v56  ;;  %2573 = vxpose.xlu1.c.b16.start.end [1/1] (short) (narrow) %v2571_v48, 16  ;;  %v806_v34 = vsel %vm360_vm2, %v801_v32, 0 }
 0x198   :  { %1535 = vrot.lane.b32.xlu0 %v21013_v46, %s20678_s2  ;;  %18543 = vmatpush3.bf16.xpose.msra.mxu1 %v512_v49 }
 0x199   :  { %18544 = vmatprep.mubr.msk.bf16.mxu1 %vm20677_vm1, %v26055_v50  ;;  %18548 = vmatprep.subr.bf16.mxu1 %v26055_v50 }
 0x19a   :  { %v2766_v52 = vpop.permute.xlu0 %2765  ;;  %v1095_v39 = vpop.permute.xlu1 %1094 }
 0x19b   :  { %2768 = vxpose.xlu1.c.b16.start.end [1/1] (short) (narrow) %v2766_v52, 16 }
 0x19c   :  { %3870 = vrot.lane.b32.xlu0 %v21013_v46, %s20674_s0 }
 0x19e   :  { %v2636_v55 = vpop.permute.xlu0 %2635  ;;  %v997_v48 = vpop.permute.xlu1 %996 }
 0x19f   :  { %18545 = vmatmul.mubr.msk.bf16.vlgmr.msra.gmra.mrb[12].mxu1 %vm360_vm2, %v20782_v0  ;;  %2638 = vxpose.xlu1.c.b16.start.end [1/1] (short) (narrow) %v2636_v55, 16  ;;  %v1002_v52 = vsel %vm360_vm2, %v997_v48, 0 }
 0x1a0   :  { %4065 = vrot.lane.b32.xlu0 %v20898_v3, %s20674_s0  ;;  %18549 = vmatpush3.bf16.xpose.msra.mxu1 %v561_v57 }
 0x1a1   :  { %18550 = vmatprep.mubr.msk.bf16.mxu1 %vm20677_vm1, %v26055_v50  ;;  %18554 = vmatprep.subr.bf16.mxu1 %v26055_v50 }
 0x1a2   :  { %v850_v58 = vpop.permute.xlu0 %849  ;;  %v1291_v55 = vpop.permute.xlu1 %1290 }
 0x1a3   :  { %v855_v13 = vsel %vm360_vm2, %v850_v58, 0  ;;  %v1100_v58 = vsel %vm360_vm2, %v1095_v39, 0  ;;  %v1296_v14 = vsel %vm360_vm2, %v1291_v55, 0 }
 0x1a4   :  { %3935 = vrot.lane.b32.xlu0 %v20913_v16, %s20674_s0 }
 0x1a6   :  { %v2961_v1 = vpop.permute.xlu0 %2960 }
 0x1a7   :  { %18551 = vmatmul.mubr.msk.bf16.vlgmr.msra.gmra.mrb[16].mxu1 %vm360_vm2, %v20823_v23  ;;  %2963 = vxpose.xlu1.c.b16.start.end [1/1] (short) (narrow) %v2961_v1, 16 }
 0x1a8   :  { %1829 = vrot.lane.b32.xlu0 %v21035_v60, %s20678_s2  ;;  %18555 = vmatpush3.bf16.xpose.msra.mxu1 %v610_v2  ;;  %v1193_v2 = vpop.permute.xlu1 %1192 }
 0x1a9   :  { %18556 = vmatprep.mubr.msk.bf16.mxu1 %vm20677_vm1, %v26055_v50  ;;  %18560 = vmatprep.subr.bf16.mxu1 %v26055_v50 }
 0x1aa   :  { %v752_v6 = vpop.permute.xlu0 %751 }
 0x1ab   :  { %v757_v9 = vsel %vm360_vm2, %v752_v6, 0 }
 0x1ac   :  { %1731 = vrot.lane.b32.xlu0 %v21049_v4, %s20678_s2  ;;  %18573 = vmatpush3.bf16.xpose.msra.mxu0 %v757_v9  ;;  %v1198_v9 = vsel %vm360_vm2, %v1193_v2, 0 }
 0x1ad   :  { %18584 = vmatprep.subr.bf16.mxu0 %v26055_v50 }
 0x1ae   :  { %v2831_v11 = vpop.permute.xlu0 %2830 }
 0x1af   :  { %18557 = vmatmul.mubr.msk.bf16.vlgmr.msra.gmra.mrb[20].mxu1 %vm360_vm2, %v20808_v15  ;;  %2833 = vxpose.xlu1.c.b16.start.end [1/1] (short) (narrow) %v2831_v11, 16 }
 0x1b0   :  { %4260 = vrot.lane.b32.xlu0 %v21035_v60, %s20674_s0  ;;  %18561 = vmatpush3.bf16.xpose.msra.mxu1 %v659_v12 }
 0x1b1   :  { %18562 = vmatprep.mubr.msk.bf16.mxu1 %vm20677_vm1, %v26055_v50  ;;  %18566 = vmatprep.subr.bf16.mxu1 %v26055_v50 }
 0x1b2   :  { %v3026_v10 = vpop.permute.xlu0 %3025 }
 0x1b3   :  { %18575 = vmatmul.mubr.msk.bf16.vlgmr.msra.gmra.mrb[32].mxu0 %vm360_vm2, %v20887_v61  ;;  %3028 = vxpose.xlu1.c.b16.start.end [1/1] (short) (narrow) %v3026_v10, 16  ;;  %v1487_v10 = vpop.permute.xlu1 %1486 }
 0x1b4   :  { %4390 = vrot.lane.b32.xlu0 %v20775_v59, %s20679_s13  ;;  %18585 = vmatpush3.bf16.xpose.msra.mxu0 %v855_v13  ;;  %v1492_v39 = vsel %vm360_vm2, %v1487_v10, 0 }
 0x1b5   :  { %18586 = vmatprep.mubr.msk.bf16.mxu0 %vm20677_vm1, %v26055_v50  ;;  %18596 = vmatprep.subr.bf16.mxu0 %v26055_v50 }
 0x1b6   :  { %v2896_v26 = vpop.permute.xlu0 %2895 }
 0x1b7   :  { %18563 = vmatmul.mubr.msk.bf16.vlgmr.msra.gmra.mrb[24].mxu1 %vm360_vm2, %v20793_v7  ;;  %2898 = vxpose.xlu1.c.b16.start.end [1/1] (short) (narrow) %v2896_v26, 16 }
 0x1b8   :  { %4440 = vrot.lane.b32.xlu0 %v20791_v5, %s20679_s13  ;;  %18567 = vmatpush3.bf16.xpose.msra.mxu1 %v708_v27  ;;  %v1389_v27 = vpop.permute.xlu1 %1388 }
 0x1b9   :  { %18568 = vmatprep.mubr.msk.bf16.mxu1 %vm20677_vm1, %v26055_v50  ;;  %18578 = vmatprep.subr.bf16.mxu1 %v26055_v50  ;;  %v1394_v32 = vsel %vm360_vm2, %v1389_v27, 0 }
 0x1ba   :  { %v1046_v31 = vpop.permute.xlu0 %1045 }
 0x1bb   :  { %18587 = vmatmul.mubr.msk.bf16.vlgmr.msra.gmra.mrb[36].mxu0 %vm360_vm2, %v20853_v38  ;;  %v1051_v45 = vsel %vm360_vm2, %v1046_v31, 0 }
 0x1bc   :  { %4490 = vrot.lane.b32.xlu0 %v20768_v56, %s20679_s13  ;;  %18598 = vmatprep.mubr.msk.bf16.mxu0 %vm20677_vm1, %v26055_v50 }
 0x1be   :  { %v3221_v33 = vpop.permute.xlu0 %3220 }
 0x1bf   :  { %18569 = vmatmul.mubr.msk.bf16.vlgmr.msra.gmra.mrb[28].mxu1 %vm360_vm2, %v20795_v8  ;;  %3223 = vxpose.xlu1.c.b16.start.end [1/1] (short) (narrow) %v3221_v33, 16 }
 0x1c0   :  { %4540 = vrot.lane.b32.xlu0 %v20782_v0, %s20679_s13  ;;  %18579 = vmatpush3.bf16.xpose.msra.mxu1 %v806_v34 }
 0x1c1   :  { %18580 = vmatprep.mubr.msk.bf16.mxu1 %vm20677_vm1, %v26055_v50  ;;  %18590 = vmatprep.subr.bf16.mxu1 %v26055_v50 }
 0x1c2   :  { %v948_v35 = vpop.permute.xlu0 %947 }
 0x1c3   :  { %v953_v37 = vsel %vm360_vm2, %v948_v35, 0  ;;  %v1683_v35 = vpop.permute.xlu1 %1682 }
 0x1c4   :  { %4590 = vrot.lane.b32.xlu0 %v20823_v23, %s20679_s13  ;;  %18597 = vmatpush3.bf16.xpose.msra.mxu0 %v953_v37  ;;  %v1688_v55 = vsel %vm360_vm2, %v1683_v35, 0 }
 0x1c5   :  { %18608 = vmatprep.subr.bf16.mxu0 %v26055_v50 }
 0x1c6   :  { %v3091_v41 = vpop.permute.xlu0 %3090 }
 0x1c7   :  { %18581 = vmatmul.mubr.msk.bf16.vlgmr.msra.gmra.mrb[32].mxu1 %vm360_vm2, %v20827_v25  ;;  %3093 = vxpose.xlu1.c.b16.start.end [1/1] (short) (narrow) %v3091_v41, 16 }
 0x1c8   :  { %4640 = vrot.lane.b32.xlu0 %v20808_v15, %s20679_s13  ;;  %18591 = vmatpush3.bf16.xpose.msra.mxu1 %v904_v43  ;;  %v1585_v43 = vpop.permute.xlu1 %1584 }
 0x1c9   :  { %18592 = vmatprep.mubr.msk.bf16.mxu1 %vm20677_vm1, %v26055_v50  ;;  %18602 = vmatprep.subr.bf16.mxu1 %v26055_v50 }
 0x1ca   :  { %v3286_v44 = vpop.permute.xlu0 %3285 }
 0x1cb   :  { %18599 = vmatmul.mubr.msk.bf16.vlgmr.msra.gmra.mrb[40].mxu0 %vm360_vm2, %v20939_v19  ;;  %3288 = vxpose.xlu1.c.b16.start.end [1/1] (short) (narrow) %v3286_v44, 16 }
 0x1cc   :  { %4690 = vrot.lane.b32.xlu0 %v20793_v7, %s20679_s13  ;;  %18609 = vmatpush3.bf16.xpose.msra.mxu0 %v1051_v45  ;;  %v1590_v45 = vsel %vm360_vm2, %v1585_v43, 0 }
 0x1cd   :  { %18610 = vmatprep.mubr.msk.bf16.mxu0 %vm20677_vm1, %v26055_v50  ;;  %18620 = vmatprep.subr.bf16.mxu0 %v26055_v50 }
 0x1ce   :  { %v3156_v49 = vpop.permute.xlu0 %3155 }
 0x1cf   :  { %18593 = vmatmul.mubr.msk.bf16.vlgmr.msra.gmra.mrb[36].mxu1 %vm360_vm2, %v20814_v17  ;;  %3158 = vxpose.xlu1.c.b16.start.end [1/1] (short) (narrow) %v3156_v49, 16 }
 0x1d0   :  { %4740 = vrot.lane.b32.xlu0 %v20795_v8, %s20679_s13  ;;  %18603 = vmatpush3.bf16.xpose.msra.mxu1 %v1002_v52  ;;  %v1879_v52 = vpop.permute.xlu1 %1878 }
 0x1d1   :  { %18604 = vmatprep.mubr.msk.bf16.mxu1 %vm20677_vm1, %v26055_v50  ;;  %18614 = vmatprep.subr.bf16.mxu1 %v26055_v50 }
 0x1d2   :  { %v1242_v54 = vpop.permute.xlu0 %1241 }
 0x1d3   :  { %18611 = vmatmul.mubr.msk.bf16.vlgmr.msra.gmra.mrb[44].mxu0 %vm360_vm2, %v20919_v18  ;;  %v1247_v12 = vsel %vm360_vm2, %v1242_v54, 0 }
 0x1d4   :  { %4790 = vrot.lane.b32.xlu0 %v20887_v61, %s20679_s13  ;;  %18622 = vmatprep.mubr.msk.bf16.mxu0 %vm20677_vm1, %v26055_v50 }
 0x1d6   :  { %v3481_v57 = vpop.permute.xlu0 %3480 }
 0x1d7   :  { %18605 = vmatmul.mubr.msk.bf16.vlgmr.msra.gmra.mrb[40].mxu1 %vm360_vm2, %v20848_v36  ;;  %3483 = vxpose.xlu1.c.b16.start.end [1/1] (short) (narrow) %v3481_v57, 16 }
 0x1d8   :  { %4840 = vrot.lane.b32.xlu0 %v20827_v25, %s20679_s13  ;;  %18615 = vmatpush3.bf16.xpose.msra.mxu1 %v1100_v58  ;;  %v1781_v58 = vpop.permute.xlu1 %1780 }
 0x1d9   :  { %18616 = vmatprep.mubr.msk.bf16.mxu1 %vm20677_vm1, %v26055_v50  ;;  %18626 = vmatprep.subr.bf16.mxu1 %v26055_v50 }
 0x1da   :  { %v1144_v62 = vpop.permute.xlu0 %1143 }
 0x1db   :  { %v1149_v1 = vsel %vm360_vm2, %v1144_v62, 0 }
 0x1dc   :  { %4890 = vrot.lane.b32.xlu0 %v20853_v38, %s20679_s13  ;;  %18621 = vmatpush3.bf16.xpose.msra.mxu0 %v1149_v1  ;;  %v1786_v1 = vsel %vm360_vm2, %v1781_v58, 0 }
 0x1dd   :  { %18632 = vmatprep.subr.bf16.mxu0 %v26055_v50 }
 0x1de   :  { %v3351_v6 = vpop.permute.xlu0 %3350 }
 0x1df   :  { %18617 = vmatmul.mubr.msk.bf16.vlgmr.msra.gmra.mrb[44].mxu1 %vm360_vm2, %v20834_v28  ;;  %3353 = vxpose.xlu1.c.b16.start.end [1/1] (short) (narrow) %v3351_v6, 16 }
 0x1e0   :  { %4940 = vrot.lane.b32.xlu0 %v20814_v17, %s20679_s13  ;;  %18627 = vmatpush3.bf16.xpose.msra.mxu1 %v1198_v9 }
 0x1e1   :  { %18628 = vmatprep.mubr.msk.bf16.mxu1 %vm20677_vm1, %v26055_v50  ;;  %18638 = vmatprep.subr.bf16.mxu1 %v26055_v50 }
 0x1e2   :  { %v3546_v11 = vpop.permute.xlu0 %3545 }
 0x1e3   :  { %18623 = vmatmul.mubr.msk.bf16.vlgmr.msra.gmra.mrb[48].mxu0 %vm360_vm2, %v20959_v21  ;;  %3548 = vxpose.xlu1.c.b16.start.end [1/1] (short) (narrow) %v3546_v11, 16  ;;  %v1884_v11 = vsel %vm360_vm2, %v1879_v52, 0 }
 0x1e4   :  { %4990 = vrot.lane.b32.xlu0 %v20939_v19, %s20679_s13  ;;  %18633 = vmatpush3.bf16.xpose.msra.mxu0 %v1247_v12 }
 0x1e5   :  { %18634 = vmatprep.mubr.msk.bf16.mxu0 %vm20677_vm1, %v26055_v50  ;;  %18644 = vmatprep.subr.bf16.mxu0 %v26055_v50 }
 0x1e6   :  { %v3416_v13 = vpop.permute.xlu0 %3415 }
 0x1e7   :  { %18629 = vmatmul.mubr.msk.bf16.vlgmr.msra.gmra.mrb[48].mxu1 %vm360_vm2, %v20868_v47  ;;  %3418 = vxpose.xlu1.c.b16.start.end [1/1] (short) (narrow) %v3416_v13, 16 }
 0x1e8   :  { %18639 = vmatpush3.bf16.xpose.msra.mxu1 %v1296_v14  ;;  %5040 = vrot.lane.b32.xlu0 %v20848_v36, %s20679_s13 }
 0x1e9   :  { %18640 = vmatprep.mubr.msk.bf16.mxu1 %vm20677_vm1, %v26055_v50  ;;  %18650 = vmatprep.subr.bf16.mxu1 %v26055_v50 }
 0x1ea   :  { %v1438_v26 = vpop.permute.xlu0 %1437 }
 0x1eb   :  { %18635 = vmatmul.mubr.msk.bf16.vlgmr.msra.gmra.mrb[52].mxu0 %vm360_vm2, %v20949_v22  ;;  %v1443_v44 = vsel %vm360_vm2, %v1438_v26, 0 }
 0x1ec   :  { %5090 = vrot.lane.b32.xlu0 %v20919_v18, %s20679_s13  ;;  %18646 = vmatprep.mubr.msk.bf16.mxu0 %vm20677_vm1, %v26055_v50 }
 0x1ee   :  { %v3741_v31 = vpop.permute.xlu0 %3740 }
 0x1ef   :  { %18641 = vmatmul.mubr.msk.bf16.vlgmr.msra.gmra.mrb[52].mxu1 %vm360_vm2, %v20857_v40  ;;  %3743 = vxpose.xlu1.c.b16.start.end [1/1] (short) (narrow) %v3741_v31, 16 }
 0x1f0   :  { %18651 = vmatpush3.bf16.xpose.msra.mxu1 %v1394_v32  ;;  %5140 = vrot.lane.b32.xlu0 %v20834_v28, %s20679_s13 }
 0x1f1   :  { %18652 = vmatprep.mubr.msk.bf16.mxu1 %vm20677_vm1, %v26055_v50  ;;  %18662 = vmatprep.subr.bf16.mxu1 %v26055_v50 }
 0x1f2   :  { %v1340_v33 = vpop.permute.xlu0 %1339 }
 0x1f3   :  { %v1345_v34 = vsel %vm360_vm2, %v1340_v33, 0 }
 0x1f4   :  { %5190 = vrot.lane.b32.xlu0 %v20959_v21, %s20679_s13  ;;  %18645 = vmatpush3.bf16.xpose.msra.mxu0 %v1345_v34 }
 0x1f5   :  { %18656 = vmatprep.subr.bf16.mxu0 %v26055_v50 }
 0x1f6   :  { %v3611_v37 = vpop.permute.xlu0 %3610 }
 0x1f7   :  { %18653 = vmatmul.mubr.msk.bf16.vlgmr.msra.gmra.mrb[56].mxu1 %vm360_vm2, %v20891_v63  ;;  %3613 = vxpose.xlu1.c.b16.start.end [1/1] (short) (narrow) %v3611_v37, 16 }
 0x1f8   :  { %18663 = vmatpush3.bf16.xpose.msra.mxu1 %v1492_v39  ;;  %5240 = vrot.lane.b32.xlu0 %v20868_v47, %s20679_s13 }
 0x1f9   :  { %18664 = vmatprep.mubr.msk.bf16.mxu1 %vm20677_vm1, %v26055_v50  ;;  %18674 = vmatprep.subr.bf16.mxu1 %v26055_v50 }
 0x1fa   :  { %v3806_v41 = vpop.permute.xlu0 %3805 }
 0x1fb   :  { %18647 = vmatmul.mubr.msk.bf16.vlgmr.msra.gmra.mrb[56].mxu0 %vm360_vm2, %v20977_v29  ;;  %3808 = vxpose.xlu1.c.b16.start.end [1/1] (short) (narrow) %v3806_v41, 16 }
 0x1fc   :  { %5290 = vrot.lane.b32.xlu0 %v20949_v22, %s20679_s13  ;;  %18657 = vmatpush3.bf16.xpose.msra.mxu0 %v1443_v44 }
 0x1fd   :  { %18658 = vmatprep.mubr.msk.bf16.mxu0 %vm20677_vm1, %v26055_v50  ;;  %18668 = vmatprep.subr.bf16.mxu0 %v26055_v50 }
 0x1fe   :  { %v3676_v48 = vpop.permute.xlu0 %3675 }
 0x1ff   :  { %18665 = vmatmul.mubr.msk.bf16.vlgmr.msra.gmra.mrb[60].mxu1 %vm360_vm2, %v20876_v53  ;;  %3678 = vxpose.xlu1.c.b16.start.end [1/1] (short) (narrow) %v3676_v48, 16 }
 0x200   :  { %18675 = vmatpush3.bf16.xpose.msra.mxu1 %v1590_v45  ;;  %5340 = vrot.lane.b32.xlu0 %v20857_v40, %s20679_s13 }
 0x201   :  { %18676 = vmatprep.mubr.msk.bf16.mxu1 %vm20677_vm1, %v26055_v50  ;;  %18686 = vmatprep.subr.bf16.mxu1 %v26055_v50 }
 0x202   :  { %v1634_v49 = vpop.permute.xlu0 %1633 }
 0x203   :  { %18659 = vmatmul.mubr.msk.bf16.vlgmr.msra.gmra.mrb[60].mxu0 %vm360_vm2, %v20967_v24  ;;  %v1639_v9 = vsel %vm360_vm2, %v1634_v49, 0 }
 0x204   :  { %5390 = vrot.lane.b32.xlu0 %v20977_v29, %s20679_s13  ;;  %18670 = vmatprep.mubr.msk.bf16.mxu0 %vm20677_vm1, %v26055_v50 }
 0x206   :  { %v4001_v54 = vpop.permute.xlu0 %4000 }
 0x207   :  { %18677 = vmatmul.mubr.msk.bf16.vlgmr.msra.gmra.mrb[64].mxu1 %vm360_vm2, %v20913_v16  ;;  %4003 = vxpose.xlu1.c.b16.start.end [1/1] (short) (narrow) %v4001_v54, 16 }
 0x208   :  { %18687 = vmatpush3.bf16.xpose.msra.mxu1 %v1688_v55  ;;  %5440 = vrot.lane.b32.xlu0 %v20891_v63, %s20679_s13 }
 0x209   :  { %18688 = vmatprep.mubr.msk.bf16.mxu1 %vm20677_vm1, %v26055_v50  ;;  %18698 = vmatprep.subr.bf16.mxu1 %v26055_v50 }
 0x20a   :  { %v1536_v57 = vpop.permute.xlu0 %1535 }
 0x20b   :  { %v1541_v62 = vsel %vm360_vm2, %v1536_v57, 0 }
 0x20c   :  { %5490 = vrot.lane.b32.xlu0 %v20967_v24, %s20679_s13  ;;  %18669 = vmatpush3.bf16.xpose.msra.mxu0 %v1541_v62 }
 0x20d   :  { %18680 = vmatprep.subr.bf16.mxu0 %v26055_v50 }
 0x20e   :  { %v3871_v2 = vpop.permute.xlu0 %3870 }
 0x20f   :  { %18689 = vmatmul.mubr.msk.bf16.vlgmr.msra.gmra.mrb[68].mxu1 %vm360_vm2, %v20898_v3  ;;  %3873 = vxpose.xlu1.c.b16.start.end [1/1] (short) (narrow) %v3871_v2, 16 }
 0x210   :  { %18699 = vmatpush3.bf16.xpose.msra.mxu1 %v1786_v1  ;;  %4130 = vrot.lane.b32.xlu0 %v21049_v4, %s20674_s0 }
 0x211   :  { %18700 = vmatprep.mubr.msk.bf16.mxu1 %vm20677_vm1, %v26055_v50  ;;  %18710 = vmatprep.subr.bf16.mxu1 %v26055_v50 }
 0x212   :  { %v4066_v6 = vpop.permute.xlu0 %4065 }
 0x213   :  { %18671 = vmatmul.mubr.msk.bf16.vlgmr.msra.gmra.mrb[64].mxu0 %vm360_vm2, %v21013_v46  ;;  %4068 = vxpose.xlu1.c.b16.start.end [1/1] (short) (narrow) %v4066_v6, 16 }
 0x214   :  { %4325 = vrot.lane.b32.xlu0 %v20923_v20, %s20674_s0  ;;  %18681 = vmatpush3.bf16.xpose.msra.mxu0 %v1639_v9 }
 0x215   :  { %18682 = vmatprep.mubr.msk.bf16.mxu0 %vm20677_vm1, %v26055_v50  ;;  %18692 = vmatprep.subr.bf16.mxu0 %v26055_v50 }
 0x216   :  { %v3936_v12 = vpop.permute.xlu0 %3935 }
 0x217   :  { %18701 = vmatmul.mubr.msk.bf16.vlgmr.msra.gmra.mrb[72].mxu1 %vm360_vm2, %v20929_v51  ;;  %3938 = vxpose.xlu1.c.b16.start.end [1/1] (short) (narrow) %v3936_v12, 16 }
 0x218   :  { %18711 = vmatpush3.bf16.xpose.msra.mxu1 %v1884_v11  ;;  %4195 = vrot.lane.b32.xlu0 %v20929_v51, %s20674_s0 }
 0x219   :  { %18712 = vmatprep.mubr.msk.bf16.mxu1 %vm20677_vm1, %v26055_v50  ;;  %18722 = vmatprep.subr.bf16.mxu1 %v26055_v50 }
 0x21a   :  { %v1830_v10 = vpop.permute.xlu0 %1829 }
 0x21b   :  { %18683 = vmatmul.mubr.msk.bf16.vlgmr.msra.gmra.mrb[68].mxu0 %vm360_vm2, %v20997_v42  ;;  %v1835_v31 = vsel %vm360_vm2, %v1830_v10, 0  ;;  %v21308_v10 = vpop.trf.xlu1 }
 0x21c   :  { %18694 = vmatprep.mubr.msk.bf16.mxu0 %vm20677_vm1, %v26055_v50 }
 0x21e   :  { %v1732_v13 = vpop.permute.xlu0 %1731 }
 0x21f   :  { %v1737_v14 = vsel %vm360_vm2, %v1732_v13, 0  ;;  %18713 = vmatmul.mubr.msk.bf16.vlgmr.msra.gmra.mrb[76].mxu1 %vm360_vm2, %v20923_v20 }
 0x220   :  { %18693 = vmatpush3.bf16.xpose.msra.mxu0 %v1737_v14  ;;  %18724 = vmatprep.mubr.msk.bf16.mxu1 %vm20677_vm1, %v26055_v50 }
 0x221   :  { %18704 = vmatprep.subr.bf16.mxu0 %v26055_v50 }
 0x222   :  { %v4261_v26 = vpop.permute.xlu0 %4260 }
 0x223   :  { %4263 = vxpose.xlu1.c.b16.start.end [1/1] (short) (narrow) %v4261_v26, 16 }
 0x226   :  { %v21257_v27 = vpop.permute.xlu0 %4390 }
 0x227   :  { %26210 = vst [vmem:[#allocation43_spill] sm:$0xff] %v21257_v27  ;;  %18695 = vmatmul.mubr.msk.bf16.vlgmr.msra.gmra.mrb[72].mxu0 %vm360_vm2, %v21049_v4 }
 0x228   :  { %18705 = vmatpush3.bf16.xpose.msra.mxu0 %v1835_v31  ;;  %18706 = vmatprep.mubr.msk.bf16.mxu0 %vm20677_vm1, %v26055_v50 }
 0x229   :  { %18716 = vmatprep.subr.bf16.mxu0 %v26055_v50 }
 0x22a   :  { %v21265_v32 = vpop.permute.xlu0 %4440 }
 0x22b   :  { %26211 = vst [vmem:[#allocation44_spill] sm:$0xff] %v21265_v32 }
 0x22e   :  { %v21267_v33 = vpop.permute.xlu0 %4490 }
 0x22f   :  { %26212 = vst [vmem:[#allocation45_spill] sm:$0xff] %v21267_v33  ;;  %18707 = vmatmul.mubr.msk.bf16.vlgmr.msra.gmra.mrb[76].mxu0 %vm360_vm2, %v21035_v60 }
 0x230   :  { %18718 = vmatprep.mubr.msk.bf16.mxu0 %vm20677_vm1, %v26055_v50 }
 0x232   :  { %v21273_v34 = vpop.permute.xlu0 %4540 }
 0x233   :  { %26213 = vst [vmem:[#allocation46_spill] sm:$0xff] %v21273_v34 }
 0x236   :  { %2313 = vxpose.xlu0.c.b16.start.end [1/1] (short) (narrow) %v20979_v30, 16  ;;  %v21276_v35 = vpop.permute.xlu0 %4590 }
 0x237   :  { %26214 = vst [vmem:[#allocation47_spill] sm:$0xff] %v21276_v35 }
 0x23a   :  { %v21278_v37 = vpop.permute.xlu0 %4640 }
 0x23b   :  { %26215 = vst [vmem:[#allocation48_spill] sm:$0xff] %v21278_v37 }
 0x23e   :  { %v21280_v39 = vpop.permute.xlu0 %4690 }
 0x23f   :  { %26216 = vst [vmem:[#allocation49_spill] sm:$0xff] %v21280_v39 }
 0x242   :  { %v21282_v41 = vpop.permute.xlu0 %4740 }
 0x243   :  { %26217 = vst [vmem:[#allocation50_spill] sm:$0xff] %v21282_v41 }
 0x246   :  { %v21284_v43 = vpop.permute.xlu0 %4790 }
 0x247   :  { %26218 = vst [vmem:[#allocation51_spill] sm:$0xff] %v21284_v43 }
 0x24a   :  { %v21286_v44 = vpop.permute.xlu0 %4840 }
 0x24b   :  { %26219 = vst [vmem:[#allocation52_spill] sm:$0xff] %v21286_v44 }
 0x24e   :  { %v21288_v45 = vpop.permute.xlu0 %4890 }
 0x24f   :  { %26220 = vst [vmem:[#allocation53_spill] sm:$0xff] %v21288_v45 }
 0x252   :  { %v21290_v48 = vpop.permute.xlu0 %4940 }
 0x253   :  { %26221 = vst [vmem:[#allocation54_spill] sm:$0xff] %v21290_v48 }
 0x256   :  { %v21292_v49 = vpop.permute.xlu0 %4990 }
 0x257   :  { %26222 = vst [vmem:[#allocation55_spill] sm:$0xff] %v21292_v49 }
 0x25a   :  { %v21294_v52 = vpop.f32.mrb[0].mxu1  ;;  %v21296_v30 = vpop.permute.xlu0 %5040 }
 0x25b   :  { %26223 = vst [vmem:[#allocation56_spill] sm:$0xff] %v21296_v30  ;;  %v18528_v54 = vpop.f32.mrb[1].mxu1  ;;  %v1926_v55 = vsel %vm360_vm2, %v21294_v52, -inf }
 0x25c   :  { %v404_v57 = vpop.f32.mrb[2].mxu1  ;;  %1927 = vmax.xlane.f32.xlu0 %v1926_v55 }
 0x25d   :  { %v18529_v58 = vpop.f32.mrb[3].mxu1 }
 0x25e   :  { %v21300_v62 = vpop.permute.xlu0 %5090  ;;  %v21318_v58 = vpop.trf.xlu1 }
 0x25f   :  { %26224 = vst [vmem:[#allocation57_spill] sm:$0xff] %v21300_v62 }
 0x262   :  { %v21302_v1 = vpop.f32.mrb[4].mxu1  ;;  %v21304_v2 = vpop.permute.xlu0 %5140 }
 0x263   :  { %26225 = vst [vmem:[#allocation58_spill] sm:$0xff] %v21304_v2  ;;  %v18534_v6 = vpop.f32.mrb[5].mxu1 }
 0x264   :  { %v453_v9 = vpop.f32.mrb[6].mxu1 }
 0x265   :  { %v18535_v11 = vpop.f32.mrb[7].mxu1 }
 0x266   :  { %v21306_v12 = vpop.permute.xlu0 %5190 }
 0x267   :  { %26226 = vst [vmem:[#allocation59_spill] sm:$0xff] %v21306_v12  ;;  %v21326_v12 = vpop.trf.xlu1 }
 0x26a   :  { %v21310_v13 = vpop.f32.mrb[8].mxu1  ;;  %v21312_v14 = vpop.permute.xlu0 %5240 }
 0x26b   :  { %26227 = vst [vmem:[#allocation60_spill] sm:$0xff] %v21312_v14  ;;  %v18540_v26 = vpop.f32.mrb[9].mxu1  ;;  %v1932_v31 = vsel %vm360_vm2, %v21310_v13, -inf  ;;  %v21334_v2 = vpop.trf.xlu1 }
 0x26c   :  { %v502_v54 = vpop.f32.mrb[10].mxu1  ;;  %1933 = vmax.xlane.f32.xlu0 %v1932_v31 }
 0x26d   :  { %v18541_v55 = vpop.f32.mrb[11].mxu1 }
 0x26e   :  { %v21316_v57 = vpop.permute.xlu0 %5290 }
 0x26f   :  { %26228 = vst [vmem:[#allocation61_spill] sm:$0xff] %v21316_v57  ;;  %v21338_v30 = vpop.trf.xlu1 }
 0x272   :  { %v21320_v6 = vpop.f32.mrb[12].mxu1  ;;  %v21322_v9 = vpop.permute.xlu0 %5340 }
 0x273   :  { %26229 = vst [vmem:[#allocation62_spill] sm:$0xff] %v21322_v9  ;;  %v18546_v11 = vpop.f32.mrb[13].mxu1  ;;  %v1935_v50 = vsel %vm360_vm2, %v21320_v6, -inf }
 0x274   :  { %v551_v14 = vpop.f32.mrb[14].mxu1  ;;  %1936 = vmax.xlane.f32.xlu0 %v1935_v50 }
 0x275   :  { %v18547_v26 = vpop.f32.mrb[15].mxu1 }
 0x276   :  { %v21328_v54 = vpop.permute.xlu0 %5390 }
 0x277   :  { %26230 = vst [vmem:[#allocation63_spill] sm:$0xff] %v21328_v54 }
 0x27a   :  { %v21330_v31 = vpop.f32.mrb[16].mxu1  ;;  %v21332_v55 = vpop.permute.xlu0 %5440 }
 0x27b   :  { %26231 = vst [vmem:[#allocation64_spill] sm:$0xff] %v21332_v55  ;;  %v18552_v57 = vpop.f32.mrb[17].mxu1 }
 0x27c   :  { %v600_v62 = vpop.f32.mrb[18].mxu1 }
 0x27d   :  { %v18553_v9 = vpop.f32.mrb[19].mxu1 }
 0x27e   :  { %v21336_v11 = vpop.permute.xlu0 %5490 }
 0x27f   :  { %26232 = vst [vmem:[#allocation65_spill] sm:$0xff] %v21336_v11  ;;  %v21346_v11 = vpop.trf.xlu1 }
 0x280   :  { %26233 = vst [vmem:[#allocation66_spill] sm:$0xff] %v21346_v11 }
 0x282   :  { %v21340_v14 = vpop.f32.mrb[20].mxu1  ;;  %v4131_v50 = vpop.permute.xlu0 %4130 }
 0x283   :  { %v18558_v26 = vpop.f32.mrb[21].mxu1  ;;  %4133 = vxpose.xlu1.c.b16.start.end [1/1] (short) (narrow) %v4131_v50, 16  ;;  %v1941_v54 = vsel %vm360_vm2, %v21340_v14, -inf }
 0x284   :  { %v649_v49 = vpop.f32.mrb[22].mxu1  ;;  %1942 = vmax.xlane.f32.xlu0 %v1941_v54 }
 0x285   :  { %v18559_v55 = vpop.f32.mrb[23].mxu1  ;;  %v21352_v49 = vpop.trf.xlu1 }
 0x286   :  { %v21344_v57 = vpop.f32.mrb[32].mxu0  ;;  %v4326_v48 = vpop.permute.xlu0 %4325 }
 0x287   :  { %v18576_v62 = vpop.f32.mrb[33].mxu0  ;;  %4328 = vxpose.xlu1.c.b16.start.end [1/1] (short) (narrow) %v4326_v48, 16 }
 0x288   :  { %v796_v9 = vpop.f32.mrb[34].mxu0 }
 0x289   :  { %v18577_v45 = vpop.f32.mrb[35].mxu0  ;;  %v21358_v35 = vpop.trf.xlu1 }
 0x28a   :  { %v21348_v44 = vpop.f32.mrb[24].mxu1  ;;  %v4196_v43 = vpop.permute.xlu0 %4195 }
 0x28b   :  { %v18564_v26 = vpop.f32.mrb[25].mxu1  ;;  %4198 = vxpose.xlu1.c.b16.start.end [1/1] (short) (narrow) %v4196_v43, 16 }
 0x28c   :  { %v698_v50 = vpop.f32.mrb[26].mxu1 }
 0x28d   :  { %v18565_v41 = vpop.f32.mrb[27].mxu1  ;;  %v21364_v50 = vpop.trf.xlu1 }
 0x28e   :  { %v21350_v39 = vpop.f32.mrb[36].mxu0  ;;  %v1929_v41 = vsel %vm360_vm2, %v21302_v1, -inf }
 0x28f   :  { %v18588_v54 = vpop.f32.mrb[37].mxu0 }
 0x290   :  { %v894_v55 = vpop.f32.mrb[38].mxu0 }
 0x291   :  { %v18589_v37 = vpop.f32.mrb[39].mxu0  ;;  %v1950_v55 = vsel %vm360_vm2, %v21344_v57, -inf  ;;  %v21374_v33 = vpop.trf.xlu1 }
 0x292   :  { %v21354_v62 = vpop.f32.mrb[28].mxu1  ;;  %26234 = vst [vmem:[#allocation67_spill] sm:$0xff] %v21374_v33 }
 0x293   :  { %v18570_v48 = vpop.f32.mrb[29].mxu1  ;;  %v1947_v45 = vsel %vm360_vm2, %v21354_v62, -inf }
 0x294   :  { %v747_v9 = vpop.f32.mrb[30].mxu1  ;;  %1948 = vmax.xlane.f32.xlu0 %v1947_v45 }
 0x295   :  { %v18571_v43 = vpop.f32.mrb[31].mxu1 }
 0x298   :  { %1930 = vmax.xlane.f32.xlu1 %v1929_v41  ;;  %v1956_v41 = vsel %vm360_vm2, %v21350_v39, -inf }
 0x29a   :  { %v21362_v26 = vpop.f32.mrb[32].mxu1 }
 0x29b   :  { %v18582_v37 = vpop.f32.mrb[33].mxu1  ;;  %v1953_v54 = vsel %vm360_vm2, %v21362_v26, -inf }
 0x29c   :  { %v845_v48 = vpop.f32.mrb[34].mxu1  ;;  %1954 = vmax.xlane.f32.xlu0 %v1953_v54  ;;  %1951 = vmax.xlane.f32.xlu1 %v1950_v55  ;;  %v1938_v54 = vsel %vm360_vm2, %v21330_v31, -inf }
 0x29d   :  { %v18583_v45 = vpop.f32.mrb[35].mxu1 }
 0x29e   :  { %v21370_v9 = vpop.f32.mrb[40].mxu0 }
 0x29f   :  { %v18600_v43 = vpop.f32.mrb[41].mxu0 }
 0x2a0   :  { %v992_v34 = vpop.f32.mrb[42].mxu0  ;;  %1957 = vmax.xlane.f32.xlu1 %v1956_v41 }
 0x2a1   :  { %v18601_v37 = vpop.f32.mrb[43].mxu0  ;;  %v21384_v34 = vpop.trf.xlu1 }
 0x2a2   :  { %v21376_v32 = vpop.f32.mrb[36].mxu1  ;;  %26235 = vst [vmem:[#allocation68_spill] sm:$0xff] %v21384_v34  ;;  %v1962_v37 = vsel %vm360_vm2, %v21370_v9, -inf }
 0x2a3   :  { %v18594_v27 = vpop.f32.mrb[37].mxu1  ;;  %v1959_v48 = vsel %vm360_vm2, %v21376_v32, -inf }
 0x2a4   :  { %v943_v55 = vpop.f32.mrb[38].mxu1  ;;  %1960 = vmax.xlane.f32.xlu0 %v1959_v48  ;;  %1939 = vmax.xlane.f32.xlu1 %v1938_v54 }
 0x2a5   :  { %v18595_v45 = vpop.f32.mrb[39].mxu1 }
 0x2a6   :  { %v21382_v43 = vpop.f32.mrb[44].mxu0  ;;  %v21394_v45 = vpop.trf.xlu1 }
 0x2a7   :  { %v18612_v41 = vpop.f32.mrb[45].mxu0  ;;  %v1968_v48 = vsel %vm360_vm2, %v21382_v43, -inf  ;;  %26236 = vst [vmem:[#allocation69_spill] sm:$0xff] %v21394_v45 }
 0x2a8   :  { %v1090_v24 = vpop.f32.mrb[46].mxu0  ;;  %1963 = vmax.xlane.f32.xlu1 %v1962_v37 }
 0x2a9   :  { %v18613_v27 = vpop.f32.mrb[47].mxu0  ;;  %v1944_v24 = vsel %vm360_vm2, %v21348_v44, -inf }
 0x2aa   :  { %v21388_v29 = vpop.f32.mrb[40].mxu1  ;;  %v21400_v27 = vpop.trf.xlu1 }
 0x2ab   :  { %v18606_v22 = vpop.f32.mrb[41].mxu1  ;;  %v1965_v55 = vsel %vm360_vm2, %v21388_v29, -inf  ;;  %26237 = vst [vmem:[#allocation70_spill] sm:$0xff] %v21400_v27 }
 0x2ac   :  { %v1041_v54 = vpop.f32.mrb[42].mxu1  ;;  %1966 = vmax.xlane.f32.xlu0 %v1965_v55  ;;  %1969 = vmax.xlane.f32.xlu1 %v1968_v48 }
 0x2ad   :  { %v18607_v41 = vpop.f32.mrb[43].mxu1 }
 0x2b0   :  { %1945 = vmax.xlane.f32.xlu1 %v1944_v24  ;;  %v21408_v24 = vpop.trf.xlu1 }
 0x2b1   :  { %26238 = vst [vmem:[#allocation71_spill] sm:$0xff] %v21408_v24 }
 0x2b2   :  { %v21398_v37 = vpop.f32.mrb[44].mxu1 }
 0x2b3   :  { %v18618_v22 = vpop.f32.mrb[45].mxu1  ;;  %v1971_v21 = vsel %vm360_vm2, %v21398_v37, -inf }
 0x2b4   :  { %v1139_v18 = vpop.f32.mrb[46].mxu1  ;;  %1972 = vmax.xlane.f32.xlu0 %v1971_v21 }
 0x2b5   :  { %v18619_v54 = vpop.f32.mrb[47].mxu1 }
 0x2b6   :  { %v21404_v55 = vpop.f32.mrb[48].mxu0 }
 0x2b7   :  { %v18624_v48 = vpop.f32.mrb[49].mxu0  ;;  %v1974_v41 = vsel %vm360_vm2, %v21404_v55, -inf }
 0x2b8   :  { %v1188_v19 = vpop.f32.mrb[50].mxu0  ;;  %1975 = vmax.xlane.f32.xlu1 %v1974_v41  ;;  %v21416_v48 = vpop.trf.xlu1 }
 0x2b9   :  { %v18625_v38 = vpop.f32.mrb[51].mxu0  ;;  %26239 = vst [vmem:[#allocation72_spill] sm:$0xff] %v21416_v48 }
 0x2ba   :  { %v21410_v61 = vpop.f32.mrb[48].mxu1 }
 0x2bb   :  { %v18630_v22 = vpop.f32.mrb[49].mxu1  ;;  %v1977_v7 = vsel %vm360_vm2, %v21410_v61, -inf }
 0x2bc   :  { %v1237_v18 = vpop.f32.mrb[50].mxu1  ;;  %1978 = vmax.xlane.f32.xlu0 %v1977_v7  ;;  %v21424_v7 = vpop.trf.xlu1 }
 0x2bd   :  { %v18631_v21 = vpop.f32.mrb[51].mxu1  ;;  %26240 = vst [vmem:[#allocation73_spill] sm:$0xff] %v21424_v7 }
 0x2be   :  { %v21414_v54 = vpop.f32.mrb[52].mxu0 }
 0x2bf   :  { %v18636_v23 = vpop.f32.mrb[53].mxu0  ;;  %v1980_v19 = vsel %vm360_vm2, %v21414_v54, -inf }
 0x2c0   :  { %v1286_v41 = vpop.f32.mrb[54].mxu0  ;;  %1981 = vmax.xlane.f32.xlu1 %v1980_v19  ;;  %v21428_v23 = vpop.trf.xlu1 }
 0x2c1   :  { %v18637_v38 = vpop.f32.mrb[55].mxu0  ;;  %26241 = vst [vmem:[#allocation74_spill] sm:$0xff] %v21428_v23 }
 0x2c2   :  { %v21420_v56 = vpop.f32.mrb[52].mxu1 }
 0x2c3   :  { %v18642_v22 = vpop.f32.mrb[53].mxu1  ;;  %v1983_v24 = vsel %vm360_vm2, %v21420_v56, -inf }
 0x2c4   :  { %v1335_v18 = vpop.f32.mrb[54].mxu1  ;;  %1984 = vmax.xlane.f32.xlu0 %v1983_v24 }
 0x2c5   :  { %v18643_v21 = vpop.f32.mrb[55].mxu1 }
 0x2c6   :  { %v21436_v21 = vpop.trf.xlu1 }
 0x2c7   :  { %26242 = vst [vmem:[#allocation75_spill] sm:$0xff] %v21436_v21 }
 0x2ca   :  { %v21426_v63 = vpop.f32.mrb[56].mxu1 }
 0x2cb   :  { %v18654_v48 = vpop.f32.mrb[57].mxu1  ;;  %v1989_v19 = vsel %vm360_vm2, %v21426_v63, -inf }
 0x2cc   :  { %v1433_v41 = vpop.f32.mrb[58].mxu1  ;;  %1990 = vmax.xlane.f32.xlu0 %v1989_v19 }
 0x2cd   :  { %v18655_v38 = vpop.f32.mrb[59].mxu1 }
 0x2ce   :  { %v21432_v22 = vpop.f32.mrb[56].mxu0 }
 0x2cf   :  { %v18648_v40 = vpop.f32.mrb[57].mxu0  ;;  %v1986_v24 = vsel %vm360_vm2, %v21432_v22, -inf }
 0x2d0   :  { %v1384_v18 = vpop.f32.mrb[58].mxu0  ;;  %1987 = vmax.xlane.f32.xlu1 %v1986_v24  ;;  %v21444_v40 = vpop.trf.xlu1 }
 0x2d1   :  { %v18649_v47 = vpop.f32.mrb[59].mxu0  ;;  %26243 = vst [vmem:[#allocation76_spill] sm:$0xff] %v21444_v40 }
 0x2d2   :  { %v21438_v33 = vpop.f32.mrb[60].mxu1 }
 0x2d3   :  { %v18666_v48 = vpop.f32.mrb[61].mxu1  ;;  %v1995_v28 = vsel %vm360_vm2, %v21438_v33, -inf }
 0x2d4   :  { %v1531_v41 = vpop.f32.mrb[62].mxu1  ;;  %1996 = vmax.xlane.f32.xlu0 %v1995_v28  ;;  %v21452_v28 = vpop.trf.xlu1 }
 0x2d5   :  { %v18667_v19 = vpop.f32.mrb[63].mxu1  ;;  %26244 = vst [vmem:[#allocation77_spill] sm:$0xff] %v21452_v28  ;;  %v21466_v28 = vpop.trf.xlu0 }
 0x2d6   :  { %v21442_v38 = vpop.f32.mrb[60].mxu0 }
 0x2d7   :  { %v18660_v7 = vpop.f32.mrb[61].mxu0  ;;  %v1992_v24 = vsel %vm360_vm2, %v21442_v38, -inf }
 0x2d8   :  { %v1482_v18 = vpop.f32.mrb[62].mxu0  ;;  %1993 = vmax.xlane.f32.xlu1 %v1992_v24  ;;  %v21456_v7 = vpop.trf.xlu1 }
 0x2d9   :  { %v18661_v47 = vpop.f32.mrb[63].mxu0  ;;  %26245 = vst [vmem:[#allocation78_spill] sm:$0xff] %v21456_v7 }
 0x2da   :  { %v21448_v21 = vpop.f32.mrb[64].mxu1 }
 0x2db   :  { %v18678_v48 = vpop.f32.mrb[65].mxu1  ;;  %v2001_v36 = vsel %vm360_vm2, %v21448_v21, -inf }
 0x2dc   :  { %v1629_v41 = vpop.f32.mrb[66].mxu1  ;;  %2002 = vmax.xlane.f32.xlu0 %v2001_v36 }
 0x2dd   :  { %v18679_v19 = vpop.f32.mrb[67].mxu1 }
 0x2de   :  { %v21464_v19 = vpop.trf.xlu1 }
 0x2df   :  { %26246 = vst [vmem:[#allocation79_spill] sm:$0xff] %v21464_v19 }
 0x2e2   :  { %v21454_v34 = vpop.f32.mrb[68].mxu1  ;;  %v21474_v25 = vpop.trf.xlu1 }
 0x2e3   :  { %v18690_v40 = vpop.f32.mrb[69].mxu1  ;;  %v2007_v24 = vsel %vm360_vm2, %v21454_v34, -inf  ;;  %26247 = vst [vmem:[#allocation80_spill] sm:$0xff] %v21474_v25 }
 0x2e4   :  { %v1727_v18 = vpop.f32.mrb[70].mxu1  ;;  %2008 = vmax.xlane.f32.xlu0 %v2007_v24 }
 0x2e5   :  { %v18691_v47 = vpop.f32.mrb[71].mxu1 }
 0x2e6   :  { %v21460_v48 = vpop.f32.mrb[64].mxu0  ;;  %v21483_v25 = vpop.trf.xlu1 }
 0x2e7   :  { %v18672_v17 = vpop.f32.mrb[65].mxu0  ;;  %v1998_v36 = vsel %vm360_vm2, %v21460_v48, -inf  ;;  %26248 = vst [vmem:[#allocation81_spill] sm:$0xff] %v21483_v25 }
 0x2e8   :  { %v1580_v41 = vpop.f32.mrb[66].mxu0  ;;  %1999 = vmax.xlane.f32.xlu1 %v1998_v36 }
 0x2e9   :  { %v18673_v7 = vpop.f32.mrb[67].mxu0  ;;  %v1928_v41 = vpop.xlane.xlu0 %1927 }
 0x2ea   :  { %v21468_v40 = vpop.f32.mrb[72].mxu1 }
 0x2eb   :  { %v18702_v23 = vpop.f32.mrb[73].mxu1  ;;  %v2013_v24 = vsel %vm360_vm2, %v21468_v40, -inf }
 0x2ec   :  { %v1825_v18 = vpop.f32.mrb[74].mxu1  ;;  %2014 = vmax.xlane.f32.xlu0 %v2013_v24  ;;  %v2022_v23 = vsub.f32 %v21294_v52, %v1928_v41 }
 0x2ed   :  { %v18703_v47 = vpop.f32.mrb[75].mxu1 }
 0x2ee   :  { %v21472_v17 = vpop.f32.mrb[68].mxu0 }
 0x2ef   :  { %v18684_v36 = vpop.f32.mrb[69].mxu0  ;;  %v2004_v19 = vsel %vm360_vm2, %v21472_v17, -inf }
 0x2f0   :  { %v1678_v11 = vpop.f32.mrb[70].mxu0  ;;  %2005 = vmax.xlane.f32.xlu1 %v2004_v19  ;;  %v2054_v36 = vmul.f32 1.442695, %v2022_v23 }
 0x2f1   :  { %v18685_v7 = vpop.f32.mrb[71].mxu0 }
 0x2f2   :  { %v21479_v8 = vpop.f32.mrb[76].mxu1  ;;  %20086 = vpow2.f32 %v2054_v36 }
 0x2f3   :  { %v18714_v45 = vpop.f32.mrb[77].mxu1  ;;  %v2019_v24 = vsel %vm360_vm2, %v21479_v8, -inf }
 0x2f4   :  { %v1923_v18 = vpop.f32.mrb[78].mxu1  ;;  %2020 = vmax.xlane.f32.xlu0 %v2019_v24  ;;  %v21490_v45 = vpop.trf.xlu1 }
 0x2f5   :  { %v18715_v47 = vpop.f32.mrb[79].mxu1  ;;  %26249 = vst [vmem:[#allocation82_spill] sm:$0xff] %v21490_v45 }
 0x2f8   :  { %v21492_v18 = vpop.trf.xlu1 }
 0x2f9   :  { %v1934_v15 = vpop.xlane.xlu0 %1933  ;;  %26250 = vst [vmem:[#allocation83_spill] sm:$0xff] %v21492_v18 }
 0x2fa   :  { %v2024_v11 = vsub.f32 %v21310_v13, %v1934_v15  ;;  %v21486_v19 = vpop.f32.mrb[72].mxu0 }
 0x2fb   :  { %v18696_v7 = vpop.f32.mrb[73].mxu0  ;;  %v2010_v52 = vsel %vm360_vm2, %v21486_v19, -inf }
 0x2fc   :  { %v2058_v41 = vmul.f32 1.442695, %v2024_v11  ;;  %v1776_v0 = vpop.f32.mrb[74].mxu0  ;;  %2011 = vmax.xlane.f32.xlu1 %v2010_v52  ;;  %v21498_v13 = vpop.eup %20086 }
 0x2fd   :  { %v18697_v24 = vpop.f32.mrb[75].mxu0  ;;  %v2118_v11 = vsel %vm360_vm2, %v21498_v13, 0.0  ;;  %v21502_v0 = vpop.trf.xlu1 }
 0x2fe   :  { %20088 = vpow2.f32 %v2058_v41  ;;  %26251 = vst [vmem:[#allocation84_spill] sm:$0xff] %v21502_v0 }
 0x301   :  { %v21508_v24 = vpop.trf.xlu1 }
 0x302   :  { %v21494_v23 = vpop.f32.mrb[76].mxu0  ;;  %26252 = vst [vmem:[#allocation85_spill] sm:$0xff] %v21508_v24 }
 0x303   :  { %v18708_v47 = vpop.f32.mrb[77].mxu0  ;;  %v2016_v15 = vsel %vm360_vm2, %v21494_v23, -inf }
 0x304   :  { %v1874_v36 = vpop.f32.mrb[78].mxu0  ;;  %2017 = vmax.xlane.f32.xlu1 %v2016_v15 }
 0x305   :  { %v18709_v7 = vpop.f32.mrb[79].mxu0  ;;  %v21510_v47 = vpop.trf.xlu1 }
 0x306   :  { %26253 = vst [vmem:[#allocation86_spill] sm:$0xff] %v21510_v47  ;;  %v1937_v36 = vpop.xlane.xlu0 %1936 }
 0x307   :  { %v2025_v7 = vsub.f32 %v21320_v6, %v1937_v36 }
 0x308   :  { %v21504_v52 = vpop.eup %20088  ;;  %2119 = vadd.xlane.f32.xlu1 %v2118_v11 }
 0x309   :  { %v2124_v41 = vsel %vm360_vm2, %v21504_v52, 0.0  ;;  %v21512_v18 = vpop.trf.xlu1  ;;  %v2060_v11 = vmul.f32 1.442695, %v2025_v7 }
 0x30a   :  { %26254 = vst [vmem:[#allocation87_spill] sm:$0xff] %v21512_v18 }
 0x30c   :  { %2125 = vadd.xlane.f32.xlu1 %v2124_v41 }
 0x30d   :  { %v21514_v15 = vpop.trf.xlu1 }
 0x30e   :  { %26255 = vst [vmem:[#allocation88_spill] sm:$0xff] %v21514_v15 }
 0x311   :  { %v1943_v25 = vpop.xlane.xlu0 %1942 }
 0x312   :  { %v2027_v27 = vsub.f32 %v21340_v14, %v1943_v25 }
 0x314   :  { %v2064_v47 = vmul.f32 1.442695, %v2027_v27 }
 0x325   :  { %v1931_v0 = vpop.xlane.xlu1 %1930 }
 0x326   :  { %v2023_v45 = vsub.f32 %v21302_v1, %v1931_v0 }
 0x328   :  { %v2056_v5 = vmul.f32 1.442695, %v2023_v45 }
 0x329   :  { %v1952_v41 = vpop.xlane.xlu1 %1951 }
 0x32a   :  { %20090 = vpow2.f32 %v2056_v5  ;;  %v2030_v24 = vsub.f32 %v21344_v57, %v1952_v41 }
 0x32b   :  { %20092 = vpow2.f32 %v2060_v11 }
 0x32c   :  { %v2070_v18 = vmul.f32 1.442695, %v2030_v24 }
 0x32d   :  { %v1958_v59 = vpop.xlane.xlu1 %1957 }
 0x32e   :  { %20094 = vpow2.f32 %v2070_v18  ;;  %v2032_v15 = vsub.f32 %v21350_v39, %v1958_v59 }
 0x32f   :  { %20096 = vpow2.f32 %v2064_v47 }
 0x330   :  { %v2074_v6 = vmul.f32 1.442695, %v2032_v15 }
 0x331   :  { %v1940_v36 = vpop.xlane.xlu1 %1939 }
 0x332   :  { %20098 = vpow2.f32 %v2074_v6  ;;  %v2026_v1 = vsub.f32 %v21330_v31, %v1940_v36 }
 0x334   :  { %v21522_v0 = vpop.eup %20090  ;;  %v2062_v25 = vmul.f32 1.442695, %v2026_v1 }
 0x335   :  { %v1964_v14 = vpop.xlane.xlu1 %1963  ;;  %v2121_v5 = vsel %vm360_vm2, %v21522_v0, 0.0  ;;  %v21526_v57 = vpop.eup %20092 }
 0x336   :  { %20100 = vpow2.f32 %v2062_v25  ;;  %v2034_v27 = vsub.f32 %v21370_v9, %v1964_v14  ;;  %2122 = vadd.xlane.f32.xlu0 %v2121_v5  ;;  %v2127_v18 = vsel %vm360_vm2, %v21526_v57, 0.0 }
 0x338   :  { %v21529_v59 = vpop.eup %20094  ;;  %v2078_v39 = vmul.f32 1.442695, %v2034_v27 }
 0x339   :  { %v1970_v45 = vpop.xlane.xlu1 %1969  ;;  %v2142_v31 = vsel %vm360_vm2, %v21529_v59, 0.0  ;;  %v21535_v24 = vpop.eup %20096 }
 0x33a   :  { %20102 = vpow2.f32 %v2078_v39  ;;  %v2036_v47 = vsub.f32 %v21382_v43, %v1970_v45  ;;  %2143 = vadd.xlane.f32.xlu1 %v2142_v31  ;;  %2128 = vadd.xlane.f32.xlu0 %v2127_v18  ;;  %v2133_v41 = vsel %vm360_vm2, %v21535_v24, 0.0 }
 0x33c   :  { %v21538_v15 = vpop.eup %20098  ;;  %v2082_v9 = vmul.f32 1.442695, %v2036_v47 }
 0x33d   :  { %v1946_v7 = vpop.xlane.xlu1 %1945  ;;  %v2148_v11 = vsel %vm360_vm2, %v21538_v15, 0.0 }
 0x33e   :  { %20104 = vpow2.f32 %v2082_v9  ;;  %v2028_v6 = vsub.f32 %v21348_v44, %v1946_v7  ;;  %2149 = vadd.xlane.f32.xlu1 %v2148_v11  ;;  %2134 = vadd.xlane.f32.xlu0 %v2133_v41  ;;  %v1949_v41 = vpop.xlane.xlu0 %1948 }
 0x340   :  { %v21545_v36 = vpop.eup %20100  ;;  %v2066_v43 = vmul.f32 1.442695, %v2028_v6 }
 0x341   :  { %v2130_v1 = vsel %vm360_vm2, %v21545_v36, 0.0 }
 0x342   :  { %20106 = vpow2.f32 %v2066_v43  ;;  %2131 = vadd.xlane.f32.xlu1 %v2130_v1  ;;  %v2029_v43 = vsub.f32 %v21354_v62, %v1949_v41 }
 0x344   :  { %v21549_v25 = vpop.eup %20102 }
 0x345   :  { %v1976_v14 = vpop.xlane.xlu1 %1975  ;;  %v2154_v5 = vsel %vm360_vm2, %v21549_v25, 0.0 }
 0x346   :  { %v2038_v27 = vsub.f32 %v21404_v55, %v1976_v14  ;;  %2155 = vadd.xlane.f32.xlu1 %v2154_v5  ;;  %v1955_v14 = vpop.xlane.xlu0 %1954 }
 0x348   :  { %v21554_v44 = vpop.eup %20104  ;;  %v2086_v39 = vmul.f32 1.442695, %v2038_v27 }
 0x349   :  { %v2160_v45 = vsel %vm360_vm2, %v21554_v44, 0.0 }
 0x34a   :  { %20108 = vpow2.f32 %v2086_v39  ;;  %2161 = vadd.xlane.f32.xlu1 %v2160_v45  ;;  %v2068_v39 = vmul.f32 1.442695, %v2029_v43  ;;  %v2031_v45 = vsub.f32 %v21362_v26, %v1955_v14 }
 0x34c   :  { %v21558_v31 = vpop.eup %20106 }
 0x34d   :  { %v1982_v18 = vpop.xlane.xlu1 %1981  ;;  %v2136_v47 = vsel %vm360_vm2, %v21558_v31, 0.0 }
 0x34e   :  { %v2040_v9 = vsub.f32 %v21414_v54, %v1982_v18  ;;  %2137 = vadd.xlane.f32.xlu1 %v2136_v47  ;;  %v1961_v18 = vpop.xlane.xlu0 %1960  ;;  %v2072_v47 = vmul.f32 1.442695, %v2031_v45 }
 0x350   :  { %v2090_v7 = vmul.f32 1.442695, %v2040_v9  ;;  %v2033_v9 = vsub.f32 %v21376_v32, %v1961_v18 }
 0x352   :  { %20110 = vpow2.f32 %v2090_v7  ;;  %v1967_v62 = vpop.xlane.xlu0 %1966 }
 0x354   :  { %v21563_v55 = vpop.eup %20108  ;;  %5540 = vrot.lane.b32.xlu0 %v20876_v53, %s20679_s13  ;;  %v2076_v53 = vmul.f32 1.442695, %v2033_v9 }
 0x355   :  { %v2166_v11 = vsel %vm360_vm2, %v21563_v55, 0.0 }
 0x356   :  { %2167 = vadd.xlane.f32.xlu1 %v2166_v11 }
 0x35c   :  { %v21569_v6 = vpop.eup %20110 }
 0x35d   :  { %v1988_v1 = vpop.xlane.xlu1 %1987  ;;  %v2172_v54 = vsel %vm360_vm2, %v21569_v6, 0.0 }
 0x35e   :  { %v2042_v5 = vsub.f32 %v21432_v22, %v1988_v1  ;;  %2173 = vadd.xlane.f32.xlu1 %v2172_v54  ;;  %v2035_v22 = vsub.f32 %v21388_v29, %v1967_v62  ;;  %v1973_v1 = vpop.xlane.xlu0 %1972 }
 0x35f   :  { %v2037_v54 = vsub.f32 %v21398_v37, %v1973_v1 }
 0x360   :  { %v2094_v27 = vmul.f32 1.442695, %v2042_v5  ;;  %v2080_v26 = vmul.f32 1.442695, %v2035_v22 }
 0x362   :  { %20112 = vpow2.f32 %v2094_v27  ;;  %v1979_v14 = vpop.xlane.xlu0 %1978 }
 0x363   :  { %20114 = vpow2.f32 %v2068_v39  ;;  %v2039_v27 = vsub.f32 %v21410_v61, %v1979_v14 }
 0x364   :  { %20116 = vpow2.f32 %v2072_v47 }
 0x365   :  { %v1994_v7 = vpop.xlane.xlu1 %1993  ;;  %v2088_v37 = vmul.f32 1.442695, %v2039_v27 }
 0x366   :  { %v2044_v11 = vsub.f32 %v21442_v38, %v1994_v7  ;;  %v2084_v38 = vmul.f32 1.442695, %v2037_v54  ;;  %v1985_v29 = vpop.xlane.xlu0 %1984 }
 0x367   :  { %v2041_v18 = vsub.f32 %v21420_v56, %v1985_v29 }
 0x368   :  { %v2098_v41 = vmul.f32 1.442695, %v2044_v11 }
 0x369   :  { %v2092_v22 = vmul.f32 1.442695, %v2041_v18 }
 0x36a   :  { %20118 = vpow2.f32 %v2098_v41  ;;  %v1991_v7 = vpop.xlane.xlu0 %1990 }
 0x36b   :  { %20120 = vpow2.f32 %v2076_v53  ;;  %v2043_v1 = vsub.f32 %v21426_v63, %v1991_v7 }
 0x36c   :  { %v21579_v43 = vpop.eup %20112  ;;  %20122 = vpow2.f32 %v2080_v26 }
 0x36d   :  { %v2178_v32 = vsel %vm360_vm2, %v21579_v43, 0.0  ;;  %v21584_v5 = vpop.eup %20114  ;;  %20124 = vpow2.f32 %v2084_v38 }
 0x36e   :  { %2179 = vadd.xlane.f32.xlu1 %v2178_v32  ;;  %v2139_v39 = vsel %vm360_vm2, %v21584_v5, 0.0  ;;  %v21589_v45 = vpop.eup %20116  ;;  %20126 = vpow2.f32 %v2088_v37  ;;  %v1997_v56 = vpop.xlane.xlu0 %1996 }
 0x36f   :  { %v2145_v62 = vsel %vm360_vm2, %v21589_v45, 0.0  ;;  %v2045_v32 = vsub.f32 %v21438_v33, %v1997_v56 }
 0x371   :  { %v2100_v37 = vmul.f32 1.442695, %v2045_v32 }
 0x372   :  { %v2003_v38 = vpop.xlane.xlu0 %2002 }
 0x373   :  { %2140 = vadd.xlane.f32.xlu0 %v2139_v39  ;;  %v2047_v18 = vsub.f32 %v21448_v21, %v2003_v38 }
 0x374   :  { %v21591_v53 = vpop.eup %20118 }
 0x375   :  { %v2000_v47 = vpop.xlane.xlu1 %1999  ;;  %v2184_v9 = vsel %vm360_vm2, %v21591_v53, 0.0  ;;  %v21599_v11 = vpop.eup %20120  ;;  %v2104_v7 = vmul.f32 1.442695, %v2047_v18 }
 0x376   :  { %v2046_v61 = vsub.f32 %v21460_v48, %v2000_v47  ;;  %2185 = vadd.xlane.f32.xlu1 %v2184_v9  ;;  %v2151_v26 = vsel %vm360_vm2, %v21599_v11, 0.0  ;;  %v21604_v54 = vpop.eup %20122  ;;  %v2096_v48 = vmul.f32 1.442695, %v2043_v1  ;;  %v2009_v47 = vpop.xlane.xlu0 %2008 }
 0x377   :  { %2146 = vadd.xlane.f32.xlu0 %v2145_v62  ;;  %v2157_v29 = vsel %vm360_vm2, %v21604_v54, 0.0  ;;  %v21610_v63 = vpop.eup %20124 }
 0x378   :  { %v2102_v41 = vmul.f32 1.442695, %v2046_v61  ;;  %v2163_v33 = vsel %vm360_vm2, %v21610_v63, 0.0  ;;  %v21615_v9 = vpop.eup %20126  ;;  %v2049_v61 = vsub.f32 %v21454_v34, %v2009_v47 }
 0x379   :  { %v2169_v21 = vsel %vm360_vm2, %v21615_v9, 0.0 }
 0x37a   :  { %20128 = vpow2.f32 %v2102_v41  ;;  %v2015_v41 = vpop.xlane.xlu0 %2014  ;;  %v2108_v1 = vmul.f32 1.442695, %v2049_v61 }
 0x37b   :  { %2152 = vadd.xlane.f32.xlu0 %v2151_v26  ;;  %20130 = vpow2.f32 %v2092_v22  ;;  %v2051_v56 = vsub.f32 %v21468_v40, %v2015_v41 }
 0x37c   :  { %20132 = vpow2.f32 %v2096_v48 }
 0x37d   :  { %v2006_v14 = vpop.xlane.xlu1 %2005 }
 0x37e   :  { %v2048_v27 = vsub.f32 %v21472_v17, %v2006_v14 }
 0x37f   :  { %2158 = vadd.xlane.f32.xlu0 %v2157_v29 }
 0x380   :  { %v2106_v39 = vmul.f32 1.442695, %v2048_v27  ;;  %v2112_v27 = vmul.f32 1.442695, %v2051_v56 }
 0x382   :  { %20134 = vpow2.f32 %v2106_v39 }
 0x383   :  { %2164 = vadd.xlane.f32.xlu0 %v2163_v33  ;;  %20136 = vpow2.f32 %v2100_v37 }
 0x384   :  { %v21617_v17 = vpop.eup %20128  ;;  %20138 = vpow2.f32 %v2104_v7 }
 0x385   :  { %v2190_v62 = vsel %vm360_vm2, %v21617_v17, 0.0  ;;  %v21624_v22 = vpop.eup %20130  ;;  %20140 = vpow2.f32 %v2108_v1 }
 0x386   :  { %2191 = vadd.xlane.f32.xlu1 %v2190_v62  ;;  %v2175_v34 = vsel %vm360_vm2, %v21624_v22, 0.0  ;;  %v21630_v32 = vpop.eup %20132 }
 0x387   :  { %2170 = vadd.xlane.f32.xlu0 %v2169_v21  ;;  %v2181_v40 = vsel %vm360_vm2, %v21630_v32, 0.0 }
 0x389   :  { %v2012_v26 = vpop.xlane.xlu1 %2011 }
 0x38a   :  { %v2050_v48 = vsub.f32 %v21486_v19, %v2012_v26 }
 0x38b   :  { %2176 = vadd.xlane.f32.xlu0 %v2175_v34 }
 0x38c   :  { %v21632_v14 = vpop.eup %20134  ;;  %v2110_v38 = vmul.f32 1.442695, %v2050_v48 }
 0x38d   :  { %v2196_v29 = vsel %vm360_vm2, %v21632_v14, 0.0  ;;  %v21638_v19 = vpop.eup %20136 }
 0x38e   :  { %20142 = vpow2.f32 %v2110_v38  ;;  %2197 = vadd.xlane.f32.xlu1 %v2196_v29  ;;  %v2187_v18 = vsel %vm360_vm2, %v21638_v19, 0.0  ;;  %v21643_v47 = vpop.eup %20138 }
 0x38f   :  { %2182 = vadd.xlane.f32.xlu0 %v2181_v40  ;;  %20144 = vpow2.f32 %v2112_v27  ;;  %v2193_v61 = vsel %vm360_vm2, %v21643_v47, 0.0  ;;  %v21647_v62 = vpop.eup %20140 }
 0x390   :  { %v2199_v1 = vsel %vm360_vm2, %v21647_v62, 0.0 }
 0x391   :  { %v2018_v39 = vpop.xlane.xlu1 %2017 }
 0x392   :  { %v2052_v37 = vsub.f32 %v21494_v23, %v2018_v39 }
 0x393   :  { %2188 = vadd.xlane.f32.xlu0 %v2187_v18  ;;  %v26256_v18 = vmov 0.0  }
 0x394   :  { %v2114_v33 = vmul.f32 1.442695, %v2052_v37 }
 0x395   :  { %v2120_v7 = vpop.xlane.xlu1 %2119 }
 0x396   :  { %20146 = vpow2.f32 %v2114_v33 }
 0x397   :  { %20148 = vrcp.f32 %v2120_v7  ;;  %2194 = vadd.xlane.f32.xlu0 %v2193_v61 }
 0x398   :  { %v21649_v41 = vpop.eup %20142 }
 0x399   :  { %v2126_v21 = vpop.xlane.xlu1 %2125  ;;  %v2202_v23 = vsel %vm360_vm2, %v21649_v41, 0.0  ;;  %v21655_v56 = vpop.eup %20144 }
 0x39a   :  { %20150 = vrcp.f32 %v2126_v21  ;;  %2203 = vadd.xlane.f32.xlu1 %v2202_v23  ;;  %v2205_v26 = vsel %vm360_vm2, %v21655_v56, 0.0 }
 0x39b   :  { %2200 = vadd.xlane.f32.xlu0 %v2199_v1 }
 0x39f   :  { %2206 = vadd.xlane.f32.xlu0 %v2205_v26 }
 0x3a0   :  { %v21659_v48 = vpop.eup %20146 }
 0x3a1   :  { %v20149_v34 = vpop.eup %20148  ;;  %v2208_v38 = vsel %vm360_vm2, %v21659_v48, 0.0 }
 0x3a2   :  { %2209 = vadd.xlane.f32.xlu1 %v2208_v38  ;;  %v2246_v27 = vmul.f32 %v20149_v34, %v21498_v13  ;;  %v2021_v13 = vpop.xlane.xlu0 %2020 }
 0x3a4   :  { %v20151_v29 = vpop.eup %20150  ;;  %v2278_v40 = vpack.c.bf16 %v2246_v27, %v2246_v27 }
 0x3a5   :  { %v2248_v37 = vmul.f32 %v20151_v29, %v21504_v52 }
 0x3a6   :  { %v2333_v39 = vsel %vm360_vm2, %v2278_v40, 0 }
 0x3a7   :  { %18717 = vmatpush3.bf16.xpose.msra.mxu0 %v2333_v39  ;;  %v2280_v33 = vpack.c.bf16 %v2248_v37, %v2248_v37 }
 0x3a8   :  { %18728 = vmatprep.subr.bf16.mxu0 %v26256_v18 }
 0x3a9   :  { %v2463_v7 = vsel %vm360_vm2, %v2280_v33, 0 }
 0x3ae   :  { %18719 = vmatmul.mubr.msk.bf16.vlgmr.msra.gmra.mrb[80].mxu0 %vm360_vm2, %v21466_v28  ;;  %v2053_v28 = vsub.f32 %v21479_v8, %v2021_v13 }
 0x3af   :  { %18729 = vmatpush3.bf16.xpose.msra.mxu0 %v2463_v7  ;;  %18730 = vmatprep.mubr.msk.bf16.mxu0 %vm20677_vm1, %v26256_v18 }
 0x3b0   :  { %18740 = vmatprep.subr.bf16.mxu0 %v26256_v18  ;;  %v2116_v52 = vmul.f32 1.442695, %v2053_v28 }
 0x3b5   :  { %5590 = vrot.lane.b32.xlu0 %v21013_v46, %s20679_s13 }
 0x3b6   :  { %18731 = vmatmul.mubr.msk.bf16.vlgmr.msra.gmra.mrb[84].mxu0 %vm360_vm2, %v21308_v10 }
 0x3b7   :  { %18742 = vmatprep.mubr.msk.bf16.mxu0 %vm20677_vm1, %v26256_v18 }
 0x3c3   :  { %v2123_v61 = vpop.xlane.xlu0 %2122 }
 0x3c4   :  { %20152 = vrcp.f32 %v2123_v61 }
 0x3c5   :  { %20154 = vpow2.f32 %v2116_v52 }
 0x3c7   :  { %v2144_v21 = vpop.xlane.xlu1 %2143  ;;  %v2129_v23 = vpop.xlane.xlu0 %2128 }
 0x3c8   :  { %20156 = vrcp.f32 %v2129_v23 }
 0x3cb   :  { %v2150_v1 = vpop.xlane.xlu1 %2149  ;;  %v2135_v26 = vpop.xlane.xlu0 %2134 }
 0x3cc   :  { %20158 = vrcp.f32 %v2135_v26 }
 0x3ce   :  { %v20153_v34 = vpop.eup %20152 }
 0x3cf   :  { %v2132_v38 = vpop.xlane.xlu1 %2131  ;;  %v2247_v10 = vmul.f32 %v20153_v34, %v21522_v0  ;;  %v21681_v27 = vpop.eup %20154 }
 0x3d0   :  { %20160 = vrcp.f32 %v2132_v38  ;;  %v2211_v39 = vsel %vm360_vm2, %v21681_v27, 0.0 }
 0x3d1   :  { %v2279_v29 = vpack.c.bf16 %v2247_v10, %v2247_v10 }
 0x3d2   :  { %v20157_v40 = vpop.eup %20156 }
 0x3d3   :  { %v2156_v8 = vpop.xlane.xlu1 %2155  ;;  %v2398_v37 = vsel %vm360_vm2, %v2279_v29, 0  ;;  %v2249_v33 = vmul.f32 %v20157_v40, %v21526_v57 }
 0x3d4   :  { %2212 = vadd.xlane.f32.xlu0 %v2211_v39  ;;  %18723 = vmatpush3.bf16.xpose.msra.mxu1 %v2398_v37  ;;  %v21737_v39 = vpop.permute.xlu0 %5540 }
 0x3d5   :  { %18734 = vmatprep.subr.bf16.mxu1 %v26256_v18  ;;  %v2281_v13 = vpack.c.bf16 %v2249_v33, %v2249_v33 }
 0x3d6   :  { %v20159_v0 = vpop.eup %20158 }
 0x3d7   :  { %v2162_v7 = vpop.xlane.xlu1 %2161  ;;  %v2528_v61 = vsel %vm360_vm2, %v2281_v13, 0  ;;  %v2251_v26 = vmul.f32 %v20159_v0, %v21535_v24 }
 0x3d9   :  { %v2283_v38 = vpack.c.bf16 %v2251_v26, %v2251_v26 }
 0x3da   :  { %v20161_v28 = vpop.eup %20160 }
 0x3db   :  { %v2138_v52 = vpop.xlane.xlu1 %2137  ;;  %18725 = vmatmul.mubr.msk.bf16.vlgmr.msra.gmra.mrb[80].mxu1 %vm360_vm2, %v21326_v12  ;;  %v2250_v23 = vmul.f32 %v20161_v28, %v21545_v36  ;;  %v2658_v12 = vsel %vm360_vm2, %v2283_v38, 0  ;;  %v26257_v28 = vld [vmem:[#allocation12_spill] sm:$0xff] }
 0x3dc   :  { %20162 = vrcp.f32 %v2138_v52  ;;  %18735 = vmatpush3.bf16.xpose.msra.mxu1 %v2528_v61  ;;  %18736 = vmatprep.mubr.msk.bf16.mxu1 %vm20677_vm1, %v26256_v18 }
 0x3dd   :  { %v2282_v57 = vpack.c.bf16 %v2250_v23, %v2250_v23  ;;  %18746 = vmatprep.subr.bf16.mxu1 %v26256_v18  ;;  %20164 = vrcp.f32 %v2144_v21  ;;  %v26258_v23 = vld [vmem:[#allocation14_spill] sm:$0xff] }
 0x3de   :  { %20166 = vrcp.f32 %v2150_v1 }
 0x3df   :  { %v2593_v34 = vsel %vm360_vm2, %v2282_v57, 0  ;;  %20168 = vrcp.f32 %v2156_v8  ;;  %v26259_v57 = vld [vmem:[#allocation70_spill] sm:$0xff] }
 0x3e0   :  { %18741 = vmatpush3.bf16.xpose.msra.mxu0 %v2593_v34  ;;  %20170 = vrcp.f32 %v2162_v7 }
 0x3e1   :  { %18752 = vmatprep.subr.bf16.mxu0 %v26256_v18 }
 0x3e3   :  { %18737 = vmatmul.mubr.msk.bf16.vlgmr.msra.gmra.mrb[84].mxu1 %vm360_vm2, %v21318_v58 }
 0x3e4   :  { %18747 = vmatpush3.bf16.xpose.msra.mxu1 %v2658_v12  ;;  %18748 = vmatprep.mubr.msk.bf16.mxu1 %vm20677_vm1, %v26256_v18 }
 0x3e5   :  { %18758 = vmatprep.subr.bf16.mxu1 %v26256_v18 }
 0x3e6   :  { %v20163_v24 = vpop.eup %20162 }
 0x3e7   :  { %18743 = vmatmul.mubr.msk.bf16.vlgmr.msra.gmra.mrb[88].mxu0 %vm360_vm2, %v21338_v30  ;;  %v2252_v36 = vmul.f32 %v20163_v24, %v21558_v31  ;;  %v20165_v21 = vpop.eup %20164  ;;  %v26260_v24 = vld [vmem:[#allocation13_spill] sm:$0xff] }
 0x3e8   :  { %18754 = vmatprep.mubr.msk.bf16.mxu0 %vm20677_vm1, %v26256_v18  ;;  %v2254_v1 = vmul.f32 %v20165_v21, %v21529_v59  ;;  %v20167_v31 = vpop.eup %20166 }
 0x3e9   :  { %v2284_v58 = vpack.c.bf16 %v2252_v36, %v2252_v36  ;;  %v2256_v59 = vmul.f32 %v20167_v31, %v21538_v15  ;;  %v20169_v40 = vpop.eup %20168 }
 0x3ea   :  { %5640 = vrot.lane.b32.xlu0 %v20913_v16, %s20679_s13  ;;  %v2286_v30 = vpack.c.bf16 %v2254_v1, %v2254_v1  ;;  %v2258_v8 = vmul.f32 %v20169_v40, %v21549_v25  ;;  %v20171_v33 = vpop.eup %20170 }
 0x3eb   :  { %18749 = vmatmul.mubr.msk.bf16.vlgmr.msra.gmra.mrb[88].mxu1 %vm360_vm2, %v21352_v49  ;;  %v2723_v10 = vsel %vm360_vm2, %v2284_v58, 0  ;;  %v2288_v29 = vpack.c.bf16 %v2256_v59, %v2256_v59  ;;  %v2260_v13 = vmul.f32 %v20171_v33, %v21554_v44  ;;  %v26264_v33 = vld [vmem:[#allocation66_spill] sm:$0xff] }
 0x3ec   :  { %18753 = vmatpush3.bf16.xpose.msra.mxu0 %v2723_v10  ;;  %18760 = vmatprep.mubr.msk.bf16.mxu1 %vm20677_vm1, %v26256_v18  ;;  %v2853_v49 = vsel %vm360_vm2, %v2286_v30, 0  ;;  %v2290_v37 = vpack.c.bf16 %v2258_v8, %v2258_v8 }
 0x3ed   :  { %18764 = vmatprep.subr.bf16.mxu0 %v26256_v18  ;;  %v2983_v15 = vsel %vm360_vm2, %v2288_v29, 0  ;;  %v2292_v52 = vpack.c.bf16 %v2260_v13, %v2260_v13  ;;  %v26266_v13 = vld [vmem:[#allocation74_spill] sm:$0xff] }
 0x3ee   :  { %5690 = vrot.lane.b32.xlu0 %v20997_v42, %s20679_s13  ;;  %v3113_v25 = vsel %vm360_vm2, %v2290_v37, 0 }
 0x3ef   :  { %v3243_v34 = vsel %vm360_vm2, %v2292_v52, 0 }
 0x3f2   :  { %5740 = vrot.lane.b32.xlu0 %v20898_v3, %s20679_s13 }
 0x3f3   :  { %18755 = vmatmul.mubr.msk.bf16.vlgmr.msra.gmra.mrb[92].mxu0 %vm360_vm2, %v21334_v2  ;;  %v2168_v2 = vpop.xlane.xlu1 %2167 }
 0x3f4   :  { %18765 = vmatpush3.bf16.xpose.msra.mxu0 %v2853_v49  ;;  %18766 = vmatprep.mubr.msk.bf16.mxu0 %vm20677_vm1, %v26256_v18  ;;  %20172 = vrcp.f32 %v2168_v2  ;;  %v26262_v49 = vld [vmem:[#allocation69_spill] sm:$0xff]  ;;  %v26263_v2 = vld [vmem:[#allocation16_spill] sm:$0xff] }
 0x3f5   :  { %18776 = vmatprep.subr.bf16.mxu0 %v26256_v18 }
 0x3f6   :  { %5790 = vrot.lane.b32.xlu0 %v21049_v4, %s20679_s13 }
 0x3fa   :  { %5840 = vrot.lane.b32.xlu0 %v20929_v51, %s20679_s13 }
 0x3fb   :  { %18767 = vmatmul.mubr.msk.bf16.vlgmr.msra.gmra.mrb[96].mxu0 %vm360_vm2, %v21364_v50  ;;  %v2174_v50 = vpop.xlane.xlu1 %2173 }
 0x3fc   :  { %18777 = vmatpush3.bf16.xpose.msra.mxu0 %v2983_v15  ;;  %18778 = vmatprep.mubr.msk.bf16.mxu0 %vm20677_vm1, %v26256_v18 }
 0x3fd   :  { %18788 = vmatprep.subr.bf16.mxu0 %v26256_v18 }
 0x3fe   :  { %5890 = vrot.lane.b32.xlu0 %v21035_v60, %s20679_s13  ;;  %v20173_v61 = vpop.eup %20172 }
 0x3ff   :  { %v2180_v26 = vpop.xlane.xlu1 %2179  ;;  %v2262_v38 = vmul.f32 %v20173_v61, %v21563_v55 }
 0x400   :  { %v2141_v7 = vpop.xlane.xlu0 %2140 }
 0x401   :  { %20174 = vrcp.f32 %v2141_v7  ;;  %v2294_v58 = vpack.c.bf16 %v2262_v38, %v2262_v38 }
 0x402   :  { %5940 = vrot.lane.b32.xlu0 %v20923_v20, %s20679_s13 }
 0x403   :  { %18779 = vmatmul.mubr.msk.bf16.vlgmr.msra.gmra.mrb[100].mxu0 %vm360_vm2, %v21358_v35  ;;  %v2186_v31 = vpop.xlane.xlu1 %2185  ;;  %v3373_v59 = vsel %vm360_vm2, %v2294_v58, 0 }
 0x404   :  { %18789 = vmatpush3.bf16.xpose.msra.mxu0 %v3113_v25  ;;  %v2147_v0 = vpop.xlane.xlu0 %2146  ;;  %18790 = vmatprep.mubr.msk.bf16.mxu0 %vm20677_vm1, %v26256_v18 }
 0x405   :  { %20176 = vrcp.f32 %v2147_v0  ;;  %18800 = vmatprep.subr.bf16.mxu0 %v26256_v18 }
 0x406   :  { %20178 = vrcp.f32 %v2174_v50  ;;  %6374 = vrot.lane.b32.xlu0 %v26257_v28, %s20680_s14  ;;  %v26265_v50 = vld [vmem:[#allocation20_spill] sm:$0xff] }
 0x408   :  { %v2153_v35 = vpop.xlane.xlu0 %2152 }
 0x409   :  { %20180 = vrcp.f32 %v2153_v35  ;;  %v26267_v35 = vld [vmem:[#allocation18_spill] sm:$0xff] }
 0x40a   :  { %6439 = vrot.lane.b32.xlu0 %v26258_v23, %s20680_s14  ;;  %20182 = vrcp.f32 %v2180_v26 }
 0x40b   :  { %v20175_v44 = vpop.eup %20174  ;;  %18791 = vmatmul.mubr.msk.bf16.vlgmr.msra.gmra.mrb[104].mxu0 %vm360_vm2, %v26259_v57 }
 0x40c   :  { %18801 = vmatpush3.bf16.xpose.msra.mxu0 %v3243_v34  ;;  %v2253_v12 = vmul.f32 %v20175_v44, %v21584_v5  ;;  %18802 = vmatprep.mubr.msk.bf16.mxu0 %vm20677_vm1, %v26256_v18  ;;  %v2159_v1 = vpop.xlane.xlu0 %2158  ;;  %v26261_v5 = vld [vmem:[#allocation17_spill] sm:$0xff]  ;;  %v26268_v34 = vld [vmem:[#allocation68_spill] sm:$0xff] }
 0x40d   :  { %18812 = vmatprep.subr.bf16.mxu0 %v26256_v18  ;;  %20184 = vrcp.f32 %v2159_v1 }
 0x40e   :  { %6569 = vrot.lane.b32.xlu0 %v26260_v24, %s20680_s14  ;;  %v2285_v36 = vpack.c.bf16 %v2253_v12, %v2253_v12  ;;  %20186 = vrcp.f32 %v2186_v31  ;;  %v26269_v12 = vld [vmem:[#allocation22_spill] sm:$0xff] }
 0x40f   :  { %v20177_v21 = vpop.eup %20176 }
 0x410   :  { %v20179_v10 = vpop.eup %20178  ;;  %v2788_v30 = vsel %vm360_vm2, %v2285_v36, 0  ;;  %v2255_v55 = vmul.f32 %v20177_v21, %v21589_v45  ;;  %v2165_v37 = vpop.xlane.xlu0 %2164  ;;  %v26270_v21 = vld [vmem:[#allocation73_spill] sm:$0xff] }
 0x411   :  { %18759 = vmatpush3.bf16.xpose.msra.mxu1 %v2788_v30  ;;  %v2264_v29 = vmul.f32 %v20179_v10, %v21569_v6  ;;  %20188 = vrcp.f32 %v2165_v37  ;;  %v26271_v30 = vld [vmem:[#allocation21_spill] sm:$0xff] }
 0x412   :  { %6699 = vrot.lane.b32.xlu0 %v26261_v5, %s20680_s14  ;;  %18770 = vmatprep.subr.bf16.mxu1 %v26256_v18  ;;  %v2287_v40 = vpack.c.bf16 %v2255_v55, %v2255_v55 }
 0x413   :  { %18803 = vmatmul.mubr.msk.bf16.vlgmr.msra.gmra.mrb[108].mxu0 %vm360_vm2, %v26262_v49  ;;  %v20181_v45 = vpop.eup %20180  ;;  %v2296_v15 = vpack.c.bf16 %v2264_v29, %v2264_v29  ;;  %v2192_v25 = vpop.xlane.xlu1 %2191 }
 0x414   :  { %18813 = vmatpush3.bf16.xpose.msra.mxu0 %v3373_v59  ;;  %18814 = vmatprep.mubr.msk.bf16.mxu0 %vm20677_vm1, %v26256_v18  ;;  %v20183_v8 = vpop.eup %20182  ;;  %v2918_v6 = vsel %vm360_vm2, %v2287_v40, 0  ;;  %v2257_v7 = vmul.f32 %v20181_v45, %v21599_v11  ;;  %20190 = vrcp.f32 %v2192_v25  ;;  %v2171_v57 = vpop.xlane.xlu0 %2170  ;;  %v26272_v59 = vld [vmem:[#allocation67_spill] sm:$0xff]  ;;  %v26273_v40 = vld [vmem:[#allocation25_spill] sm:$0xff] }
 0x415   :  { %18824 = vmatprep.subr.bf16.mxu0 %v26256_v18  ;;  %v3503_v0 = vsel %vm360_vm2, %v2296_v15, 0  ;;  %v2266_v52 = vmul.f32 %v20183_v8, %v21579_v43  ;;  %20192 = vrcp.f32 %v2171_v57  ;;  %v26274_v15 = vld [vmem:[#allocation78_spill] sm:$0xff] }
 0x416   :  { %6829 = vrot.lane.b32.xlu0 %v26263_v2, %s20680_s14  ;;  %v2289_v11 = vpack.c.bf16 %v2257_v7, %v2257_v7 }
 0x417   :  { %v20185_v61 = vpop.eup %20184  ;;  %v2298_v44 = vpack.c.bf16 %v2266_v52, %v2266_v52 }
 0x418   :  { %18761 = vmatmul.mubr.msk.bf16.vlgmr.msra.gmra.mrb[92].mxu1 %vm360_vm2, %v26264_v33  ;;  %v20187_v26 = vpop.eup %20186  ;;  %v3048_v43 = vsel %vm360_vm2, %v2289_v11, 0  ;;  %v2259_v38 = vmul.f32 %v20185_v61, %v21604_v54  ;;  %v2177_v49 = vpop.xlane.xlu0 %2176  ;;  %v26277_v11 = vld [vmem:[#allocation28_spill] sm:$0xff] }
 0x419   :  { %18771 = vmatpush3.bf16.xpose.msra.mxu1 %v2918_v6  ;;  %18772 = vmatprep.mubr.msk.bf16.mxu1 %vm20677_vm1, %v26256_v18  ;;  %v3633_v58 = vsel %vm360_vm2, %v2298_v44, 0  ;;  %v2268_v10 = vmul.f32 %v20187_v26, %v21591_v53  ;;  %v26275_v6 = vld [vmem:[#allocation24_spill] sm:$0xff]  ;;  %v26278_v44 = vld [vmem:[#allocation77_spill] sm:$0xff] }
 0x41a   :  { %6959 = vrot.lane.b32.xlu0 %v26265_v50, %s20680_s14  ;;  %18782 = vmatprep.subr.bf16.mxu1 %v26256_v18  ;;  %v2291_v54 = vpack.c.bf16 %v2259_v38, %v2259_v38 }
 0x41b   :  { %18815 = vmatmul.mubr.msk.bf16.vlgmr.msra.gmra.mrb[112].mxu0 %vm360_vm2, %v26266_v13  ;;  %v2198_v36 = vpop.xlane.xlu1 %2197  ;;  %v20189_v1 = vpop.eup %20188  ;;  %v2300_v55 = vpack.c.bf16 %v2268_v10, %v2268_v10 }
 0x41c   :  { %18825 = vmatpush3.bf16.xpose.msra.mxu0 %v3503_v0  ;;  %18826 = vmatprep.mubr.msk.bf16.mxu0 %vm20677_vm1, %v26256_v18  ;;  %20194 = vrcp.f32 %v2198_v36  ;;  %v3178_v53 = vsel %vm360_vm2, %v2291_v54, 0  ;;  %v2261_v29 = vmul.f32 %v20189_v1, %v21610_v63  ;;  %v2183_v13 = vpop.xlane.xlu0 %2182  ;;  %v26276_v0 = vld [vmem:[#allocation72_spill] sm:$0xff]  ;;  %v26281_v54 = vld [vmem:[#allocation82_spill] sm:$0xff] }
 0x41d   :  { %18836 = vmatprep.subr.bf16.mxu0 %v26256_v18  ;;  %20196 = vrcp.f32 %v2177_v49  ;;  %v3763_v8 = vsel %vm360_vm2, %v2300_v55, 0 }
 0x41e   :  { %7089 = vrot.lane.b32.xlu0 %v26267_v35, %s20680_s14  ;;  %v20191_v31 = vpop.eup %20190  ;;  %v2293_v63 = vpack.c.bf16 %v2261_v29, %v2261_v29  ;;  %v26282_v29 = vld [vmem:[#allocation76_spill] sm:$0xff] }
 0x41f   :  { %v2270_v37 = vmul.f32 %v20191_v31, %v21617_v17  ;;  %v20193_v33 = vpop.eup %20192 }
 0x420   :  { %18773 = vmatmul.mubr.msk.bf16.vlgmr.msra.gmra.mrb[96].mxu1 %vm360_vm2, %v26268_v34  ;;  %v3308_v17 = vsel %vm360_vm2, %v2293_v63, 0  ;;  %v2263_v52 = vmul.f32 %v20193_v33, %v21615_v9 }
 0x421   :  { %18783 = vmatpush3.bf16.xpose.msra.mxu1 %v3048_v43  ;;  %18784 = vmatprep.mubr.msk.bf16.mxu1 %vm20677_vm1, %v26256_v18  ;;  %v2302_v7 = vpack.c.bf16 %v2270_v37, %v2270_v37  ;;  %v26279_v43 = vld [vmem:[#allocation26_spill] sm:$0xff] }
 0x422   :  { %7219 = vrot.lane.b32.xlu0 %v26269_v12, %s20680_s14  ;;  %18794 = vmatprep.subr.bf16.mxu1 %v26256_v18  ;;  %v2295_v9 = vpack.c.bf16 %v2263_v52, %v2263_v52 }
 0x423   :  { %18827 = vmatmul.mubr.msk.bf16.vlgmr.msra.gmra.mrb[116].mxu0 %vm360_vm2, %v26270_v21  ;;  %v3893_v26 = vsel %vm360_vm2, %v2302_v7, 0  ;;  %v2189_v21 = vpop.xlane.xlu0 %2188 }
 0x424   :  { %18837 = vmatpush3.bf16.xpose.msra.mxu0 %v3633_v58  ;;  %18838 = vmatprep.mubr.msk.bf16.mxu0 %vm20677_vm1, %v26256_v18  ;;  %v26280_v58 = vld [vmem:[#allocation71_spill] sm:$0xff] }
 0x425   :  { %18848 = vmatprep.subr.bf16.mxu0 %v26256_v18 }
 0x426   :  { %7349 = vrot.lane.b32.xlu0 %v26271_v30, %s20680_s14  ;;  %v20195_v25 = vpop.eup %20194 }
 0x427   :  { %v2204_v45 = vpop.xlane.xlu1 %2203  ;;  %v2272_v57 = vmul.f32 %v20195_v25, %v21632_v14  ;;  %v20197_v34 = vpop.eup %20196  ;;  %v3438_v14 = vsel %vm360_vm2, %v2295_v9, 0  ;;  %v26284_v25 = vld [vmem:[#allocation75_spill] sm:$0xff]  ;;  %v26287_v9 = vld [vmem:[#allocation85_spill] sm:$0xff] }
 0x428   :  { %18785 = vmatmul.mubr.msk.bf16.vlgmr.msra.gmra.mrb[100].mxu1 %vm360_vm2, %v26272_v59  ;;  %20198 = vrcp.f32 %v2204_v45  ;;  %v2265_v10 = vmul.f32 %v20197_v34, %v21624_v22 }
 0x429   :  { %18795 = vmatpush3.bf16.xpose.msra.mxu1 %v3178_v53  ;;  %18796 = vmatprep.mubr.msk.bf16.mxu1 %vm20677_vm1, %v26256_v18  ;;  %20200 = vrcp.f32 %v2183_v13  ;;  %v2304_v38 = vpack.c.bf16 %v2272_v57, %v2272_v57  ;;  %v2195_v53 = vpop.xlane.xlu0 %2194 }
 0x42a   :  { %7479 = vrot.lane.b32.xlu0 %v26273_v40, %s20680_s14  ;;  %18806 = vmatprep.subr.bf16.mxu1 %v26256_v18  ;;  %v2297_v31 = vpack.c.bf16 %v2265_v10, %v2265_v10 }
 0x42b   :  { %18839 = vmatmul.mubr.msk.bf16.vlgmr.msra.gmra.mrb[120].mxu0 %vm360_vm2, %v26274_v15  ;;  %v4023_v1 = vsel %vm360_vm2, %v2304_v38, 0  ;;  %v26283_v15 = vld [vmem:[#allocation81_spill] sm:$0xff] }
 0x42c   :  { %18849 = vmatpush3.bf16.xpose.msra.mxu0 %v3763_v8  ;;  %18850 = vmatprep.mubr.msk.bf16.mxu0 %vm20677_vm1, %v26256_v18  ;;  %v3568_v45 = vsel %vm360_vm2, %v2297_v31, 0 }
 0x42d   :  { %18860 = vmatprep.subr.bf16.mxu0 %v26256_v18  ;;  %v2201_v7 = vpop.xlane.xlu0 %2200 }
 0x42e   :  { %7609 = vrot.lane.b32.xlu0 %v26275_v6, %s20680_s14 }
 0x42f   :  { %v2210_v61 = vpop.xlane.xlu1 %2209 }
 0x430   :  { %18797 = vmatmul.mubr.msk.bf16.vlgmr.msra.gmra.mrb[104].mxu1 %vm360_vm2, %v26276_v0  ;;  %20202 = vrcp.f32 %v2210_v61  ;;  %v26285_v0 = vld [vmem:[#allocation86_spill] sm:$0xff] }
 0x431   :  { %18807 = vmatpush3.bf16.xpose.msra.mxu1 %v3308_v17  ;;  %18808 = vmatprep.mubr.msk.bf16.mxu1 %vm20677_vm1, %v26256_v18  ;;  %20204 = vrcp.f32 %v2189_v21 }
 0x432   :  { %7739 = vrot.lane.b32.xlu0 %v26277_v11, %s20680_s14  ;;  %18818 = vmatprep.subr.bf16.mxu1 %v26256_v18  ;;  %v20199_v36 = vpop.eup %20198  ;;  %20206 = vrcp.f32 %v2195_v53 }
 0x433   :  { %18851 = vmatmul.mubr.msk.bf16.vlgmr.msra.gmra.mrb[124].mxu0 %vm360_vm2, %v26278_v44  ;;  %v2274_v55 = vmul.f32 %v20199_v36, %v21649_v41  ;;  %v20201_v22 = vpop.eup %20200  ;;  %20208 = vrcp.f32 %v2201_v7  ;;  %v26286_v44 = vld [vmem:[#allocation80_spill] sm:$0xff]  ;;  %v26288_v36 = vld [vmem:[#allocation79_spill] sm:$0xff] }
 0x434   :  { %18861 = vmatpush3.bf16.xpose.msra.mxu0 %v3893_v26  ;;  %18862 = vmatprep.mubr.msk.bf16.mxu0 %vm20677_vm1, %v26256_v18  ;;  %v2267_v41 = vmul.f32 %v20201_v22, %v21630_v32 }
 0x435   :  { %18872 = vmatprep.subr.bf16.mxu0 %v26256_v18  ;;  %v2306_v49 = vpack.c.bf16 %v2274_v55, %v2274_v55 }
 0x436   :  { %7869 = vrot.lane.b32.xlu0 %v26279_v43, %s20680_s14  ;;  %v2299_v63 = vpack.c.bf16 %v2267_v41, %v2267_v41 }
 0x437   :  { %v4153_v8 = vsel %vm360_vm2, %v2306_v49, 0  ;;  %v26290_v49 = vld [vmem:[#allocation83_spill] sm:$0xff] }
 0x438   :  { %18809 = vmatmul.mubr.msk.bf16.vlgmr.msra.gmra.mrb[108].mxu1 %vm360_vm2, %v26280_v58  ;;  %v3698_v13 = vsel %vm360_vm2, %v2299_v63, 0 }
 0x439   :  { %18819 = vmatpush3.bf16.xpose.msra.mxu1 %v3438_v14  ;;  %18820 = vmatprep.mubr.msk.bf16.mxu1 %vm20677_vm1, %v26256_v18 }
 0x43a   :  { %7999 = vrot.lane.b32.xlu0 %v20913_v16, %s20680_s14  ;;  %18830 = vmatprep.subr.bf16.mxu1 %v26256_v18  ;;  %v20203_v59 = vpop.eup %20202 }
 0x43b   :  { %18863 = vmatmul.mubr.msk.bf16.vlgmr.msra.gmra.mrb[128].mxu0 %vm360_vm2, %v26281_v54  ;;  %v2276_v37 = vmul.f32 %v20203_v59, %v21659_v48  ;;  %v20205_v32 = vpop.eup %20204  ;;  %v26289_v54 = vld [vmem:[#allocation84_spill] sm:$0xff] }
 0x43c   :  { %18873 = vmatpush3.bf16.xpose.msra.mxu0 %v4023_v1  ;;  %18874 = vmatprep.mubr.msk.bf16.mxu0 %vm20677_vm1, %v26256_v18  ;;  %v2269_v48 = vmul.f32 %v20205_v32, %v21638_v19  ;;  %v20207_v61 = vpop.eup %20206  ;;  %v2207_v19 = vpop.xlane.xlu0 %2206  ;;  %v26292_v32 = vld [vmem:[#allocation87_spill] sm:$0xff] }
 0x43d   :  { %18884 = vmatprep.subr.bf16.mxu0 %v26256_v18  ;;  %v2308_v33 = vpack.c.bf16 %v2276_v37, %v2276_v37  ;;  %v2271_v57 = vmul.f32 %v20207_v61, %v21643_v47  ;;  %20210 = vrcp.f32 %v2207_v19  ;;  %v20209_v38 = vpop.eup %20208 }
 0x43e   :  { %8129 = vrot.lane.b32.xlu0 %v20898_v3, %s20680_s14  ;;  %v2301_v52 = vpack.c.bf16 %v2269_v48, %v2269_v48  ;;  %v2273_v21 = vmul.f32 %v20209_v38, %v21647_v62 }
 0x43f   :  { %v4283_v17 = vsel %vm360_vm2, %v2308_v33, 0  ;;  %v2303_v34 = vpack.c.bf16 %v2271_v57, %v2271_v57 }
 0x440   :  { %18821 = vmatmul.mubr.msk.bf16.vlgmr.msra.gmra.mrb[112].mxu1 %vm360_vm2, %v26282_v29  ;;  %v3828_v26 = vsel %vm360_vm2, %v2301_v52, 0  ;;  %v2305_v58 = vpack.c.bf16 %v2273_v21, %v2273_v21  ;;  %v21920_v10 = vpop.permute.xlu0 %5590 }
 0x441   :  { %18831 = vmatpush3.bf16.xpose.msra.mxu1 %v3568_v45  ;;  %18832 = vmatprep.mubr.msk.bf16.mxu1 %vm20677_vm1, %v26256_v18  ;;  %v3958_v47 = vsel %vm360_vm2, %v2303_v34, 0 }
 0x442   :  { %8259 = vrot.lane.b32.xlu0 %v20929_v51, %s20680_s14  ;;  %18842 = vmatprep.subr.bf16.mxu1 %v26256_v18  ;;  %v4088_v1 = vsel %vm360_vm2, %v2305_v58, 0  ;;  %v26297_v58 = vld [vmem:[#allocation15_spill] sm:$0xff] }
 0x443   :  { %18875 = vmatmul.mubr.msk.bf16.vlgmr.msra.gmra.mrb[132].mxu0 %vm360_vm2, %v26283_v15  ;;  %v26291_v15 = vld [vmem:[#allocation88_spill] sm:$0xff] }
 0x444   :  { %18885 = vmatpush3.bf16.xpose.msra.mxu0 %v4153_v8  ;;  %18886 = vmatprep.mubr.msk.bf16.mxu0 %vm20677_vm1, %v26256_v18 }
 0x445   :  { %18896 = vmatprep.subr.bf16.mxu0 %v26256_v18 }
 0x446   :  { %8389 = vrot.lane.b32.xlu0 %v20923_v20, %s20680_s14 }
 0x447   :  { %v20211_v14 = vpop.eup %20210 }
 0x448   :  { %18833 = vmatmul.mubr.msk.bf16.vlgmr.msra.gmra.mrb[116].mxu1 %vm360_vm2, %v26284_v25  ;;  %v2275_v55 = vmul.f32 %v20211_v14, %v21655_v56 }
 0x449   :  { %18843 = vmatpush3.bf16.xpose.msra.mxu1 %v3698_v13  ;;  %18844 = vmatprep.mubr.msk.bf16.mxu1 %vm20677_vm1, %v26256_v18 }
 0x44a   :  { %18854 = vmatprep.subr.bf16.mxu1 %v26256_v18  ;;  %v2307_v62 = vpack.c.bf16 %v2275_v55, %v2275_v55 }
 0x44b   :  { %18887 = vmatmul.mubr.msk.bf16.vlgmr.msra.gmra.mrb[136].mxu0 %vm360_vm2, %v26285_v0 }
 0x44c   :  { %18897 = vmatpush3.bf16.xpose.msra.mxu0 %v4283_v17  ;;  %18898 = vmatprep.mubr.msk.bf16.mxu0 %vm20677_vm1, %v26256_v18  ;;  %v4218_v59 = vsel %vm360_vm2, %v2307_v62, 0 }
 0x44d   :  { %18908 = vmatprep.subr.bf16.mxu0 %v26256_v18 }
 0x450   :  { %18845 = vmatmul.mubr.msk.bf16.vlgmr.msra.gmra.mrb[120].mxu1 %vm360_vm2, %v26286_v44 }
 0x451   :  { %18855 = vmatpush3.bf16.xpose.msra.mxu1 %v3828_v26  ;;  %18856 = vmatprep.mubr.msk.bf16.mxu1 %vm20677_vm1, %v26256_v18 }
 0x452   :  { %18866 = vmatprep.subr.bf16.mxu1 %v26256_v18 }
 0x453   :  { %18899 = vmatmul.mubr.msk.bf16.vlgmr.msra.gmra.mrb[140].mxu0 %vm360_vm2, %v26287_v9  ;;  %v26295_v9 = vld [vmem:[#allocation11_spill] sm:$0xff] }
 0x454   :  { %18910 = vmatprep.mubr.msk.bf16.mxu0 %vm20677_vm1, %v26256_v18 }
 0x458   :  { %18857 = vmatmul.mubr.msk.bf16.vlgmr.msra.gmra.mrb[124].mxu1 %vm360_vm2, %v26288_v36  ;;  %v26296_v36 = vld [vmem:[#allocation19_spill] sm:$0xff] }
 0x459   :  { %18867 = vmatpush3.bf16.xpose.msra.mxu1 %v3958_v47  ;;  %18868 = vmatprep.mubr.msk.bf16.mxu1 %vm20677_vm1, %v26256_v18 }
 0x45a   :  { %18878 = vmatprep.subr.bf16.mxu1 %v26256_v18 }
 0x460   :  { %18869 = vmatmul.mubr.msk.bf16.vlgmr.msra.gmra.mrb[128].mxu1 %vm360_vm2, %v26289_v54 }
 0x461   :  { %18879 = vmatpush3.bf16.xpose.msra.mxu1 %v4088_v1  ;;  %v2213_v31 = vpop.xlane.xlu0 %2212  ;;  %18880 = vmatprep.mubr.msk.bf16.mxu1 %vm20677_vm1, %v26256_v18  ;;  %v26298_v1 = vld [vmem:[#allocation27_spill] sm:$0xff] }
 0x462   :  { %20212 = vrcp.f32 %v2213_v31  ;;  %18890 = vmatprep.subr.bf16.mxu1 %v26256_v18 }
 0x465   :  { %v21929_v22 = vpop.permute.xlu0 %5640 }
 0x468   :  { %18881 = vmatmul.mubr.msk.bf16.vlgmr.msra.gmra.mrb[132].mxu1 %vm360_vm2, %v26290_v49  ;;  %v26300_v49 = vld [vmem:[#allocation23_spill] sm:$0xff] }
 0x469   :  { %18891 = vmatpush3.bf16.xpose.msra.mxu1 %v4218_v59  ;;  %v21934_v53 = vpop.permute.xlu0 %5690  ;;  %18892 = vmatprep.mubr.msk.bf16.mxu1 %vm20677_vm1, %v26256_v18 }
 0x46a   :  { %18902 = vmatprep.subr.bf16.mxu1 %v26256_v18 }
 0x46c   :  { %v20213_v56 = vpop.eup %20212 }
 0x46d   :  { %v21939_v29 = vpop.permute.xlu0 %5740  ;;  %v2277_v45 = vmul.f32 %v20213_v56, %v21681_v27 }
 0x46f   :  { %v2309_v41 = vpack.c.bf16 %v2277_v45, %v2277_v45 }
 0x470   :  { %18893 = vmatmul.mubr.msk.bf16.vlgmr.msra.gmra.mrb[136].mxu1 %vm360_vm2, %v26291_v15 }
 0x471   :  { %v21944_v8 = vpop.permute.xlu0 %5790  ;;  %v4348_v37 = vsel %vm360_vm2, %v2309_v41, 0  ;;  %18904 = vmatprep.mubr.msk.bf16.mxu1 %vm20677_vm1, %v26256_v18 }
 0x472   :  { %18903 = vmatpush3.bf16.xpose.msra.mxu1 %v4348_v37 }
 0x473   :  { %18914 = vmatprep.subr.bf16.mxu1 %v26256_v18 }
 0x475   :  { %v21950_v63 = vpop.permute.xlu0 %5840 }
 0x479   :  { %18905 = vmatmul.mubr.msk.bf16.vlgmr.msra.gmra.mrb[140].mxu1 %vm360_vm2, %v26292_v32  ;;  %v21954_v27 = vpop.permute.xlu0 %5890  ;;  %v26302_v32 = vld [vmem:[#allocation34_spill] sm:$0xff] }
 0x47a   :  { %18916 = vmatprep.mubr.msk.bf16.mxu1 %vm20677_vm1, %v26256_v18 }
 0x47d   :  { %v21958_v33 = vpop.permute.xlu0 %5940 }
 0x481   :  { %v21960_v7 = vpop.f32.mrb[80].mxu0  ;;  %v6375_v25 = vpop.permute.xlu0 %6374 }
 0x482   :  { %26293 = vst [vmem:[#allocation70_spill] sm:$0xff] %v21960_v7  ;;  %v18720_v13 = vpop.f32.mrb[81].mxu0  ;;  %6377 = vxpose.xlu1.c.b16.start.end [1/1] (short) (narrow) %v6375_v25, 16 }
 0x483   :  { %v2372_v48 = vpop.f32.mrb[82].mxu0 }
 0x484   :  { %v18721_v0 = vpop.f32.mrb[83].mxu0 }
 0x485   :  { %v6440_v17 = vpop.permute.xlu0 %6439 }
 0x486   :  { %6442 = vxpose.xlu0.c.b16.start.end [1/1] (short) (narrow) %v6440_v17, 16  ;;  %4392 = vrot.lane.b32.xlu1 %v26257_v28, %s20681_s15 }
 0x489   :  { %v21964_v52 = vpop.f32.mrb[84].mxu0  ;;  %v6570_v61 = vpop.permute.xlu0 %6569 }
 0x48a   :  { %26294 = vst [vmem:[#allocation17_spill] sm:$0xff] %v21964_v52  ;;  %v18732_v19 = vpop.f32.mrb[85].mxu0  ;;  %6572 = vxpose.xlu0.c.b16.start.end [1/1] (short) (narrow) %v6570_v61, 16  ;;  %4442 = vrot.lane.b32.xlu1 %v26258_v23, %s20681_s15 }
 0x48b   :  { %v2502_v44 = vpop.f32.mrb[86].mxu0 }
 0x48c   :  { %v18733_v26 = vpop.f32.mrb[87].mxu0 }
 0x48d   :  { %v6700_v57 = vpop.permute.xlu0 %6699 }
 0x48e   :  { %6702 = vxpose.xlu0.c.b16.start.end [1/1] (short) (narrow) %v6700_v57, 16  ;;  %4492 = vrot.lane.b32.xlu1 %v26295_v9, %s20681_s15 }
 0x491   :  { %v6830_v34 = vpop.permute.xlu0 %6829 }
 0x492   :  { %6832 = vxpose.xlu0.c.b16.start.end [1/1] (short) (narrow) %v6830_v34, 16  ;;  %4542 = vrot.lane.b32.xlu1 %v26260_v24, %s20681_s15  ;;  %v26305_v34 = vld [vmem:[#allocation31_spill] sm:$0xff] }
 0x495   :  { %v6960_v38 = vpop.permute.xlu0 %6959 }
 0x496   :  { %6962 = vxpose.xlu0.c.b16.start.end [1/1] (short) (narrow) %v6960_v38, 16  ;;  %4592 = vrot.lane.b32.xlu1 %v26296_v36, %s20681_s15 }
 0x499   :  { %v7090_v47 = vpop.permute.xlu0 %7089 }
 0x49a   :  { %7092 = vxpose.xlu0.c.b16.start.end [1/1] (short) (narrow) %v7090_v47, 16  ;;  %4642 = vrot.lane.b32.xlu1 %v26261_v5, %s20681_s15 }
 0x49d   :  { %v7220_v21 = vpop.permute.xlu0 %7219 }
 0x49e   :  { %7222 = vxpose.xlu0.c.b16.start.end [1/1] (short) (narrow) %v7220_v21, 16  ;;  %4692 = vrot.lane.b32.xlu1 %v26297_v58, %s20681_s15 }
 0x4a1   :  { %v7350_v14 = vpop.permute.xlu0 %7349 }
 0x4a2   :  { %7352 = vxpose.xlu0.c.b16.start.end [1/1] (short) (narrow) %v7350_v14, 16  ;;  %4742 = vrot.lane.b32.xlu1 %v26263_v2, %s20681_s15 }
 0x4a5   :  { %v7480_v54 = vpop.permute.xlu0 %7479 }
 0x4a6   :  { %7482 = vxpose.xlu0.c.b16.start.end [1/1] (short) (narrow) %v7480_v54, 16  ;;  %4792 = vrot.lane.b32.xlu1 %v26298_v1, %s20681_s15 }
 0x4a9   :  { %v7610_v55 = vpop.permute.xlu0 %7609 }
 0x4aa   :  { %7612 = vxpose.xlu0.c.b16.start.end [1/1] (short) (narrow) %v7610_v55, 16  ;;  %4842 = vrot.lane.b32.xlu1 %v26265_v50, %s20681_s15  ;;  %v26307_v55 = vld [vmem:[#allocation36_spill] sm:$0xff] }
 0x4ad   :  { %v7740_v31 = vpop.permute.xlu0 %7739 }
 0x4ae   :  { %v21984_v62 = vpop.f32.mrb[80].mxu1  ;;  %7742 = vxpose.xlu0.c.b16.start.end [1/1] (short) (narrow) %v7740_v31, 16  ;;  %4892 = vrot.lane.b32.xlu1 %v26300_v49, %s20681_s15 }
 0x4af   :  { %26299 = vst [vmem:[#allocation69_spill] sm:$0xff] %v21984_v62  ;;  %v18726_v59 = vpop.f32.mrb[81].mxu1 }
 0x4b0   :  { %v2437_v56 = vpop.f32.mrb[82].mxu1 }
 0x4b1   :  { %v18727_v45 = vpop.f32.mrb[83].mxu1  ;;  %v7870_v41 = vpop.permute.xlu0 %7869 }
 0x4b2   :  { %7872 = vxpose.xlu0.c.b16.start.end [1/1] (short) (narrow) %v7870_v41, 16  ;;  %4942 = vrot.lane.b32.xlu1 %v26267_v35, %s20681_s15  ;;  %v26309_v41 = vld [vmem:[#allocation35_spill] sm:$0xff] }
 0x4b5   :  { %v8000_v15 = vpop.permute.xlu0 %7999 }
 0x4b6   :  { %v21990_v37 = vpop.f32.mrb[84].mxu1  ;;  %8002 = vxpose.xlu0.c.b16.start.end [1/1] (short) (narrow) %v8000_v15, 16  ;;  %4992 = vrot.lane.b32.xlu1 %v26302_v32, %s20681_s15 }
 0x4b7   :  { %26301 = vst [vmem:[#allocation16_spill] sm:$0xff] %v21990_v37  ;;  %v18738_v25 = vpop.f32.mrb[85].mxu1 }
 0x4b8   :  { %v2567_v13 = vpop.f32.mrb[86].mxu1 }
 0x4b9   :  { %v18739_v48 = vpop.f32.mrb[87].mxu1  ;;  %v8130_v0 = vpop.permute.xlu0 %8129 }
 0x4ba   :  { %v21994_v17 = vpop.f32.mrb[88].mxu0  ;;  %8132 = vxpose.xlu0.c.b16.start.end [1/1] (short) (narrow) %v8130_v0, 16  ;;  %5042 = vrot.lane.b32.xlu1 %v26269_v12, %s20681_s15  ;;  %v26311_v0 = vld [vmem:[#allocation38_spill] sm:$0xff] }
 0x4bb   :  { %26303 = vst [vmem:[#allocation66_spill] sm:$0xff] %v21994_v17  ;;  %v18744_v61 = vpop.f32.mrb[89].mxu0 }
 0x4bc   :  { %v2632_v19 = vpop.f32.mrb[90].mxu0 }
 0x4bd   :  { %v18745_v44 = vpop.f32.mrb[91].mxu0  ;;  %v8260_v26 = vpop.permute.xlu0 %8259 }
 0x4be   :  { %v21998_v57 = vpop.f32.mrb[88].mxu1  ;;  %8262 = vxpose.xlu0.c.b16.start.end [1/1] (short) (narrow) %v8260_v26, 16  ;;  %5092 = vrot.lane.b32.xlu1 %v26305_v34, %s20681_s15 }
 0x4bf   :  { %26304 = vst [vmem:[#allocation20_spill] sm:$0xff] %v21998_v57  ;;  %v18750_v38 = vpop.f32.mrb[89].mxu1 }
 0x4c0   :  { %v2697_v47 = vpop.f32.mrb[90].mxu1  ;;  %v26313_v38 = vld [vmem:[#allocation37_spill] sm:$0xff] }
 0x4c1   :  { %v18751_v21 = vpop.f32.mrb[91].mxu1  ;;  %v8390_v14 = vpop.permute.xlu0 %8389 }
 0x4c2   :  { %8392 = vxpose.xlu0.c.b16.start.end [1/1] (short) (narrow) %v8390_v14, 16  ;;  %5142 = vrot.lane.b32.xlu1 %v26271_v30, %s20681_s15 }
 0x4c6   :  { %v22004_v54 = vpop.f32.mrb[92].mxu0  ;;  %5192 = vrot.lane.b32.xlu1 %v26307_v55, %s20681_s15 }
 0x4c7   :  { %26306 = vst [vmem:[#allocation74_spill] sm:$0xff] %v22004_v54  ;;  %v18756_v31 = vpop.f32.mrb[93].mxu0 }
 0x4c8   :  { %v2762_v59 = vpop.f32.mrb[94].mxu0 }
 0x4c9   :  { %v18757_v56 = vpop.f32.mrb[95].mxu0 }
 0x4ca   :  { %5242 = vrot.lane.b32.xlu1 %v26273_v40, %s20681_s15 }
 0x4ce   :  { %v22010_v45 = vpop.f32.mrb[96].mxu0  ;;  %5292 = vrot.lane.b32.xlu1 %v26309_v41, %s20681_s15 }
 0x4cf   :  { %26308 = vst [vmem:[#allocation68_spill] sm:$0xff] %v22010_v45  ;;  %v18768_v15 = vpop.f32.mrb[97].mxu0  ;;  %v26357_v45 = vld [vmem:[#allocation63_spill] sm:$0xff] }
 0x4d0   :  { %v2892_v25 = vpop.f32.mrb[98].mxu0 }
 0x4d1   :  { %v18769_v13 = vpop.f32.mrb[99].mxu0 }
 0x4d2   :  { %5342 = vrot.lane.b32.xlu1 %v26275_v6, %s20681_s15 }
 0x4d6   :  { %v22016_v48 = vpop.f32.mrb[100].mxu0  ;;  %5392 = vrot.lane.b32.xlu1 %v26311_v0, %s20681_s15 }
 0x4d7   :  { %26310 = vst [vmem:[#allocation73_spill] sm:$0xff] %v22016_v48  ;;  %v18780_v61 = vpop.f32.mrb[101].mxu0  ;;  %v26351_v48 = vld [vmem:[#allocation59_spill] sm:$0xff] }
 0x4d8   :  { %v3022_v19 = vpop.f32.mrb[102].mxu0 }
 0x4d9   :  { %v18781_v44 = vpop.f32.mrb[103].mxu0 }
 0x4da   :  { %5442 = vrot.lane.b32.xlu1 %v26277_v11, %s20681_s15 }
 0x4de   :  { %v22022_v26 = vpop.f32.mrb[104].mxu0  ;;  %5492 = vrot.lane.b32.xlu1 %v26313_v38, %s20681_s15 }
 0x4df   :  { %26312 = vst [vmem:[#allocation67_spill] sm:$0xff] %v22022_v26  ;;  %v18792_v47 = vpop.f32.mrb[105].mxu0  ;;  %v26348_v26 = vld [vmem:[#allocation57_spill] sm:$0xff] }
 0x4e0   :  { %v3152_v21 = vpop.f32.mrb[106].mxu0 }
 0x4e1   :  { %v18793_v14 = vpop.f32.mrb[107].mxu0 }
 0x4e2   :  { %5542 = vrot.lane.b32.xlu1 %v26279_v43, %s20681_s15 }
 0x4e6   :  { %v22028_v31 = vpop.f32.mrb[108].mxu0  ;;  %5592 = vrot.lane.b32.xlu1 %v21013_v46, %s20681_s15 }
 0x4e7   :  { %26314 = vst [vmem:[#allocation78_spill] sm:$0xff] %v22028_v31  ;;  %v18804_v59 = vpop.f32.mrb[109].mxu0 }
 0x4e8   :  { %v3282_v56 = vpop.f32.mrb[110].mxu0  ;;  %v22042_v59 = vpop.trf.xlu1 }
 0x4e9   :  { %v18805_v15 = vpop.f32.mrb[111].mxu0  ;;  %26317 = vst [vmem:[#allocation71_spill] sm:$0xff] %v22042_v59 }
 0x4ea   :  { %5642 = vrot.lane.b32.xlu1 %v20913_v16, %s20681_s15 }
 0x4eb   :  { %v22034_v25 = vpop.f32.mrb[92].mxu1 }
 0x4ec   :  { %26315 = vst [vmem:[#allocation72_spill] sm:$0xff] %v22034_v25  ;;  %v18762_v13 = vpop.f32.mrb[93].mxu1 }
 0x4ed   :  { %v2827_v61 = vpop.f32.mrb[94].mxu1 }
 0x4ee   :  { %v18763_v19 = vpop.f32.mrb[95].mxu1  ;;  %v22036_v44 = vpop.f32.mrb[112].mxu0  ;;  %5692 = vrot.lane.b32.xlu1 %v20997_v42, %s20681_s15 }
 0x4ef   :  { %26316 = vst [vmem:[#allocation77_spill] sm:$0xff] %v22036_v44  ;;  %v18816_v47 = vpop.f32.mrb[113].mxu0 }
 0x4f0   :  { %v3412_v21 = vpop.f32.mrb[114].mxu0 }
 0x4f1   :  { %v18817_v14 = vpop.f32.mrb[115].mxu0 }
 0x4f2   :  { %5742 = vrot.lane.b32.xlu1 %v20898_v3, %s20681_s15 }
 0x4f3   :  { %v22044_v56 = vpop.f32.mrb[96].mxu1 }
 0x4f4   :  { %26318 = vst [vmem:[#allocation82_spill] sm:$0xff] %v22044_v56  ;;  %v18774_v15 = vpop.f32.mrb[97].mxu1 }
 0x4f5   :  { %v2957_v25 = vpop.f32.mrb[98].mxu1 }
 0x4f6   :  { %v18775_v13 = vpop.f32.mrb[99].mxu1  ;;  %v22046_v61 = vpop.f32.mrb[116].mxu0  ;;  %5792 = vrot.lane.b32.xlu1 %v21049_v4, %s20681_s15 }
 0x4f7   :  { %26319 = vst [vmem:[#allocation76_spill] sm:$0xff] %v22046_v61  ;;  %v18828_v19 = vpop.f32.mrb[117].mxu0 }
 0x4f8   :  { %v3542_v57 = vpop.f32.mrb[118].mxu0  ;;  %v4393_v47 = vpop.permute.xlu1 %4392 }
 0x4f9   :  { %v4398_v21 = vsel %vm360_vm2, %v4393_v47, 0  ;;  %v18829_v14 = vpop.f32.mrb[119].mxu0 }
 0x4fa   :  { %5842 = vrot.lane.b32.xlu1 %v20929_v51, %s20681_s15  ;;  %18909 = vmatpush3.bf16.xpose.msra.mxu0 %v4398_v21 }
 0x4fb   :  { %v22053_v54 = vpop.f32.mrb[100].mxu1  ;;  %18920 = vmatprep.subr.bf16.mxu0 %v26256_v18 }
 0x4fc   :  { %26320 = vst [vmem:[#allocation81_spill] sm:$0xff] %v22053_v54  ;;  %v18786_v25 = vpop.f32.mrb[101].mxu1  ;;  %v4443_v15 = vpop.permute.xlu1 %4442 }
 0x4fd   :  { %v4448_v13 = vsel %vm360_vm2, %v4443_v15, 0  ;;  %v3087_v56 = vpop.f32.mrb[102].mxu1  ;;  %v26322_v25 = vld [vmem:[#allocation43_spill] sm:$0xff] }
 0x4fe   :  { %v18787_v61 = vpop.f32.mrb[103].mxu1  ;;  %v22057_v19 = vpop.f32.mrb[120].mxu0  ;;  %5892 = vrot.lane.b32.xlu1 %v21035_v60, %s20681_s15  ;;  %18915 = vmatpush3.bf16.xpose.msra.mxu1 %v4448_v13 }
 0x4ff   :  { %26321 = vst [vmem:[#allocation75_spill] sm:$0xff] %v22057_v19  ;;  %v18840_v57 = vpop.f32.mrb[121].mxu0  ;;  %18926 = vmatprep.subr.bf16.mxu1 %v26256_v18  ;;  %v26328_v19 = vld [vmem:[#allocation46_spill] sm:$0xff] }
 0x500   :  { %v3672_v47 = vpop.f32.mrb[122].mxu0  ;;  %v4493_v21 = vpop.permute.xlu1 %4492 }
 0x501   :  { %v4498_v14 = vsel %vm360_vm2, %v4493_v21, 0  ;;  %v18841_v54 = vpop.f32.mrb[123].mxu0  ;;  %18911 = vmatmul.mubr.msk.bf16.vlgmr.msra.gmra.mrb[144].mxu0 %vm360_vm2, %v26322_v25 }
 0x502   :  { %5942 = vrot.lane.b32.xlu1 %v20923_v20, %s20681_s15  ;;  %18921 = vmatpush3.bf16.xpose.msra.mxu0 %v4498_v14  ;;  %v26324_v54 = vld [vmem:[#allocation44_spill] sm:$0xff] }
 0x503   :  { %v22067_v56 = vpop.f32.mrb[104].mxu1  ;;  %18922 = vmatprep.mubr.msk.bf16.mxu0 %vm20677_vm1, %v26256_v18  ;;  %18932 = vmatprep.subr.bf16.mxu0 %v26256_v18 }
 0x504   :  { %26323 = vst [vmem:[#allocation86_spill] sm:$0xff] %v22067_v56  ;;  %v18798_v61 = vpop.f32.mrb[105].mxu1  ;;  %v4543_v15 = vpop.permute.xlu1 %4542  ;;  %v26326_v56 = vld [vmem:[#allocation45_spill] sm:$0xff] }
 0x505   :  { %v4548_v13 = vsel %vm360_vm2, %v4543_v15, 0  ;;  %v3217_v57 = vpop.f32.mrb[106].mxu1  ;;  %18917 = vmatmul.mubr.msk.bf16.vlgmr.msra.gmra.mrb[144].mxu1 %vm360_vm2, %v26324_v54 }
 0x506   :  { %v18799_v47 = vpop.f32.mrb[107].mxu1  ;;  %v22075_v21 = vpop.f32.mrb[124].mxu0  ;;  %6504 = vrot.lane.b32.xlu1 %v26295_v9, %s20680_s14  ;;  %18927 = vmatpush3.bf16.xpose.msra.mxu1 %v4548_v13 }
 0x507   :  { %26325 = vst [vmem:[#allocation80_spill] sm:$0xff] %v22075_v21  ;;  %v18852_v14 = vpop.f32.mrb[125].mxu0  ;;  %18928 = vmatprep.mubr.msk.bf16.mxu1 %vm20677_vm1, %v26256_v18  ;;  %18938 = vmatprep.subr.bf16.mxu1 %v26256_v18 }
 0x508   :  { %v3802_v25 = vpop.f32.mrb[126].mxu0  ;;  %v4593_v61 = vpop.permute.xlu1 %4592 }
 0x509   :  { %v4598_v15 = vsel %vm360_vm2, %v4593_v61, 0  ;;  %v18853_v57 = vpop.f32.mrb[127].mxu0  ;;  %18923 = vmatmul.mubr.msk.bf16.vlgmr.msra.gmra.mrb[148].mxu0 %vm360_vm2, %v26326_v56 }
 0x50a   :  { %18933 = vmatpush3.bf16.xpose.msra.mxu0 %v4598_v15  ;;  %18934 = vmatprep.mubr.msk.bf16.mxu0 %vm20677_vm1, %v26256_v18 }
 0x50b   :  { %v22087_v54 = vpop.f32.mrb[108].mxu1  ;;  %18944 = vmatprep.subr.bf16.mxu0 %v26256_v18 }
 0x50c   :  { %26327 = vst [vmem:[#allocation85_spill] sm:$0xff] %v22087_v54  ;;  %v18810_v13 = vpop.f32.mrb[109].mxu1  ;;  %v4643_v47 = vpop.permute.xlu1 %4642 }
 0x50d   :  { %v4648_v14 = vsel %vm360_vm2, %v4643_v47, 0  ;;  %v3347_v25 = vpop.f32.mrb[110].mxu1  ;;  %18929 = vmatmul.mubr.msk.bf16.vlgmr.msra.gmra.mrb[148].mxu1 %vm360_vm2, %v26328_v19  ;;  %v26330_v47 = vld [vmem:[#allocation47_spill] sm:$0xff] }
 0x50e   :  { %v18811_v61 = vpop.f32.mrb[111].mxu1  ;;  %v22093_v57 = vpop.f32.mrb[128].mxu0  ;;  %18939 = vmatpush3.bf16.xpose.msra.mxu1 %v4648_v14  ;;  %18940 = vmatprep.mubr.msk.bf16.mxu1 %vm20677_vm1, %v26256_v18 }
 0x50f   :  { %26329 = vst [vmem:[#allocation79_spill] sm:$0xff] %v22093_v57  ;;  %v18864_v56 = vpop.f32.mrb[129].mxu0  ;;  %18950 = vmatprep.subr.bf16.mxu1 %v26256_v18 }
 0x510   :  { %v3932_v15 = vpop.f32.mrb[130].mxu0  ;;  %v4693_v54 = vpop.permute.xlu1 %4692 }
 0x511   :  { %v4698_v13 = vsel %vm360_vm2, %v4693_v54, 0  ;;  %v18865_v44 = vpop.f32.mrb[131].mxu0  ;;  %18935 = vmatmul.mubr.msk.bf16.vlgmr.msra.gmra.mrb[152].mxu0 %vm360_vm2, %v26330_v47  ;;  %v26332_v15 = vld [vmem:[#allocation48_spill] sm:$0xff] }
 0x512   :  { %18945 = vmatpush3.bf16.xpose.msra.mxu0 %v4698_v13  ;;  %18946 = vmatprep.mubr.msk.bf16.mxu0 %vm20677_vm1, %v26256_v18 }
 0x513   :  { %v22103_v19 = vpop.f32.mrb[112].mxu1  ;;  %18956 = vmatprep.subr.bf16.mxu0 %v26256_v18 }
 0x514   :  { %26331 = vst [vmem:[#allocation84_spill] sm:$0xff] %v22103_v19  ;;  %v18822_v14 = vpop.f32.mrb[113].mxu1  ;;  %v4743_v25 = vpop.permute.xlu1 %4742 }
 0x515   :  { %v4748_v61 = vsel %vm360_vm2, %v4743_v25, 0  ;;  %v3477_v56 = vpop.f32.mrb[114].mxu1  ;;  %18941 = vmatmul.mubr.msk.bf16.vlgmr.msra.gmra.mrb[152].mxu1 %vm360_vm2, %v26332_v15  ;;  %v26334_v25 = vld [vmem:[#allocation49_spill] sm:$0xff] }
 0x516   :  { %v18823_v44 = vpop.f32.mrb[115].mxu1  ;;  %v22109_v54 = vpop.f32.mrb[132].mxu0  ;;  %18951 = vmatpush3.bf16.xpose.msra.mxu1 %v4748_v61  ;;  %18952 = vmatprep.mubr.msk.bf16.mxu1 %vm20677_vm1, %v26256_v18 }
 0x517   :  { %26333 = vst [vmem:[#allocation83_spill] sm:$0xff] %v22109_v54  ;;  %v18876_v13 = vpop.f32.mrb[133].mxu0  ;;  %18962 = vmatprep.subr.bf16.mxu1 %v26256_v18 }
 0x518   :  { %v4062_v47 = vpop.f32.mrb[134].mxu0  ;;  %v4793_v19 = vpop.permute.xlu1 %4792 }
 0x519   :  { %v4798_v14 = vsel %vm360_vm2, %v4793_v19, 0  ;;  %v18877_v37 = vpop.f32.mrb[135].mxu0  ;;  %18947 = vmatmul.mubr.msk.bf16.vlgmr.msra.gmra.mrb[156].mxu0 %vm360_vm2, %v26334_v25  ;;  %v26336_v47 = vld [vmem:[#allocation50_spill] sm:$0xff] }
 0x51a   :  { %18957 = vmatpush3.bf16.xpose.msra.mxu0 %v4798_v14  ;;  %18958 = vmatprep.mubr.msk.bf16.mxu0 %vm20677_vm1, %v26256_v18 }
 0x51b   :  { %v22119_v56 = vpop.f32.mrb[116].mxu1  ;;  %18968 = vmatprep.subr.bf16.mxu0 %v26256_v18 }
 0x51c   :  { %26335 = vst [vmem:[#allocation88_spill] sm:$0xff] %v22119_v56  ;;  %v18834_v61 = vpop.f32.mrb[117].mxu1  ;;  %v4843_v15 = vpop.permute.xlu1 %4842 }
 0x51d   :  { %v4848_v44 = vsel %vm360_vm2, %v4843_v15, 0  ;;  %v3607_v13 = vpop.f32.mrb[118].mxu1  ;;  %18953 = vmatmul.mubr.msk.bf16.vlgmr.msra.gmra.mrb[156].mxu1 %vm360_vm2, %v26336_v47  ;;  %v26338_v15 = vld [vmem:[#allocation51_spill] sm:$0xff] }
 0x51e   :  { %v18835_v37 = vpop.f32.mrb[119].mxu1  ;;  %v22125_v19 = vpop.f32.mrb[136].mxu0  ;;  %18963 = vmatpush3.bf16.xpose.msra.mxu1 %v4848_v44  ;;  %18964 = vmatprep.mubr.msk.bf16.mxu1 %vm20677_vm1, %v26256_v18 }
 0x51f   :  { %26337 = vst [vmem:[#allocation87_spill] sm:$0xff] %v22125_v19  ;;  %v18888_v14 = vpop.f32.mrb[137].mxu0  ;;  %18974 = vmatprep.subr.bf16.mxu1 %v26256_v18 }
 0x520   :  { %v4192_v25 = vpop.f32.mrb[138].mxu0  ;;  %v4893_v56 = vpop.permute.xlu1 %4892 }
 0x521   :  { %v4898_v61 = vsel %vm360_vm2, %v4893_v56, 0  ;;  %v18889_v31 = vpop.f32.mrb[139].mxu0  ;;  %18959 = vmatmul.mubr.msk.bf16.vlgmr.msra.gmra.mrb[160].mxu0 %vm360_vm2, %v26338_v15  ;;  %v26340_v25 = vld [vmem:[#allocation52_spill] sm:$0xff] }
 0x522   :  { %18969 = vmatpush3.bf16.xpose.msra.mxu0 %v4898_v61  ;;  %18970 = vmatprep.mubr.msk.bf16.mxu0 %vm20677_vm1, %v26256_v18 }
 0x523   :  { %v22135_v13 = vpop.f32.mrb[120].mxu1  ;;  %18980 = vmatprep.subr.bf16.mxu0 %v26256_v18 }
 0x524   :  { %26339 = vst [vmem:[#allocation15_spill] sm:$0xff] %v22135_v13  ;;  %v18846_v44 = vpop.f32.mrb[121].mxu1  ;;  %v4943_v47 = vpop.permute.xlu1 %4942 }
 0x525   :  { %v4948_v37 = vsel %vm360_vm2, %v4943_v47, 0  ;;  %v3737_v14 = vpop.f32.mrb[122].mxu1  ;;  %18965 = vmatmul.mubr.msk.bf16.vlgmr.msra.gmra.mrb[160].mxu1 %vm360_vm2, %v26340_v25  ;;  %v26342_v47 = vld [vmem:[#allocation53_spill] sm:$0xff] }
 0x526   :  { %v18847_v31 = vpop.f32.mrb[123].mxu1  ;;  %v22141_v56 = vpop.f32.mrb[140].mxu0  ;;  %18975 = vmatpush3.bf16.xpose.msra.mxu1 %v4948_v37  ;;  %18976 = vmatprep.mubr.msk.bf16.mxu1 %vm20677_vm1, %v26256_v18 }
 0x527   :  { %26341 = vst [vmem:[#allocation27_spill] sm:$0xff] %v22141_v56  ;;  %v18900_v61 = vpop.f32.mrb[141].mxu0  ;;  %18986 = vmatprep.subr.bf16.mxu1 %v26256_v18 }
 0x528   :  { %v4322_v15 = vpop.f32.mrb[142].mxu0  ;;  %v4993_v13 = vpop.permute.xlu1 %4992 }
 0x529   :  { %v4998_v44 = vsel %vm360_vm2, %v4993_v13, 0  ;;  %v18901_v62 = vpop.f32.mrb[143].mxu0  ;;  %18971 = vmatmul.mubr.msk.bf16.vlgmr.msra.gmra.mrb[164].mxu0 %vm360_vm2, %v26342_v47  ;;  %v26344_v15 = vld [vmem:[#allocation54_spill] sm:$0xff]  ;;  %v26345_v47 = vld [vmem:[#allocation55_spill] sm:$0xff] }
 0x52a   :  { %18981 = vmatpush3.bf16.xpose.msra.mxu0 %v4998_v44  ;;  %18982 = vmatprep.mubr.msk.bf16.mxu0 %vm20677_vm1, %v26256_v18 }
 0x52b   :  { %v22151_v14 = vpop.f32.mrb[124].mxu1  ;;  %18992 = vmatprep.subr.bf16.mxu0 %v26256_v18 }
 0x52c   :  { %26343 = vst [vmem:[#allocation43_spill] sm:$0xff] %v22151_v14  ;;  %v18858_v37 = vpop.f32.mrb[125].mxu1  ;;  %v5043_v25 = vpop.permute.xlu1 %5042 }
 0x52d   :  { %v5048_v31 = vsel %vm360_vm2, %v5043_v25, 0  ;;  %v3867_v61 = vpop.f32.mrb[126].mxu1  ;;  %18977 = vmatmul.mubr.msk.bf16.vlgmr.msra.gmra.mrb[164].mxu1 %vm360_vm2, %v26344_v15 }
 0x52e   :  { %v18859_v62 = vpop.f32.mrb[127].mxu1  ;;  %18987 = vmatpush3.bf16.xpose.msra.mxu1 %v5048_v31  ;;  %18988 = vmatprep.mubr.msk.bf16.mxu1 %vm20677_vm1, %v26256_v18 }
 0x52f   :  { %18998 = vmatprep.subr.bf16.mxu1 %v26256_v18  ;;  %v26347_v62 = vld [vmem:[#allocation56_spill] sm:$0xff] }
 0x530   :  { %v5093_v13 = vpop.permute.xlu1 %5092 }
 0x531   :  { %v5098_v44 = vsel %vm360_vm2, %v5093_v13, 0  ;;  %18983 = vmatmul.mubr.msk.bf16.vlgmr.msra.gmra.mrb[168].mxu0 %vm360_vm2, %v26345_v47 }
 0x532   :  { %18993 = vmatpush3.bf16.xpose.msra.mxu0 %v5098_v44  ;;  %18994 = vmatprep.mubr.msk.bf16.mxu0 %vm20677_vm1, %v26256_v18 }
 0x533   :  { %v22165_v37 = vpop.f32.mrb[128].mxu1  ;;  %19004 = vmatprep.subr.bf16.mxu0 %v26256_v18 }
 0x534   :  { %26346 = vst [vmem:[#allocation44_spill] sm:$0xff] %v22165_v37  ;;  %v18870_v25 = vpop.f32.mrb[129].mxu1  ;;  %v5143_v31 = vpop.permute.xlu1 %5142 }
 0x535   :  { %v5148_v61 = vsel %vm360_vm2, %v5143_v31, 0  ;;  %v3997_v15 = vpop.f32.mrb[130].mxu1  ;;  %18989 = vmatmul.mubr.msk.bf16.vlgmr.msra.gmra.mrb[168].mxu1 %vm360_vm2, %v26347_v62 }
 0x536   :  { %v18871_v13 = vpop.f32.mrb[131].mxu1  ;;  %18999 = vmatpush3.bf16.xpose.msra.mxu1 %v5148_v61  ;;  %19000 = vmatprep.mubr.msk.bf16.mxu1 %vm20677_vm1, %v26256_v18 }
 0x537   :  { %19010 = vmatprep.subr.bf16.mxu1 %v26256_v18  ;;  %v26350_v13 = vld [vmem:[#allocation58_spill] sm:$0xff] }
 0x538   :  { %v5193_v44 = vpop.permute.xlu1 %5192 }
 0x539   :  { %v5198_v47 = vsel %vm360_vm2, %v5193_v44, 0  ;;  %18995 = vmatmul.mubr.msk.bf16.vlgmr.msra.gmra.mrb[172].mxu0 %vm360_vm2, %v26348_v26 }
 0x53a   :  { %19005 = vmatpush3.bf16.xpose.msra.mxu0 %v5198_v47  ;;  %19006 = vmatprep.mubr.msk.bf16.mxu0 %vm20677_vm1, %v26256_v18 }
 0x53b   :  { %v22179_v25 = vpop.f32.mrb[132].mxu1  ;;  %19016 = vmatprep.subr.bf16.mxu0 %v26256_v18 }
 0x53c   :  { %26349 = vst [vmem:[#allocation45_spill] sm:$0xff] %v22179_v25  ;;  %v18882_v31 = vpop.f32.mrb[133].mxu1  ;;  %v5243_v61 = vpop.permute.xlu1 %5242 }
 0x53d   :  { %v5248_v15 = vsel %vm360_vm2, %v5243_v61, 0  ;;  %v4127_v62 = vpop.f32.mrb[134].mxu1  ;;  %19001 = vmatmul.mubr.msk.bf16.vlgmr.msra.gmra.mrb[172].mxu1 %vm360_vm2, %v26350_v13 }
 0x53e   :  { %v18883_v44 = vpop.f32.mrb[135].mxu1  ;;  %19011 = vmatpush3.bf16.xpose.msra.mxu1 %v5248_v15  ;;  %19012 = vmatprep.mubr.msk.bf16.mxu1 %vm20677_vm1, %v26256_v18 }
 0x53f   :  { %19022 = vmatprep.subr.bf16.mxu1 %v26256_v18  ;;  %v26353_v44 = vld [vmem:[#allocation60_spill] sm:$0xff] }
 0x540   :  { %v5293_v26 = vpop.permute.xlu1 %5292 }
 0x541   :  { %v5298_v47 = vsel %vm360_vm2, %v5293_v26, 0  ;;  %19007 = vmatmul.mubr.msk.bf16.vlgmr.msra.gmra.mrb[176].mxu0 %vm360_vm2, %v26351_v48 }
 0x542   :  { %19017 = vmatpush3.bf16.xpose.msra.mxu0 %v5298_v47  ;;  %19018 = vmatprep.mubr.msk.bf16.mxu0 %vm20677_vm1, %v26256_v18 }
 0x543   :  { %v22193_v31 = vpop.f32.mrb[136].mxu1  ;;  %19028 = vmatprep.subr.bf16.mxu0 %v26256_v18 }
 0x544   :  { %26352 = vst [vmem:[#allocation46_spill] sm:$0xff] %v22193_v31  ;;  %v18894_v61 = vpop.f32.mrb[137].mxu1  ;;  %v5343_v15 = vpop.permute.xlu1 %5342  ;;  %v26354_v31 = vld [vmem:[#allocation61_spill] sm:$0xff] }
 0x545   :  { %v5348_v62 = vsel %vm360_vm2, %v5343_v15, 0  ;;  %v4257_v13 = vpop.f32.mrb[138].mxu1  ;;  %19013 = vmatmul.mubr.msk.bf16.vlgmr.msra.gmra.mrb[176].mxu1 %vm360_vm2, %v26353_v44  ;;  %v26356_v44 = vld [vmem:[#allocation62_spill] sm:$0xff] }
 0x546   :  { %v18895_v26 = vpop.f32.mrb[139].mxu1  ;;  %19023 = vmatpush3.bf16.xpose.msra.mxu1 %v5348_v62  ;;  %19024 = vmatprep.mubr.msk.bf16.mxu1 %vm20677_vm1, %v26256_v18 }
 0x547   :  { %19034 = vmatprep.subr.bf16.mxu1 %v26256_v18 }
 0x548   :  { %v5393_v48 = vpop.permute.xlu1 %5392 }
 0x549   :  { %v5398_v47 = vsel %vm360_vm2, %v5393_v48, 0  ;;  %19019 = vmatmul.mubr.msk.bf16.vlgmr.msra.gmra.mrb[180].mxu0 %vm360_vm2, %v26354_v31 }
 0x54a   :  { %19029 = vmatpush3.bf16.xpose.msra.mxu0 %v5398_v47  ;;  %19030 = vmatprep.mubr.msk.bf16.mxu0 %vm20677_vm1, %v26256_v18 }
 0x54b   :  { %19040 = vmatprep.subr.bf16.mxu0 %v26256_v18 }
 0x54c   :  { %v22208_v61 = vpop.f32.mrb[140].mxu1  ;;  %v5443_v15 = vpop.permute.xlu1 %5442 }
 0x54d   :  { %26355 = vst [vmem:[#allocation47_spill] sm:$0xff] %v22208_v61  ;;  %v5448_v62 = vsel %vm360_vm2, %v5443_v15, 0  ;;  %v18906_v13 = vpop.f32.mrb[141].mxu1  ;;  %19025 = vmatmul.mubr.msk.bf16.vlgmr.msra.gmra.mrb[180].mxu1 %vm360_vm2, %v26356_v44 }
 0x54e   :  { %v4387_v26 = vpop.f32.mrb[142].mxu1  ;;  %19035 = vmatpush3.bf16.xpose.msra.mxu1 %v5448_v62  ;;  %19036 = vmatprep.mubr.msk.bf16.mxu1 %vm20677_vm1, %v26256_v18  ;;  %v26358_v13 = vld [vmem:[#allocation64_spill] sm:$0xff] }
 0x54f   :  { %v18907_v31 = vpop.f32.mrb[143].mxu1  ;;  %19046 = vmatprep.subr.bf16.mxu1 %v26256_v18  ;;  %v26359_v26 = vld [vmem:[#allocation65_spill] sm:$0xff] }
 0x550   :  { %v5493_v48 = vpop.permute.xlu1 %5492 }
 0x551   :  { %v5498_v47 = vsel %vm360_vm2, %v5493_v48, 0  ;;  %19031 = vmatmul.mubr.msk.bf16.vlgmr.msra.gmra.mrb[184].mxu0 %vm360_vm2, %v26357_v45 }
 0x552   :  { %19041 = vmatpush3.bf16.xpose.msra.mxu0 %v5498_v47  ;;  %19042 = vmatprep.mubr.msk.bf16.mxu0 %vm20677_vm1, %v26256_v18 }
 0x553   :  { %19052 = vmatprep.subr.bf16.mxu0 %v26256_v18 }
 0x554   :  { %v5543_v15 = vpop.permute.xlu1 %5542 }
 0x555   :  { %v5548_v62 = vsel %vm360_vm2, %v5543_v15, 0  ;;  %19037 = vmatmul.mubr.msk.bf16.vlgmr.msra.gmra.mrb[184].mxu1 %vm360_vm2, %v26358_v13 }
 0x556   :  { %19047 = vmatpush3.bf16.xpose.msra.mxu1 %v5548_v62  ;;  %19048 = vmatprep.mubr.msk.bf16.mxu1 %vm20677_vm1, %v26256_v18 }
 0x557   :  { %19058 = vmatprep.subr.bf16.mxu1 %v26256_v18 }
 0x558   :  { %v5593_v44 = vpop.permute.xlu1 %5592 }
 0x559   :  { %v5598_v45 = vsel %vm360_vm2, %v5593_v44, 0  ;;  %19043 = vmatmul.mubr.msk.bf16.vlgmr.msra.gmra.mrb[188].mxu0 %vm360_vm2, %v26359_v26 }
 0x55a   :  { %19053 = vmatpush3.bf16.xpose.msra.mxu0 %v5598_v45  ;;  %19054 = vmatprep.mubr.msk.bf16.mxu0 %vm20677_vm1, %v26256_v18 }
 0x55b   :  { %19064 = vmatprep.subr.bf16.mxu0 %v26256_v18 }
 0x55c   :  { %v5643_v31 = vpop.permute.xlu1 %5642 }
 0x55d   :  { %v5648_v48 = vsel %vm360_vm2, %v5643_v31, 0  ;;  %19049 = vmatmul.mubr.msk.bf16.vlgmr.msra.gmra.mrb[188].mxu1 %vm360_vm2, %v21737_v39 }
 0x55e   :  { %19059 = vmatpush3.bf16.xpose.msra.mxu1 %v5648_v48  ;;  %19060 = vmatprep.mubr.msk.bf16.mxu1 %vm20677_vm1, %v26256_v18 }
 0x55f   :  { %19070 = vmatprep.subr.bf16.mxu1 %v26256_v18 }
 0x560   :  { %v5693_v47 = vpop.permute.xlu1 %5692 }
 0x561   :  { %v5698_v15 = vsel %vm360_vm2, %v5693_v47, 0  ;;  %19055 = vmatmul.mubr.msk.bf16.vlgmr.msra.gmra.mrb[192].mxu0 %vm360_vm2, %v21920_v10 }
 0x562   :  { %19065 = vmatpush3.bf16.xpose.msra.mxu0 %v5698_v15  ;;  %19066 = vmatprep.mubr.msk.bf16.mxu0 %vm20677_vm1, %v26256_v18 }
 0x563   :  { %19076 = vmatprep.subr.bf16.mxu0 %v26256_v18 }
 0x564   :  { %v5743_v62 = vpop.permute.xlu1 %5742 }
 0x565   :  { %v5748_v39 = vsel %vm360_vm2, %v5743_v62, 0  ;;  %19061 = vmatmul.mubr.msk.bf16.vlgmr.msra.gmra.mrb[192].mxu1 %vm360_vm2, %v21929_v22 }
 0x566   :  { %19071 = vmatpush3.bf16.xpose.msra.mxu1 %v5748_v39  ;;  %19072 = vmatprep.mubr.msk.bf16.mxu1 %vm20677_vm1, %v26256_v18 }
 0x567   :  { %19082 = vmatprep.subr.bf16.mxu1 %v26256_v18 }
 0x568   :  { %v5793_v13 = vpop.permute.xlu1 %5792 }
 0x569   :  { %v5798_v10 = vsel %vm360_vm2, %v5793_v13, 0  ;;  %19067 = vmatmul.mubr.msk.bf16.vlgmr.msra.gmra.mrb[196].mxu0 %vm360_vm2, %v21934_v53 }
 0x56a   :  { %19077 = vmatpush3.bf16.xpose.msra.mxu0 %v5798_v10  ;;  %19078 = vmatprep.mubr.msk.bf16.mxu0 %vm20677_vm1, %v26256_v18 }
 0x56b   :  { %19088 = vmatprep.subr.bf16.mxu0 %v26256_v18 }
 0x56c   :  { %v5843_v44 = vpop.permute.xlu1 %5842 }
 0x56d   :  { %v5848_v22 = vsel %vm360_vm2, %v5843_v44, 0  ;;  %19073 = vmatmul.mubr.msk.bf16.vlgmr.msra.gmra.mrb[196].mxu1 %vm360_vm2, %v21939_v29 }
 0x56e   :  { %19083 = vmatpush3.bf16.xpose.msra.mxu1 %v5848_v22  ;;  %19084 = vmatprep.mubr.msk.bf16.mxu1 %vm20677_vm1, %v26256_v18 }
 0x56f   :  { %19094 = vmatprep.subr.bf16.mxu1 %v26256_v18 }
 0x570   :  { %v5893_v45 = vpop.permute.xlu1 %5892 }
 0x571   :  { %v5898_v53 = vsel %vm360_vm2, %v5893_v45, 0  ;;  %19079 = vmatmul.mubr.msk.bf16.vlgmr.msra.gmra.mrb[200].mxu0 %vm360_vm2, %v21944_v8 }
 0x572   :  { %19089 = vmatpush3.bf16.xpose.msra.mxu0 %v5898_v53  ;;  %19090 = vmatprep.mubr.msk.bf16.mxu0 %vm20677_vm1, %v26256_v18 }
 0x573   :  { %19100 = vmatprep.subr.bf16.mxu0 %v26256_v18 }
 0x574   :  { %v5943_v26 = vpop.permute.xlu1 %5942 }
 0x575   :  { %v5948_v29 = vsel %vm360_vm2, %v5943_v26, 0  ;;  %19085 = vmatmul.mubr.msk.bf16.vlgmr.msra.gmra.mrb[200].mxu1 %vm360_vm2, %v21950_v63 }
 0x576   :  { %19095 = vmatpush3.bf16.xpose.msra.mxu1 %v5948_v29  ;;  %19096 = vmatprep.mubr.msk.bf16.mxu1 %vm20677_vm1, %v26256_v18 }
 0x577   :  { %19106 = vmatprep.subr.bf16.mxu1 %v26256_v18 }
 0x578   :  { %v6505_v31 = vpop.permute.xlu1 %6504 }
 0x579   :  { %19091 = vmatmul.mubr.msk.bf16.vlgmr.msra.gmra.mrb[204].mxu0 %vm360_vm2, %v21954_v27  ;;  %6507 = vxpose.xlu1.c.b16.start.end [1/1] (short) (narrow) %v6505_v31, 16 }
 0x57a   :  { %19102 = vmatprep.mubr.msk.bf16.mxu0 %vm20677_vm1, %v26256_v18 }
 0x57d   :  { %19097 = vmatmul.mubr.msk.bf16.vlgmr.msra.gmra.mrb[204].mxu1 %vm360_vm2, %v21958_v33  ;;  %6634 = vrot.lane.b32.xlu1 %v26296_v36, %s20680_s14 }
 0x57e   :  { %19108 = vmatprep.mubr.msk.bf16.mxu1 %vm20677_vm1, %v26256_v18 }
 0x5d4   :  { %v22286_v8 = vpop.f32.mrb[144].mxu0 }
 0x5d5   :  { %v18912_v63 = vpop.f32.mrb[145].mxu0  ;;  %v5990_v48 = vsel %vm360_vm2, %v22286_v8, -inf }
 0x5d6   :  { %5991 = vmax.xlane.f32.xlu0 %v5990_v48  ;;  %v4437_v27 = vpop.f32.mrb[146].mxu0 }
 0x5d7   :  { %v18913_v47 = vpop.f32.mrb[147].mxu0 }
 0x5d8   :  { %v22290_v15 = vpop.f32.mrb[144].mxu1 }
 0x5d9   :  { %v18918_v62 = vpop.f32.mrb[145].mxu1 }
 0x5da   :  { %v4487_v39 = vpop.f32.mrb[146].mxu1 }
 0x5db   :  { %v18919_v33 = vpop.f32.mrb[147].mxu1 }
 0x5dc   :  { %v22292_v13 = vpop.f32.mrb[148].mxu0 }
 0x5dd   :  { %v18924_v10 = vpop.f32.mrb[149].mxu0  ;;  %v5996_v44 = vsel %vm360_vm2, %v22292_v13, -inf }
 0x5de   :  { %5997 = vmax.xlane.f32.xlu0 %v5996_v44  ;;  %v4537_v22 = vpop.f32.mrb[150].mxu0 }
 0x5df   :  { %v18925_v45 = vpop.f32.mrb[151].mxu0  ;;  %v22306_v44 = vpop.trf.xlu1 }
 0x5e0   :  { %v22296_v53 = vpop.f32.mrb[148].mxu1  ;;  %26360 = vst [vmem:[#allocation48_spill] sm:$0xff] %v22306_v44 }
 0x5e1   :  { %v18930_v26 = vpop.f32.mrb[149].mxu1  ;;  %v5999_v29 = vsel %vm360_vm2, %v22296_v53, -inf }
 0x5e2   :  { %6000 = vmax.xlane.f32.xlu0 %v5999_v29  ;;  %v4587_v31 = vpop.f32.mrb[150].mxu1 }
 0x5e3   :  { %v18931_v63 = vpop.f32.mrb[151].mxu1 }
 0x5e4   :  { %v22300_v48 = vpop.f32.mrb[152].mxu0 }
 0x5e5   :  { %v18936_v27 = vpop.f32.mrb[153].mxu0  ;;  %v6002_v47 = vsel %vm360_vm2, %v22300_v48, -inf }
 0x5e6   :  { %6003 = vmax.xlane.f32.xlu0 %v6002_v47  ;;  %v4637_v62 = vpop.f32.mrb[154].mxu0 }
 0x5e7   :  { %v18937_v39 = vpop.f32.mrb[155].mxu0 }
 0x5e8   :  { %v22304_v33 = vpop.f32.mrb[152].mxu1 }
 0x5e9   :  { %v18942_v10 = vpop.f32.mrb[153].mxu1 }
 0x5ea   :  { %v4687_v22 = vpop.f32.mrb[154].mxu1 }
 0x5eb   :  { %v18943_v45 = vpop.f32.mrb[155].mxu1 }
 0x5ec   :  { %v22308_v26 = vpop.f32.mrb[156].mxu0 }
 0x5ed   :  { %26361 = vst [vmem:[#allocation49_spill] sm:$0xff] %v22308_v26  ;;  %v18948_v29 = vpop.f32.mrb[157].mxu0  ;;  %v6008_v31 = vsel %vm360_vm2, %v22308_v26, -inf }
 0x5ee   :  { %6009 = vmax.xlane.f32.xlu0 %v6008_v31  ;;  %v4737_v63 = vpop.f32.mrb[158].mxu0 }
 0x5ef   :  { %v18949_v27 = vpop.f32.mrb[159].mxu0  ;;  %v6635_v61 = vpop.permute.xlu1 %6634 }
 0x5f0   :  { %v22312_v47 = vpop.f32.mrb[156].mxu1  ;;  %6637 = vxpose.xlu1.c.b16.start.end [1/1] (short) (narrow) %v6635_v61, 16 }
 0x5f1   :  { %v18954_v62 = vpop.f32.mrb[157].mxu1 }
 0x5f2   :  { %v4787_v39 = vpop.f32.mrb[158].mxu1 }
 0x5f3   :  { %v18955_v10 = vpop.f32.mrb[159].mxu1 }
 0x5f4   :  { %v22314_v25 = vpop.f32.mrb[160].mxu0  ;;  %6764 = vrot.lane.b32.xlu1 %v26297_v58, %s20680_s14 }
 0x5f5   :  { %26362 = vst [vmem:[#allocation50_spill] sm:$0xff] %v22314_v25  ;;  %v18960_v22 = vpop.f32.mrb[161].mxu0  ;;  %v6014_v45 = vsel %vm360_vm2, %v22314_v25, -inf }
 0x5f6   :  { %6015 = vmax.xlane.f32.xlu0 %v6014_v45  ;;  %v4837_v29 = vpop.f32.mrb[162].mxu0 }
 0x5f7   :  { %v18961_v31 = vpop.f32.mrb[163].mxu0 }
 0x5f8   :  { %v22320_v63 = vpop.f32.mrb[160].mxu1 }
 0x5f9   :  { %v18966_v27 = vpop.f32.mrb[161].mxu1 }
 0x5fa   :  { %v4887_v37 = vpop.f32.mrb[162].mxu1 }
 0x5fb   :  { %v18967_v61 = vpop.f32.mrb[163].mxu1 }
 0x5fc   :  { %v22322_v62 = vpop.f32.mrb[164].mxu0 }
 0x5fd   :  { %26363 = vst [vmem:[#allocation51_spill] sm:$0xff] %v22322_v62  ;;  %v18972_v39 = vpop.f32.mrb[165].mxu0  ;;  %v6020_v10 = vsel %vm360_vm2, %v22322_v62, -inf }
 0x5fe   :  { %6021 = vmax.xlane.f32.xlu0 %v6020_v10  ;;  %v4937_v17 = vpop.f32.mrb[166].mxu0 }
 0x5ff   :  { %v18973_v22 = vpop.f32.mrb[167].mxu0 }
 0x600   :  { %v22326_v14 = vpop.f32.mrb[164].mxu1 }
 0x601   :  { %v18978_v52 = vpop.f32.mrb[165].mxu1 }
 0x602   :  { %v4987_v45 = vpop.f32.mrb[166].mxu1 }
 0x603   :  { %v18979_v29 = vpop.f32.mrb[167].mxu1 }
 0x604   :  { %v22328_v31 = vpop.f32.mrb[168].mxu0 }
 0x605   :  { %26364 = vst [vmem:[#allocation52_spill] sm:$0xff] %v22328_v31  ;;  %v18984_v7 = vpop.f32.mrb[169].mxu0  ;;  %v6026_v37 = vsel %vm360_vm2, %v22328_v31, -inf }
 0x606   :  { %6027 = vmax.xlane.f32.xlu0 %v6026_v37  ;;  %v5037_v27 = vpop.f32.mrb[170].mxu0 }
 0x607   :  { %v18985_v61 = vpop.f32.mrb[171].mxu0 }
 0x608   :  { %v22332_v39 = vpop.f32.mrb[168].mxu1 }
 0x609   :  { %v18990_v56 = vpop.f32.mrb[169].mxu1 }
 0x60a   :  { %v5087_v10 = vpop.f32.mrb[170].mxu1 }
 0x60b   :  { %v18991_v17 = vpop.f32.mrb[171].mxu1 }
 0x60c   :  { %v22334_v22 = vpop.f32.mrb[172].mxu0 }
 0x60d   :  { %26365 = vst [vmem:[#allocation53_spill] sm:$0xff] %v22334_v22  ;;  %v18996_v19 = vpop.f32.mrb[173].mxu0  ;;  %v6032_v52 = vsel %vm360_vm2, %v22334_v22, -inf }
 0x60e   :  { %6033 = vmax.xlane.f32.xlu0 %v6032_v52  ;;  %v5137_v45 = vpop.f32.mrb[174].mxu0 }
 0x60f   :  { %v18997_v7 = vpop.f32.mrb[175].mxu0 }
 0x610   :  { %v22338_v29 = vpop.f32.mrb[172].mxu1 }
 0x611   :  { %v19002_v54 = vpop.f32.mrb[173].mxu1 }
 0x612   :  { %v5187_v37 = vpop.f32.mrb[174].mxu1 }
 0x613   :  { %v19003_v27 = vpop.f32.mrb[175].mxu1 }
 0x614   :  { %v22340_v61 = vpop.f32.mrb[176].mxu0 }
 0x615   :  { %26366 = vst [vmem:[#allocation54_spill] sm:$0xff] %v22340_v61  ;;  %v19008_v57 = vpop.f32.mrb[177].mxu0  ;;  %v6038_v56 = vsel %vm360_vm2, %v22340_v61, -inf }
 0x616   :  { %6039 = vmax.xlane.f32.xlu0 %v6038_v56  ;;  %v5237_v10 = vpop.f32.mrb[178].mxu0 }
 0x617   :  { %v19009_v19 = vpop.f32.mrb[179].mxu0 }
 0x618   :  { %v22344_v17 = vpop.f32.mrb[176].mxu1 }
 0x619   :  { %v19014_v21 = vpop.f32.mrb[177].mxu1 }
 0x61a   :  { %v5287_v52 = vpop.f32.mrb[178].mxu1 }
 0x61b   :  { %v19015_v45 = vpop.f32.mrb[179].mxu1 }
 0x61c   :  { %v22346_v7 = vpop.f32.mrb[180].mxu0 }
 0x61d   :  { %26367 = vst [vmem:[#allocation55_spill] sm:$0xff] %v22346_v7  ;;  %v19020_v44 = vpop.f32.mrb[181].mxu0  ;;  %v6044_v54 = vsel %vm360_vm2, %v22346_v7, -inf }
 0x61e   :  { %6045 = vmax.xlane.f32.xlu0 %v6044_v54  ;;  %v5337_v37 = vpop.f32.mrb[182].mxu0 }
 0x61f   :  { %v19021_v57 = vpop.f32.mrb[183].mxu0 }
 0x620   :  { %v22350_v27 = vpop.f32.mrb[180].mxu1 }
 0x621   :  { %v19026_v59 = vpop.f32.mrb[181].mxu1 }
 0x622   :  { %v5387_v56 = vpop.f32.mrb[182].mxu1 }
 0x623   :  { %v19027_v10 = vpop.f32.mrb[183].mxu1 }
 0x624   :  { %v22352_v19 = vpop.f32.mrb[184].mxu0 }
 0x625   :  { %26368 = vst [vmem:[#allocation56_spill] sm:$0xff] %v22352_v19  ;;  %v19032_v61 = vpop.f32.mrb[185].mxu0  ;;  %v6050_v21 = vsel %vm360_vm2, %v22352_v19, -inf }
 0x626   :  { %6051 = vmax.xlane.f32.xlu0 %v6050_v21  ;;  %v5437_v52 = vpop.f32.mrb[186].mxu0 }
 0x627   :  { %v19033_v44 = vpop.f32.mrb[187].mxu0 }
 0x628   :  { %v22356_v45 = vpop.f32.mrb[184].mxu1 }
 0x629   :  { %v19038_v7 = vpop.f32.mrb[185].mxu1 }
 0x62a   :  { %v5487_v54 = vpop.f32.mrb[186].mxu1 }
 0x62b   :  { %v19039_v37 = vpop.f32.mrb[187].mxu1 }
 0x62c   :  { %v22358_v57 = vpop.f32.mrb[188].mxu0 }
 0x62d   :  { %26369 = vst [vmem:[#allocation57_spill] sm:$0xff] %v22358_v57  ;;  %v19044_v22 = vpop.f32.mrb[189].mxu0  ;;  %v6056_v59 = vsel %vm360_vm2, %v22358_v57, -inf }
 0x62e   :  { %6057 = vmax.xlane.f32.xlu0 %v6056_v59  ;;  %v5537_v56 = vpop.f32.mrb[190].mxu0 }
 0x62f   :  { %v19045_v61 = vpop.f32.mrb[191].mxu0 }
 0x630   :  { %v22362_v10 = vpop.f32.mrb[188].mxu1 }
 0x631   :  { %v19050_v19 = vpop.f32.mrb[189].mxu1 }
 0x632   :  { %v5587_v21 = vpop.f32.mrb[190].mxu1 }
 0x633   :  { %v19051_v52 = vpop.f32.mrb[191].mxu1 }
 0x634   :  { %v22364_v44 = vpop.f32.mrb[192].mxu0 }
 0x635   :  { %26370 = vst [vmem:[#allocation58_spill] sm:$0xff] %v22364_v44  ;;  %v19056_v31 = vpop.f32.mrb[193].mxu0  ;;  %v6062_v7 = vsel %vm360_vm2, %v22364_v44, -inf }
 0x636   :  { %6063 = vmax.xlane.f32.xlu0 %v6062_v7  ;;  %v5637_v54 = vpop.f32.mrb[194].mxu0 }
 0x637   :  { %v19057_v22 = vpop.f32.mrb[195].mxu0 }
 0x638   :  { %v22368_v37 = vpop.f32.mrb[192].mxu1 }
 0x639   :  { %v19062_v57 = vpop.f32.mrb[193].mxu1 }
 0x63a   :  { %v5687_v59 = vpop.f32.mrb[194].mxu1 }
 0x63b   :  { %v19063_v56 = vpop.f32.mrb[195].mxu1 }
 0x63c   :  { %v22370_v61 = vpop.f32.mrb[196].mxu0 }
 0x63d   :  { %26371 = vst [vmem:[#allocation59_spill] sm:$0xff] %v22370_v61  ;;  %v19068_v62 = vpop.f32.mrb[197].mxu0  ;;  %v6068_v19 = vsel %vm360_vm2, %v22370_v61, -inf }
 0x63e   :  { %6069 = vmax.xlane.f32.xlu0 %v6068_v19  ;;  %v5737_v21 = vpop.f32.mrb[198].mxu0 }
 0x63f   :  { %v19069_v31 = vpop.f32.mrb[199].mxu0 }
 0x640   :  { %v22374_v52 = vpop.f32.mrb[196].mxu1 }
 0x641   :  { %v19074_v44 = vpop.f32.mrb[197].mxu1 }
 0x642   :  { %v5787_v7 = vpop.f32.mrb[198].mxu1 }
 0x643   :  { %v19075_v54 = vpop.f32.mrb[199].mxu1 }
 0x644   :  { %v22376_v22 = vpop.f32.mrb[200].mxu0 }
 0x645   :  { %26372 = vst [vmem:[#allocation60_spill] sm:$0xff] %v22376_v22  ;;  %v19080_v25 = vpop.f32.mrb[201].mxu0  ;;  %v6074_v57 = vsel %vm360_vm2, %v22376_v22, -inf }
 0x646   :  { %6075 = vmax.xlane.f32.xlu0 %v6074_v57  ;;  %v5837_v59 = vpop.f32.mrb[202].mxu0 }
 0x647   :  { %v19081_v62 = vpop.f32.mrb[203].mxu0 }
 0x648   :  { %v22380_v56 = vpop.f32.mrb[200].mxu1 }
 0x649   :  { %v19086_v61 = vpop.f32.mrb[201].mxu1 }
 0x64a   :  { %v5887_v19 = vpop.f32.mrb[202].mxu1 }
 0x64b   :  { %v19087_v21 = vpop.f32.mrb[203].mxu1 }
 0x64c   :  { %v22382_v31 = vpop.f32.mrb[204].mxu0 }
 0x64d   :  { %v19092_v26 = vpop.f32.mrb[205].mxu0  ;;  %v6080_v44 = vsel %vm360_vm2, %v22382_v31, -inf }
 0x64e   :  { %6081 = vmax.xlane.f32.xlu0 %v6080_v44  ;;  %v5937_v7 = vpop.f32.mrb[206].mxu0 }
 0x64f   :  { %v19093_v25 = vpop.f32.mrb[207].mxu0 }
 0x650   :  { %v22386_v54 = vpop.f32.mrb[204].mxu1 }
 0x651   :  { %26373 = vst [vmem:[#allocation61_spill] sm:$0xff] %v22386_v54  ;;  %v19098_v22 = vpop.f32.mrb[205].mxu1 }
 0x652   :  { %v5987_v57 = vpop.f32.mrb[206].mxu1 }
 0x653   :  { %v19099_v59 = vpop.f32.mrb[207].mxu1 }
 0x656   :  { %v22388_v62 = vpop.trf.xlu1 }
 0x666   :  { %v6765_v18 = vpop.permute.xlu1 %6764 }
 0x667   :  { %6767 = vxpose.xlu1.c.b16.start.end [1/1] (short) (narrow) %v6765_v18, 16 }
 0x66b   :  { %6894 = vrot.lane.b32.xlu1 %v26298_v1, %s20680_s14 }
 0x6cd   :  { %v22392_v61 = vpop.trf.xlu1 }
 0x6ce   :  { %26374 = vst [vmem:[#allocation62_spill] sm:$0xff] %v22392_v61 }
 0x6dd   :  { %v6895_v26 = vpop.permute.xlu1 %6894 }
 0x6de   :  { %6897 = vxpose.xlu1.c.b16.start.end [1/1] (short) (narrow) %v6895_v26, 16 }
 0x6e2   :  { %7024 = vrot.lane.b32.xlu1 %v26300_v49, %s20680_s14 }
 0x744   :  { %v22396_v19 = vpop.trf.xlu1 }
 0x745   :  { %26375 = vst [vmem:[#allocation63_spill] sm:$0xff] %v22396_v19 }
 0x754   :  { %v7025_v21 = vpop.permute.xlu1 %7024 }
 0x755   :  { %7027 = vxpose.xlu1.c.b16.start.end [1/1] (short) (narrow) %v7025_v21, 16 }
 0x759   :  { %7154 = vrot.lane.b32.xlu1 %v26302_v32, %s20680_s14 }
 0x7bb   :  { %v22400_v22 = vpop.trf.xlu1 }
 0x7bc   :  { %26376 = vst [vmem:[#allocation64_spill] sm:$0xff] %v22400_v22  ;;  %v6083_v22 = vsel %vm360_vm2, %v22386_v54, -inf }
 0x7cb   :  { %v7155_v18 = vpop.permute.xlu1 %7154 }
 0x7cc   :  { %7157 = vxpose.xlu1.c.b16.start.end [1/1] (short) (narrow) %v7155_v18, 16 }
 0x7d0   :  { %7284 = vrot.lane.b32.xlu1 %v26305_v34, %s20680_s14 }
 0x832   :  { %v22404_v44 = vpop.trf.xlu1 }
 0x833   :  { %26377 = vst [vmem:[#allocation65_spill] sm:$0xff] %v22404_v44 }
 0x842   :  { %v7285_v7 = vpop.permute.xlu1 %7284 }
 0x843   :  { %7287 = vxpose.xlu1.c.b16.start.end [1/1] (short) (narrow) %v7285_v7, 16 }
 0x847   :  { %7414 = vrot.lane.b32.xlu1 %v26307_v55, %s20680_s14 }
 0x8a9   :  { %v22408_v25 = vpop.trf.xlu1 }
 0x8aa   :  { %26378 = vst [vmem:[#allocation89_spill] sm:$0xff] %v22408_v25 }
 0x8b9   :  { %v7415_v57 = vpop.permute.xlu1 %7414 }
 0x8ba   :  { %7417 = vxpose.xlu1.c.b16.start.end [1/1] (short) (narrow) %v7415_v57, 16 }
 0x8be   :  { %7544 = vrot.lane.b32.xlu1 %v26309_v41, %s20680_s14 }
 0x920   :  { %v22412_v59 = vpop.trf.xlu1 }
 0x921   :  { %26379 = vst [vmem:[#allocation90_spill] sm:$0xff] %v22412_v59 }
 0x930   :  { %v7545_v26 = vpop.permute.xlu1 %7544 }
 0x931   :  { %7547 = vxpose.xlu1.c.b16.start.end [1/1] (short) (narrow) %v7545_v26, 16 }
 0x935   :  { %7674 = vrot.lane.b32.xlu1 %v26311_v0, %s20680_s14 }
 0x997   :  { %v22416_v21 = vpop.trf.xlu1 }
 0x998   :  { %26380 = vst [vmem:[#allocation91_spill] sm:$0xff] %v22416_v21 }
 0x9a7   :  { %v7675_v18 = vpop.permute.xlu1 %7674 }
 0x9a8   :  { %7677 = vxpose.xlu1.c.b16.start.end [1/1] (short) (narrow) %v7675_v18, 16 }
 0x9ac   :  { %7804 = vrot.lane.b32.xlu1 %v26313_v38, %s20680_s14 }
 0xa0e   :  { %v22420_v7 = vpop.trf.xlu1 }
 0xa0f   :  { %26381 = vst [vmem:[#allocation92_spill] sm:$0xff] %v22420_v7 }
 0xa1e   :  { %v7805_v57 = vpop.permute.xlu1 %7804 }
 0xa1f   :  { %7807 = vxpose.xlu1.c.b16.start.end [1/1] (short) (narrow) %v7805_v57, 16 }
 0xa23   :  { %7934 = vrot.lane.b32.xlu1 %v21013_v46, %s20680_s14 }
 0xa85   :  { %v22424_v59 = vpop.trf.xlu1 }
 0xa86   :  { %26382 = vst [vmem:[#allocation93_spill] sm:$0xff] %v22424_v59 }
 0xa95   :  { %v7935_v26 = vpop.permute.xlu1 %7934 }
 0xa96   :  { %7937 = vxpose.xlu1.c.b16.start.end [1/1] (short) (narrow) %v7935_v26, 16 }
 0xa9a   :  { %8064 = vrot.lane.b32.xlu1 %v20997_v42, %s20680_s14 }
 0xafc   :  { %v22428_v21 = vpop.trf.xlu1 }
 0xafd   :  { %26383 = vst [vmem:[#allocation94_spill] sm:$0xff] %v22428_v21 }
 0xb0c   :  { %v8065_v18 = vpop.permute.xlu1 %8064 }
 0xb0d   :  { %8067 = vxpose.xlu1.c.b16.start.end [1/1] (short) (narrow) %v8065_v18, 16  ;;  %v5993_v18 = vsel %vm360_vm2, %v22290_v15, -inf }
 0xb11   :  { %8194 = vrot.lane.b32.xlu1 %v21049_v4, %s20680_s14 }
 0xb73   :  { %v22432_v7 = vpop.trf.xlu1 }
 0xb74   :  { %26384 = vst [vmem:[#allocation95_spill] sm:$0xff] %v22432_v7 }
 0xb83   :  { %v8195_v57 = vpop.permute.xlu1 %8194 }
 0xb84   :  { %8197 = vxpose.xlu1.c.b16.start.end [1/1] (short) (narrow) %v8195_v57, 16  ;;  %v6005_v57 = vsel %vm360_vm2, %v22304_v33, -inf }
 0xb88   :  { %8324 = vrot.lane.b32.xlu1 %v21035_v60, %s20680_s14 }
 0xbea   :  { %v22436_v59 = vpop.trf.xlu1 }
 0xbeb   :  { %26385 = vst [vmem:[#allocation96_spill] sm:$0xff] %v22436_v59 }
 0xbfa   :  { %v8325_v26 = vpop.permute.xlu1 %8324 }
 0xbfb   :  { %8327 = vxpose.xlu1.c.b16.start.end [1/1] (short) (narrow) %v8325_v26, 16  ;;  %v6011_v26 = vsel %vm360_vm2, %v22312_v47, -inf }
 0xbff   :  { %8454 = vrot.lane.b32.xlu1 %v26257_v28, %s20682_s16 }
 0xc03   :  { %8456 = vrot.lane.b32.xlu1 %v26257_v28, %s20683_s17 }
 0xc07   :  { %8504 = vrot.lane.b32.xlu1 %v26258_v23, %s20682_s16 }
 0xc0b   :  { %8554 = vrot.lane.b32.xlu1 %v26295_v9, %s20682_s16 }
 0xc0f   :  { %8556 = vrot.lane.b32.xlu1 %v26295_v9, %s20683_s17 }
 0xc13   :  { %8606 = vrot.lane.b32.xlu1 %v26260_v24, %s20683_s17 }
 0xc17   :  { %8656 = vrot.lane.b32.xlu1 %v26296_v36, %s20683_s17 }
 0xc1b   :  { %8706 = vrot.lane.b32.xlu1 %v26261_v5, %s20683_s17 }
 0xc1f   :  { %8756 = vrot.lane.b32.xlu1 %v26297_v58, %s20683_s17 }
 0xc23   :  { %8806 = vrot.lane.b32.xlu1 %v26263_v2, %s20683_s17 }
 0xc27   :  { %8856 = vrot.lane.b32.xlu1 %v26298_v1, %s20683_s17 }
 0xc2b   :  { %8906 = vrot.lane.b32.xlu1 %v26265_v50, %s20683_s17 }
 0xc2f   :  { %8956 = vrot.lane.b32.xlu1 %v26300_v49, %s20683_s17 }
 0xc33   :  { %9006 = vrot.lane.b32.xlu1 %v26267_v35, %s20683_s17 }
 0xc37   :  { %9056 = vrot.lane.b32.xlu1 %v26302_v32, %s20683_s17 }
 0xc3b   :  { %9106 = vrot.lane.b32.xlu1 %v26269_v12, %s20683_s17 }
 0xc3f   :  { %9156 = vrot.lane.b32.xlu1 %v26305_v34, %s20683_s17 }
 0xc43   :  { %9206 = vrot.lane.b32.xlu1 %v26271_v30, %s20683_s17 }
 0xc47   :  { %9256 = vrot.lane.b32.xlu1 %v26307_v55, %s20683_s17 }
 0xc4b   :  { %9306 = vrot.lane.b32.xlu1 %v26273_v40, %s20683_s17 }
 0xc61   :  { %v22520_v59 = vpop.trf.xlu1 }
 0xc62   :  { %26386 = vst [vmem:[#allocation97_spill] sm:$0xff] %v22520_v59 }
 0xc6f   :  { %5994 = vmax.xlane.f32.xlu1 %v5993_v18  ;;  %v6017_v18 = vsel %vm360_vm2, %v22320_v63, -inf }
 0xc71   :  { %v22522_v7 = vpop.permute.xlu1 %8454 }
 0xc72   :  { %26387 = vst [vmem:[#allocation98_spill] sm:$0xff] %v22522_v7  ;;  %v6059_v7 = vsel %vm360_vm2, %v22362_v10, -inf }
 0xc75   :  { %v22524_v21 = vpop.permute.xlu1 %8456 }
 0xc76   :  { %26388 = vst [vmem:[#allocation99_spill] sm:$0xff] %v22524_v21 }
 0xc80   :  { %9356 = vrot.lane.b32.xlu1 %v26309_v41, %s20683_s17 }
 0xc84   :  { %9406 = vrot.lane.b32.xlu1 %v26275_v6, %s20683_s17 }
 0xc88   :  { %9456 = vrot.lane.b32.xlu1 %v26311_v0, %s20683_s17 }
 0xcac   :  { %6006 = vmax.xlane.f32.xlu1 %v6005_v57  ;;  %v6023_v57 = vsel %vm360_vm2, %v22326_v14, -inf }
 0xcbd   :  { %9506 = vrot.lane.b32.xlu1 %v26277_v11, %s20683_s17 }
 0xce1   :  { %6012 = vmax.xlane.f32.xlu1 %v6011_v26  ;;  %v6029_v26 = vsel %vm360_vm2, %v22332_v39, -inf }
 0xcf2   :  { %9556 = vrot.lane.b32.xlu1 %v26313_v38, %s20683_s17  ;;  %v6071_v38 = vsel %vm360_vm2, %v22374_v52, -inf }
 0xd16   :  { %6018 = vmax.xlane.f32.xlu1 %v6017_v18  ;;  %v6035_v18 = vsel %vm360_vm2, %v22338_v29, -inf }
 0xd27   :  { %9606 = vrot.lane.b32.xlu1 %v26279_v43, %s20683_s17 }
 0xd4b   :  { %6024 = vmax.xlane.f32.xlu1 %v6023_v57  ;;  %v6041_v57 = vsel %vm360_vm2, %v22344_v17, -inf }
 0xd5c   :  { %9656 = vrot.lane.b32.xlu1 %v21013_v46, %s20683_s17 }
 0xd80   :  { %6030 = vmax.xlane.f32.xlu1 %v6029_v26  ;;  %v6047_v26 = vsel %vm360_vm2, %v22350_v27, -inf }
 0xd91   :  { %9706 = vrot.lane.b32.xlu1 %v20913_v16, %s20683_s17 }
 0xdb5   :  { %6036 = vmax.xlane.f32.xlu1 %v6035_v18  ;;  %v6053_v18 = vsel %vm360_vm2, %v22356_v45, -inf }
 0xdc6   :  { %9756 = vrot.lane.b32.xlu1 %v20997_v42, %s20683_s17 }
 0xdea   :  { %6042 = vmax.xlane.f32.xlu1 %v6041_v57  ;;  %v22528_v57 = vpop.permute.xlu1 %8504 }
 0xdeb   :  { %26389 = vst [vmem:[#allocation100_spill] sm:$0xff] %v22528_v57 }
 0xdee   :  { %v22530_v9 = vpop.permute.xlu1 %8554 }
 0xdef   :  { %26390 = vst [vmem:[#allocation101_spill] sm:$0xff] %v22530_v9 }
 0xdfb   :  { %9806 = vrot.lane.b32.xlu1 %v20898_v3, %s20683_s17 }
 0xe1f   :  { %6048 = vmax.xlane.f32.xlu1 %v6047_v26  ;;  %v22532_v26 = vpop.permute.xlu1 %8556 }
 0xe20   :  { %26391 = vst [vmem:[#allocation102_spill] sm:$0xff] %v22532_v26  ;;  %v6065_v26 = vsel %vm360_vm2, %v22368_v37, -inf }
 0xe30   :  { %9856 = vrot.lane.b32.xlu1 %v21049_v4, %s20683_s17  ;;  %v22534_v4 = vpop.permute.xlu1 %8606 }
 0xe31   :  { %26392 = vst [vmem:[#allocation103_spill] sm:$0xff] %v22534_v4 }
 0xe34   :  { %v22536_v3 = vpop.permute.xlu1 %8656 }
 0xe35   :  { %26393 = vst [vmem:[#allocation104_spill] sm:$0xff] %v22536_v3  ;;  %v22558_v3 = vpop.trf.xlu0 }
 0xe54   :  { %6054 = vmax.xlane.f32.xlu1 %v6053_v18  ;;  %v22538_v18 = vpop.permute.xlu1 %8706 }
 0xe55   :  { %26394 = vst [vmem:[#allocation105_spill] sm:$0xff] %v22538_v18 }
 0xe58   :  { %v22542_v59 = vpop.permute.xlu1 %8756 }
 0xe59   :  { %26395 = vst [vmem:[#allocation106_spill] sm:$0xff] %v22542_v59  ;;  %v22562_v59 = vpop.trf.xlu0 }
 0xe5c   :  { %v22544_v21 = vpop.permute.xlu1 %8806 }
 0xe5d   :  { %26396 = vst [vmem:[#allocation107_spill] sm:$0xff] %v22544_v21 }
 0xe65   :  { %9906 = vrot.lane.b32.xlu1 %v20929_v51, %s20683_s17  ;;  %v22546_v51 = vpop.permute.xlu1 %8856 }
 0xe66   :  { %26397 = vst [vmem:[#allocation108_spill] sm:$0xff] %v22546_v51  ;;  %v22566_v51 = vpop.trf.xlu0 }
 0xe69   :  { %v22550_v57 = vpop.permute.xlu1 %8906 }
 0xe6a   :  { %26398 = vst [vmem:[#allocation109_spill] sm:$0xff] %v22550_v57 }
 0xe6d   :  { %v22552_v4 = vpop.permute.xlu1 %8956 }
 0xe6e   :  { %26399 = vst [vmem:[#allocation110_spill] sm:$0xff] %v22552_v4  ;;  %v22572_v4 = vpop.trf.xlu0 }
 0xe71   :  { %v22554_v9 = vpop.permute.xlu1 %9006 }
 0xe72   :  { %26400 = vst [vmem:[#allocation111_spill] sm:$0xff] %v22554_v9 }
 0xe75   :  { %v22556_v18 = vpop.permute.xlu1 %9056 }
 0xe76   :  { %26401 = vst [vmem:[#allocation112_spill] sm:$0xff] %v22556_v18  ;;  %v22576_v18 = vpop.trf.xlu0 }
 0xe89   :  { %6060 = vmax.xlane.f32.xlu1 %v6059_v7  ;;  %v22560_v7 = vpop.permute.xlu1 %9106 }
 0xe8a   :  { %26402 = vst [vmem:[#allocation113_spill] sm:$0xff] %v22560_v7  ;;  %v22580_v7 = vpop.trf.xlu0 }
 0xe8d   :  { %v22564_v21 = vpop.permute.xlu1 %9156 }
 0xe8e   :  { %26403 = vst [vmem:[#allocation114_spill] sm:$0xff] %v22564_v21  ;;  %v22584_v42 = vpop.trf.xlu0 }
 0xe91   :  { %v22570_v57 = vpop.permute.xlu1 %9206 }
 0xe92   :  { %26404 = vst [vmem:[#allocation115_spill] sm:$0xff] %v22570_v57 }
 0xe95   :  { %v22574_v9 = vpop.permute.xlu1 %9256 }
 0xe96   :  { %26405 = vst [vmem:[#allocation116_spill] sm:$0xff] %v22574_v9 }
 0xe9a   :  { %9956 = vrot.lane.b32.xlu1 %v21035_v60, %s20683_s17  ;;  %v22578_v60 = vpop.permute.xlu1 %9306 }
 0xe9b   :  { %26406 = vst [vmem:[#allocation117_spill] sm:$0xff] %v22578_v60 }
 0xe9e   :  { %v5995_v21 = vpop.xlane.xlu1 %5994 }
 0xea2   :  { %v22586_v16 = vpop.permute.xlu1 %9356 }
 0xea3   :  { %26407 = vst [vmem:[#allocation118_spill] sm:$0xff] %v22586_v16 }
 0xea6   :  { %v22590_v57 = vpop.permute.xlu1 %9406 }
 0xea7   :  { %26408 = vst [vmem:[#allocation119_spill] sm:$0xff] %v22590_v57  ;;  %v6077_v57 = vsel %vm360_vm2, %v22380_v56, -inf }
 0xeaa   :  { %v22594_v9 = vpop.permute.xlu1 %9456 }
 0xeab   :  { %26409 = vst [vmem:[#allocation120_spill] sm:$0xff] %v22594_v9 }
 0xeae   :  { %v6007_v60 = vpop.xlane.xlu1 %6006 }
 0xeb2   :  { %v22600_v44 = vpop.permute.xlu1 %9506 }
 0xeb3   :  { %26410 = vst [vmem:[#allocation121_spill] sm:$0xff] %v22600_v44 }
 0xebe   :  { %6066 = vmax.xlane.f32.xlu1 %v6065_v26  ;;  %v22588_v26 = vpop.trf.xlu0 }
 0xec2   :  { %v22592_v25 = vpop.trf.xlu0 }
 0xec6   :  { %v22596_v46 = vpop.trf.xlu0 }
 0xeca   :  { %v22598_v43 = vpop.trf.xlu0 }
 0xece   :  { %v22604_v16 = vpop.trf.xlu0 }
 0xecf   :  { %10006 = vrot.lane.b32.xlu1 %v20923_v20, %s20683_s17  ;;  %v6013_v20 = vpop.xlane.xlu1 %6012 }
 0xed0   :  { %v6093_v35 = vsub.f32 %v22312_v47, %v6013_v20 }
 0xed2   :  { %v22610_v9 = vpop.trf.xlu0 }
 0xed3   :  { %v22608_v11 = vpop.permute.xlu1 %9556 }
 0xed4   :  { %26411 = vst [vmem:[#allocation122_spill] sm:$0xff] %v22608_v11 }
 0xed6   :  { %v22614_v44 = vpop.trf.xlu0 }
 0xed7   :  { %v6019_v0 = vpop.xlane.xlu1 %6018 }
 0xeda   :  { %v22618_v19 = vpop.trf.xlu0 }
 0xedb   :  { %v22616_v6 = vpop.permute.xlu1 %9606 }
 0xedc   :  { %26412 = vst [vmem:[#allocation123_spill] sm:$0xff] %v22616_v6  ;;  %v6087_v6 = vsub.f32 %v22290_v15, %v5995_v21  ;;  %v6095_v15 = vsub.f32 %v22320_v63, %v6019_v0 }
 0xede   :  { %v22620_v41 = vpop.trf.xlu0 }
 0xedf   :  { %26413 = vst [vmem:[#allocation124_spill] sm:$0xff] %v22620_v41  ;;  %v6120_v41 = vmul.f32 1.442695, %v6087_v6 }
 0xee1   :  { %20214 = vpow2.f32 %v6120_v41 }
 0xee2   :  { %v22626_v11 = vpop.xlane.xlu0 %5991 }
 0xee6   :  { %v22628_v54 = vpop.xlane.xlu0 %5997 }
 0xeea   :  { %v6001_v55 = vpop.xlane.xlu0 %6000 }
 0xeeb   :  { %v6089_v30 = vsub.f32 %v22296_v53, %v6001_v55  ;;  %v22641_v21 = vpop.eup %20214  ;;  %v6136_v55 = vmul.f32 1.442695, %v6095_v15 }
 0xef3   :  { %6072 = vmax.xlane.f32.xlu1 %v6071_v38  ;;  %v6025_v38 = vpop.xlane.xlu1 %6024 }
 0xef7   :  { %6078 = vmax.xlane.f32.xlu1 %v6077_v57  ;;  %v22622_v40 = vpop.permute.xlu1 %9656 }
 0xef8   :  { %26414 = vst [vmem:[#allocation125_spill] sm:$0xff] %v22622_v40  ;;  %v6124_v40 = vmul.f32 1.442695, %v6089_v30  ;;  %v6097_v30 = vsub.f32 %v22326_v14, %v6025_v38 }
 0xefa   :  { %20216 = vpow2.f32 %v6124_v40  ;;  %v6140_v20 = vmul.f32 1.442695, %v6097_v30 }
 0xefb   :  { %6084 = vmax.xlane.f32.xlu1 %v6083_v22  ;;  %v6031_v57 = vpop.xlane.xlu1 %6030 }
 0xeff   :  { %v22630_v22 = vpop.permute.xlu1 %9706 }
 0xf00   :  { %26415 = vst [vmem:[#allocation126_spill] sm:$0xff] %v22630_v22  ;;  %v6132_v22 = vmul.f32 1.442695, %v6093_v35 }
 0xf03   :  { %v6037_v61 = vpop.xlane.xlu1 %6036 }
 0xf04   :  { %v22646_v40 = vpop.eup %20216  ;;  %v6101_v14 = vsub.f32 %v22338_v29, %v6037_v61 }
 0xf06   :  { %v6148_v63 = vmul.f32 1.442695, %v6101_v14 }
 0xf07   :  { %v22634_v34 = vpop.permute.xlu1 %9756 }
 0xf0b   :  { %v6043_v12 = vpop.xlane.xlu1 %6042 }
 0xf0c   :  { %10438 = vrot.lane.b32.xlu1 %v26257_v28, %s20684_s18  ;;  %v6091_v28 = vsub.f32 %v22304_v33, %v6007_v60  ;;  %v6185_v60 = vsel %vm360_vm2, %v22641_v21, 0.0 }
 0xf0e   :  { %v6128_v32 = vmul.f32 1.442695, %v6091_v28  ;;  %v6099_v28 = vsub.f32 %v22332_v39, %v6031_v57  ;;  %v6103_v39 = vsub.f32 %v22344_v17, %v6043_v12 }
 0xf0f   :  { %v22638_v49 = vpop.permute.xlu1 %9806 }
 0xf10   :  { %20218 = vpow2.f32 %v6128_v32  ;;  %v6191_v32 = vsel %vm360_vm2, %v22646_v40, 0.0  ;;  %v6144_v0 = vmul.f32 1.442695, %v6099_v28  ;;  %v6152_v29 = vmul.f32 1.442695, %v6103_v39 }
 0xf11   :  { %20220 = vpow2.f32 %v6132_v22 }
 0xf12   :  { %20222 = vpow2.f32 %v6136_v55 }
 0xf13   :  { %v6049_v6 = vpop.xlane.xlu1 %6048  ;;  %20224 = vpow2.f32 %v6140_v20 }
 0xf14   :  { %20226 = vpow2.f32 %v6144_v0  ;;  %v6105_v61 = vsub.f32 %v22350_v27, %v6049_v6 }
 0xf15   :  { %20228 = vpow2.f32 %v6148_v63 }
 0xf16   :  { %20230 = vpow2.f32 %v6152_v29  ;;  %v6156_v12 = vmul.f32 1.442695, %v6105_v61 }
 0xf17   :  { %v22649_v35 = vpop.permute.xlu1 %9856 }
 0xf18   :  { %20232 = vpow2.f32 %v6156_v12 }
 0xf1a   :  { %v22653_v41 = vpop.eup %20218 }
 0xf1b   :  { %v6055_v53 = vpop.xlane.xlu1 %6054  ;;  %v6197_v33 = vsel %vm360_vm2, %v22653_v41, 0.0  ;;  %v22658_v47 = vpop.eup %20220 }
 0xf1c   :  { %v6203_v38 = vsel %vm360_vm2, %v22658_v47, 0.0  ;;  %v22663_v57 = vpop.eup %20222  ;;  %v6107_v17 = vsub.f32 %v22356_v45, %v6055_v53 }
 0xf1d   :  { %v6209_v15 = vsel %vm360_vm2, %v22663_v57, 0.0  ;;  %v22670_v55 = vpop.eup %20224 }
 0xf1e   :  { %v22675_v20 = vpop.eup %20226  ;;  %v6160_v28 = vmul.f32 1.442695, %v6107_v17 }
 0xf1f   :  { %v22665_v22 = vpop.permute.xlu1 %9906  ;;  %v22682_v0 = vpop.eup %20228 }
 0xf20   :  { %20234 = vpow2.f32 %v6160_v28  ;;  %v6227_v53 = vsel %vm360_vm2, %v22682_v0, 0.0 }
 0xf23   :  { %v6061_v30 = vpop.xlane.xlu1 %6060 }
 0xf24   :  { %v6109_v27 = vsub.f32 %v22362_v10, %v6061_v30 }
 0xf26   :  { %v6164_v45 = vmul.f32 1.442695, %v6109_v27 }
 0xf27   :  { %v22678_v6 = vpop.permute.xlu1 %9956 }
 0xf28   :  { %20236 = vpow2.f32 %v6164_v45 }
 0xf30   :  { %6186 = vadd.xlane.f32.xlu1 %v6185_v60  ;;  %v6215_v60 = vsel %vm360_vm2, %v22670_v55, 0.0 }
 0xf34   :  { %6192 = vadd.xlane.f32.xlu1 %v6191_v32  ;;  %v6221_v32 = vsel %vm360_vm2, %v22675_v20, 0.0 }
 0xf38   :  { %6198 = vadd.xlane.f32.xlu1 %v6197_v33  ;;  %v22686_v33 = vpop.eup %20230 }
 0xf39   :  { %v6233_v39 = vsel %vm360_vm2, %v22686_v33, 0.0 }
 0xf3c   :  { %6204 = vadd.xlane.f32.xlu1 %v6203_v38  ;;  %v22691_v38 = vpop.eup %20232 }
 0xf3d   :  { %v6239_v29 = vsel %vm360_vm2, %v22691_v38, 0.0  ;;  %v22695_v61 = vpop.eup %20234 }
 0xf40   :  { %6210 = vadd.xlane.f32.xlu1 %v6209_v15  ;;  %v6245_v15 = vsel %vm360_vm2, %v22695_v61, 0.0 }
 0xf44   :  { %6216 = vadd.xlane.f32.xlu1 %v6215_v60 }
 0xf48   :  { %6222 = vadd.xlane.f32.xlu1 %v6221_v32 }
 0xf4b   :  { %v6067_v14 = vpop.xlane.xlu1 %6066 }
 0xf4c   :  { %v6111_v63 = vsub.f32 %v22368_v37, %v6067_v14  ;;  %6228 = vadd.xlane.f32.xlu1 %v6227_v53  ;;  %v22699_v37 = vpop.eup %20236 }
 0xf4d   :  { %v6251_v30 = vsel %vm360_vm2, %v22699_v37, 0.0 }
 0xf4e   :  { %v6168_v10 = vmul.f32 1.442695, %v6111_v63 }
 0xf4f   :  { %v22707_v60 = vpop.permute.xlu1 %10006 }
 0xf50   :  { %6234 = vadd.xlane.f32.xlu1 %v6233_v39  ;;  %20238 = vpow2.f32 %v6168_v10 }
 0xf54   :  { %6240 = vadd.xlane.f32.xlu1 %v6239_v29 }
 0xf58   :  { %6246 = vadd.xlane.f32.xlu1 %v6245_v15 }
 0xf5a   :  { %v22703_v12 = vpop.eup %20238 }
 0xf5b   :  { %v6257_v17 = vsel %vm360_vm2, %v22703_v12, 0.0 }
 0xf5c   :  { %6252 = vadd.xlane.f32.xlu1 %v6251_v30 }
 0xf60   :  { %6258 = vadd.xlane.f32.xlu1 %v6257_v17  ;;  %v6088_v17 = vsub.f32 %v22292_v13, %v22628_v54 }
 0xf80   :  { %v6073_v28 = vpop.xlane.xlu1 %6072 }
 0xf81   :  { %v6113_v27 = vsub.f32 %v22374_v52, %v6073_v28  ;;  %v6004_v28 = vpop.xlane.xlu0 %6003 }
 0xf83   :  { %v6172_v32 = vmul.f32 1.442695, %v6113_v27  ;;  %v6122_v27 = vmul.f32 1.442695, %v6088_v17 }
 0xf84   :  { %v6079_v45 = vpop.xlane.xlu1 %6078 }
 0xf85   :  { %20240 = vpow2.f32 %v6172_v32  ;;  %v6115_v14 = vsub.f32 %v22380_v56, %v6079_v45  ;;  %v6086_v56 = vsub.f32 %v22286_v8, %v22626_v11  ;;  %v6090_v32 = vsub.f32 %v22300_v48, %v6004_v28 }
 0xf87   :  { %v6176_v53 = vmul.f32 1.442695, %v6115_v14  ;;  %v6118_v30 = vmul.f32 1.442695, %v6086_v56  ;;  %v6126_v45 = vmul.f32 1.442695, %v6090_v32 }
 0xf88   :  { %v22711_v63 = vpop.xlane.xlu1 %6084 }
 0xf89   :  { %20242 = vpow2.f32 %v6176_v53 }
 0xf8a   :  { %20244 = vpow2.f32 %v6118_v30 }
 0xf8b   :  { %20246 = vpow2.f32 %v6122_v27 }
 0xf8c   :  { %v10439_v10 = vpop.permute.xlu1 %10438  ;;  %20248 = vpow2.f32 %v6126_v45  ;;  %v26416_v45 = vmov 0.0  }
 0xf8d   :  { %10441 = vxpose.xlu0.c.b16.start.end [1/1] (short) (narrow) %v10439_v10, 16 }
 0xf8f   :  { %v22713_v39 = vpop.eup %20240 }
 0xf90   :  { %v6263_v29 = vsel %vm360_vm2, %v22713_v39, 0.0 }
 0xf91   :  { %6264 = vadd.xlane.f32.xlu1 %v6263_v29 }
 0xf93   :  { %v22717_v15 = vpop.eup %20242 }
 0xf94   :  { %v6269_v52 = vsel %vm360_vm2, %v22717_v15, 0.0  ;;  %v22730_v14 = vpop.eup %20244 }
 0xf95   :  { %6270 = vadd.xlane.f32.xlu1 %v6269_v52  ;;  %v6182_v11 = vsel %vm360_vm2, %v22730_v14, 0.0  ;;  %v22734_v8 = vpop.eup %20246 }
 0xf96   :  { %8506 = vrot.lane.b32.xlu0 %v26258_v23, %s20683_s17  ;;  %v6188_v13 = vsel %vm360_vm2, %v22734_v8, 0.0  ;;  %v22738_v54 = vpop.eup %20248 }
 0xf97   :  { %v6194_v48 = vsel %vm360_vm2, %v22738_v54, 0.0 }
 0xfa6   :  { %10503 = vrot.lane.b32.xlu1 %v26258_v23, %s20684_s18 }
 0xfb5   :  { %6183 = vadd.xlane.f32.xlu0 %v6182_v11 }
 0xfb9   :  { %6189 = vadd.xlane.f32.xlu0 %v6188_v13 }
 0xfbd   :  { %v6187_v53 = vpop.xlane.xlu1 %6186  ;;  %6195 = vadd.xlane.f32.xlu0 %v6194_v48 }
 0xfbe   :  { %20250 = vrcp.f32 %v6187_v53 }
 0xfc1   :  { %v6193_v10 = vpop.xlane.xlu1 %6192 }
 0xfc2   :  { %20252 = vrcp.f32 %v6193_v10 }
 0xfc5   :  { %v6199_v29 = vpop.xlane.xlu1 %6198 }
 0xfc6   :  { %20254 = vrcp.f32 %v6199_v29 }
 0xfc8   :  { %v20251_v52 = vpop.eup %20250 }
 0xfc9   :  { %v6311_v56 = vmul.f32 %v20251_v52, %v22641_v21  ;;  %v6205_v28 = vpop.xlane.xlu1 %6204  ;;  %v26417_v52 = vld [vmem:[#allocation49_spill] sm:$0xff] }
 0xfca   :  { %20256 = vrcp.f32 %v6205_v28  ;;  %v26418_v28 = vld [vmem:[#allocation50_spill] sm:$0xff] }
 0xfcb   :  { %v6343_v30 = vpack.c.bf16 %v6311_v56, %v6311_v56 }
 0xfcc   :  { %v20253_v17 = vpop.eup %20252 }
 0xfcd   :  { %v6462_v27 = vsel %vm360_vm2, %v6343_v30, 0  ;;  %v6313_v32 = vmul.f32 %v20253_v17, %v22646_v40  ;;  %v6211_v48 = vpop.xlane.xlu1 %6210  ;;  %v6010_v40 = vpop.xlane.xlu0 %6009 }
 0xfce   :  { %19107 = vmatpush3.bf16.xpose.msra.mxu1 %v6462_v27  ;;  %20258 = vrcp.f32 %v6211_v48  ;;  %v6092_v56 = vsub.f32 %v26417_v52, %v6010_v40  ;;  %v26420_v52 = vld [vmem:[#allocation52_spill] sm:$0xff] }
 0xfcf   :  { %19118 = vmatprep.subr.bf16.mxu1 %v26416_v45  ;;  %v6345_v11 = vpack.c.bf16 %v6313_v32, %v6313_v32 }
 0xfd0   :  { %v20255_v13 = vpop.eup %20254  ;;  %v6130_v32 = vmul.f32 1.442695, %v6092_v56 }
 0xfd1   :  { %v6592_v21 = vsel %vm360_vm2, %v6345_v11, 0  ;;  %v6315_v53 = vmul.f32 %v20255_v13, %v22653_v41  ;;  %v6016_v30 = vpop.xlane.xlu0 %6015  ;;  %v6217_v17 = vpop.xlane.xlu1 %6216 }
 0xfd2   :  { %v6094_v27 = vsub.f32 %v26418_v28, %v6016_v30  ;;  %20260 = vrcp.f32 %v6217_v17 }
 0xfd3   :  { %8604 = vrot.lane.b32.xlu0 %v26260_v24, %s20682_s16  ;;  %v6347_v10 = vpack.c.bf16 %v6315_v53, %v6315_v53  ;;  %20262 = vpow2.f32 %v6130_v32 }
 0xfd4   :  { %v20257_v29 = vpop.eup %20256 }
 0xfd5   :  { %19109 = vmatmul.mubr.msk.bf16.vlgmr.msra.gmra.mrb[208].mxu1 %vm360_vm2, %v22558_v3  ;;  %v6722_v3 = vsel %vm360_vm2, %v6347_v10, 0  ;;  %v6317_v41 = vmul.f32 %v20257_v29, %v22658_v47  ;;  %v6022_v11 = vpop.xlane.xlu0 %6021  ;;  %v6223_v10 = vpop.xlane.xlu1 %6222 }
 0xfd6   :  { %19119 = vmatpush3.bf16.xpose.msra.mxu1 %v6592_v21  ;;  %19120 = vmatprep.mubr.msk.bf16.mxu1 %vm20677_vm1, %v26416_v45  ;;  %v6134_v21 = vmul.f32 1.442695, %v6094_v27 }
 0xfd7   :  { %19130 = vmatprep.subr.bf16.mxu1 %v26416_v45  ;;  %v6349_v13 = vpack.c.bf16 %v6317_v41, %v6317_v41 }
 0xfd8   :  { %v20259_v48 = vpop.eup %20258  ;;  %20264 = vpow2.f32 %v6134_v21  ;;  %v26422_v21 = vld [vmem:[#allocation54_spill] sm:$0xff] }
 0xfd9   :  { %v6028_v40 = vpop.xlane.xlu0 %6027  ;;  %v6852_v47 = vsel %vm360_vm2, %v6349_v13, 0  ;;  %v6319_v29 = vmul.f32 %v20259_v48, %v22663_v57  ;;  %20266 = vrcp.f32 %v6223_v10  ;;  %v6229_v57 = vpop.xlane.xlu1 %6228 }
 0xfda   :  { %v6098_v56 = vsub.f32 %v26420_v52, %v6028_v40  ;;  %v26423_v52 = vld [vmem:[#allocation55_spill] sm:$0xff] }
 0xfdc   :  { %v20261_v41 = vpop.eup %20260  ;;  %v6142_v28 = vmul.f32 1.442695, %v6098_v56 }
 0xfdd   :  { %19121 = vmatmul.mubr.msk.bf16.vlgmr.msra.gmra.mrb[212].mxu1 %vm360_vm2, %v22562_v59  ;;  %v26419_v59 = vld [vmem:[#allocation51_spill] sm:$0xff]  ;;  %v6034_v17 = vpop.xlane.xlu0 %6033  ;;  %v6321_v13 = vmul.f32 %v20261_v41, %v22670_v55  ;;  %v22778_v48 = vpop.eup %20262 }
 0xfde   :  { %19131 = vmatpush3.bf16.xpose.msra.mxu1 %v6722_v3  ;;  %19132 = vmatprep.mubr.msk.bf16.mxu1 %vm20677_vm1, %v26416_v45  ;;  %v6096_v53 = vsub.f32 %v26419_v59, %v6022_v11  ;;  %v6351_v3 = vpack.c.bf16 %v6319_v29, %v6319_v29 }
 0xfdf   :  { %19142 = vmatprep.subr.bf16.mxu1 %v26416_v45  ;;  %v6353_v55 = vpack.c.bf16 %v6321_v13, %v6321_v13 }
 0xfe0   :  { %v6138_v30 = vmul.f32 1.442695, %v6096_v53  ;;  %v6982_v11 = vsel %vm360_vm2, %v6351_v3, 0 }
 0xfe1   :  { %v6040_v32 = vpop.xlane.xlu0 %6039  ;;  %v7112_v3 = vsel %vm360_vm2, %v6353_v55, 0 }
 0xfe2   :  { %20268 = vpow2.f32 %v6138_v30  ;;  %v6102_v59 = vsub.f32 %v26422_v21, %v6040_v32  ;;  %v22784_v10 = vpop.eup %20264 }
 0xfe3   :  { %20270 = vpow2.f32 %v6142_v28  ;;  %v6206_v41 = vsel %vm360_vm2, %v22784_v10, 0.0 }
 0xfe4   :  { %20272 = vrcp.f32 %v6229_v57  ;;  %v6150_v29 = vmul.f32 1.442695, %v6102_v59 }
 0xfe5   :  { %19133 = vmatmul.mubr.msk.bf16.vlgmr.msra.gmra.mrb[216].mxu1 %vm360_vm2, %v22566_v51  ;;  %v26421_v51 = vld [vmem:[#allocation53_spill] sm:$0xff]  ;;  %v6046_v40 = vpop.xlane.xlu0 %6045 }
 0xfe6   :  { %19143 = vmatpush3.bf16.xpose.msra.mxu1 %v6852_v47  ;;  %19144 = vmatprep.mubr.msk.bf16.mxu1 %vm20677_vm1, %v26416_v45  ;;  %v6100_v27 = vsub.f32 %v26421_v51, %v6034_v17  ;;  %v20267_v47 = vpop.eup %20266  ;;  %v6104_v56 = vsub.f32 %v26423_v52, %v6046_v40  ;;  %v6235_v17 = vpop.xlane.xlu1 %6234 }
 0xfe7   :  { %19154 = vmatprep.subr.bf16.mxu1 %v26416_v45  ;;  %v6323_v28 = vmul.f32 %v20267_v47, %v22675_v20 }
 0xfe8   :  { %v6146_v53 = vmul.f32 1.442695, %v6100_v27  ;;  %v26424_v27 = vld [vmem:[#allocation56_spill] sm:$0xff] }
 0xfe9   :  { %v6052_v30 = vpop.xlane.xlu0 %6051  ;;  %v6355_v13 = vpack.c.bf16 %v6323_v28, %v6323_v28 }
 0xfea   :  { %20274 = vpow2.f32 %v6146_v53  ;;  %v6106_v32 = vsub.f32 %v26424_v27, %v6052_v30  ;;  %v26425_v53 = vld [vmem:[#allocation57_spill] sm:$0xff]  ;;  %v6241_v55 = vpop.xlane.xlu1 %6240  ;;  %v26426_v30 = vld [vmem:[#allocation58_spill] sm:$0xff] }
 0xfeb   :  { %20276 = vpow2.f32 %v6150_v29  ;;  %v7242_v47 = vsel %vm360_vm2, %v6355_v13, 0 }
 0xfec   :  { %v22795_v51 = vpop.eup %20268  ;;  %20278 = vrcp.f32 %v6235_v17  ;;  %v6158_v59 = vmul.f32 1.442695, %v6106_v32 }
 0xfed   :  { %19145 = vmatmul.mubr.msk.bf16.vlgmr.msra.gmra.mrb[220].mxu1 %vm360_vm2, %v22572_v4  ;;  %v6200_v4 = vsel %vm360_vm2, %v22778_v48, 0.0  ;;  %v6058_v57 = vpop.xlane.xlu0 %6057  ;;  %v6212_v20 = vsel %vm360_vm2, %v22795_v51, 0.0 }
 0xfee   :  { %19155 = vmatpush3.bf16.xpose.msra.mxu1 %v6982_v11  ;;  %19156 = vmatprep.mubr.msk.bf16.mxu1 %vm20677_vm1, %v26416_v45  ;;  %v22801_v11 = vpop.eup %20270  ;;  %v6108_v40 = vsub.f32 %v26425_v53, %v6058_v57  ;;  %v6247_v13 = vpop.xlane.xlu1 %6246 }
 0xfef   :  { %19166 = vmatprep.subr.bf16.mxu1 %v26416_v45  ;;  %v20273_v21 = vpop.eup %20272  ;;  %v6218_v29 = vsel %vm360_vm2, %v22801_v11, 0.0 }
 0xff0   :  { %v6325_v52 = vmul.f32 %v20273_v21, %v22682_v0 }
 0xff2   :  { %6201 = vadd.xlane.f32.xlu0 %v6200_v4  ;;  %v6064_v4 = vpop.xlane.xlu0 %6063  ;;  %v6357_v28 = vpack.c.bf16 %v6325_v52, %v6325_v52 }
 0xff3   :  { %v6110_v17 = vsub.f32 %v26426_v30, %v6064_v4  ;;  %v26428_v4 = vld [vmem:[#allocation60_spill] sm:$0xff] }
 0xff4   :  { %v7372_v21 = vsel %vm360_vm2, %v6357_v28, 0 }
 0xff5   :  { %19157 = vmatmul.mubr.msk.bf16.vlgmr.msra.gmra.mrb[224].mxu1 %vm360_vm2, %v22576_v18  ;;  %v6154_v18 = vmul.f32 1.442695, %v6104_v56  ;;  %v22812_v56 = vpop.eup %20274  ;;  %v6166_v32 = vmul.f32 1.442695, %v6110_v17  ;;  %v6253_v17 = vpop.xlane.xlu1 %6252 }
 0xff6   :  { %19167 = vmatpush3.bf16.xpose.msra.mxu1 %v7112_v3  ;;  %6207 = vadd.xlane.f32.xlu0 %v6206_v41  ;;  %v6070_v3 = vpop.xlane.xlu0 %6069  ;;  %v22818_v41 = vpop.eup %20276  ;;  %v6224_v0 = vsel %vm360_vm2, %v22812_v56, 0.0 }
 0xff7   :  { %19168 = vmatprep.mubr.msk.bf16.mxu1 %vm20677_vm1, %v26416_v45  ;;  %19178 = vmatprep.subr.bf16.mxu1 %v26416_v45  ;;  %20280 = vpow2.f32 %v6154_v18  ;;  %v20279_v27 = vpop.eup %20278  ;;  %v26427_v18 = vld [vmem:[#allocation59_spill] sm:$0xff] }
 0xff8   :  { %20282 = vpow2.f32 %v6158_v59  ;;  %v6112_v57 = vsub.f32 %v26427_v18, %v6070_v3  ;;  %v6230_v59 = vsel %vm360_vm2, %v22818_v41, 0.0  ;;  %v6327_v53 = vmul.f32 %v20279_v27, %v22686_v33 }
 0xff9   :  { %20284 = vrcp.f32 %v6241_v55 }
 0xffa   :  { %6213 = vadd.xlane.f32.xlu0 %v6212_v20  ;;  %v6076_v20 = vpop.xlane.xlu0 %6075  ;;  %v6359_v33 = vpack.c.bf16 %v6327_v53, %v6327_v53 }
 0xffb   :  { %v6114_v55 = vsub.f32 %v26428_v4, %v6076_v20 }
 0xffd   :  { %19169 = vmatmul.mubr.msk.bf16.vlgmr.msra.gmra.mrb[228].mxu1 %vm360_vm2, %v22580_v7  ;;  %v6162_v7 = vmul.f32 1.442695, %v6108_v40  ;;  %v6174_v30 = vmul.f32 1.442695, %v6114_v55 }
 0xffe   :  { %19179 = vmatpush3.bf16.xpose.msra.mxu1 %v7242_v47  ;;  %6219 = vadd.xlane.f32.xlu0 %v6218_v29 }
 0xfff   :  { %19180 = vmatprep.mubr.msk.bf16.mxu1 %vm20677_vm1, %v26416_v45  ;;  %19190 = vmatprep.subr.bf16.mxu1 %v26416_v45  ;;  %20286 = vpow2.f32 %v6162_v7  ;;  %v7502_v7 = vsel %vm360_vm2, %v6359_v33, 0 }
0x1000   :  { %20288 = vpow2.f32 %v6166_v32 }
0x1001   :  { %v22829_v40 = vpop.eup %20280  ;;  %20290 = vrcp.f32 %v6247_v13 }
0x1002   :  { %6225 = vadd.xlane.f32.xlu0 %v6224_v0  ;;  %v22835_v47 = vpop.eup %20282  ;;  %v6236_v29 = vsel %vm360_vm2, %v22829_v40, 0.0 }
0x1003   :  { %v20285_v52 = vpop.eup %20284  ;;  %v6242_v3 = vsel %vm360_vm2, %v22835_v47, 0.0 }
0x1004   :  { %v6329_v0 = vmul.f32 %v20285_v52, %v22691_v38  ;;  %v6259_v38 = vpop.xlane.xlu1 %6258 }
0x1005   :  { %19181 = vmatmul.mubr.msk.bf16.vlgmr.msra.gmra.mrb[232].mxu1 %vm360_vm2, %v22584_v42  ;;  %v6170_v42 = vmul.f32 1.442695, %v6112_v57 }
0x1006   :  { %19191 = vmatpush3.bf16.xpose.msra.mxu1 %v7372_v21  ;;  %6231 = vadd.xlane.f32.xlu0 %v6230_v59  ;;  %v6361_v32 = vpack.c.bf16 %v6329_v0, %v6329_v0 }
0x1007   :  { %19192 = vmatprep.mubr.msk.bf16.mxu1 %vm20677_vm1, %v26416_v45  ;;  %19202 = vmatprep.subr.bf16.mxu1 %v26416_v45  ;;  %20292 = vpow2.f32 %v6170_v42 }
0x1008   :  { %20294 = vpow2.f32 %v6174_v30  ;;  %v7632_v57 = vsel %vm360_vm2, %v6361_v32, 0  ;;  %v6082_v32 = vpop.xlane.xlu0 %6081 }
0x1009   :  { %v22845_v28 = vpop.eup %20286  ;;  %20296 = vrcp.f32 %v6253_v17 }
0x100a   :  { %6237 = vadd.xlane.f32.xlu0 %v6236_v29  ;;  %v22850_v27 = vpop.eup %20288  ;;  %20298 = vrcp.f32 %v6259_v38 }
0x100b   :  { %v20291_v18 = vpop.eup %20290  ;;  %v6254_v20 = vsel %vm360_vm2, %v22850_v27, 0.0 }
0x100c   :  { %v6331_v13 = vmul.f32 %v20291_v18, %v22695_v61 }
0x100d   :  { %19193 = vmatmul.mubr.msk.bf16.vlgmr.msra.gmra.mrb[236].mxu1 %vm360_vm2, %v22588_v26  ;;  %v6248_v26 = vsel %vm360_vm2, %v22845_v28, 0.0 }
0x100e   :  { %19203 = vmatpush3.bf16.xpose.msra.mxu1 %v7502_v7  ;;  %6243 = vadd.xlane.f32.xlu0 %v6242_v3  ;;  %v6363_v53 = vpack.c.bf16 %v6331_v13, %v6331_v13 }
0x100f   :  { %19204 = vmatprep.mubr.msk.bf16.mxu1 %vm20677_vm1, %v26416_v45  ;;  %19214 = vmatprep.subr.bf16.mxu1 %v26416_v45 }
0x1010   :  { %v7762_v61 = vsel %vm360_vm2, %v6363_v53, 0 }
0x1011   :  { %v22860_v21 = vpop.eup %20292 }
0x1012   :  { %6249 = vadd.xlane.f32.xlu0 %v6248_v26  ;;  %v22865_v59 = vpop.eup %20294 }
0x1013   :  { %v20297_v4 = vpop.eup %20296  ;;  %v6266_v55 = vsel %vm360_vm2, %v22865_v59, 0.0 }
0x1014   :  { %v6333_v42 = vmul.f32 %v20297_v4, %v22699_v37  ;;  %v20299_v52 = vpop.eup %20298 }
0x1015   :  { %19205 = vmatmul.mubr.msk.bf16.vlgmr.msra.gmra.mrb[240].mxu1 %vm360_vm2, %v22592_v25  ;;  %v6260_v25 = vsel %vm360_vm2, %v22860_v21, 0.0  ;;  %v6335_v17 = vmul.f32 %v20299_v52, %v22703_v12 }
0x1016   :  { %19215 = vmatpush3.bf16.xpose.msra.mxu1 %v7632_v57  ;;  %6255 = vadd.xlane.f32.xlu0 %v6254_v20  ;;  %v6365_v33 = vpack.c.bf16 %v6333_v42, %v6333_v42  ;;  %v6116_v57 = vsub.f32 %v22382_v31, %v6082_v32 }
0x1017   :  { %19216 = vmatprep.mubr.msk.bf16.mxu1 %vm20677_vm1, %v26416_v45  ;;  %19226 = vmatprep.subr.bf16.mxu1 %v26416_v45  ;;  %v6367_v7 = vpack.c.bf16 %v6335_v17, %v6335_v17  ;;  %v26430_v17 = vld [vmem:[#allocation48_spill] sm:$0xff] }
0x101a   :  { %6261 = vadd.xlane.f32.xlu0 %v6260_v25 }
0x101d   :  { %19217 = vmatmul.mubr.msk.bf16.vlgmr.msra.gmra.mrb[244].mxu1 %vm360_vm2, %v22596_v46  ;;  %v7892_v46 = vsel %vm360_vm2, %v6365_v33, 0 }
0x101e   :  { %19227 = vmatpush3.bf16.xpose.msra.mxu1 %v7762_v61  ;;  %v6265_v29 = vpop.xlane.xlu1 %6264  ;;  %6267 = vadd.xlane.f32.xlu0 %v6266_v55 }
0x101f   :  { %19228 = vmatprep.mubr.msk.bf16.mxu1 %vm20677_vm1, %v26416_v45  ;;  %19238 = vmatprep.subr.bf16.mxu1 %v26416_v45  ;;  %20300 = vrcp.f32 %v6265_v29 }
0x1022   :  { %v6271_v30 = vpop.xlane.xlu1 %6270 }
0x1023   :  { %20302 = vrcp.f32 %v6271_v30  ;;  %v26429_v30 = vld [vmem:[#allocation71_spill] sm:$0xff] }
0x1025   :  { %19229 = vmatmul.mubr.msk.bf16.vlgmr.msra.gmra.mrb[248].mxu1 %vm360_vm2, %v22598_v43  ;;  %v8022_v43 = vsel %vm360_vm2, %v6367_v7, 0  ;;  %v26431_v7 = vld [vmem:[#allocation23_spill] sm:$0xff] }
0x1026   :  { %19239 = vmatpush3.bf16.xpose.msra.mxu1 %v7892_v46  ;;  %v10504_v37 = vpop.permute.xlu1 %10503  ;;  %19240 = vmatprep.mubr.msk.bf16.mxu1 %vm20677_vm1, %v26416_v45 }
0x1027   :  { %10506 = vxpose.xlu1.c.b16.start.end [1/1] (short) (narrow) %v10504_v37, 16  ;;  %19250 = vmatprep.subr.bf16.mxu1 %v26416_v45 }
0x1029   :  { %v20301_v3 = vpop.eup %20300 }
0x102a   :  { %v6337_v0 = vmul.f32 %v20301_v3, %v22713_v39  ;;  %v22901_v39 = vpop.trf.xlu0  ;;  %v26432_v3 = vld [vmem:[#allocation18_spill] sm:$0xff] }
0x102c   :  { %v6369_v12 = vpack.c.bf16 %v6337_v0, %v6337_v0  ;;  %v26433_v0 = vld [vmem:[#allocation34_spill] sm:$0xff] }
0x102d   :  { %19241 = vmatmul.mubr.msk.bf16.vlgmr.msra.gmra.mrb[252].mxu1 %vm360_vm2, %v22604_v16  ;;  %v20303_v26 = vpop.eup %20302 }
0x102e   :  { %19251 = vmatpush3.bf16.xpose.msra.mxu1 %v8022_v43  ;;  %19252 = vmatprep.mubr.msk.bf16.mxu1 %vm20677_vm1, %v26416_v45  ;;  %v8152_v16 = vsel %vm360_vm2, %v6369_v12, 0  ;;  %v6339_v18 = vmul.f32 %v20303_v26, %v22717_v15  ;;  %v22907_v20 = vpop.permute.xlu0 %8506  ;;  %v6178_v15 = vmul.f32 1.442695, %v6116_v57  ;;  %v26434_v26 = vld [vmem:[#allocation22_spill] sm:$0xff] }
0x102f   :  { %19262 = vmatprep.subr.bf16.mxu1 %v26416_v45 }
0x1030   :  { %v6371_v38 = vpack.c.bf16 %v6339_v18, %v6339_v18  ;;  %v26435_v18 = vld [vmem:[#allocation31_spill] sm:$0xff] }
0x1034   :  { %8654 = vrot.lane.b32.xlu0 %v26296_v36, %s20682_s16 }
0x1035   :  { %19253 = vmatmul.mubr.msk.bf16.vlgmr.msra.gmra.mrb[0].mxu1 %vm360_vm2, %v22610_v9  ;;  %v8282_v9 = vsel %vm360_vm2, %v6371_v38, 0 }
0x1036   :  { %19263 = vmatpush3.bf16.xpose.msra.mxu1 %v8152_v16  ;;  %19264 = vmatprep.mubr.msk.bf16.mxu1 %vm20677_vm1, %v26416_v45 }
0x1037   :  { %19274 = vmatprep.subr.bf16.mxu1 %v26416_v45 }
0x103d   :  { %19265 = vmatmul.mubr.msk.bf16.vlgmr.msra.gmra.mrb[4].mxu1 %vm360_vm2, %v22614_v44 }
0x103e   :  { %19275 = vmatpush3.bf16.xpose.msra.mxu1 %v8282_v9  ;;  %19276 = vmatprep.mubr.msk.bf16.mxu1 %vm20677_vm1, %v26416_v45 }
0x103f   :  { %19286 = vmatprep.subr.bf16.mxu1 %v26416_v45 }
0x1042   :  { %v6184_v13 = vpop.xlane.xlu0 %6183 }
0x1043   :  { %20304 = vrcp.f32 %v6184_v13 }
0x1044   :  { %20306 = vpow2.f32 %v6178_v15 }
0x1045   :  { %19277 = vmatmul.mubr.msk.bf16.vlgmr.msra.gmra.mrb[8].mxu1 %vm360_vm2, %v22618_v19 }
0x1046   :  { %v6190_v31 = vpop.xlane.xlu0 %6189  ;;  %19288 = vmatprep.mubr.msk.bf16.mxu1 %vm20677_vm1, %v26416_v45 }
0x1047   :  { %20308 = vrcp.f32 %v6190_v31  ;;  %v26436_v31 = vld [vmem:[#allocation21_spill] sm:$0xff] }
0x104a   :  { %v6196_v44 = vpop.xlane.xlu0 %6195 }
0x104b   :  { %20310 = vrcp.f32 %v6196_v44 }
0x104d   :  { %v20305_v25 = vpop.eup %20304 }
0x104e   :  { %v6310_v53 = vmul.f32 %v20305_v25, %v22730_v14  ;;  %v22917_v4 = vpop.eup %20306 }
0x104f   :  { %v6272_v42 = vsel %vm360_vm2, %v22917_v4, 0.0 }
0x1050   :  { %v6342_v61 = vpack.c.bf16 %v6310_v53, %v6310_v53 }
0x1051   :  { %v20309_v55 = vpop.eup %20308 }
0x1052   :  { %v6397_v29 = vsel %vm360_vm2, %v6342_v61, 0  ;;  %v6312_v19 = vmul.f32 %v20309_v55, %v22734_v8  ;;  %v26438_v61 = vld [vmem:[#allocation62_spill] sm:$0xff] }
0x1053   :  { %6273 = vadd.xlane.f32.xlu0 %v6272_v42  ;;  %19101 = vmatpush3.bf16.xpose.msra.mxu0 %v6397_v29  ;;  %v26439_v42 = vld [vmem:[#allocation25_spill] sm:$0xff] }
0x1054   :  { %19112 = vmatprep.subr.bf16.mxu0 %v26416_v45  ;;  %v6344_v33 = vpack.c.bf16 %v6312_v19, %v6312_v19 }
0x1055   :  { %v20311_v52 = vpop.eup %20310 }
0x1056   :  { %v6527_v14 = vsel %vm360_vm2, %v6344_v33, 0  ;;  %v6314_v46 = vmul.f32 %v20311_v52, %v22738_v54  ;;  %v22951_v54 = vpop.permute.xlu0 %8604  ;;  %v26440_v33 = vld [vmem:[#allocation35_spill] sm:$0xff] }
0x1058   :  { %v6346_v8 = vpack.c.bf16 %v6314_v46, %v6314_v46  ;;  %v26442_v46 = vld [vmem:[#allocation24_spill] sm:$0xff] }
0x105a   :  { %19103 = vmatmul.mubr.msk.bf16.vlgmr.msra.gmra.mrb[208].mxu0 %vm360_vm2, %v26429_v30  ;;  %v6657_v37 = vsel %vm360_vm2, %v6346_v8, 0  ;;  %v26441_v30 = vld [vmem:[#allocation63_spill] sm:$0xff] }
0x105b   :  { %19113 = vmatpush3.bf16.xpose.msra.mxu0 %v6527_v14  ;;  %19114 = vmatprep.mubr.msk.bf16.mxu0 %vm20677_vm1, %v26416_v45 }
0x105c   :  { %19124 = vmatprep.subr.bf16.mxu0 %v26416_v45 }
0x1062   :  { %19115 = vmatmul.mubr.msk.bf16.vlgmr.msra.gmra.mrb[212].mxu0 %vm360_vm2, %v26430_v17 }
0x1063   :  { %19125 = vmatpush3.bf16.xpose.msra.mxu0 %v6657_v37  ;;  %19126 = vmatprep.mubr.msk.bf16.mxu0 %vm20677_vm1, %v26416_v45  ;;  %v26443_v37 = vld [vmem:[#allocation38_spill] sm:$0xff] }
0x1064   :  { %19136 = vmatprep.subr.bf16.mxu0 %v26416_v45 }
0x1069   :  { %8704 = vrot.lane.b32.xlu0 %v26261_v5, %s20682_s16 }
0x106a   :  { %19127 = vmatmul.mubr.msk.bf16.vlgmr.msra.gmra.mrb[216].mxu0 %vm360_vm2, %v22388_v62 }
0x106b   :  { %19138 = vmatprep.mubr.msk.bf16.mxu0 %vm20677_vm1, %v26416_v45 }
0x106d   :  { %8754 = vrot.lane.b32.xlu0 %v26297_v58, %s20682_s16 }
0x1071   :  { %8804 = vrot.lane.b32.xlu0 %v26263_v2, %s20682_s16 }
0x1075   :  { %8854 = vrot.lane.b32.xlu0 %v26298_v1, %s20682_s16 }
0x1079   :  { %8904 = vrot.lane.b32.xlu0 %v26265_v50, %s20682_s16 }
0x107d   :  { %8954 = vrot.lane.b32.xlu0 %v26431_v7, %s20682_s16 }
0x107f   :  { %v6202_v62 = vpop.xlane.xlu0 %6201 }
0x1080   :  { %20312 = vrcp.f32 %v6202_v62 }
0x1081   :  { %9004 = vrot.lane.b32.xlu0 %v26432_v3, %s20682_s16 }
0x1083   :  { %v6208_v43 = vpop.xlane.xlu0 %6207 }
0x1084   :  { %20314 = vrcp.f32 %v6208_v43  ;;  %v26444_v43 = vld [vmem:[#allocation64_spill] sm:$0xff] }
0x1085   :  { %9054 = vrot.lane.b32.xlu0 %v26433_v0, %s20682_s16 }
0x1087   :  { %v6214_v12 = vpop.xlane.xlu0 %6213 }
0x1088   :  { %20316 = vrcp.f32 %v6214_v12 }
0x1089   :  { %9104 = vrot.lane.b32.xlu0 %v26434_v26, %s20682_s16 }
0x108a   :  { %v20313_v32 = vpop.eup %20312 }
0x108b   :  { %v6316_v16 = vmul.f32 %v20313_v32, %v22778_v48  ;;  %v6220_v9 = vpop.xlane.xlu0 %6219  ;;  %v26437_v48 = vld [vmem:[#allocation36_spill] sm:$0xff] }
0x108c   :  { %20318 = vrcp.f32 %v6220_v9 }
0x108d   :  { %9154 = vrot.lane.b32.xlu0 %v26435_v18, %s20682_s16  ;;  %v6348_v38 = vpack.c.bf16 %v6316_v16, %v6316_v16 }
0x108e   :  { %v20315_v57 = vpop.eup %20314 }
0x108f   :  { %v6787_v15 = vsel %vm360_vm2, %v6348_v38, 0  ;;  %v6318_v13 = vmul.f32 %v20315_v57, %v22784_v10  ;;  %v6226_v53 = vpop.xlane.xlu0 %6225  ;;  %v26446_v38 = vld [vmem:[#allocation28_spill] sm:$0xff] }
0x1090   :  { %19137 = vmatpush3.bf16.xpose.msra.mxu0 %v6787_v15  ;;  %20320 = vrcp.f32 %v6226_v53 }
0x1091   :  { %9204 = vrot.lane.b32.xlu0 %v26436_v31, %s20682_s16  ;;  %19148 = vmatprep.subr.bf16.mxu0 %v26416_v45  ;;  %v6350_v44 = vpack.c.bf16 %v6318_v13, %v6318_v13 }
0x1092   :  { %v20317_v25 = vpop.eup %20316 }
0x1093   :  { %v6917_v55 = vsel %vm360_vm2, %v6350_v44, 0  ;;  %v6320_v10 = vmul.f32 %v20317_v25, %v22795_v51  ;;  %v6232_v52 = vpop.xlane.xlu0 %6231  ;;  %v26447_v44 = vld [vmem:[#allocation37_spill] sm:$0xff] }
0x1094   :  { %20322 = vrcp.f32 %v6232_v52  ;;  %v26448_v25 = vld [vmem:[#allocation65_spill] sm:$0xff] }
0x1095   :  { %9254 = vrot.lane.b32.xlu0 %v26437_v48, %s20682_s16  ;;  %v6352_v29 = vpack.c.bf16 %v6320_v10, %v6320_v10 }
0x1096   :  { %v20319_v19 = vpop.eup %20318 }
0x1097   :  { %19139 = vmatmul.mubr.msk.bf16.vlgmr.msra.gmra.mrb[220].mxu0 %vm360_vm2, %v26438_v61  ;;  %v7047_v51 = vsel %vm360_vm2, %v6352_v29, 0  ;;  %v6322_v14 = vmul.f32 %v20319_v19, %v22801_v11  ;;  %v6238_v62 = vpop.xlane.xlu0 %6237  ;;  %v26450_v29 = vld [vmem:[#allocation26_spill] sm:$0xff] }
0x1098   :  { %19149 = vmatpush3.bf16.xpose.msra.mxu0 %v6917_v55  ;;  %19150 = vmatprep.mubr.msk.bf16.mxu0 %vm20677_vm1, %v26416_v45  ;;  %20324 = vrcp.f32 %v6238_v62 }
0x1099   :  { %9304 = vrot.lane.b32.xlu0 %v26439_v42, %s20682_s16  ;;  %19160 = vmatprep.subr.bf16.mxu0 %v26416_v45  ;;  %v6354_v8 = vpack.c.bf16 %v6322_v14, %v6322_v14  ;;  %v26451_v14 = vld [vmem:[#allocation40_spill] sm:$0xff] }
0x109a   :  { %v20321_v17 = vpop.eup %20320 }
0x109b   :  { %v7177_v11 = vsel %vm360_vm2, %v6354_v8, 0  ;;  %v6324_v12 = vmul.f32 %v20321_v17, %v22812_v56  ;;  %v6244_v56 = vpop.xlane.xlu0 %6243  ;;  %v26452_v8 = vld [vmem:[#allocation89_spill] sm:$0xff] }
0x109c   :  { %20326 = vrcp.f32 %v6244_v56  ;;  %v26456_v56 = vld [vmem:[#allocation90_spill] sm:$0xff] }
0x109d   :  { %9354 = vrot.lane.b32.xlu0 %v26440_v33, %s20682_s16  ;;  %v6356_v15 = vpack.c.bf16 %v6324_v12, %v6324_v12  ;;  %v26454_v12 = vld [vmem:[#allocation30_spill] sm:$0xff] }
0x109e   :  { %v20323_v13 = vpop.eup %20322 }
0x109f   :  { %19151 = vmatmul.mubr.msk.bf16.vlgmr.msra.gmra.mrb[224].mxu0 %vm360_vm2, %v26441_v30  ;;  %v7307_v53 = vsel %vm360_vm2, %v6356_v15, 0  ;;  %v6326_v61 = vmul.f32 %v20323_v13, %v22818_v41  ;;  %v6250_v41 = vpop.xlane.xlu0 %6249  ;;  %v26455_v13 = vld [vmem:[#allocation39_spill] sm:$0xff] }
0x10a0   :  { %19161 = vmatpush3.bf16.xpose.msra.mxu0 %v7047_v51  ;;  %19162 = vmatprep.mubr.msk.bf16.mxu0 %vm20677_vm1, %v26416_v45  ;;  %20328 = vrcp.f32 %v6250_v41 }
0x10a1   :  { %9404 = vrot.lane.b32.xlu0 %v26442_v46, %s20682_s16  ;;  %19172 = vmatprep.subr.bf16.mxu0 %v26416_v45  ;;  %v6358_v30 = vpack.c.bf16 %v6326_v61, %v6326_v61 }
0x10a2   :  { %v20325_v51 = vpop.eup %20324 }
0x10a3   :  { %v7437_v17 = vsel %vm360_vm2, %v6358_v30, 0  ;;  %v6328_v62 = vmul.f32 %v20325_v51, %v22829_v40  ;;  %v6256_v40 = vpop.xlane.xlu0 %6255 }
0x10a4   :  { %20330 = vrcp.f32 %v6256_v40 }
0x10a5   :  { %9454 = vrot.lane.b32.xlu0 %v26443_v37, %s20682_s16 }
0x10a6   :  { %v20327_v15 = vpop.eup %20326 }
0x10a7   :  { %19163 = vmatmul.mubr.msk.bf16.vlgmr.msra.gmra.mrb[228].mxu0 %vm360_vm2, %v26444_v43 }
0x10a8   :  { %v22997_v32 = vpop.f32.mrb[208].mxu1  ;;  %19173 = vmatpush3.bf16.xpose.msra.mxu0 %v7177_v11  ;;  %19174 = vmatprep.mubr.msk.bf16.mxu0 %vm20677_vm1, %v26416_v45 }
0x10a9   :  { %26445 = vst [vmem:[#allocation49_spill] sm:$0xff] %v22997_v32  ;;  %v19110_v16 = vpop.f32.mrb[209].mxu1  ;;  %9504 = vrot.lane.b32.xlu0 %v26446_v38, %s20682_s16  ;;  %19184 = vmatprep.subr.bf16.mxu0 %v26416_v45  ;;  %v26492_v32 = vld [vmem:[#allocation114_spill] sm:$0xff] }
0x10aa   :  { %v6501_v57 = vpop.f32.mrb[210].mxu1  ;;  %v20329_v41 = vpop.eup %20328 }
0x10ab   :  { %v19111_v9 = vpop.f32.mrb[211].mxu1 }
0x10ac   :  { %v6360_v9 = vpack.c.bf16 %v6328_v62, %v6328_v62 }
0x10ad   :  { %9554 = vrot.lane.b32.xlu0 %v26447_v44, %s20682_s16 }
0x10af   :  { %19175 = vmatmul.mubr.msk.bf16.vlgmr.msra.gmra.mrb[232].mxu0 %vm360_vm2, %v26448_v25  ;;  %v7567_v25 = vsel %vm360_vm2, %v6360_v9, 0  ;;  %v26462_v9 = vld [vmem:[#allocation33_spill] sm:$0xff] }
0x10b0   :  { %v23010_v55 = vpop.f32.mrb[212].mxu1  ;;  %19185 = vmatpush3.bf16.xpose.msra.mxu0 %v7307_v53  ;;  %19186 = vmatprep.mubr.msk.bf16.mxu0 %vm20677_vm1, %v26416_v45  ;;  %v6330_v53 = vmul.f32 %v20327_v15, %v22835_v47  ;;  %v6262_v47 = vpop.xlane.xlu0 %6261 }
0x10b1   :  { %26449 = vst [vmem:[#allocation50_spill] sm:$0xff] %v23010_v55  ;;  %v19122_v10 = vpop.f32.mrb[213].mxu1  ;;  %9604 = vrot.lane.b32.xlu0 %v26450_v29, %s20682_s16  ;;  %19196 = vmatprep.subr.bf16.mxu0 %v26416_v45  ;;  %20332 = vrcp.f32 %v6262_v47  ;;  %v26466_v47 = vld [vmem:[#allocation32_spill] sm:$0xff]  ;;  %v9162_v55 = vsel %vm360_vm2, %v26492_v32, 0 }
0x10b2   :  { %v6631_v19 = vpop.f32.mrb[214].mxu1  ;;  %v6362_v51 = vpack.c.bf16 %v6330_v53, %v6330_v53  ;;  %v26463_v53 = vld [vmem:[#allocation41_spill] sm:$0xff] }
0x10b3   :  { %v19123_v52 = vpop.f32.mrb[215].mxu1  ;;  %v26458_v19 = vld [vmem:[#allocation29_spill] sm:$0xff] }
0x10b4   :  { %v7697_v62 = vsel %vm360_vm2, %v6362_v51, 0 }
0x10b5   :  { %9654 = vrot.lane.b32.xlu0 %v26451_v14, %s20682_s16 }
0x10b7   :  { %19187 = vmatmul.mubr.msk.bf16.vlgmr.msra.gmra.mrb[236].mxu0 %vm360_vm2, %v26452_v8  ;;  %v26459_v8 = vld [vmem:[#allocation42_spill] sm:$0xff] }
0x10b8   :  { %v23023_v43 = vpop.f32.mrb[216].mxu1  ;;  %19197 = vmatpush3.bf16.xpose.msra.mxu0 %v7437_v17  ;;  %19198 = vmatprep.mubr.msk.bf16.mxu0 %vm20677_vm1, %v26416_v45  ;;  %v26460_v17 = vld [vmem:[#allocation91_spill] sm:$0xff] }
0x10b9   :  { %26453 = vst [vmem:[#allocation51_spill] sm:$0xff] %v23023_v43  ;;  %v19134_v11 = vpop.f32.mrb[217].mxu1  ;;  %9704 = vrot.lane.b32.xlu0 %v26454_v12, %s20682_s16  ;;  %19208 = vmatprep.subr.bf16.mxu0 %v26416_v45 }
0x10ba   :  { %v6761_v16 = vpop.f32.mrb[218].mxu1  ;;  %v6332_v11 = vmul.f32 %v20329_v41, %v22845_v28  ;;  %v6268_v28 = vpop.xlane.xlu0 %6267 }
0x10bb   :  { %v19135_v57 = vpop.f32.mrb[219].mxu1  ;;  %20334 = vrcp.f32 %v6268_v28 }
0x10bd   :  { %9754 = vrot.lane.b32.xlu0 %v26455_v13, %s20682_s16 }
0x10bf   :  { %19199 = vmatmul.mubr.msk.bf16.vlgmr.msra.gmra.mrb[240].mxu0 %vm360_vm2, %v26456_v56  ;;  %v6364_v56 = vpack.c.bf16 %v6332_v11, %v6332_v11 }
0x10c0   :  { %v23036_v61 = vpop.f32.mrb[220].mxu1  ;;  %19209 = vmatpush3.bf16.xpose.msra.mxu0 %v7567_v25  ;;  %19210 = vmatprep.mubr.msk.bf16.mxu0 %vm20677_vm1, %v26416_v45  ;;  %v20331_v25 = vpop.eup %20330 }
0x10c1   :  { %26457 = vst [vmem:[#allocation52_spill] sm:$0xff] %v23036_v61  ;;  %v19146_v10 = vpop.f32.mrb[221].mxu1  ;;  %9804 = vrot.lane.b32.xlu0 %v26458_v19, %s20682_s16  ;;  %19220 = vmatprep.subr.bf16.mxu0 %v26416_v45 }
0x10c2   :  { %v6891_v52 = vpop.f32.mrb[222].mxu1  ;;  %v26464_v10 = vld [vmem:[#allocation92_spill] sm:$0xff] }
0x10c3   :  { %v19147_v30 = vpop.f32.mrb[223].mxu1  ;;  %v7827_v52 = vsel %vm360_vm2, %v6364_v56, 0 }
0x10c4   :  { %v6334_v30 = vmul.f32 %v20331_v25, %v22850_v27  ;;  %v26468_v27 = vld [vmem:[#allocation93_spill] sm:$0xff] }
0x10c5   :  { %9854 = vrot.lane.b32.xlu0 %v26459_v8, %s20682_s16 }
0x10c6   :  { %v6366_v11 = vpack.c.bf16 %v6334_v30, %v6334_v30 }
0x10c7   :  { %19211 = vmatmul.mubr.msk.bf16.vlgmr.msra.gmra.mrb[244].mxu0 %vm360_vm2, %v26460_v17 }
0x10c8   :  { %v23049_v16 = vpop.f32.mrb[224].mxu1  ;;  %19221 = vmatpush3.bf16.xpose.msra.mxu0 %v7697_v62  ;;  %19222 = vmatprep.mubr.msk.bf16.mxu0 %vm20677_vm1, %v26416_v45 }
0x10c9   :  { %26461 = vst [vmem:[#allocation53_spill] sm:$0xff] %v23049_v16  ;;  %v19158_v57 = vpop.f32.mrb[225].mxu1  ;;  %9904 = vrot.lane.b32.xlu0 %v26462_v9, %s20682_s16  ;;  %19232 = vmatprep.subr.bf16.mxu0 %v26416_v45 }
0x10ca   :  { %v7021_v15 = vpop.f32.mrb[226].mxu1  ;;  %v20333_v57 = vpop.eup %20332 }
0x10cb   :  { %v19159_v40 = vpop.f32.mrb[227].mxu1  ;;  %v26467_v15 = vld [vmem:[#allocation11_spill] sm:$0xff]  ;;  %v6336_v56 = vmul.f32 %v20333_v57, %v22860_v21  ;;  %v26470_v21 = vld [vmem:[#allocation94_spill] sm:$0xff] }
0x10cc   :  { %v7957_v40 = vsel %vm360_vm2, %v6366_v11, 0 }
0x10cd   :  { %9954 = vrot.lane.b32.xlu0 %v26463_v53, %s20682_s16  ;;  %v6368_v30 = vpack.c.bf16 %v6336_v56, %v6336_v56 }
0x10cf   :  { %19223 = vmatmul.mubr.msk.bf16.vlgmr.msra.gmra.mrb[248].mxu0 %vm360_vm2, %v26464_v10 }
0x10d0   :  { %v23062_v51 = vpop.f32.mrb[228].mxu1  ;;  %19233 = vmatpush3.bf16.xpose.msra.mxu0 %v7827_v52  ;;  %19234 = vmatprep.mubr.msk.bf16.mxu0 %vm20677_vm1, %v26416_v45 }
0x10d1   :  { %26465 = vst [vmem:[#allocation54_spill] sm:$0xff] %v23062_v51  ;;  %v19170_v41 = vpop.f32.mrb[229].mxu1  ;;  %10004 = vrot.lane.b32.xlu0 %v26466_v47, %s20682_s16  ;;  %19244 = vmatprep.subr.bf16.mxu0 %v26416_v45  ;;  %v26484_v51 = vld [vmem:[#allocation101_spill] sm:$0xff] }
0x10d2   :  { %v7151_v17 = vpop.f32.mrb[230].mxu1  ;;  %v20335_v41 = vpop.eup %20334 }
0x10d3   :  { %v19171_v62 = vpop.f32.mrb[231].mxu1  ;;  %v23082_v17 = vpop.permute.xlu0 %8654  ;;  %v6338_v11 = vmul.f32 %v20335_v41, %v22865_v59  ;;  %v26472_v59 = vld [vmem:[#allocation95_spill] sm:$0xff] }
0x10d4   :  { %v8087_v62 = vsel %vm360_vm2, %v6368_v30, 0 }
0x10d5   :  { %10568 = vrot.lane.b32.xlu0 %v26467_v15, %s20684_s18 }
0x10d7   :  { %19235 = vmatmul.mubr.msk.bf16.vlgmr.msra.gmra.mrb[252].mxu0 %vm360_vm2, %v26468_v27 }
0x10d8   :  { %v23075_v25 = vpop.f32.mrb[232].mxu1  ;;  %19245 = vmatpush3.bf16.xpose.msra.mxu0 %v7957_v40  ;;  %19246 = vmatprep.mubr.msk.bf16.mxu0 %vm20677_vm1, %v26416_v45 }
0x10d9   :  { %26469 = vst [vmem:[#allocation55_spill] sm:$0xff] %v23075_v25  ;;  %v19182_v28 = vpop.f32.mrb[233].mxu1  ;;  %10633 = vrot.lane.b32.xlu0 %v26260_v24, %s20684_s18  ;;  %19256 = vmatprep.subr.bf16.mxu0 %v26416_v45 }
0x10da   :  { %v7281_v10 = vpop.f32.mrb[234].mxu1 }
0x10db   :  { %v19183_v52 = vpop.f32.mrb[235].mxu1  ;;  %v6370_v10 = vpack.c.bf16 %v6338_v11, %v6338_v11 }
0x10dd   :  { %10698 = vrot.lane.b32.xlu0 %v26296_v36, %s20684_s18  ;;  %v8217_v30 = vsel %vm360_vm2, %v6370_v10, 0 }
0x10df   :  { %19247 = vmatmul.mubr.msk.bf16.vlgmr.msra.gmra.mrb[0].mxu0 %vm360_vm2, %v26470_v21 }
0x10e0   :  { %v23090_v57 = vpop.f32.mrb[236].mxu1  ;;  %19257 = vmatpush3.bf16.xpose.msra.mxu0 %v8087_v62  ;;  %v6274_v27 = vpop.xlane.xlu0 %6273  ;;  %19258 = vmatprep.mubr.msk.bf16.mxu0 %vm20677_vm1, %v26416_v45 }
0x10e1   :  { %26471 = vst [vmem:[#allocation56_spill] sm:$0xff] %v23090_v57  ;;  %20336 = vrcp.f32 %v6274_v27  ;;  %v19194_v40 = vpop.f32.mrb[237].mxu1  ;;  %10763 = vrot.lane.b32.xlu0 %v26261_v5, %s20684_s18  ;;  %19268 = vmatprep.subr.bf16.mxu0 %v26416_v45  ;;  %v26481_v57 = vld [vmem:[#allocation98_spill] sm:$0xff] }
0x10e2   :  { %v7411_v56 = vpop.f32.mrb[238].mxu1 }
0x10e3   :  { %v19195_v28 = vpop.f32.mrb[239].mxu1 }
0x10e4   :  { %v23097_v52 = vpop.permute.xlu0 %8704 }
0x10e5   :  { %10828 = vrot.lane.b32.xlu0 %v26297_v58, %s20684_s18 }
0x10e7   :  { %19259 = vmatmul.mubr.msk.bf16.vlgmr.msra.gmra.mrb[4].mxu0 %vm360_vm2, %v26472_v59  ;;  %v26474_v59 = vld [vmem:[#allocation96_spill] sm:$0xff] }
0x10e8   :  { %v23104_v41 = vpop.f32.mrb[240].mxu1  ;;  %19269 = vmatpush3.bf16.xpose.msra.mxu0 %v8217_v30  ;;  %v23106_v21 = vpop.permute.xlu0 %8754  ;;  %19270 = vmatprep.mubr.msk.bf16.mxu0 %vm20677_vm1, %v26416_v45 }
0x10e9   :  { %26473 = vst [vmem:[#allocation57_spill] sm:$0xff] %v23104_v41  ;;  %v19206_v62 = vpop.f32.mrb[241].mxu1  ;;  %10893 = vrot.lane.b32.xlu0 %v26263_v2, %s20684_s18  ;;  %19280 = vmatprep.subr.bf16.mxu0 %v26416_v45 }
0x10ea   :  { %v7541_v11 = vpop.f32.mrb[242].mxu1 }
0x10eb   :  { %v20337_v27 = vpop.eup %20336  ;;  %v19207_v40 = vpop.f32.mrb[243].mxu1 }
0x10ec   :  { %v23113_v56 = vpop.permute.xlu0 %8804  ;;  %v6340_v28 = vmul.f32 %v20337_v27, %v22917_v4 }
0x10ed   :  { %10958 = vrot.lane.b32.xlu0 %v26298_v1, %s20684_s18 }
0x10ee   :  { %v6372_v10 = vpack.c.bf16 %v6340_v28, %v6340_v28  ;;  %v26476_v28 = vld [vmem:[#allocation99_spill] sm:$0xff] }
0x10ef   :  { %19271 = vmatmul.mubr.msk.bf16.vlgmr.msra.gmra.mrb[8].mxu0 %vm360_vm2, %v26474_v59 }
0x10f0   :  { %v23120_v30 = vpop.f32.mrb[244].mxu1  ;;  %v23122_v62 = vpop.permute.xlu0 %8854  ;;  %v8347_v41 = vsel %vm360_vm2, %v6372_v10, 0  ;;  %19282 = vmatprep.mubr.msk.bf16.mxu0 %vm20677_vm1, %v26416_v45  ;;  %v8462_v10 = vsel %vm360_vm2, %v26476_v28, 0 }
0x10f1   :  { %26475 = vst [vmem:[#allocation58_spill] sm:$0xff] %v23120_v30  ;;  %v19218_v11 = vpop.f32.mrb[245].mxu1  ;;  %11023 = vrot.lane.b32.xlu0 %v26265_v50, %s20684_s18  ;;  %19281 = vmatpush3.bf16.xpose.msra.mxu0 %v8347_v41  ;;  %v26478_v30 = vld [vmem:[#allocation97_spill] sm:$0xff] }
0x10f2   :  { %v7671_v4 = vpop.f32.mrb[246].mxu1  ;;  %19292 = vmatprep.subr.bf16.mxu0 %v26416_v45 }
0x10f3   :  { %v19219_v27 = vpop.f32.mrb[247].mxu1 }
0x10f4   :  { %v23130_v40 = vpop.permute.xlu0 %8904 }
0x10f5   :  { %11088 = vrot.lane.b32.xlu0 %v26431_v7, %s20684_s18 }
0x10f8   :  { %v23136_v59 = vpop.f32.mrb[248].mxu1  ;;  %19283 = vmatmul.mubr.msk.bf16.vlgmr.msra.gmra.mrb[12].mxu0 %vm360_vm2, %v26478_v30  ;;  %v23140_v11 = vpop.permute.xlu0 %8954  ;;  %v26479_v30 = vld [vmem:[#allocation102_spill] sm:$0xff] }
0x10f9   :  { %26477 = vst [vmem:[#allocation59_spill] sm:$0xff] %v23136_v59  ;;  %v19230_v41 = vpop.f32.mrb[249].mxu1  ;;  %11153 = vrot.lane.b32.xlu0 %v26432_v3, %s20684_s18  ;;  %19293 = vmatpush3.bf16.xpose.msra.mxu0 %v8462_v10  ;;  %v8562_v59 = vsel %vm360_vm2, %v26479_v30, 0 }
0x10fa   :  { %v7801_v4 = vpop.f32.mrb[250].mxu1  ;;  %19294 = vmatprep.mubr.msk.bf16.mxu0 %vm20677_vm1, %v26416_v45  ;;  %19304 = vmatprep.subr.bf16.mxu0 %v26416_v45 }
0x10fb   :  { %v19231_v27 = vpop.f32.mrb[251].mxu1 }
0x10fc   :  { %v23147_v28 = vpop.permute.xlu0 %9004 }
0x10fd   :  { %11218 = vrot.lane.b32.xlu0 %v26433_v0, %s20684_s18 }
0x1100   :  { %v23153_v41 = vpop.f32.mrb[252].mxu1  ;;  %19295 = vmatmul.mubr.msk.bf16.vlgmr.msra.gmra.mrb[16].mxu0 %vm360_vm2, %v26481_v57  ;;  %v23157_v10 = vpop.permute.xlu0 %9054  ;;  %v26482_v57 = vld [vmem:[#allocation104_spill] sm:$0xff] }
0x1101   :  { %26480 = vst [vmem:[#allocation60_spill] sm:$0xff] %v23153_v41  ;;  %v19242_v4 = vpop.f32.mrb[253].mxu1  ;;  %11283 = vrot.lane.b32.xlu0 %v26434_v26, %s20684_s18  ;;  %19305 = vmatpush3.bf16.xpose.msra.mxu0 %v8562_v59  ;;  %v8662_v41 = vsel %vm360_vm2, %v26482_v57, 0 }
0x1102   :  { %v7931_v27 = vpop.f32.mrb[254].mxu1  ;;  %19306 = vmatprep.mubr.msk.bf16.mxu0 %vm20677_vm1, %v26416_v45  ;;  %19316 = vmatprep.subr.bf16.mxu0 %v26416_v45 }
0x1103   :  { %v19243_v25 = vpop.f32.mrb[255].mxu1 }
0x1104   :  { %v23164_v30 = vpop.permute.xlu0 %9104 }
0x1105   :  { %11348 = vrot.lane.b32.xlu0 %v26435_v18, %s20684_s18 }
0x1108   :  { %v23170_v4 = vpop.f32.mrb[0].mxu1  ;;  %19307 = vmatmul.mubr.msk.bf16.vlgmr.msra.gmra.mrb[20].mxu0 %vm360_vm2, %v26484_v51  ;;  %v23174_v59 = vpop.permute.xlu0 %9154  ;;  %v26485_v51 = vld [vmem:[#allocation106_spill] sm:$0xff] }
0x1109   :  { %26483 = vst [vmem:[#allocation71_spill] sm:$0xff] %v23170_v4  ;;  %v19254_v27 = vpop.f32.mrb[1].mxu1  ;;  %11413 = vrot.lane.b32.xlu0 %v26436_v31, %s20684_s18  ;;  %19317 = vmatpush3.bf16.xpose.msra.mxu0 %v8662_v41  ;;  %v8762_v4 = vsel %vm360_vm2, %v26485_v51, 0 }
0x110a   :  { %v8061_v25 = vpop.f32.mrb[2].mxu1  ;;  %19318 = vmatprep.mubr.msk.bf16.mxu0 %vm20677_vm1, %v26416_v45  ;;  %19328 = vmatprep.subr.bf16.mxu0 %v26416_v45 }
0x110b   :  { %v19255_v16 = vpop.f32.mrb[3].mxu1 }
0x110c   :  { %v23181_v57 = vpop.permute.xlu0 %9204 }
0x110d   :  { %11478 = vrot.lane.b32.xlu0 %v26437_v48, %s20684_s18 }
0x1110   :  { %v23187_v27 = vpop.f32.mrb[4].mxu1  ;;  %19319 = vmatmul.mubr.msk.bf16.vlgmr.msra.gmra.mrb[24].mxu0 %vm360_vm2, %v23082_v17  ;;  %v23191_v41 = vpop.permute.xlu0 %9254  ;;  %v26487_v17 = vld [vmem:[#allocation108_spill] sm:$0xff] }
0x1111   :  { %26486 = vst [vmem:[#allocation48_spill] sm:$0xff] %v23187_v27  ;;  %v19266_v25 = vpop.f32.mrb[5].mxu1  ;;  %11543 = vrot.lane.b32.xlu0 %v26439_v42, %s20684_s18  ;;  %19329 = vmatpush3.bf16.xpose.msra.mxu0 %v8762_v4  ;;  %v8862_v27 = vsel %vm360_vm2, %v26487_v17, 0 }
0x1112   :  { %v8191_v16 = vpop.f32.mrb[6].mxu1  ;;  %19330 = vmatprep.mubr.msk.bf16.mxu0 %vm20677_vm1, %v26416_v45  ;;  %19340 = vmatprep.subr.bf16.mxu0 %v26416_v45 }
0x1113   :  { %v19267_v61 = vpop.f32.mrb[7].mxu1 }
0x1114   :  { %v23198_v51 = vpop.permute.xlu0 %9304 }
0x1115   :  { %11608 = vrot.lane.b32.xlu0 %v26440_v33, %s20684_s18 }
0x1118   :  { %v23204_v25 = vpop.f32.mrb[8].mxu1  ;;  %19331 = vmatmul.mubr.msk.bf16.vlgmr.msra.gmra.mrb[28].mxu0 %vm360_vm2, %v23106_v21  ;;  %v23208_v4 = vpop.permute.xlu0 %9354  ;;  %v26489_v21 = vld [vmem:[#allocation110_spill] sm:$0xff] }
0x1119   :  { %26488 = vst [vmem:[#allocation23_spill] sm:$0xff] %v23204_v25  ;;  %v19278_v16 = vpop.f32.mrb[9].mxu1  ;;  %11673 = vrot.lane.b32.xlu0 %v26442_v46, %s20684_s18  ;;  %19341 = vmatpush3.bf16.xpose.msra.mxu0 %v8862_v27  ;;  %v8962_v25 = vsel %vm360_vm2, %v26489_v21, 0  ;;  %v26490_v27 = vld [vmem:[#allocation112_spill] sm:$0xff] }
0x111a   :  { %v8321_v61 = vpop.f32.mrb[10].mxu1  ;;  %19342 = vmatprep.mubr.msk.bf16.mxu0 %vm20677_vm1, %v26416_v45  ;;  %19352 = vmatprep.subr.bf16.mxu0 %v26416_v45 }
0x111b   :  { %v19279_v43 = vpop.f32.mrb[11].mxu1  ;;  %v9062_v61 = vsel %vm360_vm2, %v26490_v27, 0 }
0x111c   :  { %v23215_v17 = vpop.permute.xlu0 %9404 }
0x111d   :  { %11738 = vrot.lane.b32.xlu0 %v26443_v37, %s20684_s18 }
0x1120   :  { %19343 = vmatmul.mubr.msk.bf16.vlgmr.msra.gmra.mrb[32].mxu0 %vm360_vm2, %v23122_v62  ;;  %v23223_v16 = vpop.permute.xlu0 %9454 }
0x1121   :  { %11803 = vrot.lane.b32.xlu0 %v26446_v38, %s20684_s18  ;;  %19353 = vmatpush3.bf16.xpose.msra.mxu0 %v8962_v25 }
0x1122   :  { %19354 = vmatprep.mubr.msk.bf16.mxu0 %vm20677_vm1, %v26416_v45  ;;  %19364 = vmatprep.subr.bf16.mxu0 %v26416_v45 }
0x1124   :  { %v23230_v43 = vpop.permute.xlu0 %9504 }
0x1125   :  { %11868 = vrot.lane.b32.xlu0 %v26447_v44, %s20684_s18 }
0x1128   :  { %19355 = vmatmul.mubr.msk.bf16.vlgmr.msra.gmra.mrb[36].mxu0 %vm360_vm2, %v23140_v11  ;;  %v23238_v62 = vpop.permute.xlu0 %9554 }
0x1129   :  { %11933 = vrot.lane.b32.xlu0 %v26450_v29, %s20684_s18  ;;  %19365 = vmatpush3.bf16.xpose.msra.mxu0 %v9062_v61 }
0x112a   :  { %19366 = vmatprep.mubr.msk.bf16.mxu0 %vm20677_vm1, %v26416_v45  ;;  %19376 = vmatprep.subr.bf16.mxu0 %v26416_v45 }
0x112c   :  { %v23245_v25 = vpop.permute.xlu0 %9604 }
0x112d   :  { %v23247_v21 = vpop.f32.mrb[208].mxu0  ;;  %11998 = vrot.lane.b32.xlu0 %v26451_v14, %s20684_s18 }
0x112e   :  { %26491 = vst [vmem:[#allocation18_spill] sm:$0xff] %v23247_v21  ;;  %v19104_v27 = vpop.f32.mrb[209].mxu0 }
0x112f   :  { %v6436_v11 = vpop.f32.mrb[210].mxu0 }
0x1130   :  { %v19105_v44 = vpop.f32.mrb[211].mxu0  ;;  %19367 = vmatmul.mubr.msk.bf16.vlgmr.msra.gmra.mrb[40].mxu0 %vm360_vm2, %v23157_v10  ;;  %v23255_v61 = vpop.permute.xlu0 %9654  ;;  %v26494_v10 = vld [vmem:[#allocation116_spill] sm:$0xff] }
0x1131   :  { %12063 = vrot.lane.b32.xlu0 %v26454_v12, %s20684_s18  ;;  %19377 = vmatpush3.bf16.xpose.msra.mxu0 %v9162_v55  ;;  %v9262_v21 = vsel %vm360_vm2, %v26494_v10, 0  ;;  %v26496_v10 = vld [vmem:[#allocation118_spill] sm:$0xff] }
0x1132   :  { %19378 = vmatprep.mubr.msk.bf16.mxu0 %vm20677_vm1, %v26416_v45  ;;  %19388 = vmatprep.subr.bf16.mxu0 %v26416_v45 }
0x1134   :  { %v23262_v27 = vpop.permute.xlu0 %9704 }
0x1135   :  { %v23264_v11 = vpop.f32.mrb[212].mxu0  ;;  %12128 = vrot.lane.b32.xlu0 %v26455_v13, %s20684_s18 }
0x1136   :  { %26493 = vst [vmem:[#allocation62_spill] sm:$0xff] %v23264_v11  ;;  %v19116_v32 = vpop.f32.mrb[213].mxu0  ;;  %v9362_v11 = vsel %vm360_vm2, %v26496_v10, 0  ;;  %v26498_v10 = vld [vmem:[#allocation12_spill] sm:$0xff] }
0x1137   :  { %v6566_v44 = vpop.f32.mrb[214].mxu0 }
0x1138   :  { %v19117_v14 = vpop.f32.mrb[215].mxu0  ;;  %19379 = vmatmul.mubr.msk.bf16.vlgmr.msra.gmra.mrb[44].mxu0 %vm360_vm2, %v23174_v59  ;;  %v23272_v55 = vpop.permute.xlu0 %9754 }
0x1139   :  { %12193 = vrot.lane.b32.xlu0 %v26458_v19, %s20684_s18  ;;  %19389 = vmatpush3.bf16.xpose.msra.mxu0 %v9262_v21 }
0x113a   :  { %19390 = vmatprep.mubr.msk.bf16.mxu0 %vm20677_vm1, %v26416_v45  ;;  %19400 = vmatprep.subr.bf16.mxu0 %v26416_v45 }
0x113c   :  { %v23279_v32 = vpop.permute.xlu0 %9804 }
0x113d   :  { %v23281_v44 = vpop.f32.mrb[216].mxu0  ;;  %12258 = vrot.lane.b32.xlu0 %v26459_v8, %s20684_s18 }
0x113e   :  { %26495 = vst [vmem:[#allocation63_spill] sm:$0xff] %v23281_v44  ;;  %v19128_v14 = vpop.f32.mrb[217].mxu0 }
0x113f   :  { %v6696_v59 = vpop.f32.mrb[218].mxu0 }
0x1140   :  { %v19129_v13 = vpop.f32.mrb[219].mxu0  ;;  %19391 = vmatmul.mubr.msk.bf16.vlgmr.msra.gmra.mrb[48].mxu0 %vm360_vm2, %v23191_v41  ;;  %v23289_v21 = vpop.permute.xlu0 %9854 }
0x1141   :  { %12323 = vrot.lane.b32.xlu0 %v26462_v9, %s20684_s18  ;;  %19401 = vmatpush3.bf16.xpose.msra.mxu0 %v9362_v11  ;;  %v26497_v13 = vld [vmem:[#allocation120_spill] sm:$0xff] }
0x1142   :  { %19402 = vmatprep.mubr.msk.bf16.mxu0 %vm20677_vm1, %v26416_v45  ;;  %19412 = vmatprep.subr.bf16.mxu0 %v26416_v45  ;;  %v9462_v59 = vsel %vm360_vm2, %v26497_v13, 0  ;;  %v26499_v13 = vld [vmem:[#allocation122_spill] sm:$0xff] }
0x1144   :  { %v23296_v14 = vpop.permute.xlu0 %9904 }
0x1145   :  { %12388 = vrot.lane.b32.xlu0 %v26463_v53, %s20684_s18 }
0x1148   :  { %19403 = vmatmul.mubr.msk.bf16.vlgmr.msra.gmra.mrb[52].mxu0 %vm360_vm2, %v23208_v4  ;;  %v23304_v41 = vpop.permute.xlu0 %9954  ;;  %v9562_v4 = vsel %vm360_vm2, %v26499_v13, 0  ;;  %v26500_v13 = vld [vmem:[#allocation125_spill] sm:$0xff] }
0x1149   :  { %12453 = vrot.lane.b32.xlu0 %v26466_v47, %s20684_s18  ;;  %19413 = vmatpush3.bf16.xpose.msra.mxu0 %v9462_v59 }
0x114a   :  { %19414 = vmatprep.mubr.msk.bf16.mxu0 %vm20677_vm1, %v26416_v45  ;;  %19424 = vmatprep.subr.bf16.mxu0 %v26416_v45 }
0x114c   :  { %v23311_v11 = vpop.permute.xlu0 %10004 }
0x114d   :  { %12518 = vrot.lane.b32.xlu0 %v26498_v10, %s20685_s19  ;;  %v9662_v10 = vsel %vm360_vm2, %v26500_v13, 0 }
0x1150   :  { %19415 = vmatmul.mubr.msk.bf16.vlgmr.msra.gmra.mrb[56].mxu0 %vm360_vm2, %v23223_v16  ;;  %v10569_v44 = vpop.permute.xlu0 %10568 }
0x1151   :  { %12568 = vrot.lane.b32.xlu0 %v26258_v23, %s20685_s19  ;;  %19425 = vmatpush3.bf16.xpose.msra.mxu0 %v9562_v4  ;;  %v9762_v4 = vsel %vm360_vm2, %v22634_v34, 0 }
0x1152   :  { %10571 = vxpose.xlu1.c.b16.start.end [1/1] (short) (narrow) %v10569_v44, 16  ;;  %19426 = vmatprep.mubr.msk.bf16.mxu0 %vm20677_vm1, %v26416_v45 }
0x1153   :  { %19436 = vmatprep.subr.bf16.mxu0 %v26416_v45 }
0x1154   :  { %v10634_v59 = vpop.permute.xlu0 %10633 }
0x1155   :  { %12618 = vrot.lane.b32.xlu0 %v26467_v15, %s20685_s19 }
0x1156   :  { %10636 = vxpose.xlu1.c.b16.start.end [1/1] (short) (narrow) %v10634_v59, 16  ;;  %v26501_v59 = vld [vmem:[#allocation61_spill] sm:$0xff] }
0x1157   :  { %v6117_v13 = vsub.f32 %v26501_v59, %v22711_v63 }
0x1158   :  { %19427 = vmatmul.mubr.msk.bf16.vlgmr.msra.gmra.mrb[60].mxu0 %vm360_vm2, %v23238_v62  ;;  %v10699_v16 = vpop.permute.xlu0 %10698 }
0x1159   :  { %12668 = vrot.lane.b32.xlu0 %v26260_v24, %s20685_s19  ;;  %19437 = vmatpush3.bf16.xpose.msra.mxu0 %v9662_v10 }
0x115a   :  { %10701 = vxpose.xlu1.c.b16.start.end [1/1] (short) (narrow) %v10699_v16, 16  ;;  %19438 = vmatprep.mubr.msk.bf16.mxu0 %vm20677_vm1, %v26416_v45  ;;  %v9862_v16 = vsel %vm360_vm2, %v22649_v35, 0  ;;  %v9962_v35 = vsel %vm360_vm2, %v22678_v6, 0 }
0x115b   :  { %19448 = vmatprep.subr.bf16.mxu0 %v26416_v45 }
0x115c   :  { %v10764_v44 = vpop.permute.xlu0 %10763 }
0x115d   :  { %12718 = vrot.lane.b32.xlu0 %v26296_v36, %s20685_s19 }
0x115e   :  { %10766 = vxpose.xlu1.c.b16.start.end [1/1] (short) (narrow) %v10764_v44, 16 }
0x1160   :  { %19439 = vmatmul.mubr.msk.bf16.vlgmr.msra.gmra.mrb[64].mxu0 %vm360_vm2, %v23255_v61  ;;  %v10829_v62 = vpop.permute.xlu0 %10828  ;;  %v6180_v61 = vmul.f32 1.442695, %v6117_v13 }
0x1161   :  { %19449 = vmatpush3.bf16.xpose.msra.mxu0 %v9762_v4  ;;  %19450 = vmatprep.mubr.msk.bf16.mxu0 %vm20677_vm1, %v26416_v45 }
0x1162   :  { %10831 = vxpose.xlu1.c.b16.start.end [1/1] (short) (narrow) %v10829_v62, 16  ;;  %19460 = vmatprep.subr.bf16.mxu0 %v26416_v45  ;;  %20338 = vpow2.f32 %v6180_v61 }
0x1164   :  { %v10894_v10 = vpop.permute.xlu0 %10893 }
0x1166   :  { %10896 = vxpose.xlu1.c.b16.start.end [1/1] (short) (narrow) %v10894_v10, 16 }
0x1168   :  { %19451 = vmatmul.mubr.msk.bf16.vlgmr.msra.gmra.mrb[68].mxu0 %vm360_vm2, %v23272_v55  ;;  %v10959_v34 = vpop.permute.xlu0 %10958 }
0x1169   :  { %19461 = vmatpush3.bf16.xpose.msra.mxu0 %v9862_v16  ;;  %19462 = vmatprep.mubr.msk.bf16.mxu0 %vm20677_vm1, %v26416_v45 }
0x116a   :  { %10961 = vxpose.xlu1.c.b16.start.end [1/1] (short) (narrow) %v10959_v34, 16  ;;  %v23352_v44 = vpop.f32.mrb[220].mxu0  ;;  %19472 = vmatprep.subr.bf16.mxu0 %v26416_v45 }
0x116b   :  { %26502 = vst [vmem:[#allocation64_spill] sm:$0xff] %v23352_v44  ;;  %v19140_v4 = vpop.f32.mrb[221].mxu0 }
0x116c   :  { %v6826_v63 = vpop.f32.mrb[222].mxu0  ;;  %v11024_v62 = vpop.permute.xlu0 %11023 }
0x116d   :  { %v19141_v10 = vpop.f32.mrb[223].mxu0  ;;  %v23364_v34 = vpop.eup %20338 }
0x116e   :  { %11026 = vxpose.xlu1.c.b16.start.end [1/1] (short) (narrow) %v11024_v62, 16 }
0x1170   :  { %19463 = vmatmul.mubr.msk.bf16.vlgmr.msra.gmra.mrb[72].mxu0 %vm360_vm2, %v23289_v21  ;;  %v6275_v21 = vsel %vm360_vm2, %v23364_v34, 0.0  ;;  %v11089_v63 = vpop.permute.xlu0 %11088 }
0x1171   :  { %19473 = vmatpush3.bf16.xpose.msra.mxu0 %v9962_v35  ;;  %19474 = vmatprep.mubr.msk.bf16.mxu0 %vm20677_vm1, %v26416_v45 }
0x1172   :  { %v23361_v55 = vpop.f32.mrb[224].mxu0  ;;  %19484 = vmatprep.subr.bf16.mxu0 %v26416_v45 }
0x1173   :  { %26503 = vst [vmem:[#allocation65_spill] sm:$0xff] %v23361_v55  ;;  %v19152_v59 = vpop.f32.mrb[225].mxu0 }
0x1174   :  { %v6956_v13 = vpop.f32.mrb[226].mxu0  ;;  %v11154_v35 = vpop.permute.xlu0 %11153 }
0x1175   :  { %v19153_v16 = vpop.f32.mrb[227].mxu0 }
0x1178   :  { %19475 = vmatmul.mubr.msk.bf16.vlgmr.msra.gmra.mrb[76].mxu0 %vm360_vm2, %v23304_v41  ;;  %v11219_v41 = vpop.permute.xlu0 %11218 }
0x1179   :  { %19486 = vmatprep.mubr.msk.bf16.mxu0 %vm20677_vm1, %v26416_v45 }
0x117a   :  { %v23370_v6 = vpop.f32.mrb[228].mxu0 }
0x117b   :  { %26504 = vst [vmem:[#allocation89_spill] sm:$0xff] %v23370_v6  ;;  %6276 = vadd.xlane.f32.xlu1 %v6275_v21  ;;  %v19164_v61 = vpop.f32.mrb[229].mxu0 }
0x117c   :  { %v7086_v4 = vpop.f32.mrb[230].mxu0  ;;  %v11284_v15 = vpop.permute.xlu0 %11283 }
0x117d   :  { %v19165_v62 = vpop.f32.mrb[231].mxu0 }
0x1180   :  { %v11349_v4 = vpop.permute.xlu0 %11348 }
0x1182   :  { %v23374_v10 = vpop.f32.mrb[232].mxu0 }
0x1183   :  { %26505 = vst [vmem:[#allocation90_spill] sm:$0xff] %v23374_v10  ;;  %v19176_v59 = vpop.f32.mrb[233].mxu0 }
0x1184   :  { %v7216_v13 = vpop.f32.mrb[234].mxu0  ;;  %v11414_v10 = vpop.permute.xlu0 %11413 }
0x1185   :  { %v19177_v16 = vpop.f32.mrb[235].mxu0 }
0x1188   :  { %v11479_v16 = vpop.permute.xlu0 %11478 }
0x118a   :  { %v23376_v55 = vpop.f32.mrb[236].mxu0 }
0x118b   :  { %26506 = vst [vmem:[#allocation91_spill] sm:$0xff] %v23376_v55  ;;  %v19188_v44 = vpop.f32.mrb[237].mxu0 }
0x118c   :  { %v7346_v36 = vpop.f32.mrb[238].mxu0 }
0x118d   :  { %v19189_v6 = vpop.f32.mrb[239].mxu0 }
0x118e   :  { %v11544_v6 = vpop.permute.xlu0 %11543 }
0x1192   :  { %v23378_v24 = vpop.f32.mrb[240].mxu0 }
0x1193   :  { %26507 = vst [vmem:[#allocation92_spill] sm:$0xff] %v23378_v24  ;;  %v19200_v21 = vpop.f32.mrb[241].mxu0 }
0x1194   :  { %v7476_v61 = vpop.f32.mrb[242].mxu0 }
0x1195   :  { %v19201_v23 = vpop.f32.mrb[243].mxu0 }
0x1196   :  { %v11609_v23 = vpop.permute.xlu0 %11608 }
0x119a   :  { %v23380_v62 = vpop.f32.mrb[244].mxu0 }
0x119b   :  { %26508 = vst [vmem:[#allocation93_spill] sm:$0xff] %v23380_v62  ;;  %v19212_v47 = vpop.f32.mrb[245].mxu0 }
0x119c   :  { %v7606_v59 = vpop.f32.mrb[246].mxu0  ;;  %v11674_v47 = vpop.permute.xlu0 %11673 }
0x119d   :  { %v19213_v13 = vpop.f32.mrb[247].mxu0 }
0x11a2   :  { %v23382_v53 = vpop.f32.mrb[248].mxu0 }
0x11a3   :  { %26509 = vst [vmem:[#allocation94_spill] sm:$0xff] %v23382_v53  ;;  %v19224_v55 = vpop.f32.mrb[249].mxu0 }
0x11a4   :  { %v7736_v44 = vpop.f32.mrb[250].mxu0  ;;  %v11739_v55 = vpop.permute.xlu0 %11738 }
0x11a5   :  { %v19225_v36 = vpop.f32.mrb[251].mxu0 }
0x11a8   :  { %11091 = vxpose.xlu1.c.b16.start.end [1/1] (short) (narrow) %v11089_v63, 16 }
0x11aa   :  { %v23384_v9 = vpop.f32.mrb[252].mxu0 }
0x11ab   :  { %26510 = vst [vmem:[#allocation95_spill] sm:$0xff] %v23384_v9  ;;  %v19236_v21 = vpop.f32.mrb[253].mxu0 }
0x11ac   :  { %11156 = vxpose.xlu1.c.b16.start.end [1/1] (short) (narrow) %v11154_v35, 16  ;;  %v7866_v61 = vpop.f32.mrb[254].mxu0  ;;  %v11804_v35 = vpop.permute.xlu0 %11803 }
0x11ad   :  { %v19237_v24 = vpop.f32.mrb[255].mxu0 }
0x11b0   :  { %11221 = vxpose.xlu1.c.b16.start.end [1/1] (short) (narrow) %v11219_v41, 16 }
0x11b2   :  { %v23386_v62 = vpop.f32.mrb[0].mxu0 }
0x11b3   :  { %26511 = vst [vmem:[#allocation96_spill] sm:$0xff] %v23386_v62  ;;  %v19248_v59 = vpop.f32.mrb[1].mxu0  ;;  %v11869_v62 = vpop.permute.xlu0 %11868 }
0x11b4   :  { %11286 = vxpose.xlu1.c.b16.start.end [1/1] (short) (narrow) %v11284_v15, 16  ;;  %v7996_v13 = vpop.f32.mrb[2].mxu0 }
0x11b5   :  { %v19249_v53 = vpop.f32.mrb[3].mxu0 }
0x11b7   :  { %v11934_v15 = vpop.permute.xlu0 %11933 }
0x11b8   :  { %11351 = vxpose.xlu1.c.b16.start.end [1/1] (short) (narrow) %v11349_v4, 16 }
0x11ba   :  { %v23388_v44 = vpop.f32.mrb[4].mxu0 }
0x11bb   :  { %26512 = vst [vmem:[#allocation99_spill] sm:$0xff] %v23388_v44  ;;  %v19260_v63 = vpop.f32.mrb[5].mxu0 }
0x11bc   :  { %11416 = vxpose.xlu1.c.b16.start.end [1/1] (short) (narrow) %v11414_v10, 16  ;;  %v8126_v36 = vpop.f32.mrb[6].mxu0  ;;  %v11999_v10 = vpop.permute.xlu0 %11998 }
0x11bd   :  { %v19261_v21 = vpop.f32.mrb[7].mxu0  ;;  %v23394_v36 = vpop.trf.xlu1 }
0x11c0   :  { %11481 = vxpose.xlu1.c.b16.start.end [1/1] (short) (narrow) %v11479_v16, 16 }
0x11c2   :  { %v23390_v61 = vpop.f32.mrb[8].mxu0 }
0x11c3   :  { %26513 = vst [vmem:[#allocation97_spill] sm:$0xff] %v23390_v61  ;;  %v19272_v24 = vpop.f32.mrb[9].mxu0 }
0x11c4   :  { %11546 = vxpose.xlu1.c.b16.start.end [1/1] (short) (narrow) %v11544_v6, 16  ;;  %v8256_v41 = vpop.f32.mrb[10].mxu0 }
0x11c5   :  { %v19273_v59 = vpop.f32.mrb[11].mxu0  ;;  %v12064_v41 = vpop.permute.xlu0 %12063 }
0x11c8   :  { %11611 = vxpose.xlu1.c.b16.start.end [1/1] (short) (narrow) %v11609_v23, 16 }
0x11cb   :  { %v23392_v53 = vpop.f32.mrb[12].mxu0 }
0x11cc   :  { %26514 = vst [vmem:[#allocation102_spill] sm:$0xff] %v23392_v53  ;;  %11676 = vxpose.xlu1.c.b16.start.end [1/1] (short) (narrow) %v11674_v47, 16  ;;  %v19284_v4 = vpop.f32.mrb[13].mxu0  ;;  %v23400_v47 = vpop.trf.xlu1 }
0x11cd   :  { %v8386_v13 = vpop.f32.mrb[14].mxu0 }
0x11ce   :  { %v19285_v63 = vpop.f32.mrb[15].mxu0  ;;  %v12129_v13 = vpop.permute.xlu0 %12128 }
0x11d0   :  { %11741 = vxpose.xlu1.c.b16.start.end [1/1] (short) (narrow) %v11739_v55, 16 }
0x11d3   :  { %v23396_v16 = vpop.f32.mrb[16].mxu0 }
0x11d4   :  { %11806 = vxpose.xlu1.c.b16.start.end [1/1] (short) (narrow) %v11804_v35, 16  ;;  %v19296_v21 = vpop.f32.mrb[17].mxu0  ;;  %v10054_v6 = vsel %vm360_vm2, %v23396_v16, -inf }
0x11d5   :  { %v8501_v24 = vpop.f32.mrb[18].mxu0  ;;  %10055 = vmax.xlane.f32.xlu0 %v10054_v6  ;;  %v23406_v21 = vpop.trf.xlu1 }
0x11d6   :  { %v19297_v23 = vpop.f32.mrb[19].mxu0  ;;  %v12194_v6 = vpop.permute.xlu0 %12193 }
0x11d8   :  { %11871 = vxpose.xlu1.c.b16.start.end [1/1] (short) (narrow) %v11869_v62, 16 }
0x11d9   :  { %v23410_v23 = vpop.trf.xlu1 }
0x11db   :  { %v23402_v59 = vpop.f32.mrb[20].mxu0 }
0x11dc   :  { %11936 = vxpose.xlu1.c.b16.start.end [1/1] (short) (narrow) %v11934_v15, 16  ;;  %v19308_v55 = vpop.f32.mrb[21].mxu0  ;;  %v10060_v4 = vsel %vm360_vm2, %v23402_v59, -inf }
0x11dd   :  { %v8601_v35 = vpop.f32.mrb[22].mxu0  ;;  %10061 = vmax.xlane.f32.xlu0 %v10060_v4  ;;  %v12259_v55 = vpop.permute.xlu0 %12258 }
0x11de   :  { %v19309_v63 = vpop.f32.mrb[23].mxu0  ;;  %v23412_v61 = vpop.trf.xlu1 }
0x11e0   :  { %12001 = vxpose.xlu1.c.b16.start.end [1/1] (short) (narrow) %v11999_v10, 16 }
0x11e1   :  { %v12324_v10 = vpop.permute.xlu0 %12323 }
0x11e2   :  { %v23416_v9 = vpop.trf.xlu1 }
0x11e3   :  { %v23408_v24 = vpop.f32.mrb[24].mxu0 }
0x11e4   :  { %12066 = vxpose.xlu1.c.b16.start.end [1/1] (short) (narrow) %v12064_v41, 16  ;;  %v19320_v62 = vpop.f32.mrb[25].mxu0 }
0x11e5   :  { %v8701_v53 = vpop.f32.mrb[26].mxu0 }
0x11e6   :  { %v19321_v15 = vpop.f32.mrb[27].mxu0  ;;  %v12389_v53 = vpop.permute.xlu0 %12388 }
0x11e7   :  { %v23420_v8 = vpop.trf.xlu1 }
0x11e8   :  { %12131 = vxpose.xlu1.c.b16.start.end [1/1] (short) (narrow) %v12129_v13, 16  ;;  %26515 = vst [vmem:[#allocation98_spill] sm:$0xff] %v23420_v8 }
0x11ea   :  { %v12454_v19 = vpop.permute.xlu0 %12453 }
0x11eb   :  { %v23414_v44 = vpop.f32.mrb[28].mxu0 }
0x11ec   :  { %12196 = vxpose.xlu1.c.b16.start.end [1/1] (short) (narrow) %v12194_v6, 16  ;;  %v19332_v4 = vpop.f32.mrb[29].mxu0 }
0x11ed   :  { %v8801_v35 = vpop.f32.mrb[30].mxu0  ;;  %v23424_v4 = vpop.trf.xlu1 }
0x11ee   :  { %v19333_v63 = vpop.f32.mrb[31].mxu0 }
0x11f0   :  { %12261 = vxpose.xlu1.c.b16.start.end [1/1] (short) (narrow) %v12259_v55, 16 }
0x11f1   :  { %v23426_v63 = vpop.trf.xlu1 }
0x11f2   :  { %26516 = vst [vmem:[#allocation104_spill] sm:$0xff] %v23426_v63 }
0x11f3   :  { %v23418_v41 = vpop.f32.mrb[32].mxu0 }
0x11f4   :  { %12326 = vxpose.xlu1.c.b16.start.end [1/1] (short) (narrow) %v12324_v10, 16  ;;  %v19344_v62 = vpop.f32.mrb[33].mxu0 }
0x11f5   :  { %v8901_v15 = vpop.f32.mrb[34].mxu0 }
0x11f6   :  { %v19345_v13 = vpop.f32.mrb[35].mxu0 }
0x11f8   :  { %12391 = vxpose.xlu1.c.b16.start.end [1/1] (short) (narrow) %v12389_v53, 16 }
0x11fb   :  { %v23422_v12 = vpop.f32.mrb[36].mxu0 }
0x11fc   :  { %12456 = vxpose.xlu1.c.b16.start.end [1/1] (short) (narrow) %v12454_v19, 16  ;;  %v19356_v6 = vpop.f32.mrb[37].mxu0 }
0x11fd   :  { %v9001_v55 = vpop.f32.mrb[38].mxu0 }
0x11fe   :  { %v19357_v35 = vpop.f32.mrb[39].mxu0 }
0x1203   :  { %v23428_v29 = vpop.f32.mrb[40].mxu0 }
0x1204   :  { %v19368_v10 = vpop.f32.mrb[41].mxu0 }
0x1205   :  { %v9101_v62 = vpop.f32.mrb[42].mxu0 }
0x1206   :  { %v19369_v15 = vpop.f32.mrb[43].mxu0 }
0x1208   :  { %v6277_v13 = vpop.xlane.xlu1 %6276 }
0x1209   :  { %20340 = vrcp.f32 %v6277_v13 }
0x120b   :  { %v23430_v38 = vpop.f32.mrb[44].mxu0 }
0x120c   :  { %v19380_v53 = vpop.f32.mrb[45].mxu0 }
0x120d   :  { %v9201_v37 = vpop.f32.mrb[46].mxu0  ;;  %v26517_v53 = vld [vmem:[#allocation124_spill] sm:$0xff] }
0x120e   :  { %v19381_v46 = vpop.f32.mrb[47].mxu0 }
0x120f   :  { %v8512_v46 = vsel %vm360_vm2, %v22907_v20, 0 }
0x1213   :  { %v20341_v19 = vpop.eup %20340  ;;  %v23432_v6 = vpop.f32.mrb[48].mxu0 }
0x1214   :  { %v19392_v8 = vpop.f32.mrb[49].mxu0  ;;  %v6341_v55 = vmul.f32 %v20341_v19, %v23364_v34  ;;  %v26518_v19 = vld [vmem:[#allocation103_spill] sm:$0xff] }
0x1215   :  { %v9301_v35 = vpop.f32.mrb[50].mxu0 }
0x1216   :  { %v19393_v63 = vpop.f32.mrb[51].mxu0  ;;  %v6373_v33 = vpack.c.bf16 %v6341_v55, %v6341_v55  ;;  %v8612_v55 = vsel %vm360_vm2, %v26518_v19, 0  ;;  %v26519_v35 = vld [vmem:[#allocation100_spill] sm:$0xff]  ;;  %v26521_v19 = vld [vmem:[#allocation107_spill] sm:$0xff] }
0x1218   :  { %v8412_v10 = vsel %vm360_vm2, %v6373_v33, 0 }
0x1219   :  { %19287 = vmatpush3.bf16.xpose.msra.mxu1 %v8412_v10 }
0x121a   :  { %19298 = vmatprep.subr.bf16.mxu1 %v26416_v45 }
0x121b   :  { %v23437_v62 = vpop.f32.mrb[52].mxu0 }
0x121c   :  { %v19404_v15 = vpop.f32.mrb[53].mxu0 }
0x121d   :  { %v9401_v13 = vpop.f32.mrb[54].mxu0 }
0x121e   :  { %v19405_v37 = vpop.f32.mrb[55].mxu0 }
0x121f   :  { %v26520_v37 = vld [vmem:[#allocation105_spill] sm:$0xff] }
0x1220   :  { %19289 = vmatmul.mubr.msk.bf16.vlgmr.msra.gmra.mrb[12].mxu1 %vm360_vm2, %v26517_v53 }
0x1221   :  { %19299 = vmatpush3.bf16.xpose.msra.mxu1 %v8512_v46  ;;  %19300 = vmatprep.mubr.msk.bf16.mxu1 %vm20677_vm1, %v26416_v45  ;;  %v8712_v46 = vsel %vm360_vm2, %v26520_v37, 0 }
0x1222   :  { %19310 = vmatprep.subr.bf16.mxu1 %v26416_v45 }
0x1223   :  { %v23446_v33 = vpop.f32.mrb[56].mxu0 }
0x1224   :  { %v19416_v8 = vpop.f32.mrb[57].mxu0 }
0x1225   :  { %v9501_v34 = vpop.f32.mrb[58].mxu0 }
0x1226   :  { %v19417_v63 = vpop.f32.mrb[59].mxu0 }
0x1228   :  { %19301 = vmatmul.mubr.msk.bf16.vlgmr.msra.gmra.mrb[16].mxu1 %vm360_vm2, %v26519_v35 }
0x1229   :  { %19311 = vmatpush3.bf16.xpose.msra.mxu1 %v8612_v55  ;;  %19312 = vmatprep.mubr.msk.bf16.mxu1 %vm20677_vm1, %v26416_v45  ;;  %v8812_v55 = vsel %vm360_vm2, %v26521_v19, 0 }
0x122a   :  { %19322 = vmatprep.subr.bf16.mxu1 %v26416_v45 }
0x122b   :  { %v23455_v20 = vpop.f32.mrb[60].mxu0 }
0x122c   :  { %v19428_v10 = vpop.f32.mrb[61].mxu0 }
0x122d   :  { %v9601_v15 = vpop.f32.mrb[62].mxu0 }
0x122e   :  { %v19429_v13 = vpop.f32.mrb[63].mxu0 }
0x122f   :  { %v26522_v13 = vld [vmem:[#allocation109_spill] sm:$0xff] }
0x1230   :  { %19313 = vmatmul.mubr.msk.bf16.vlgmr.msra.gmra.mrb[20].mxu1 %vm360_vm2, %v22951_v54  ;;  %v8912_v37 = vsel %vm360_vm2, %v26522_v13, 0 }
0x1231   :  { %19323 = vmatpush3.bf16.xpose.msra.mxu1 %v8712_v46  ;;  %19324 = vmatprep.mubr.msk.bf16.mxu1 %vm20677_vm1, %v26416_v45 }
0x1232   :  { %19334 = vmatprep.subr.bf16.mxu1 %v26416_v45 }
0x1233   :  { %v23464_v53 = vpop.f32.mrb[64].mxu0 }
0x1234   :  { %v19440_v8 = vpop.f32.mrb[65].mxu0 }
0x1235   :  { %v9701_v34 = vpop.f32.mrb[66].mxu0 }
0x1236   :  { %v19441_v63 = vpop.f32.mrb[67].mxu0 }
0x1237   :  { %v26523_v63 = vld [vmem:[#allocation111_spill] sm:$0xff] }
0x1238   :  { %19325 = vmatmul.mubr.msk.bf16.vlgmr.msra.gmra.mrb[24].mxu1 %vm360_vm2, %v23097_v52  ;;  %v9012_v19 = vsel %vm360_vm2, %v26523_v63, 0  ;;  %v26529_v63 = vld [vmem:[#allocation123_spill] sm:$0xff] }
0x1239   :  { %19335 = vmatpush3.bf16.xpose.msra.mxu1 %v8812_v55  ;;  %19336 = vmatprep.mubr.msk.bf16.mxu1 %vm20677_vm1, %v26416_v45 }
0x123a   :  { %19346 = vmatprep.subr.bf16.mxu1 %v26416_v45 }
0x123b   :  { %v23473_v54 = vpop.f32.mrb[68].mxu0 }
0x123c   :  { %v19452_v35 = vpop.f32.mrb[69].mxu0 }
0x123d   :  { %v9801_v10 = vpop.f32.mrb[70].mxu0 }
0x123e   :  { %v19453_v15 = vpop.f32.mrb[71].mxu0 }
0x123f   :  { %v26524_v15 = vld [vmem:[#allocation113_spill] sm:$0xff] }
0x1240   :  { %19337 = vmatmul.mubr.msk.bf16.vlgmr.msra.gmra.mrb[28].mxu1 %vm360_vm2, %v23113_v56  ;;  %v9112_v13 = vsel %vm360_vm2, %v26524_v15, 0 }
0x1241   :  { %19347 = vmatpush3.bf16.xpose.msra.mxu1 %v8912_v37  ;;  %19348 = vmatprep.mubr.msk.bf16.mxu1 %vm20677_vm1, %v26416_v45 }
0x1242   :  { %19358 = vmatprep.subr.bf16.mxu1 %v26416_v45 }
0x1243   :  { %v23482_v52 = vpop.f32.mrb[72].mxu0 }
0x1244   :  { %v19464_v46 = vpop.f32.mrb[73].mxu0 }
0x1245   :  { %v9901_v8 = vpop.f32.mrb[74].mxu0  ;;  %v26526_v46 = vld [vmem:[#allocation117_spill] sm:$0xff] }
0x1246   :  { %v19465_v34 = vpop.f32.mrb[75].mxu0  ;;  %v26527_v8 = vld [vmem:[#allocation119_spill] sm:$0xff] }
0x1247   :  { %v26528_v34 = vld [vmem:[#allocation121_spill] sm:$0xff] }
0x1248   :  { %19349 = vmatmul.mubr.msk.bf16.vlgmr.msra.gmra.mrb[32].mxu1 %vm360_vm2, %v23130_v40  ;;  %v26525_v40 = vld [vmem:[#allocation115_spill] sm:$0xff] }
0x1249   :  { %19359 = vmatpush3.bf16.xpose.msra.mxu1 %v9012_v19  ;;  %19360 = vmatprep.mubr.msk.bf16.mxu1 %vm20677_vm1, %v26416_v45  ;;  %v9212_v37 = vsel %vm360_vm2, %v26525_v40, 0  ;;  %v26530_v19 = vld [vmem:[#allocation126_spill] sm:$0xff] }
0x124a   :  { %19370 = vmatprep.subr.bf16.mxu1 %v26416_v45 }
0x124b   :  { %v23491_v56 = vpop.f32.mrb[76].mxu0 }
0x124c   :  { %v19476_v55 = vpop.f32.mrb[77].mxu0 }
0x124d   :  { %v10001_v35 = vpop.f32.mrb[78].mxu0 }
0x124e   :  { %v19477_v10 = vpop.f32.mrb[79].mxu0 }
0x1250   :  { %19361 = vmatmul.mubr.msk.bf16.vlgmr.msra.gmra.mrb[36].mxu1 %vm360_vm2, %v23147_v28  ;;  %v9312_v28 = vsel %vm360_vm2, %v26526_v46, 0  ;;  %v10072_v46 = vsel %vm360_vm2, %v23414_v44, -inf }
0x1251   :  { %19371 = vmatpush3.bf16.xpose.msra.mxu1 %v9112_v13  ;;  %19372 = vmatprep.mubr.msk.bf16.mxu1 %vm20677_vm1, %v26416_v45  ;;  %v23575_v13 = vpop.permute.xlu0 %12518 }
0x1252   :  { %19382 = vmatprep.subr.bf16.mxu1 %v26416_v45  ;;  %26532 = vst [vmem:[#allocation106_spill] sm:$0xff] %v23575_v13 }
0x1258   :  { %19373 = vmatmul.mubr.msk.bf16.vlgmr.msra.gmra.mrb[40].mxu1 %vm360_vm2, %v23164_v30  ;;  %v9412_v30 = vsel %vm360_vm2, %v26527_v8, 0 }
0x1259   :  { %19383 = vmatpush3.bf16.xpose.msra.mxu1 %v9212_v37  ;;  %19384 = vmatprep.mubr.msk.bf16.mxu1 %vm20677_vm1, %v26416_v45 }
0x125a   :  { %19394 = vmatprep.subr.bf16.mxu1 %v26416_v45 }
0x1260   :  { %19385 = vmatmul.mubr.msk.bf16.vlgmr.msra.gmra.mrb[44].mxu1 %vm360_vm2, %v23181_v57  ;;  %v9512_v57 = vsel %vm360_vm2, %v26528_v34, 0  ;;  %v23583_v34 = vpop.trf.xlu1 }
0x1261   :  { %19395 = vmatpush3.bf16.xpose.msra.mxu1 %v9312_v28  ;;  %19396 = vmatprep.mubr.msk.bf16.mxu1 %vm20677_vm1, %v26416_v45 }
0x1262   :  { %19406 = vmatprep.subr.bf16.mxu1 %v26416_v45 }
0x1268   :  { %19397 = vmatmul.mubr.msk.bf16.vlgmr.msra.gmra.mrb[48].mxu1 %vm360_vm2, %v23198_v51  ;;  %v9612_v51 = vsel %vm360_vm2, %v26529_v63, 0  ;;  %v23587_v63 = vpop.permute.xlu0 %12568 }
0x1269   :  { %19407 = vmatpush3.bf16.xpose.msra.mxu1 %v9412_v30  ;;  %19408 = vmatprep.mubr.msk.bf16.mxu1 %vm20677_vm1, %v26416_v45  ;;  %26533 = vst [vmem:[#allocation108_spill] sm:$0xff] %v23587_v63 }
0x126a   :  { %19418 = vmatprep.subr.bf16.mxu1 %v26416_v45 }
0x1270   :  { %19409 = vmatmul.mubr.msk.bf16.vlgmr.msra.gmra.mrb[52].mxu1 %vm360_vm2, %v23215_v17  ;;  %v9712_v17 = vsel %vm360_vm2, %v26530_v19, 0 }
0x1271   :  { %19419 = vmatpush3.bf16.xpose.msra.mxu1 %v9512_v57  ;;  %19420 = vmatprep.mubr.msk.bf16.mxu1 %vm20677_vm1, %v26416_v45  ;;  %v10078_v57 = vsel %vm360_vm2, %v23418_v41, -inf }
0x1272   :  { %19430 = vmatprep.subr.bf16.mxu1 %v26416_v45 }
0x1278   :  { %19421 = vmatmul.mubr.msk.bf16.vlgmr.msra.gmra.mrb[56].mxu1 %vm360_vm2, %v23230_v43  ;;  %v9812_v43 = vsel %vm360_vm2, %v22638_v49, 0  ;;  %v10012_v49 = vsel %vm360_vm2, %v22707_v60, 0 }
0x1279   :  { %19431 = vmatpush3.bf16.xpose.msra.mxu1 %v9612_v51  ;;  %19432 = vmatprep.mubr.msk.bf16.mxu1 %vm20677_vm1, %v26416_v45 }
0x127a   :  { %19442 = vmatprep.subr.bf16.mxu1 %v26416_v45 }
0x1280   :  { %19433 = vmatmul.mubr.msk.bf16.vlgmr.msra.gmra.mrb[60].mxu1 %vm360_vm2, %v23245_v25  ;;  %v9912_v25 = vsel %vm360_vm2, %v22665_v22, 0 }
0x1281   :  { %19443 = vmatpush3.bf16.xpose.msra.mxu1 %v9712_v17  ;;  %19444 = vmatprep.mubr.msk.bf16.mxu1 %vm20677_vm1, %v26416_v45  ;;  %v10084_v17 = vsel %vm360_vm2, %v23422_v12, -inf }
0x1282   :  { %19454 = vmatprep.subr.bf16.mxu1 %v26416_v45 }
0x1288   :  { %19445 = vmatmul.mubr.msk.bf16.vlgmr.msra.gmra.mrb[64].mxu1 %vm360_vm2, %v23262_v27 }
0x1289   :  { %19455 = vmatpush3.bf16.xpose.msra.mxu1 %v9812_v43  ;;  %19456 = vmatprep.mubr.msk.bf16.mxu1 %vm20677_vm1, %v26416_v45 }
0x128a   :  { %19466 = vmatprep.subr.bf16.mxu1 %v26416_v45 }
0x1290   :  { %19457 = vmatmul.mubr.msk.bf16.vlgmr.msra.gmra.mrb[68].mxu1 %vm360_vm2, %v23279_v32 }
0x1291   :  { %19467 = vmatpush3.bf16.xpose.msra.mxu1 %v9912_v25  ;;  %19468 = vmatprep.mubr.msk.bf16.mxu1 %vm20677_vm1, %v26416_v45  ;;  %v23595_v25 = vpop.trf.xlu1 }
0x1292   :  { %19478 = vmatprep.subr.bf16.mxu1 %v26416_v45  ;;  %26534 = vst [vmem:[#allocation110_spill] sm:$0xff] %v23595_v25 }
0x1298   :  { %19469 = vmatmul.mubr.msk.bf16.vlgmr.msra.gmra.mrb[72].mxu1 %vm360_vm2, %v23296_v14 }
0x1299   :  { %19479 = vmatpush3.bf16.xpose.msra.mxu1 %v10012_v49  ;;  %19480 = vmatprep.mubr.msk.bf16.mxu1 %vm20677_vm1, %v26416_v45 }
0x129a   :  { %19490 = vmatprep.subr.bf16.mxu1 %v26416_v45 }
0x12a0   :  { %19481 = vmatmul.mubr.msk.bf16.vlgmr.msra.gmra.mrb[76].mxu1 %vm360_vm2, %v23311_v11  ;;  %v10066_v11 = vsel %vm360_vm2, %v23408_v24, -inf }
0x12a1   :  { %19492 = vmatprep.mubr.msk.bf16.mxu1 %vm20677_vm1, %v26416_v45 }
0x12f3   :  { %v23567_v22 = vpop.f32.mrb[12].mxu1 }
0x12f4   :  { %26531 = vst [vmem:[#allocation101_spill] sm:$0xff] %v23567_v22  ;;  %v19290_v27 = vpop.f32.mrb[13].mxu1  ;;  %v10120_v22 = vsel %vm360_vm2, %v23455_v20, -inf }
0x12f5   :  { %v8451_v32 = vpop.f32.mrb[14].mxu1 }
0x12f6   :  { %v19291_v60 = vpop.f32.mrb[15].mxu1  ;;  %v23597_v32 = vpop.permute.xlu0 %12618 }
0x12f7   :  { %26535 = vst [vmem:[#allocation112_spill] sm:$0xff] %v23597_v32  ;;  %v10090_v60 = vsel %vm360_vm2, %v23428_v29, -inf }
0x12fb   :  { %v23569_v55 = vpop.f32.mrb[16].mxu1 }
0x12fc   :  { %v19302_v14 = vpop.f32.mrb[17].mxu1  ;;  %v10057_v35 = vsel %vm360_vm2, %v23569_v55, -inf }
0x12fd   :  { %10058 = vmax.xlane.f32.xlu1 %v10057_v35  ;;  %v8551_v10 = vpop.f32.mrb[18].mxu1  ;;  %v23601_v14 = vpop.trf.xlu1 }
0x12fe   :  { %v19303_v15 = vpop.f32.mrb[19].mxu1 }
0x12ff   :  { %v10096_v15 = vsel %vm360_vm2, %v23430_v38, -inf }
0x1301   :  { %10067 = vmax.xlane.f32.xlu1 %v10066_v11 }
0x1303   :  { %v23577_v40 = vpop.f32.mrb[20].mxu1 }
0x1304   :  { %v19314_v37 = vpop.f32.mrb[21].mxu1  ;;  %v10063_v28 = vsel %vm360_vm2, %v23577_v40, -inf }
0x1305   :  { %10073 = vmax.xlane.f32.xlu1 %v10072_v46  ;;  %10064 = vmax.xlane.f32.xlu0 %v10063_v28  ;;  %v8651_v8 = vpop.f32.mrb[22].mxu1  ;;  %v23609_v37 = vpop.permute.xlu0 %12668 }
0x1306   :  { %v19315_v30 = vpop.f32.mrb[23].mxu1  ;;  %26536 = vst [vmem:[#allocation114_spill] sm:$0xff] %v23609_v37  ;;  %v10102_v8 = vsel %vm360_vm2, %v23432_v6, -inf }
0x1307   :  { %v23613_v30 = vpop.trf.xlu1 }
0x1308   :  { %26537 = vst [vmem:[#allocation116_spill] sm:$0xff] %v23613_v30 }
0x1309   :  { %10079 = vmax.xlane.f32.xlu1 %v10078_v57  ;;  %v23615_v57 = vpop.permute.xlu0 %12718 }
0x130a   :  { %26538 = vst [vmem:[#allocation118_spill] sm:$0xff] %v23615_v57 }
0x130b   :  { %v23589_v51 = vpop.f32.mrb[24].mxu1 }
0x130c   :  { %v19326_v19 = vpop.f32.mrb[25].mxu1  ;;  %v10069_v43 = vsel %vm360_vm2, %v23589_v51, -inf }
0x130d   :  { %10085 = vmax.xlane.f32.xlu1 %v10084_v17  ;;  %10070 = vmax.xlane.f32.xlu0 %v10069_v43  ;;  %v8751_v49 = vpop.f32.mrb[26].mxu1  ;;  %v10108_v43 = vsel %vm360_vm2, %v23437_v62, -inf }
0x130e   :  { %v19327_v27 = vpop.f32.mrb[27].mxu1 }
0x1311   :  { %10091 = vmax.xlane.f32.xlu1 %v10090_v60 }
0x1313   :  { %v23603_v35 = vpop.f32.mrb[28].mxu1 }
0x1314   :  { %v19338_v10 = vpop.f32.mrb[29].mxu1  ;;  %v10075_v11 = vsel %vm360_vm2, %v23603_v35, -inf }
0x1315   :  { %10097 = vmax.xlane.f32.xlu1 %v10096_v15  ;;  %10076 = vmax.xlane.f32.xlu0 %v10075_v11  ;;  %v8851_v46 = vpop.f32.mrb[30].mxu1  ;;  %v23623_v10 = vpop.trf.xlu1  ;;  %v10114_v11 = vsel %vm360_vm2, %v23446_v33, -inf }
0x1316   :  { %v19339_v28 = vpop.f32.mrb[31].mxu1  ;;  %26539 = vst [vmem:[#allocation120_spill] sm:$0xff] %v23623_v10  ;;  %v10056_v15 = vpop.xlane.xlu0 %10055 }
0x1317   :  { %v10150_v46 = vsub.f32 %v23396_v16, %v10056_v15  ;;  %v10126_v16 = vsel %vm360_vm2, %v23464_v53, -inf }
0x1319   :  { %10103 = vmax.xlane.f32.xlu1 %v10102_v8  ;;  %v10182_v57 = vmul.f32 1.442695, %v10150_v46 }
0x131a   :  { %v10062_v28 = vpop.xlane.xlu0 %10061 }
0x131b   :  { %v23617_v19 = vpop.f32.mrb[32].mxu1  ;;  %20342 = vpow2.f32 %v10182_v57 }
0x131c   :  { %v19350_v17 = vpop.f32.mrb[33].mxu1  ;;  %v10081_v49 = vsel %vm360_vm2, %v23617_v19, -inf }
0x131d   :  { %10109 = vmax.xlane.f32.xlu1 %v10108_v43  ;;  %10082 = vmax.xlane.f32.xlu0 %v10081_v49  ;;  %v8951_v27 = vpop.f32.mrb[34].mxu1  ;;  %v23634_v49 = vpop.trf.xlu1 }
0x131e   :  { %v19351_v60 = vpop.f32.mrb[35].mxu1  ;;  %26540 = vst [vmem:[#allocation122_spill] sm:$0xff] %v23634_v49 }
0x1321   :  { %10115 = vmax.xlane.f32.xlu1 %v10114_v11  ;;  %v10152_v11 = vsub.f32 %v23402_v59, %v10062_v28  ;;  %v23639_v15 = vpop.trf.xlu1  ;;  %v10138_v28 = vsel %vm360_vm2, %v23482_v52, -inf }
0x1322   :  { %26541 = vst [vmem:[#allocation125_spill] sm:$0xff] %v23639_v15 }
0x1323   :  { %v23628_v8 = vpop.f32.mrb[36].mxu1 }
0x1324   :  { %v19362_v17 = vpop.f32.mrb[37].mxu1  ;;  %v10087_v43 = vsel %vm360_vm2, %v23628_v8, -inf }
0x1325   :  { %10121 = vmax.xlane.f32.xlu1 %v10120_v22  ;;  %10088 = vmax.xlane.f32.xlu0 %v10087_v43  ;;  %v9051_v27 = vpop.f32.mrb[38].mxu1  ;;  %v10186_v17 = vmul.f32 1.442695, %v10152_v11  ;;  %v10132_v22 = vsel %vm360_vm2, %v23473_v54, -inf }
0x1326   :  { %v19363_v60 = vpop.f32.mrb[39].mxu1  ;;  %v23649_v27 = vpop.trf.xlu1 }
0x1327   :  { %20344 = vpow2.f32 %v10186_v17  ;;  %26542 = vst [vmem:[#allocation61_spill] sm:$0xff] %v23649_v27  ;;  %v10144_v60 = vsel %vm360_vm2, %v23491_v56, -inf }
0x1329   :  { %10127 = vmax.xlane.f32.xlu1 %v10126_v16  ;;  %v23657_v16 = vpop.eup %20342 }
0x132b   :  { %v23641_v37 = vpop.f32.mrb[40].mxu1 }
0x132c   :  { %v19374_v32 = vpop.f32.mrb[41].mxu1  ;;  %v10093_v43 = vsel %vm360_vm2, %v23641_v37, -inf }
0x132d   :  { %10133 = vmax.xlane.f32.xlu1 %v10132_v22  ;;  %10094 = vmax.xlane.f32.xlu0 %v10093_v43  ;;  %v9151_v59 = vpop.f32.mrb[42].mxu1  ;;  %v23659_v43 = vpop.trf.xlu1 }
0x132e   :  { %v19375_v46 = vpop.f32.mrb[43].mxu1  ;;  %26543 = vst [vmem:[#allocation124_spill] sm:$0xff] %v23659_v43  ;;  %v10246_v59 = vsel %vm360_vm2, %v23657_v16, 0.0 }
0x1331   :  { %10139 = vmax.xlane.f32.xlu1 %v10138_v28  ;;  %v23663_v46 = vpop.eup %20344 }
0x1332   :  { %v10252_v63 = vsel %vm360_vm2, %v23663_v46, 0.0 }
0x1333   :  { %v23651_v57 = vpop.f32.mrb[44].mxu1 }
0x1334   :  { %v19386_v32 = vpop.f32.mrb[45].mxu1  ;;  %v10099_v11 = vsel %vm360_vm2, %v23651_v57, -inf }
0x1335   :  { %10145 = vmax.xlane.f32.xlu1 %v10144_v60  ;;  %10100 = vmax.xlane.f32.xlu0 %v10099_v11  ;;  %v9251_v17 = vpop.f32.mrb[46].mxu1  ;;  %v23671_v11 = vpop.trf.xlu1 }
0x1336   :  { %v19387_v22 = vpop.f32.mrb[47].mxu1  ;;  %26544 = vst [vmem:[#allocation103_spill] sm:$0xff] %v23671_v11 }
0x1339   :  { %10247 = vadd.xlane.f32.xlu1 %v10246_v59  ;;  %v23673_v13 = vpop.trf.xlu1 }
0x133a   :  { %26545 = vst [vmem:[#allocation100_spill] sm:$0xff] %v23673_v13 }
0x133b   :  { %v23665_v28 = vpop.f32.mrb[48].mxu1 }
0x133c   :  { %v19398_v32 = vpop.f32.mrb[49].mxu1  ;;  %v10105_v60 = vsel %vm360_vm2, %v23665_v28, -inf }
0x133d   :  { %10253 = vadd.xlane.f32.xlu1 %v10252_v63  ;;  %10106 = vmax.xlane.f32.xlu0 %v10105_v60  ;;  %v9351_v17 = vpop.f32.mrb[50].mxu1  ;;  %v23679_v25 = vpop.trf.xlu1 }
0x133e   :  { %v19399_v22 = vpop.f32.mrb[51].mxu1  ;;  %26546 = vst [vmem:[#allocation105_spill] sm:$0xff] %v23679_v25 }
0x1341   :  { %v23685_v22 = vpop.trf.xlu1 }
0x1342   :  { %26547 = vst [vmem:[#allocation107_spill] sm:$0xff] %v23685_v22 }
0x1343   :  { %v23675_v27 = vpop.f32.mrb[52].mxu1 }
0x1344   :  { %v19410_v59 = vpop.f32.mrb[53].mxu1  ;;  %v10111_v32 = vsel %vm360_vm2, %v23675_v27, -inf }
0x1345   :  { %10112 = vmax.xlane.f32.xlu0 %v10111_v32  ;;  %v9451_v49 = vpop.f32.mrb[54].mxu1 }
0x1346   :  { %v19411_v30 = vpop.f32.mrb[55].mxu1 }
0x1347   :  { %v23691_v30 = vpop.trf.xlu1 }
0x1348   :  { %26548 = vst [vmem:[#allocation109_spill] sm:$0xff] %v23691_v30 }
0x134b   :  { %v23681_v42 = vpop.f32.mrb[56].mxu1 }
0x134c   :  { %v19422_v11 = vpop.f32.mrb[57].mxu1  ;;  %v10117_v63 = vsel %vm360_vm2, %v23681_v42, -inf }
0x134d   :  { %10118 = vmax.xlane.f32.xlu0 %v10117_v63  ;;  %v9551_v60 = vpop.f32.mrb[58].mxu1  ;;  %v23693_v11 = vpop.trf.xlu1 }
0x134e   :  { %v19423_v17 = vpop.f32.mrb[59].mxu1  ;;  %26549 = vst [vmem:[#allocation111_spill] sm:$0xff] %v23693_v11 }
0x1353   :  { %v23687_v59 = vpop.f32.mrb[60].mxu1 }
0x1354   :  { %v19434_v13 = vpop.f32.mrb[61].mxu1  ;;  %v10123_v49 = vsel %vm360_vm2, %v23687_v59, -inf }
0x1355   :  { %10124 = vmax.xlane.f32.xlu0 %v10123_v49  ;;  %v9651_v32 = vpop.f32.mrb[62].mxu1  ;;  %v23699_v13 = vpop.trf.xlu1 }
0x1356   :  { %v19435_v25 = vpop.f32.mrb[63].mxu1  ;;  %26550 = vst [vmem:[#allocation113_spill] sm:$0xff] %v23699_v13 }
0x1359   :  { %v23705_v30 = vpop.trf.xlu1 }
0x135a   :  { %26551 = vst [vmem:[#allocation115_spill] sm:$0xff] %v23705_v30 }
0x135b   :  { %v23695_v43 = vpop.f32.mrb[64].mxu1 }
0x135c   :  { %v19446_v63 = vpop.f32.mrb[65].mxu1  ;;  %v10129_v60 = vsel %vm360_vm2, %v23695_v43, -inf }
0x135d   :  { %10130 = vmax.xlane.f32.xlu0 %v10129_v60  ;;  %v9751_v17 = vpop.f32.mrb[66].mxu1 }
0x135e   :  { %v19447_v22 = vpop.f32.mrb[67].mxu1 }
0x135f   :  { %v23711_v22 = vpop.trf.xlu1 }
0x1360   :  { %26552 = vst [vmem:[#allocation117_spill] sm:$0xff] %v23711_v22 }
0x1363   :  { %v23701_v48 = vpop.f32.mrb[68].mxu1 }
0x1364   :  { %v19458_v31 = vpop.f32.mrb[69].mxu1  ;;  %v10135_v49 = vsel %vm360_vm2, %v23701_v48, -inf }
0x1365   :  { %10136 = vmax.xlane.f32.xlu0 %v10135_v49  ;;  %v9851_v25 = vpop.f32.mrb[70].mxu1  ;;  %v23713_v31 = vpop.trf.xlu1 }
0x1366   :  { %v19459_v32 = vpop.f32.mrb[71].mxu1  ;;  %26553 = vst [vmem:[#allocation119_spill] sm:$0xff] %v23713_v31 }
0x136b   :  { %v23707_v63 = vpop.f32.mrb[72].mxu1 }
0x136c   :  { %v19470_v11 = vpop.f32.mrb[73].mxu1  ;;  %v10141_v60 = vsel %vm360_vm2, %v23707_v63, -inf }
0x136d   :  { %10142 = vmax.xlane.f32.xlu0 %v10141_v60  ;;  %v9951_v17 = vpop.f32.mrb[74].mxu1  ;;  %v23719_v11 = vpop.trf.xlu1 }
0x136e   :  { %v19471_v13 = vpop.f32.mrb[75].mxu1  ;;  %26554 = vst [vmem:[#allocation121_spill] sm:$0xff] %v23719_v11 }
0x1371   :  { %v23721_v18 = vpop.trf.xlu1 }
0x1372   :  { %26555 = vst [vmem:[#allocation123_spill] sm:$0xff] %v23721_v18 }
0x1373   :  { %v23715_v15 = vpop.f32.mrb[76].mxu1 }
0x1374   :  { %v19482_v49 = vpop.f32.mrb[77].mxu1  ;;  %v10147_v25 = vsel %vm360_vm2, %v23715_v15, -inf }
0x1375   :  { %10148 = vmax.xlane.f32.xlu0 %v10147_v25  ;;  %v10051_v32 = vpop.f32.mrb[78].mxu1  ;;  %v23723_v26 = vpop.trf.xlu1 }
0x1376   :  { %v19483_v30 = vpop.f32.mrb[79].mxu1  ;;  %26556 = vst [vmem:[#allocation126_spill] sm:$0xff] %v23723_v26 }
0x138a   :  { %v10059_v60 = vpop.xlane.xlu1 %10058 }
0x138b   :  { %v10151_v13 = vsub.f32 %v23569_v55, %v10059_v60 }
0x138d   :  { %v10184_v17 = vmul.f32 1.442695, %v10151_v13 }
0x138e   :  { %v10068_v22 = vpop.xlane.xlu1 %10067 }
0x138f   :  { %20346 = vpow2.f32 %v10184_v17  ;;  %v10154_v49 = vsub.f32 %v23408_v24, %v10068_v22 }
0x1391   :  { %v10190_v31 = vmul.f32 1.442695, %v10154_v49 }
0x1392   :  { %v10065_v10 = vpop.xlane.xlu0 %10064  ;;  %v10074_v0 = vpop.xlane.xlu1 %10073 }
0x1393   :  { %20348 = vpow2.f32 %v10190_v31  ;;  %v10153_v30 = vsub.f32 %v23577_v40, %v10065_v10  ;;  %v10156_v25 = vsub.f32 %v23414_v44, %v10074_v0 }
0x1395   :  { %v10188_v32 = vmul.f32 1.442695, %v10153_v30  ;;  %v10194_v11 = vmul.f32 1.442695, %v10156_v25 }
0x1396   :  { %v10080_v18 = vpop.xlane.xlu1 %10079 }
0x1397   :  { %20350 = vpow2.f32 %v10188_v32  ;;  %v10158_v26 = vsub.f32 %v23418_v41, %v10080_v18 }
0x1398   :  { %20352 = vpow2.f32 %v10194_v11 }
0x1399   :  { %v23730_v55 = vpop.eup %20346  ;;  %v10198_v60 = vmul.f32 1.442695, %v10158_v26 }
0x139a   :  { %v10071_v13 = vpop.xlane.xlu0 %10070  ;;  %v10086_v24 = vpop.xlane.xlu1 %10085  ;;  %v10249_v22 = vsel %vm360_vm2, %v23730_v55, 0.0 }
0x139b   :  { %20354 = vpow2.f32 %v10198_v60  ;;  %v10155_v40 = vsub.f32 %v23589_v51, %v10071_v13  ;;  %v10160_v0 = vsub.f32 %v23422_v12, %v10086_v24  ;;  %10250 = vadd.xlane.f32.xlu0 %v10249_v22 }
0x139d   :  { %v23736_v44 = vpop.eup %20348  ;;  %v10192_v10 = vmul.f32 1.442695, %v10155_v40  ;;  %v10202_v31 = vmul.f32 1.442695, %v10160_v0 }
0x139e   :  { %v10092_v18 = vpop.xlane.xlu1 %10091  ;;  %v10258_v41 = vsel %vm360_vm2, %v23736_v44, 0.0 }
0x139f   :  { %20356 = vpow2.f32 %v10192_v10  ;;  %v10162_v26 = vsub.f32 %v23428_v29, %v10092_v18  ;;  %10259 = vadd.xlane.f32.xlu1 %v10258_v41 }
0x13a0   :  { %20358 = vpow2.f32 %v10202_v31 }
0x13a1   :  { %v23741_v11 = vpop.eup %20350  ;;  %v10206_v17 = vmul.f32 1.442695, %v10162_v26 }
0x13a2   :  { %v23743_v51 = vpop.eup %20352  ;;  %v10098_v12 = vpop.xlane.xlu1 %10097  ;;  %v10255_v49 = vsel %vm360_vm2, %v23741_v11, 0.0 }
0x13a3   :  { %20360 = vpow2.f32 %v10206_v17  ;;  %v10164_v30 = vsub.f32 %v23430_v38, %v10098_v12  ;;  %10256 = vadd.xlane.f32.xlu0 %v10255_v49  ;;  %v10264_v25 = vsel %vm360_vm2, %v23743_v51, 0.0 }
0x13a4   :  { %10265 = vadd.xlane.f32.xlu1 %v10264_v25 }
0x13a5   :  { %v23750_v29 = vpop.eup %20354  ;;  %v10210_v32 = vmul.f32 1.442695, %v10164_v30 }
0x13a6   :  { %v10104_v60 = vpop.xlane.xlu1 %10103  ;;  %v10270_v13 = vsel %vm360_vm2, %v23750_v29, 0.0 }
0x13a7   :  { %v10166_v24 = vsub.f32 %v23432_v6, %v10104_v60  ;;  %20362 = vpow2.f32 %v10210_v32 }
0x13a8   :  { %10271 = vadd.xlane.f32.xlu1 %v10270_v13 }
0x13a9   :  { %v23755_v22 = vpop.eup %20356  ;;  %v10214_v40 = vmul.f32 1.442695, %v10166_v24 }
0x13aa   :  { %v23757_v38 = vpop.eup %20358  ;;  %v10110_v0 = vpop.xlane.xlu1 %10109  ;;  %v10261_v10 = vsel %vm360_vm2, %v23755_v22, 0.0 }
0x13ab   :  { %20364 = vpow2.f32 %v10214_v40  ;;  %v10168_v31 = vsub.f32 %v23437_v62, %v10110_v0  ;;  %10262 = vadd.xlane.f32.xlu0 %v10261_v10  ;;  %v10276_v18 = vsel %vm360_vm2, %v23757_v38, 0.0 }
0x13ac   :  { %10277 = vadd.xlane.f32.xlu1 %v10276_v18 }
0x13ad   :  { %v23764_v6 = vpop.eup %20360  ;;  %v10218_v41 = vmul.f32 1.442695, %v10168_v31 }
0x13ae   :  { %v10116_v26 = vpop.xlane.xlu1 %10115  ;;  %v10282_v17 = vsel %vm360_vm2, %v23764_v6, 0.0 }
0x13af   :  { %v10170_v12 = vsub.f32 %v23446_v33, %v10116_v26  ;;  %20366 = vpow2.f32 %v10218_v41 }
0x13b0   :  { %10283 = vadd.xlane.f32.xlu1 %v10282_v17 }
0x13b1   :  { %v10222_v49 = vmul.f32 1.442695, %v10170_v12  ;;  %v23769_v30 = vpop.eup %20362 }
0x13b2   :  { %v10122_v62 = vpop.xlane.xlu1 %10121  ;;  %v10288_v32 = vsel %vm360_vm2, %v23769_v30, 0.0 }
0x13b3   :  { %20368 = vpow2.f32 %v10222_v49  ;;  %v10172_v25 = vsub.f32 %v23455_v20, %v10122_v62 }
0x13b4   :  { %10289 = vadd.xlane.f32.xlu1 %v10288_v32 }
0x13b5   :  { %v23774_v60 = vpop.eup %20364  ;;  %v10226_v13 = vmul.f32 1.442695, %v10172_v25 }
0x13b6   :  { %v10128_v24 = vpop.xlane.xlu1 %10127  ;;  %v10294_v33 = vsel %vm360_vm2, %v23774_v60, 0.0 }
0x13b7   :  { %v10174_v40 = vsub.f32 %v23464_v53, %v10128_v24  ;;  %20370 = vpow2.f32 %v10226_v13 }
0x13b8   :  { %10295 = vadd.xlane.f32.xlu1 %v10294_v33 }
0x13b9   :  { %v10230_v0 = vmul.f32 1.442695, %v10174_v40  ;;  %v23779_v10 = vpop.eup %20366  ;;  %v10077_v40 = vpop.xlane.xlu0 %10076 }
0x13ba   :  { %v10134_v31 = vpop.xlane.xlu1 %10133  ;;  %v10300_v18 = vsel %vm360_vm2, %v23779_v10, 0.0 }
0x13bb   :  { %20372 = vpow2.f32 %v10230_v0  ;;  %v10176_v20 = vsub.f32 %v23473_v54, %v10134_v31  ;;  %v10157_v31 = vsub.f32 %v23603_v35, %v10077_v40 }
0x13bc   :  { %10301 = vadd.xlane.f32.xlu1 %v10300_v18 }
0x13bd   :  { %v23784_v41 = vpop.eup %20368  ;;  %v10234_v26 = vmul.f32 1.442695, %v10176_v20  ;;  %v10083_v20 = vpop.xlane.xlu0 %10082 }
0x13be   :  { %v10140_v17 = vpop.xlane.xlu1 %10139  ;;  %v10306_v53 = vsel %vm360_vm2, %v23784_v41, 0.0 }
0x13bf   :  { %v10178_v12 = vsub.f32 %v23482_v52, %v10140_v17  ;;  %20374 = vpow2.f32 %v10234_v26  ;;  %v10196_v17 = vmul.f32 1.442695, %v10157_v31 }
0x13c0   :  { %10307 = vadd.xlane.f32.xlu1 %v10306_v53  ;;  %v10159_v53 = vsub.f32 %v23617_v19, %v10083_v20 }
0x13c1   :  { %v10238_v49 = vmul.f32 1.442695, %v10178_v12  ;;  %12768 = vrot.lane.b32.xlu0 %v26261_v5, %s20685_s19  ;;  %v23791_v54 = vpop.eup %20370 }
0x13c2   :  { %v10146_v62 = vpop.xlane.xlu1 %10145  ;;  %v10312_v32 = vsel %vm360_vm2, %v23791_v54, 0.0  ;;  %v10200_v35 = vmul.f32 1.442695, %v10159_v53 }
0x13c3   :  { %20376 = vpow2.f32 %v10238_v49  ;;  %v10180_v25 = vsub.f32 %v23491_v56, %v10146_v62  ;;  %v10089_v49 = vpop.xlane.xlu0 %10088 }
0x13c4   :  { %10313 = vadd.xlane.f32.xlu1 %v10312_v32 }
0x13c5   :  { %v23796_v13 = vpop.eup %20372  ;;  %v10242_v24 = vmul.f32 1.442695, %v10180_v25  ;;  %v10161_v25 = vsub.f32 %v23628_v8, %v10089_v49 }
0x13c6   :  { %v10248_v52 = vpop.xlane.xlu1 %10247  ;;  %v10318_v33 = vsel %vm360_vm2, %v23796_v13, 0.0 }
0x13c7   :  { %20378 = vpow2.f32 %v10242_v24  ;;  %v10095_v24 = vpop.xlane.xlu0 %10094  ;;  %v10204_v40 = vmul.f32 1.442695, %v10161_v25 }
0x13c8   :  { %10319 = vadd.xlane.f32.xlu1 %v10318_v33  ;;  %20380 = vrcp.f32 %v10248_v52  ;;  %v10163_v31 = vsub.f32 %v23641_v37, %v10095_v24 }
0x13c9   :  { %v23800_v0 = vpop.eup %20374 }
0x13ca   :  { %v10254_v56 = vpop.xlane.xlu1 %10253  ;;  %v10324_v18 = vsel %vm360_vm2, %v23800_v0, 0.0  ;;  %v10208_v8 = vmul.f32 1.442695, %v10163_v31 }
0x13cb   :  { %20382 = vrcp.f32 %v10254_v56  ;;  %v10101_v20 = vpop.xlane.xlu0 %10100 }
0x13cc   :  { %10325 = vadd.xlane.f32.xlu1 %v10324_v18  ;;  %20384 = vpow2.f32 %v10196_v17  ;;  %v10165_v53 = vsub.f32 %v23651_v57, %v10101_v20 }
0x13cd   :  { %v23805_v26 = vpop.eup %20376  ;;  %20386 = vpow2.f32 %v10200_v35 }
0x13ce   :  { %v10330_v12 = vsel %vm360_vm2, %v23805_v26, 0.0  ;;  %20388 = vpow2.f32 %v10204_v40  ;;  %v10212_v35 = vmul.f32 1.442695, %v10165_v53 }
0x13cf   :  { %20390 = vpow2.f32 %v10208_v8 }
0x13d0   :  { %10331 = vadd.xlane.f32.xlu1 %v10330_v12  ;;  %v10107_v12 = vpop.xlane.xlu0 %10106  ;;  %20392 = vpow2.f32 %v10212_v35 }
0x13d1   :  { %v23810_v62 = vpop.eup %20378  ;;  %v10167_v37 = vsub.f32 %v23665_v28, %v10107_v12 }
0x13d2   :  { %v20381_v32 = vpop.eup %20380  ;;  %v10336_v52 = vsel %vm360_vm2, %v23810_v62, 0.0 }
0x13d3   :  { %v10374_v33 = vmul.f32 %v20381_v32, %v23657_v16  ;;  %v10216_v24 = vmul.f32 1.442695, %v10167_v37 }
0x13d4   :  { %10337 = vadd.xlane.f32.xlu1 %v10336_v52  ;;  %v10113_v25 = vpop.xlane.xlu0 %10112 }
0x13d5   :  { %v20383_v19 = vpop.eup %20382  ;;  %v10406_v56 = vpack.c.bf16 %v10374_v33, %v10374_v33  ;;  %v10169_v28 = vsub.f32 %v23675_v27, %v10113_v25  ;;  %20394 = vpow2.f32 %v10216_v24 }
0x13d6   :  { %v10376_v17 = vmul.f32 %v20383_v19, %v23663_v46  ;;  %v23821_v16 = vpop.eup %20384 }
0x13d7   :  { %v10461_v18 = vsel %vm360_vm2, %v10406_v56, 0  ;;  %v10267_v32 = vsel %vm360_vm2, %v23821_v16, 0.0  ;;  %v23826_v46 = vpop.eup %20386 }
0x13d8   :  { %19485 = vmatpush3.bf16.xpose.msra.mxu0 %v10461_v18  ;;  %v10408_v49 = vpack.c.bf16 %v10376_v17, %v10376_v17  ;;  %v10273_v33 = vsel %vm360_vm2, %v23826_v46, 0.0  ;;  %v23837_v19 = vpop.eup %20388 }
0x13d9   :  { %19496 = vmatprep.subr.bf16.mxu0 %v26416_v45  ;;  %v10279_v56 = vsel %vm360_vm2, %v23837_v19, 0.0  ;;  %v23842_v20 = vpop.eup %20390 }
0x13da   :  { %v10591_v57 = vsel %vm360_vm2, %v10408_v49, 0  ;;  %v10119_v52 = vpop.xlane.xlu0 %10118  ;;  %v23851_v8 = vpop.eup %20392 }
0x13db   :  { %v10171_v40 = vsub.f32 %v23681_v42, %v10119_v52  ;;  %v10285_v42 = vsel %vm360_vm2, %v23842_v20, 0.0 }
0x13dd   :  { %v10224_v27 = vmul.f32 1.442695, %v10171_v40 }
0x13df   :  { %19487 = vmatmul.mubr.msk.bf16.vlgmr.msra.gmra.mrb[80].mxu0 %vm360_vm2, %v22901_v39  ;;  %v10220_v39 = vmul.f32 1.442695, %v10169_v28  ;;  %v23856_v49 = vpop.eup %20394 }
0x13e0   :  { %10268 = vadd.xlane.f32.xlu0 %v10267_v32  ;;  %19497 = vmatpush3.bf16.xpose.msra.mxu0 %v10591_v57  ;;  %v10297_v25 = vsel %vm360_vm2, %v23856_v49, 0.0 }
0x13e1   :  { %19498 = vmatprep.mubr.msk.bf16.mxu0 %vm20677_vm1, %v26416_v45  ;;  %19508 = vmatprep.subr.bf16.mxu0 %v26416_v45  ;;  %20396 = vpow2.f32 %v10220_v39 }
0x13e2   :  { %v10125_v31 = vpop.xlane.xlu0 %10124  ;;  %20398 = vpow2.f32 %v10224_v27 }
0x13e3   :  { %v10173_v18 = vsub.f32 %v23687_v59, %v10125_v31 }
0x13e4   :  { %10274 = vadd.xlane.f32.xlu0 %v10273_v33 }
0x13e5   :  { %v10228_v53 = vmul.f32 1.442695, %v10173_v18 }
0x13e7   :  { %19499 = vmatmul.mubr.msk.bf16.vlgmr.msra.gmra.mrb[84].mxu0 %vm360_vm2, %v23400_v47  ;;  %v10291_v47 = vsel %vm360_vm2, %v23851_v8, 0.0  ;;  %20400 = vpow2.f32 %v10228_v53 }
0x13e8   :  { %10280 = vadd.xlane.f32.xlu0 %v10279_v56  ;;  %19510 = vmatprep.mubr.msk.bf16.mxu0 %vm20677_vm1, %v26416_v45 }
0x13ea   :  { %v10131_v17 = vpop.xlane.xlu0 %10130 }
0x13eb   :  { %v10175_v12 = vsub.f32 %v23695_v43, %v10131_v17  ;;  %v23861_v32 = vpop.eup %20396 }
0x13ec   :  { %10286 = vadd.xlane.f32.xlu0 %v10285_v42  ;;  %v10303_v43 = vsel %vm360_vm2, %v23861_v32, 0.0  ;;  %v23865_v24 = vpop.eup %20398 }
0x13ed   :  { %v10232_v35 = vmul.f32 1.442695, %v10175_v12 }
0x13ef   :  { %20402 = vpow2.f32 %v10232_v35 }
0x13f0   :  { %10292 = vadd.xlane.f32.xlu0 %v10291_v47 }
0x13f1   :  { %v23870_v33 = vpop.eup %20400 }
0x13f2   :  { %v10137_v59 = vpop.xlane.xlu0 %10136  ;;  %v10315_v40 = vsel %vm360_vm2, %v23870_v33, 0.0 }
0x13f3   :  { %v10177_v37 = vsub.f32 %v23701_v48, %v10137_v59  ;;  %v10309_v48 = vsel %vm360_vm2, %v23865_v24, 0.0 }
0x13f4   :  { %10298 = vadd.xlane.f32.xlu0 %v10297_v25 }
0x13f5   :  { %v10236_v57 = vmul.f32 1.442695, %v10177_v37 }
0x13f7   :  { %20404 = vpow2.f32 %v10236_v57 }
0x13f8   :  { %10304 = vadd.xlane.f32.xlu0 %v10303_v43 }
0x13f9   :  { %v23874_v31 = vpop.eup %20402 }
0x13fa   :  { %v10143_v28 = vpop.xlane.xlu0 %10142  ;;  %v10321_v56 = vsel %vm360_vm2, %v23874_v31, 0.0 }
0x13fb   :  { %v10179_v52 = vsub.f32 %v23707_v63, %v10143_v28 }
0x13fc   :  { %10310 = vadd.xlane.f32.xlu0 %v10309_v48 }
0x13fd   :  { %v10240_v39 = vmul.f32 1.442695, %v10179_v52 }
0x13ff   :  { %20406 = vpow2.f32 %v10240_v39 }
0x1400   :  { %10316 = vadd.xlane.f32.xlu0 %v10315_v40 }
0x1401   :  { %v23878_v27 = vpop.eup %20404 }
0x1402   :  { %v10327_v63 = vsel %vm360_vm2, %v23878_v27, 0.0  ;;  %v10149_v42 = vpop.xlane.xlu0 %10148 }
0x1403   :  { %v10181_v12 = vsub.f32 %v23715_v15, %v10149_v42 }
0x1404   :  { %10322 = vadd.xlane.f32.xlu0 %v10321_v56 }
0x1405   :  { %v10244_v35 = vmul.f32 1.442695, %v10181_v12 }
0x1408   :  { %10328 = vadd.xlane.f32.xlu0 %v10327_v63 }
0x1409   :  { %v23882_v18 = vpop.eup %20406 }
0x140a   :  { %v10333_v17 = vsel %vm360_vm2, %v23882_v18, 0.0 }
0x140c   :  { %10334 = vadd.xlane.f32.xlu0 %v10333_v17 }
0x1422   :  { %12818 = vrot.lane.b32.xlu0 %v26297_v58, %s20685_s19 }
0x1428   :  { %v10251_v53 = vpop.xlane.xlu0 %10250 }
0x1429   :  { %20408 = vrcp.f32 %v10251_v53 }
0x142c   :  { %v10260_v47 = vpop.xlane.xlu1 %10259 }
0x142d   :  { %20410 = vrcp.f32 %v10260_v47 }
0x1430   :  { %v10257_v59 = vpop.xlane.xlu0 %10256 }
0x1431   :  { %20412 = vrcp.f32 %v10257_v59  ;;  %v10266_v37 = vpop.xlane.xlu1 %10265 }
0x1432   :  { %20414 = vrcp.f32 %v10266_v37 }
0x1433   :  { %v20409_v25 = vpop.eup %20408  ;;  %20416 = vpow2.f32 %v10244_v35 }
0x1434   :  { %v10375_v57 = vmul.f32 %v20409_v25, %v23730_v55 }
0x1435   :  { %v10272_v43 = vpop.xlane.xlu1 %10271 }
0x1436   :  { %v10407_v28 = vpack.c.bf16 %v10375_v57, %v10375_v57  ;;  %20418 = vrcp.f32 %v10272_v43 }
0x1437   :  { %v20411_v52 = vpop.eup %20410 }
0x1438   :  { %v10263_v48 = vpop.xlane.xlu0 %10262  ;;  %v10526_v39 = vsel %vm360_vm2, %v10407_v28, 0  ;;  %v10378_v15 = vmul.f32 %v20411_v52, %v23736_v44 }
0x1439   :  { %20420 = vrcp.f32 %v10263_v48  ;;  %19491 = vmatpush3.bf16.xpose.msra.mxu1 %v10526_v39  ;;  %v10278_v17 = vpop.xlane.xlu1 %10277 }
0x143a   :  { %v10410_v40 = vpack.c.bf16 %v10378_v15, %v10378_v15  ;;  %19502 = vmatprep.subr.bf16.mxu1 %v26416_v45  ;;  %20422 = vrcp.f32 %v10278_v17 }
0x143b   :  { %v20413_v56 = vpop.eup %20412 }
0x143c   :  { %v20415_v63 = vpop.eup %20414  ;;  %v10721_v42 = vsel %vm360_vm2, %v10410_v40, 0  ;;  %v10377_v55 = vmul.f32 %v20413_v56, %v23741_v11 }
0x143d   :  { %v23895_v53 = vpop.eup %20416  ;;  %19509 = vmatpush3.bf16.xpose.msra.mxu0 %v10721_v42  ;;  %v10380_v12 = vmul.f32 %v20415_v63, %v23743_v51  ;;  %v10284_v51 = vpop.xlane.xlu1 %10283 }
0x143e   :  { %v10409_v47 = vpack.c.bf16 %v10377_v55, %v10377_v55  ;;  %19520 = vmatprep.subr.bf16.mxu0 %v26416_v45  ;;  %v10339_v44 = vsel %vm360_vm2, %v23895_v53, 0.0  ;;  %20424 = vrcp.f32 %v10284_v51 }
0x143f   :  { %v10412_v59 = vpack.c.bf16 %v10380_v12, %v10380_v12 }
0x1440   :  { %19493 = vmatmul.mubr.msk.bf16.vlgmr.msra.gmra.mrb[80].mxu1 %vm360_vm2, %v23394_v36  ;;  %v10656_v35 = vsel %vm360_vm2, %v10409_v47, 0  ;;  %v20419_v37 = vpop.eup %20418  ;;  %v23963_v47 = vpop.permute.xlu0 %12768 }
0x1441   :  { %10340 = vadd.xlane.f32.xlu0 %v10339_v44  ;;  %19503 = vmatpush3.bf16.xpose.msra.mxu1 %v10656_v35  ;;  %v10851_v36 = vsel %vm360_vm2, %v10412_v59, 0  ;;  %v10382_v57 = vmul.f32 %v20419_v37, %v23750_v29  ;;  %v10290_v29 = vpop.xlane.xlu1 %10289  ;;  %v26558_v35 = vld [vmem:[#allocation120_spill] sm:$0xff] }
0x1442   :  { %19504 = vmatprep.mubr.msk.bf16.mxu1 %vm20677_vm1, %v26416_v45  ;;  %19514 = vmatprep.subr.bf16.mxu1 %v26416_v45  ;;  %20426 = vrcp.f32 %v10290_v29  ;;  %v26562_v29 = vld [vmem:[#allocation21_spill] sm:$0xff] }
0x1443   :  { %v20421_v11 = vpop.eup %20420 }
0x1444   :  { %19511 = vmatmul.mubr.msk.bf16.vlgmr.msra.gmra.mrb[88].mxu0 %vm360_vm2, %v23410_v23  ;;  %v10379_v25 = vmul.f32 %v20421_v11, %v23755_v22  ;;  %v10414_v23 = vpack.c.bf16 %v10382_v57, %v10382_v57  ;;  %v20423_v52 = vpop.eup %20422  ;;  %v26559_v11 = vld [vmem:[#allocation22_spill] sm:$0xff]  ;;  %v26560_v57 = vld [vmem:[#allocation31_spill] sm:$0xff] }
0x1445   :  { %19521 = vmatpush3.bf16.xpose.msra.mxu0 %v10851_v36  ;;  %19522 = vmatprep.mubr.msk.bf16.mxu0 %vm20677_vm1, %v26416_v45  ;;  %v10384_v48 = vmul.f32 %v20423_v52, %v23757_v38 }
0x1446   :  { %v10411_v43 = vpack.c.bf16 %v10379_v25, %v10379_v25  ;;  %19532 = vmatprep.subr.bf16.mxu0 %v26416_v45  ;;  %v10981_v22 = vsel %vm360_vm2, %v10414_v23, 0 }
0x1448   :  { %19505 = vmatmul.mubr.msk.bf16.vlgmr.msra.gmra.mrb[84].mxu1 %vm360_vm2, %v23406_v21  ;;  %v10786_v28 = vsel %vm360_vm2, %v10411_v43, 0  ;;  %v10416_v21 = vpack.c.bf16 %v10384_v48, %v10384_v48  ;;  %v20425_v39 = vpop.eup %20424  ;;  %v26561_v43 = vld [vmem:[#allocation125_spill] sm:$0xff] }
0x1449   :  { %19515 = vmatpush3.bf16.xpose.msra.mxu1 %v10786_v28  ;;  %19516 = vmatprep.mubr.msk.bf16.mxu1 %vm20677_vm1, %v26416_v45  ;;  %v10386_v15 = vmul.f32 %v20425_v39, %v23764_v6 }
0x144a   :  { %19526 = vmatprep.subr.bf16.mxu1 %v26416_v45  ;;  %v11111_v38 = vsel %vm360_vm2, %v10416_v21, 0 }
0x144c   :  { %19523 = vmatmul.mubr.msk.bf16.vlgmr.msra.gmra.mrb[92].mxu0 %vm360_vm2, %v23416_v9  ;;  %v10296_v9 = vpop.xlane.xlu1 %10295  ;;  %v20427_v40 = vpop.eup %20426 }
0x144d   :  { %19533 = vmatpush3.bf16.xpose.msra.mxu0 %v10981_v22  ;;  %19534 = vmatprep.mubr.msk.bf16.mxu0 %vm20677_vm1, %v26416_v45  ;;  %20428 = vrcp.f32 %v10296_v9  ;;  %v10388_v56 = vmul.f32 %v20427_v40, %v23769_v30  ;;  %v26563_v9 = vld [vmem:[#allocation36_spill] sm:$0xff] }
0x144e   :  { %19544 = vmatprep.subr.bf16.mxu0 %v26416_v45 }
0x144f   :  { %v10420_v63 = vpack.c.bf16 %v10388_v56, %v10388_v56 }
0x1450   :  { %19517 = vmatmul.mubr.msk.bf16.vlgmr.msra.gmra.mrb[88].mxu1 %vm360_vm2, %v23412_v61  ;;  %v10418_v61 = vpack.c.bf16 %v10386_v15, %v10386_v15 }
0x1451   :  { %19528 = vmatprep.mubr.msk.bf16.mxu1 %vm20677_vm1, %v26416_v45  ;;  %v11371_v30 = vsel %vm360_vm2, %v10420_v63, 0  ;;  %v26565_v63 = vld [vmem:[#allocation25_spill] sm:$0xff] }
0x1452   :  { %v11241_v6 = vsel %vm360_vm2, %v10418_v61, 0  ;;  %v26564_v61 = vld [vmem:[#allocation124_spill] sm:$0xff] }
0x1454   :  { %19535 = vmatmul.mubr.msk.bf16.vlgmr.msra.gmra.mrb[96].mxu0 %vm360_vm2, %v23424_v4  ;;  %v10302_v4 = vpop.xlane.xlu1 %10301 }
0x1455   :  { %19545 = vmatpush3.bf16.xpose.msra.mxu0 %v11111_v38  ;;  %19546 = vmatprep.mubr.msk.bf16.mxu0 %vm20677_vm1, %v26416_v45  ;;  %20430 = vrcp.f32 %v10302_v4 }
0x1456   :  { %19556 = vmatprep.subr.bf16.mxu0 %v26416_v45 }
0x1457   :  { %12868 = vrot.lane.b32.xlu0 %v26263_v2, %s20685_s19  ;;  %v20429_v17 = vpop.eup %20428 }
0x1458   :  { %v10390_v42 = vmul.f32 %v20429_v17, %v23774_v60 }
0x145a   :  { %v10422_v55 = vpack.c.bf16 %v10390_v42, %v10390_v42  ;;  %v26566_v42 = vld [vmem:[#allocation35_spill] sm:$0xff] }
0x145b   :  { %12918 = vrot.lane.b32.xlu0 %v26298_v1, %s20685_s19 }
0x145c   :  { %19547 = vmatmul.mubr.msk.bf16.vlgmr.msra.gmra.mrb[100].mxu0 %vm360_vm2, %v23583_v34  ;;  %v10308_v34 = vpop.xlane.xlu1 %10307  ;;  %v11501_v60 = vsel %vm360_vm2, %v10422_v55, 0 }
0x145d   :  { %19557 = vmatpush3.bf16.xpose.msra.mxu0 %v11241_v6  ;;  %19558 = vmatprep.mubr.msk.bf16.mxu0 %vm20677_vm1, %v26416_v45  ;;  %20432 = vrcp.f32 %v10308_v34 }
0x145e   :  { %19568 = vmatprep.subr.bf16.mxu0 %v26416_v45 }
0x145f   :  { %12968 = vrot.lane.b32.xlu0 %v26265_v50, %s20685_s19  ;;  %v20431_v12 = vpop.eup %20430 }
0x1460   :  { %v10314_v44 = vpop.xlane.xlu1 %10313  ;;  %v10392_v59 = vmul.f32 %v20431_v12, %v23779_v10  ;;  %v26567_v12 = vld [vmem:[#allocation100_spill] sm:$0xff] }
0x1462   :  { %v10424_v51 = vpack.c.bf16 %v10392_v59, %v10392_v59 }
0x1463   :  { %13018 = vrot.lane.b32.xlu0 %v26431_v7, %s20685_s19 }
0x1464   :  { %19559 = vmatmul.mubr.msk.bf16.vlgmr.msra.gmra.mrb[104].mxu0 %vm360_vm2, %v23601_v14  ;;  %v26557_v14 = vld [vmem:[#allocation34_spill] sm:$0xff]  ;;  %v10320_v10 = vpop.xlane.xlu1 %10319  ;;  %v11631_v28 = vsel %vm360_vm2, %v10424_v51, 0  ;;  %v26569_v51 = vld [vmem:[#allocation24_spill] sm:$0xff] }
0x1465   :  { %19569 = vmatpush3.bf16.xpose.msra.mxu0 %v11371_v30  ;;  %19570 = vmatprep.mubr.msk.bf16.mxu0 %vm20677_vm1, %v26416_v45 }
0x1466   :  { %19580 = vmatprep.subr.bf16.mxu0 %v26416_v45 }
0x1467   :  { %13068 = vrot.lane.b32.xlu0 %v26432_v3, %s20685_s19  ;;  %v20433_v36 = vpop.eup %20432 }
0x1468   :  { %v10394_v23 = vmul.f32 %v20433_v36, %v23784_v41  ;;  %v10326_v15 = vpop.xlane.xlu1 %10325 }
0x146a   :  { %v10426_v48 = vpack.c.bf16 %v10394_v23, %v10394_v23 }
0x146b   :  { %13118 = vrot.lane.b32.xlu0 %v26557_v14, %s20685_s19 }
0x146c   :  { %19571 = vmatmul.mubr.msk.bf16.vlgmr.msra.gmra.mrb[108].mxu0 %vm360_vm2, %v26558_v35  ;;  %v11761_v40 = vsel %vm360_vm2, %v10426_v48, 0  ;;  %v10332_v55 = vpop.xlane.xlu1 %10331  ;;  %v26572_v48 = vld [vmem:[#allocation104_spill] sm:$0xff] }
0x146d   :  { %v10269_v37 = vpop.xlane.xlu0 %10268  ;;  %19581 = vmatpush3.bf16.xpose.msra.mxu0 %v11501_v60  ;;  %19582 = vmatprep.mubr.msk.bf16.mxu0 %vm20677_vm1, %v26416_v45  ;;  %v26568_v60 = vld [vmem:[#allocation98_spill] sm:$0xff] }
0x146e   :  { %20434 = vrcp.f32 %v10269_v37  ;;  %19592 = vmatprep.subr.bf16.mxu0 %v26416_v45 }
0x146f   :  { %20436 = vrcp.f32 %v10314_v44  ;;  %13168 = vrot.lane.b32.xlu0 %v26559_v11, %s20685_s19 }
0x1471   :  { %v10275_v25 = vpop.xlane.xlu0 %10274 }
0x1472   :  { %20438 = vrcp.f32 %v10275_v25 }
0x1473   :  { %13218 = vrot.lane.b32.xlu0 %v26560_v57, %s20685_s19  ;;  %20440 = vrcp.f32 %v10320_v10  ;;  %v26570_v10 = vld [vmem:[#allocation38_spill] sm:$0xff] }
0x1474   :  { %19583 = vmatmul.mubr.msk.bf16.vlgmr.msra.gmra.mrb[112].mxu0 %vm360_vm2, %v26561_v43  ;;  %v10338_v43 = vpop.xlane.xlu1 %10337 }
0x1475   :  { %v10281_v52 = vpop.xlane.xlu0 %10280  ;;  %19593 = vmatpush3.bf16.xpose.msra.mxu0 %v11631_v28  ;;  %19594 = vmatprep.mubr.msk.bf16.mxu0 %vm20677_vm1, %v26416_v45  ;;  %v26571_v28 = vld [vmem:[#allocation107_spill] sm:$0xff] }
0x1476   :  { %19604 = vmatprep.subr.bf16.mxu0 %v26416_v45  ;;  %20442 = vrcp.f32 %v10281_v52 }
0x1477   :  { %13268 = vrot.lane.b32.xlu0 %v26562_v29, %s20685_s19  ;;  %20444 = vrcp.f32 %v10326_v15 }
0x1478   :  { %v20435_v22 = vpop.eup %20434 }
0x1479   :  { %v20437_v21 = vpop.eup %20436  ;;  %v10381_v39 = vmul.f32 %v20435_v22, %v23821_v16  ;;  %v10287_v6 = vpop.xlane.xlu0 %10286 }
0x147a   :  { %v10396_v4 = vmul.f32 %v20437_v21, %v23791_v54  ;;  %20446 = vrcp.f32 %v10287_v6 }
0x147b   :  { %13318 = vrot.lane.b32.xlu0 %v26563_v9, %s20685_s19  ;;  %v10413_v41 = vpack.c.bf16 %v10381_v39, %v10381_v39  ;;  %20448 = vrcp.f32 %v10332_v55 }
0x147c   :  { %v20439_v38 = vpop.eup %20438  ;;  %19595 = vmatmul.mubr.msk.bf16.vlgmr.msra.gmra.mrb[116].mxu0 %vm360_vm2, %v26564_v61  ;;  %v10428_v54 = vpack.c.bf16 %v10396_v4, %v10396_v4  ;;  %v26574_v61 = vld [vmem:[#allocation37_spill] sm:$0xff] }
0x147d   :  { %19605 = vmatpush3.bf16.xpose.msra.mxu0 %v11761_v40  ;;  %v10916_v56 = vsel %vm360_vm2, %v10413_v41, 0  ;;  %19606 = vmatprep.mubr.msk.bf16.mxu0 %vm20677_vm1, %v26416_v45  ;;  %v10383_v16 = vmul.f32 %v20439_v38, %v23826_v46  ;;  %v20441_v17 = vpop.eup %20440  ;;  %v10293_v35 = vpop.xlane.xlu0 %10292  ;;  %v26573_v41 = vld [vmem:[#allocation28_spill] sm:$0xff]  ;;  %v26575_v40 = vld [vmem:[#allocation111_spill] sm:$0xff] }
0x147e   :  { %19527 = vmatpush3.bf16.xpose.msra.mxu1 %v10916_v56  ;;  %19616 = vmatprep.subr.bf16.mxu0 %v26416_v45  ;;  %v11891_v46 = vsel %vm360_vm2, %v10428_v54, 0  ;;  %v10398_v44 = vmul.f32 %v20441_v17, %v23796_v13  ;;  %20450 = vrcp.f32 %v10293_v35 }
0x147f   :  { %13368 = vrot.lane.b32.xlu0 %v26565_v63, %s20685_s19  ;;  %19538 = vmatprep.subr.bf16.mxu1 %v26416_v45  ;;  %v10415_v34 = vpack.c.bf16 %v10383_v16, %v10383_v16  ;;  %20452 = vrcp.f32 %v10338_v43  ;;  %v26576_v16 = vld [vmem:[#allocation110_spill] sm:$0xff]  ;;  %v26583_v43 = vld [vmem:[#allocation119_spill] sm:$0xff] }
0x1480   :  { %v20443_v30 = vpop.eup %20442  ;;  %v10430_v13 = vpack.c.bf16 %v10398_v44, %v10398_v44 }
0x1481   :  { %v11046_v59 = vsel %vm360_vm2, %v10415_v34, 0  ;;  %v10385_v37 = vmul.f32 %v20443_v30, %v23837_v19  ;;  %v20445_v36 = vpop.eup %20444  ;;  %v10299_v22 = vpop.xlane.xlu0 %10298  ;;  %v26577_v34 = vld [vmem:[#allocation26_spill] sm:$0xff] }
0x1482   :  { %v12021_v23 = vsel %vm360_vm2, %v10430_v13, 0  ;;  %v10400_v52 = vmul.f32 %v20445_v36, %v23800_v0  ;;  %20454 = vrcp.f32 %v10299_v22  ;;  %v26581_v36 = vld [vmem:[#allocation30_spill] sm:$0xff] }
0x1483   :  { %13418 = vrot.lane.b32.xlu0 %v26566_v42, %s20685_s19  ;;  %v10417_v25 = vpack.c.bf16 %v10385_v37, %v10385_v37 }
0x1484   :  { %19607 = vmatmul.mubr.msk.bf16.vlgmr.msra.gmra.mrb[120].mxu0 %vm360_vm2, %v26567_v12  ;;  %v20447_v19 = vpop.eup %20446  ;;  %v10432_v0 = vpack.c.bf16 %v10400_v52, %v10400_v52  ;;  %v26584_v52 = vld [vmem:[#allocation122_spill] sm:$0xff] }
0x1485   :  { %19529 = vmatmul.mubr.msk.bf16.vlgmr.msra.gmra.mrb[92].mxu1 %vm360_vm2, %v26568_v60  ;;  %19617 = vmatpush3.bf16.xpose.msra.mxu0 %v11891_v46  ;;  %v11176_v21 = vsel %vm360_vm2, %v10417_v25, 0  ;;  %v10387_v39 = vmul.f32 %v20447_v19, %v23842_v20  ;;  %v20449_v38 = vpop.eup %20448  ;;  %v10305_v56 = vpop.xlane.xlu0 %10304  ;;  %v26579_v46 = vld [vmem:[#allocation115_spill] sm:$0xff] }
0x1486   :  { %19539 = vmatpush3.bf16.xpose.msra.mxu1 %v11046_v59  ;;  %19618 = vmatprep.mubr.msk.bf16.mxu0 %vm20677_vm1, %v26416_v45  ;;  %v12151_v4 = vsel %vm360_vm2, %v10432_v0, 0  ;;  %v10402_v6 = vmul.f32 %v20449_v38, %v23805_v26  ;;  %20456 = vrcp.f32 %v10305_v56  ;;  %v26580_v59 = vld [vmem:[#allocation116_spill] sm:$0xff]  ;;  %v26586_v38 = vld [vmem:[#allocation42_spill] sm:$0xff] }
0x1487   :  { %13468 = vrot.lane.b32.xlu0 %v26569_v51, %s20685_s19  ;;  %19540 = vmatprep.mubr.msk.bf16.mxu1 %vm20677_vm1, %v26416_v45  ;;  %v10419_v15 = vpack.c.bf16 %v10387_v39, %v10387_v39 }
0x1488   :  { %19628 = vmatprep.subr.bf16.mxu0 %v26416_v45  ;;  %19550 = vmatprep.subr.bf16.mxu1 %v26416_v45  ;;  %v20451_v20 = vpop.eup %20450  ;;  %v10434_v26 = vpack.c.bf16 %v10402_v6, %v10402_v6  ;;  %v26589_v6 = vld [vmem:[#allocation33_spill] sm:$0xff] }
0x1489   :  { %v11306_v54 = vsel %vm360_vm2, %v10419_v15, 0  ;;  %v10389_v17 = vmul.f32 %v20451_v20, %v23851_v8  ;;  %v20453_v30 = vpop.eup %20452  ;;  %v26578_v8 = vld [vmem:[#allocation40_spill] sm:$0xff]  ;;  %v10311_v60 = vpop.xlane.xlu0 %10310  ;;  %v26588_v20 = vld [vmem:[#allocation61_spill] sm:$0xff] }
0x148a   :  { %v12281_v44 = vsel %vm360_vm2, %v10434_v26, 0  ;;  %v10404_v35 = vmul.f32 %v20453_v30, %v23810_v62  ;;  %20458 = vrcp.f32 %v10311_v60 }
0x148b   :  { %13518 = vrot.lane.b32.xlu0 %v26570_v10, %s20685_s19  ;;  %v10421_v55 = vpack.c.bf16 %v10389_v17, %v10389_v17  ;;  %v26591_v17 = vld [vmem:[#allocation41_spill] sm:$0xff] }
0x148c   :  { %19619 = vmatmul.mubr.msk.bf16.vlgmr.msra.gmra.mrb[124].mxu0 %vm360_vm2, %v26571_v28  ;;  %v20455_v12 = vpop.eup %20454  ;;  %v10436_v62 = vpack.c.bf16 %v10404_v35, %v10404_v35  ;;  %v26593_v35 = vld [vmem:[#allocation32_spill] sm:$0xff] }
0x148d   :  { %19541 = vmatmul.mubr.msk.bf16.vlgmr.msra.gmra.mrb[96].mxu1 %vm360_vm2, %v26572_v48  ;;  %19629 = vmatpush3.bf16.xpose.msra.mxu0 %v12021_v23  ;;  %v11436_v37 = vsel %vm360_vm2, %v10421_v55, 0  ;;  %v10391_v13 = vmul.f32 %v20455_v12, %v23856_v49  ;;  %v26582_v49 = vld [vmem:[#allocation39_spill] sm:$0xff]  ;;  %v10317_v23 = vpop.xlane.xlu0 %10316 }
0x148e   :  { %19551 = vmatpush3.bf16.xpose.msra.mxu1 %v11176_v21  ;;  %19630 = vmatprep.mubr.msk.bf16.mxu0 %vm20677_vm1, %v26416_v45  ;;  %v12411_v28 = vsel %vm360_vm2, %v10436_v62, 0  ;;  %v26585_v21 = vld [vmem:[#allocation29_spill] sm:$0xff]  ;;  %20460 = vrcp.f32 %v10317_v23  ;;  %v26592_v55 = vld [vmem:[#allocation103_spill] sm:$0xff] }
0x148f   :  { %13568 = vrot.lane.b32.xlu0 %v26573_v41, %s20685_s19  ;;  %19552 = vmatprep.mubr.msk.bf16.mxu1 %vm20677_vm1, %v26416_v45  ;;  %v10423_v25 = vpack.c.bf16 %v10391_v13, %v10391_v13  ;;  %v26595_v13 = vld [vmem:[#allocation12_spill] sm:$0xff] }
0x1490   :  { %19640 = vmatprep.subr.bf16.mxu0 %v26416_v45  ;;  %19562 = vmatprep.subr.bf16.mxu1 %v26416_v45  ;;  %v20457_v19 = vpop.eup %20456 }
0x1491   :  { %v11566_v22 = vsel %vm360_vm2, %v10423_v25, 0  ;;  %v10393_v48 = vmul.f32 %v20457_v19, %v23861_v32  ;;  %v26587_v32 = vld [vmem:[#allocation123_spill] sm:$0xff]  ;;  %v10323_v15 = vpop.xlane.xlu0 %10322  ;;  %v26596_v19 = vld [vmem:[#allocation105_spill] sm:$0xff] }
0x1492   :  { %20462 = vrcp.f32 %v10323_v15 }
0x1493   :  { %13618 = vrot.lane.b32.xlu0 %v26574_v61, %s20685_s19  ;;  %v10425_v39 = vpack.c.bf16 %v10393_v48, %v10393_v48 }
0x1494   :  { %19631 = vmatmul.mubr.msk.bf16.vlgmr.msra.gmra.mrb[128].mxu0 %vm360_vm2, %v26575_v40  ;;  %v20459_v0 = vpop.eup %20458 }
0x1495   :  { %19553 = vmatmul.mubr.msk.bf16.vlgmr.msra.gmra.mrb[100].mxu1 %vm360_vm2, %v26576_v16  ;;  %19641 = vmatpush3.bf16.xpose.msra.mxu0 %v12151_v4  ;;  %v11696_v40 = vsel %vm360_vm2, %v10425_v39, 0  ;;  %v10395_v4 = vmul.f32 %v20459_v0, %v23865_v24  ;;  %v10329_v26 = vpop.xlane.xlu0 %10328  ;;  %v26598_v39 = vld [vmem:[#allocation13_spill] sm:$0xff] }
0x1496   :  { %19563 = vmatpush3.bf16.xpose.msra.mxu1 %v11306_v54  ;;  %19642 = vmatprep.mubr.msk.bf16.mxu0 %vm20677_vm1, %v26416_v45  ;;  %20464 = vrcp.f32 %v10329_v26  ;;  %v26599_v0 = vld [vmem:[#allocation109_spill] sm:$0xff] }
0x1497   :  { %13668 = vrot.lane.b32.xlu0 %v26577_v34, %s20685_s19  ;;  %19564 = vmatprep.mubr.msk.bf16.mxu1 %vm20677_vm1, %v26416_v45  ;;  %v10427_v56 = vpack.c.bf16 %v10395_v4, %v10395_v4  ;;  %v26600_v4 = vld [vmem:[#allocation113_spill] sm:$0xff] }
0x1498   :  { %19652 = vmatprep.subr.bf16.mxu0 %v26416_v45  ;;  %19574 = vmatprep.subr.bf16.mxu1 %v26416_v45  ;;  %v20461_v16 = vpop.eup %20460 }
0x1499   :  { %v11826_v12 = vsel %vm360_vm2, %v10427_v56, 0  ;;  %v10335_v62 = vpop.xlane.xlu0 %10334 }
0x149a   :  { %20466 = vrcp.f32 %v10335_v62 }
0x149b   :  { %13718 = vrot.lane.b32.xlu0 %v26578_v8, %s20685_s19 }
0x149c   :  { %19643 = vmatmul.mubr.msk.bf16.vlgmr.msra.gmra.mrb[132].mxu0 %vm360_vm2, %v26579_v46  ;;  %v10397_v46 = vmul.f32 %v20461_v16, %v23870_v33 }
0x149d   :  { %19565 = vmatmul.mubr.msk.bf16.vlgmr.msra.gmra.mrb[104].mxu1 %vm360_vm2, %v26580_v59  ;;  %19653 = vmatpush3.bf16.xpose.msra.mxu0 %v12281_v44  ;;  %v20463_v59 = vpop.eup %20462 }
0x149e   :  { %19575 = vmatpush3.bf16.xpose.msra.mxu1 %v11436_v37  ;;  %19654 = vmatprep.mubr.msk.bf16.mxu0 %vm20677_vm1, %v26416_v45  ;;  %v10429_v60 = vpack.c.bf16 %v10397_v46, %v10397_v46 }
0x149f   :  { %13768 = vrot.lane.b32.xlu0 %v26581_v36, %s20685_s19  ;;  %19576 = vmatprep.mubr.msk.bf16.mxu1 %vm20677_vm1, %v26416_v45 }
0x14a0   :  { %19664 = vmatprep.subr.bf16.mxu0 %v26416_v45  ;;  %19586 = vmatprep.subr.bf16.mxu1 %v26416_v45  ;;  %v20465_v48 = vpop.eup %20464 }
0x14a3   :  { %13818 = vrot.lane.b32.xlu0 %v26582_v49, %s20685_s19 }
0x14a4   :  { %19655 = vmatmul.mubr.msk.bf16.vlgmr.msra.gmra.mrb[136].mxu0 %vm360_vm2, %v26583_v43  ;;  %v11956_v43 = vsel %vm360_vm2, %v10429_v60, 0 }
0x14a5   :  { %19577 = vmatmul.mubr.msk.bf16.vlgmr.msra.gmra.mrb[108].mxu1 %vm360_vm2, %v26584_v52  ;;  %19665 = vmatpush3.bf16.xpose.msra.mxu0 %v12411_v28  ;;  %v10399_v28 = vmul.f32 %v20463_v59, %v23874_v31  ;;  %v26597_v52 = vld [vmem:[#allocation14_spill] sm:$0xff]  ;;  %v26602_v59 = vld [vmem:[#allocation121_spill] sm:$0xff] }
0x14a6   :  { %19587 = vmatpush3.bf16.xpose.msra.mxu1 %v11566_v22  ;;  %19666 = vmatprep.mubr.msk.bf16.mxu0 %vm20677_vm1, %v26416_v45 }
0x14a7   :  { %13868 = vrot.lane.b32.xlu0 %v26585_v21, %s20685_s19  ;;  %19588 = vmatprep.mubr.msk.bf16.mxu1 %vm20677_vm1, %v26416_v45  ;;  %v10431_v22 = vpack.c.bf16 %v10399_v28, %v10399_v28 }
0x14a8   :  { %19598 = vmatprep.subr.bf16.mxu1 %v26416_v45  ;;  %19676 = vmatprep.subr.bf16.mxu0 %v26416_v45 }
0x14a9   :  { %v12086_v31 = vsel %vm360_vm2, %v10431_v22, 0 }
0x14ab   :  { %13918 = vrot.lane.b32.xlu0 %v26586_v38, %s20685_s19 }
0x14ac   :  { %19667 = vmatmul.mubr.msk.bf16.vlgmr.msra.gmra.mrb[140].mxu0 %vm360_vm2, %v26587_v32  ;;  %v10401_v32 = vmul.f32 %v20465_v48, %v23878_v27 }
0x14ad   :  { %19589 = vmatmul.mubr.msk.bf16.vlgmr.msra.gmra.mrb[112].mxu1 %vm360_vm2, %v26588_v20  ;;  %19678 = vmatprep.mubr.msk.bf16.mxu0 %vm20677_vm1, %v26416_v45  ;;  %v20467_v20 = vpop.eup %20466 }
0x14ae   :  { %19599 = vmatpush3.bf16.xpose.msra.mxu1 %v11696_v40  ;;  %19600 = vmatprep.mubr.msk.bf16.mxu1 %vm20677_vm1, %v26416_v45  ;;  %v10433_v15 = vpack.c.bf16 %v10401_v32, %v10401_v32  ;;  %v24143_v40 = vpop.permute.xlu0 %12818  ;;  %v10403_v56 = vmul.f32 %v20467_v20, %v23882_v18 }
0x14af   :  { %13968 = vrot.lane.b32.xlu0 %v26589_v6, %s20685_s19  ;;  %19610 = vmatprep.subr.bf16.mxu1 %v26416_v45 }
0x14b0   :  { %v12216_v27 = vsel %vm360_vm2, %v10433_v15, 0 }
0x14b2   :  { %v24106_v54 = vpop.f32.mrb[80].mxu0 }
0x14b3   :  { %26590 = vst [vmem:[#allocation34_spill] sm:$0xff] %v24106_v54  ;;  %14018 = vrot.lane.b32.xlu0 %v26591_v17, %s20685_s19  ;;  %v19488_v24 = vpop.f32.mrb[81].mxu0 }
0x14b4   :  { %v10500_v30 = vpop.f32.mrb[82].mxu0  ;;  %v10435_v24 = vpack.c.bf16 %v10403_v56, %v10403_v56 }
0x14b5   :  { %19601 = vmatmul.mubr.msk.bf16.vlgmr.msra.gmra.mrb[116].mxu1 %vm360_vm2, %v26592_v55  ;;  %v19489_v44 = vpop.f32.mrb[83].mxu0  ;;  %v26601_v30 = vld [vmem:[#allocation117_spill] sm:$0xff] }
0x14b6   :  { %19611 = vmatpush3.bf16.xpose.msra.mxu1 %v11826_v12  ;;  %19612 = vmatprep.mubr.msk.bf16.mxu1 %vm20677_vm1, %v26416_v45  ;;  %v12346_v18 = vsel %vm360_vm2, %v10435_v24, 0 }
0x14b7   :  { %14068 = vrot.lane.b32.xlu0 %v26593_v35, %s20685_s19  ;;  %19622 = vmatprep.subr.bf16.mxu1 %v26416_v45 }
0x14ba   :  { %v24119_v37 = vpop.f32.mrb[84].mxu0 }
0x14bb   :  { %26594 = vst [vmem:[#allocation120_spill] sm:$0xff] %v24119_v37  ;;  %14502 = vrot.lane.b32.xlu0 %v26595_v13, %s20686_s20  ;;  %v19500_v33 = vpop.f32.mrb[85].mxu0 }
0x14bc   :  { %v10630_v25 = vpop.f32.mrb[86].mxu0 }
0x14bd   :  { %19613 = vmatmul.mubr.msk.bf16.vlgmr.msra.gmra.mrb[120].mxu1 %vm360_vm2, %v26596_v19  ;;  %v19501_v23 = vpop.f32.mrb[87].mxu0  ;;  %v26603_v25 = vld [vmem:[#allocation126_spill] sm:$0xff] }
0x14be   :  { %19623 = vmatpush3.bf16.xpose.msra.mxu1 %v11956_v43  ;;  %19624 = vmatprep.mubr.msk.bf16.mxu1 %vm20677_vm1, %v26416_v45 }
0x14bf   :  { %14567 = vrot.lane.b32.xlu0 %v26597_v52, %s20686_s20  ;;  %19634 = vmatprep.subr.bf16.mxu1 %v26416_v45 }
0x14c3   :  { %14697 = vrot.lane.b32.xlu0 %v26598_v39, %s20686_s20 }
0x14c5   :  { %19625 = vmatmul.mubr.msk.bf16.vlgmr.msra.gmra.mrb[124].mxu1 %vm360_vm2, %v26599_v0 }
0x14c6   :  { %19635 = vmatpush3.bf16.xpose.msra.mxu1 %v12086_v31  ;;  %19636 = vmatprep.mubr.msk.bf16.mxu1 %vm20677_vm1, %v26416_v45 }
0x14c7   :  { %14827 = vrot.lane.b32.xlu0 %v26261_v5, %s20686_s20  ;;  %19646 = vmatprep.subr.bf16.mxu1 %v26416_v45 }
0x14cb   :  { %14957 = vrot.lane.b32.xlu0 %v26263_v2, %s20686_s20 }
0x14cd   :  { %19637 = vmatmul.mubr.msk.bf16.vlgmr.msra.gmra.mrb[128].mxu1 %vm360_vm2, %v26600_v4 }
0x14ce   :  { %19647 = vmatpush3.bf16.xpose.msra.mxu1 %v12216_v27  ;;  %v10341_v16 = vpop.xlane.xlu0 %10340  ;;  %19648 = vmatprep.mubr.msk.bf16.mxu1 %vm20677_vm1, %v26416_v45 }
0x14cf   :  { %20468 = vrcp.f32 %v10341_v16  ;;  %15087 = vrot.lane.b32.xlu0 %v26265_v50, %s20686_s20  ;;  %19658 = vmatprep.subr.bf16.mxu1 %v26416_v45 }
0x14d2   :  { %v24156_v26 = vpop.permute.xlu0 %12868 }
0x14d3   :  { %15217 = vrot.lane.b32.xlu0 %v26432_v3, %s20686_s20 }
0x14d5   :  { %19649 = vmatmul.mubr.msk.bf16.vlgmr.msra.gmra.mrb[132].mxu1 %vm360_vm2, %v26601_v30 }
0x14d6   :  { %19659 = vmatpush3.bf16.xpose.msra.mxu1 %v12346_v18  ;;  %v24163_v55 = vpop.permute.xlu0 %12918  ;;  %19660 = vmatprep.mubr.msk.bf16.mxu1 %vm20677_vm1, %v26416_v45 }
0x14d7   :  { %15347 = vrot.lane.b32.xlu0 %v26559_v11, %s20686_s20  ;;  %19670 = vmatprep.subr.bf16.mxu1 %v26416_v45 }
0x14d9   :  { %v20469_v12 = vpop.eup %20468 }
0x14da   :  { %v24170_v46 = vpop.permute.xlu0 %12968  ;;  %v10405_v44 = vmul.f32 %v20469_v12, %v23895_v53 }
0x14db   :  { %15477 = vrot.lane.b32.xlu0 %v26562_v29, %s20686_s20 }
0x14dc   :  { %v10437_v60 = vpack.c.bf16 %v10405_v44, %v10405_v44 }
0x14dd   :  { %19661 = vmatmul.mubr.msk.bf16.vlgmr.msra.gmra.mrb[136].mxu1 %vm360_vm2, %v26602_v59 }
0x14de   :  { %v24177_v33 = vpop.permute.xlu0 %13018  ;;  %v12476_v62 = vsel %vm360_vm2, %v10437_v60, 0  ;;  %19672 = vmatprep.mubr.msk.bf16.mxu1 %vm20677_vm1, %v26416_v45 }
0x14df   :  { %15607 = vrot.lane.b32.xlu0 %v26565_v63, %s20686_s20  ;;  %19671 = vmatpush3.bf16.xpose.msra.mxu1 %v12476_v62 }
0x14e0   :  { %19682 = vmatprep.subr.bf16.mxu1 %v26416_v45 }
0x14e2   :  { %v24185_v53 = vpop.permute.xlu0 %13068 }
0x14e3   :  { %15737 = vrot.lane.b32.xlu0 %v26569_v51, %s20686_s20 }
0x14e6   :  { %19673 = vmatmul.mubr.msk.bf16.vlgmr.msra.gmra.mrb[140].mxu1 %vm360_vm2, %v26603_v25  ;;  %v24191_v19 = vpop.permute.xlu0 %13118 }
0x14e7   :  { %15867 = vrot.lane.b32.xlu0 %v26573_v41, %s20686_s20  ;;  %19684 = vmatprep.mubr.msk.bf16.mxu1 %vm20677_vm1, %v26416_v45 }
0x14ea   :  { %v24197_v43 = vpop.permute.xlu0 %13168 }
0x14ee   :  { %v24199_v28 = vpop.permute.xlu0 %13218 }
0x14f2   :  { %v24201_v23 = vpop.permute.xlu0 %13268 }
0x14f6   :  { %v24203_v22 = vpop.permute.xlu0 %13318 }
0x14fa   :  { %v24205_v48 = vpop.permute.xlu0 %13368 }
0x14fe   :  { %v24207_v0 = vpop.permute.xlu0 %13418 }
0x1502   :  { %v24209_v31 = vpop.permute.xlu0 %13468 }
0x1506   :  { %v24211_v32 = vpop.permute.xlu0 %13518 }
0x150a   :  { %v24213_v15 = vpop.permute.xlu0 %13568 }
0x150e   :  { %v24215_v20 = vpop.permute.xlu0 %13618 }
0x1512   :  { %v24217_v4 = vpop.permute.xlu0 %13668 }
0x1513   :  { %26604 = vst [vmem:[#allocation22_spill] sm:$0xff] %v24217_v4  ;;  %v24219_v27 = vpop.f32.mrb[80].mxu1 }
0x1514   :  { %26605 = vst [vmem:[#allocation31_spill] sm:$0xff] %v24219_v27  ;;  %v19494_v56 = vpop.f32.mrb[81].mxu1 }
0x1515   :  { %v10565_v16 = vpop.f32.mrb[82].mxu1 }
0x1516   :  { %v19495_v24 = vpop.f32.mrb[83].mxu1  ;;  %v24221_v30 = vpop.permute.xlu0 %13718 }
0x1517   :  { %26606 = vst [vmem:[#allocation125_spill] sm:$0xff] %v24221_v30  ;;  %v24223_v18 = vpop.f32.mrb[88].mxu0 }
0x1518   :  { %26607 = vst [vmem:[#allocation21_spill] sm:$0xff] %v24223_v18  ;;  %v19512_v12 = vpop.f32.mrb[89].mxu0 }
0x1519   :  { %v10760_v44 = vpop.f32.mrb[90].mxu0 }
0x151a   :  { %v24225_v60 = vpop.permute.xlu0 %13768  ;;  %v19513_v59 = vpop.f32.mrb[91].mxu0 }
0x151b   :  { %26608 = vst [vmem:[#allocation36_spill] sm:$0xff] %v24225_v60  ;;  %v24227_v62 = vpop.f32.mrb[84].mxu1 }
0x151c   :  { %26609 = vst [vmem:[#allocation124_spill] sm:$0xff] %v24227_v62  ;;  %v19506_v25 = vpop.f32.mrb[85].mxu1 }
0x151d   :  { %v10695_v37 = vpop.f32.mrb[86].mxu1 }
0x151e   :  { %v19507_v54 = vpop.f32.mrb[87].mxu1  ;;  %v24229_v4 = vpop.permute.xlu0 %13818 }
0x151f   :  { %26610 = vst [vmem:[#allocation25_spill] sm:$0xff] %v24229_v4  ;;  %v24231_v27 = vpop.f32.mrb[92].mxu0 }
0x1520   :  { %26611 = vst [vmem:[#allocation35_spill] sm:$0xff] %v24231_v27  ;;  %v19524_v56 = vpop.f32.mrb[93].mxu0 }
0x1521   :  { %v10890_v16 = vpop.f32.mrb[94].mxu0 }
0x1522   :  { %v24233_v24 = vpop.permute.xlu0 %13868  ;;  %v19525_v30 = vpop.f32.mrb[95].mxu0 }
0x1523   :  { %26612 = vst [vmem:[#allocation100_spill] sm:$0xff] %v24233_v24  ;;  %v24235_v18 = vpop.f32.mrb[88].mxu1 }
0x1524   :  { %26613 = vst [vmem:[#allocation98_spill] sm:$0xff] %v24235_v18  ;;  %v19518_v12 = vpop.f32.mrb[89].mxu1 }
0x1525   :  { %v10825_v44 = vpop.f32.mrb[90].mxu1 }
0x1526   :  { %v19519_v60 = vpop.f32.mrb[91].mxu1  ;;  %v24237_v59 = vpop.permute.xlu0 %13918 }
0x1527   :  { %v24239_v62 = vpop.f32.mrb[96].mxu0 }
0x1528   :  { %26614 = vst [vmem:[#allocation24_spill] sm:$0xff] %v24239_v62  ;;  %v19536_v37 = vpop.f32.mrb[97].mxu0 }
0x1529   :  { %v11020_v54 = vpop.f32.mrb[98].mxu0 }
0x152a   :  { %v24241_v25 = vpop.permute.xlu0 %13968  ;;  %v19537_v4 = vpop.f32.mrb[99].mxu0 }
0x152e   :  { %v24243_v27 = vpop.permute.xlu0 %14018 }
0x152f   :  { %v24245_v56 = vpop.f32.mrb[100].mxu0 }
0x1530   :  { %26615 = vst [vmem:[#allocation38_spill] sm:$0xff] %v24245_v56  ;;  %v19548_v16 = vpop.f32.mrb[101].mxu0 }
0x1531   :  { %v11150_v30 = vpop.f32.mrb[102].mxu0 }
0x1532   :  { %v24247_v24 = vpop.permute.xlu0 %14068  ;;  %v19549_v12 = vpop.f32.mrb[103].mxu0 }
0x1536   :  { %v14503_v44 = vpop.permute.xlu0 %14502 }
0x1537   :  { %14505 = vxpose.xlu1.c.b16.start.end [1/1] (short) (narrow) %v14503_v44, 16  ;;  %v24249_v60 = vpop.f32.mrb[104].mxu0 }
0x1538   :  { %26616 = vst [vmem:[#allocation107_spill] sm:$0xff] %v24249_v60  ;;  %v19560_v18 = vpop.f32.mrb[105].mxu0 }
0x1539   :  { %v11280_v62 = vpop.f32.mrb[106].mxu0  ;;  %v26618_v18 = vld [vmem:[#allocation11_spill] sm:$0xff] }
0x153a   :  { %v14568_v37 = vpop.permute.xlu0 %14567  ;;  %v19561_v54 = vpop.f32.mrb[107].mxu0 }
0x153b   :  { %14570 = vxpose.xlu0.c.b16.start.end [1/1] (short) (narrow) %v14568_v37, 16  ;;  %12520 = vrot.lane.b32.xlu1 %v26595_v13, %s20687_s21 }
0x153e   :  { %v14698_v4 = vpop.permute.xlu0 %14697 }
0x153f   :  { %14700 = vxpose.xlu0.c.b16.start.end [1/1] (short) (narrow) %v14698_v4, 16  ;;  %12570 = vrot.lane.b32.xlu1 %v26597_v52, %s20687_s21  ;;  %v24255_v16 = vpop.f32.mrb[108].mxu0 }
0x1540   :  { %26617 = vst [vmem:[#allocation104_spill] sm:$0xff] %v24255_v16  ;;  %v19572_v30 = vpop.f32.mrb[109].mxu0 }
0x1541   :  { %v11410_v12 = vpop.f32.mrb[110].mxu0  ;;  %v26620_v30 = vld [vmem:[#allocation19_spill] sm:$0xff] }
0x1542   :  { %v14828_v44 = vpop.permute.xlu0 %14827  ;;  %v19573_v60 = vpop.f32.mrb[111].mxu0 }
0x1543   :  { %14830 = vxpose.xlu0.c.b16.start.end [1/1] (short) (narrow) %v14828_v44, 16  ;;  %12620 = vrot.lane.b32.xlu1 %v26618_v18, %s20687_s21 }
0x1546   :  { %v14958_v62 = vpop.permute.xlu0 %14957 }
0x1547   :  { %14960 = vxpose.xlu0.c.b16.start.end [1/1] (short) (narrow) %v14958_v62, 16  ;;  %12670 = vrot.lane.b32.xlu1 %v26598_v39, %s20687_s21  ;;  %v24261_v13 = vpop.f32.mrb[112].mxu0 }
0x1548   :  { %26619 = vst [vmem:[#allocation28_spill] sm:$0xff] %v24261_v13  ;;  %v19584_v37 = vpop.f32.mrb[113].mxu0 }
0x1549   :  { %v11540_v54 = vpop.f32.mrb[114].mxu0 }
0x154a   :  { %v15088_v52 = vpop.permute.xlu0 %15087  ;;  %v19585_v4 = vpop.f32.mrb[115].mxu0 }
0x154b   :  { %15090 = vxpose.xlu0.c.b16.start.end [1/1] (short) (narrow) %v15088_v52, 16  ;;  %12720 = vrot.lane.b32.xlu1 %v26620_v30, %s20687_s21 }
0x154e   :  { %v15218_v60 = vpop.permute.xlu0 %15217 }
0x154f   :  { %15220 = vxpose.xlu0.c.b16.start.end [1/1] (short) (narrow) %v15218_v60, 16  ;;  %12770 = vrot.lane.b32.xlu1 %v26261_v5, %s20687_s21  ;;  %v24267_v12 = vpop.f32.mrb[116].mxu0 }
0x1550   :  { %26621 = vst [vmem:[#allocation37_spill] sm:$0xff] %v24267_v12  ;;  %v19596_v44 = vpop.f32.mrb[117].mxu0 }
0x1551   :  { %v11670_v62 = vpop.f32.mrb[118].mxu0 }
0x1552   :  { %v15348_v39 = vpop.permute.xlu0 %15347  ;;  %v19597_v16 = vpop.f32.mrb[119].mxu0 }
0x1553   :  { %15350 = vxpose.xlu0.c.b16.start.end [1/1] (short) (narrow) %v15348_v39, 16  ;;  %12820 = vrot.lane.b32.xlu1 %v26297_v58, %s20687_s21 }
0x1556   :  { %v15478_v37 = vpop.permute.xlu0 %15477 }
0x1557   :  { %15480 = vxpose.xlu0.c.b16.start.end [1/1] (short) (narrow) %v15478_v37, 16  ;;  %12870 = vrot.lane.b32.xlu1 %v26263_v2, %s20687_s21  ;;  %v24273_v54 = vpop.f32.mrb[120].mxu0 }
0x1558   :  { %26622 = vst [vmem:[#allocation111_spill] sm:$0xff] %v24273_v54  ;;  %v24275_v52 = vpop.f32.mrb[92].mxu1  ;;  %v19608_v5 = vpop.f32.mrb[121].mxu0 }
0x1559   :  { %26623 = vst [vmem:[#allocation110_spill] sm:$0xff] %v24275_v52  ;;  %v19530_v4 = vpop.f32.mrb[93].mxu1  ;;  %v11800_v60 = vpop.f32.mrb[122].mxu0 }
0x155a   :  { %v10955_v44 = vpop.f32.mrb[94].mxu1  ;;  %v15608_v62 = vpop.permute.xlu0 %15607 }
0x155b   :  { %v19609_v12 = vpop.f32.mrb[123].mxu0  ;;  %v19531_v16 = vpop.f32.mrb[95].mxu1  ;;  %15610 = vxpose.xlu0.c.b16.start.end [1/1] (short) (narrow) %v15608_v62, 16  ;;  %12920 = vrot.lane.b32.xlu1 %v26298_v1, %s20687_s21 }
0x155e   :  { %v15738_v39 = vpop.permute.xlu0 %15737 }
0x155f   :  { %15740 = vxpose.xlu0.c.b16.start.end [1/1] (short) (narrow) %v15738_v39, 16  ;;  %12970 = vrot.lane.b32.xlu1 %v26265_v50, %s20687_s21  ;;  %v24281_v2 = vpop.f32.mrb[124].mxu0 }
0x1560   :  { %26624 = vst [vmem:[#allocation26_spill] sm:$0xff] %v24281_v2  ;;  %v24283_v37 = vpop.f32.mrb[96].mxu1  ;;  %v19620_v5 = vpop.f32.mrb[125].mxu0 }
0x1561   :  { %26625 = vst [vmem:[#allocation40_spill] sm:$0xff] %v24283_v37  ;;  %v19542_v4 = vpop.f32.mrb[97].mxu1  ;;  %v11930_v60 = vpop.f32.mrb[126].mxu0 }
0x1562   :  { %v11085_v44 = vpop.f32.mrb[98].mxu1  ;;  %v15868_v54 = vpop.permute.xlu0 %15867 }
0x1563   :  { %v19621_v12 = vpop.f32.mrb[127].mxu0  ;;  %v19543_v16 = vpop.f32.mrb[99].mxu1  ;;  %15870 = vxpose.xlu0.c.b16.start.end [1/1] (short) (narrow) %v15868_v54, 16  ;;  %13020 = vrot.lane.b32.xlu1 %v26431_v7, %s20687_s21 }
0x1567   :  { %13070 = vrot.lane.b32.xlu1 %v26432_v3, %s20687_s21  ;;  %v24289_v62 = vpop.f32.mrb[128].mxu0 }
0x1568   :  { %26626 = vst [vmem:[#allocation115_spill] sm:$0xff] %v24289_v62  ;;  %v24291_v50 = vpop.f32.mrb[100].mxu1  ;;  %v19632_v39 = vpop.f32.mrb[129].mxu0 }
0x1569   :  { %26627 = vst [vmem:[#allocation116_spill] sm:$0xff] %v24291_v50  ;;  %v19554_v2 = vpop.f32.mrb[101].mxu1  ;;  %v12060_v5 = vpop.f32.mrb[130].mxu0 }
0x156a   :  { %v11215_v4 = vpop.f32.mrb[102].mxu1  ;;  %v19633_v60 = vpop.f32.mrb[131].mxu0 }
0x156b   :  { %v19555_v44 = vpop.f32.mrb[103].mxu1  ;;  %13120 = vrot.lane.b32.xlu1 %v26557_v14, %s20687_s21 }
0x156c   :  { %15932 = vrot.lane.b32.xlu0 %v26574_v61, %s20686_s20 }
0x156f   :  { %13170 = vrot.lane.b32.xlu1 %v26559_v11, %s20687_s21  ;;  %v24299_v3 = vpop.f32.mrb[132].mxu0 }
0x1570   :  { %26628 = vst [vmem:[#allocation30_spill] sm:$0xff] %v24299_v3  ;;  %v24301_v54 = vpop.f32.mrb[104].mxu1  ;;  %15997 = vrot.lane.b32.xlu0 %v26577_v34, %s20686_s20  ;;  %v19644_v2 = vpop.f32.mrb[133].mxu0 }
0x1571   :  { %26629 = vst [vmem:[#allocation39_spill] sm:$0xff] %v24301_v54  ;;  %v19566_v12 = vpop.f32.mrb[105].mxu1  ;;  %v12190_v16 = vpop.f32.mrb[134].mxu0 }
0x1572   :  { %v11345_v39 = vpop.f32.mrb[106].mxu1  ;;  %v19645_v5 = vpop.f32.mrb[135].mxu0 }
0x1573   :  { %v19567_v4 = vpop.f32.mrb[107].mxu1  ;;  %13220 = vrot.lane.b32.xlu1 %v26560_v57, %s20687_s21 }
0x1577   :  { %13270 = vrot.lane.b32.xlu1 %v26562_v29, %s20687_s21  ;;  %v24309_v11 = vpop.f32.mrb[136].mxu0 }
0x1578   :  { %26630 = vst [vmem:[#allocation119_spill] sm:$0xff] %v24309_v11  ;;  %v24311_v60 = vpop.f32.mrb[108].mxu1  ;;  %v19656_v44 = vpop.f32.mrb[137].mxu0 }
0x1579   :  { %26631 = vst [vmem:[#allocation122_spill] sm:$0xff] %v24311_v60  ;;  %v19578_v3 = vpop.f32.mrb[109].mxu1  ;;  %v12320_v54 = vpop.f32.mrb[138].mxu0 }
0x157a   :  { %v11475_v62 = vpop.f32.mrb[110].mxu1  ;;  %v19657_v2 = vpop.f32.mrb[139].mxu0 }
0x157b   :  { %v19579_v12 = vpop.f32.mrb[111].mxu1  ;;  %13320 = vrot.lane.b32.xlu1 %v26563_v9, %s20687_s21 }
0x157f   :  { %13370 = vrot.lane.b32.xlu1 %v26565_v63, %s20687_s21  ;;  %v24317_v16 = vpop.f32.mrb[140].mxu0 }
0x1580   :  { %26632 = vst [vmem:[#allocation29_spill] sm:$0xff] %v24317_v16  ;;  %v24319_v39 = vpop.f32.mrb[112].mxu1  ;;  %v19668_v29 = vpop.f32.mrb[141].mxu0 }
0x1581   :  { %26633 = vst [vmem:[#allocation42_spill] sm:$0xff] %v24319_v39  ;;  %v19590_v5 = vpop.f32.mrb[113].mxu1  ;;  %v12450_v4 = vpop.f32.mrb[142].mxu0 }
0x1582   :  { %v11605_v11 = vpop.f32.mrb[114].mxu1  ;;  %v19669_v44 = vpop.f32.mrb[143].mxu0 }
0x1583   :  { %v19591_v3 = vpop.f32.mrb[115].mxu1  ;;  %13420 = vrot.lane.b32.xlu1 %v26566_v42, %s20687_s21 }
0x1587   :  { %13470 = vrot.lane.b32.xlu1 %v26569_v51, %s20687_s21 }
0x1588   :  { %v24325_v62 = vpop.f32.mrb[116].mxu1 }
0x1589   :  { %26634 = vst [vmem:[#allocation123_spill] sm:$0xff] %v24325_v62  ;;  %v19602_v54 = vpop.f32.mrb[117].mxu1 }
0x158a   :  { %v11735_v63 = vpop.f32.mrb[118].mxu1 }
0x158b   :  { %v19603_v2 = vpop.f32.mrb[119].mxu1  ;;  %13520 = vrot.lane.b32.xlu1 %v26570_v10, %s20687_s21 }
0x158f   :  { %13570 = vrot.lane.b32.xlu1 %v26573_v41, %s20687_s21 }
0x1590   :  { %v24331_v11 = vpop.f32.mrb[120].mxu1 }
0x1591   :  { %26635 = vst [vmem:[#allocation61_spill] sm:$0xff] %v24331_v11  ;;  %v19614_v12 = vpop.f32.mrb[121].mxu1 }
0x1592   :  { %v11865_v29 = vpop.f32.mrb[122].mxu1 }
0x1593   :  { %v19615_v5 = vpop.f32.mrb[123].mxu1  ;;  %13620 = vrot.lane.b32.xlu1 %v26574_v61, %s20687_s21 }
0x1597   :  { %13670 = vrot.lane.b32.xlu1 %v26577_v34, %s20687_s21 }
0x1598   :  { %v24337_v51 = vpop.f32.mrb[124].mxu1 }
0x1599   :  { %26636 = vst [vmem:[#allocation103_spill] sm:$0xff] %v24337_v51  ;;  %v19626_v4 = vpop.f32.mrb[125].mxu1 }
0x159a   :  { %v11995_v44 = vpop.f32.mrb[126].mxu1 }
0x159b   :  { %v19627_v3 = vpop.f32.mrb[127].mxu1  ;;  %13720 = vrot.lane.b32.xlu1 %v26578_v8, %s20687_s21 }
0x159d   :  { %v24349_v61 = vpop.trf.xlu1 }
0x159f   :  { %13770 = vrot.lane.b32.xlu1 %v26581_v36, %s20687_s21 }
0x15a0   :  { %v24343_v41 = vpop.f32.mrb[128].mxu1 }
0x15a1   :  { %26637 = vst [vmem:[#allocation12_spill] sm:$0xff] %v24343_v41  ;;  %v19638_v54 = vpop.f32.mrb[129].mxu1 }
0x15a2   :  { %v12125_v63 = vpop.f32.mrb[130].mxu1 }
0x15a3   :  { %v19639_v2 = vpop.f32.mrb[131].mxu1  ;;  %13820 = vrot.lane.b32.xlu1 %v26582_v49, %s20687_s21 }
0x15a7   :  { %13870 = vrot.lane.b32.xlu1 %v26585_v21, %s20687_s21 }
0x15a8   :  { %v24351_v34 = vpop.f32.mrb[132].mxu1 }
0x15a9   :  { %26638 = vst [vmem:[#allocation105_spill] sm:$0xff] %v24351_v34  ;;  %v19650_v12 = vpop.f32.mrb[133].mxu1 }
0x15aa   :  { %v12255_v29 = vpop.f32.mrb[134].mxu1 }
0x15ab   :  { %v19651_v5 = vpop.f32.mrb[135].mxu1  ;;  %13920 = vrot.lane.b32.xlu1 %v26586_v38, %s20687_s21 }
0x15ad   :  { %v12521_v4 = vpop.permute.xlu1 %12520 }
0x15ae   :  { %v12526_v44 = vsel %vm360_vm2, %v12521_v4, 0 }
0x15af   :  { %13970 = vrot.lane.b32.xlu1 %v26589_v6, %s20687_s21  ;;  %19677 = vmatpush3.bf16.xpose.msra.mxu0 %v12526_v44  ;;  %v26640_v44 = vld [vmem:[#allocation106_spill] sm:$0xff] }
0x15b0   :  { %v24358_v3 = vpop.f32.mrb[136].mxu1  ;;  %19688 = vmatprep.subr.bf16.mxu0 %v26416_v45 }
0x15b1   :  { %26639 = vst [vmem:[#allocation14_spill] sm:$0xff] %v24358_v3  ;;  %v19662_v54 = vpop.f32.mrb[137].mxu1  ;;  %v12571_v63 = vpop.permute.xlu1 %12570  ;;  %v26643_v3 = vld [vmem:[#allocation112_spill] sm:$0xff] }
0x15b2   :  { %v12576_v2 = vsel %vm360_vm2, %v12571_v63, 0  ;;  %v12385_v12 = vpop.f32.mrb[138].mxu1 }
0x15b3   :  { %v19663_v29 = vpop.f32.mrb[139].mxu1  ;;  %14020 = vrot.lane.b32.xlu1 %v26591_v17, %s20687_s21  ;;  %19683 = vmatpush3.bf16.xpose.msra.mxu1 %v12576_v2 }
0x15b4   :  { %19694 = vmatprep.subr.bf16.mxu1 %v26416_v45  ;;  %v26642_v29 = vld [vmem:[#allocation108_spill] sm:$0xff] }
0x15b5   :  { %v12621_v5 = vpop.permute.xlu1 %12620 }
0x15b6   :  { %v12626_v4 = vsel %vm360_vm2, %v12621_v5, 0  ;;  %19679 = vmatmul.mubr.msk.bf16.vlgmr.msra.gmra.mrb[144].mxu0 %vm360_vm2, %v26640_v44 }
0x15b7   :  { %14070 = vrot.lane.b32.xlu1 %v26593_v35, %s20687_s21  ;;  %19689 = vmatpush3.bf16.xpose.msra.mxu0 %v12626_v4 }
0x15b8   :  { %19690 = vmatprep.mubr.msk.bf16.mxu0 %vm20677_vm1, %v26416_v45  ;;  %19700 = vmatprep.subr.bf16.mxu0 %v26416_v45 }
0x15b9   :  { %v24373_v54 = vpop.f32.mrb[140].mxu1  ;;  %v12671_v63 = vpop.permute.xlu1 %12670 }
0x15ba   :  { %26641 = vst [vmem:[#allocation13_spill] sm:$0xff] %v24373_v54  ;;  %v12676_v2 = vsel %vm360_vm2, %v12671_v63, 0  ;;  %v19674_v12 = vpop.f32.mrb[141].mxu1  ;;  %19685 = vmatmul.mubr.msk.bf16.vlgmr.msra.gmra.mrb[144].mxu1 %vm360_vm2, %v26642_v29 }
0x15bb   :  { %v12515_v5 = vpop.f32.mrb[142].mxu1  ;;  %14632 = vrot.lane.b32.xlu1 %v26618_v18, %s20686_s20  ;;  %19695 = vmatpush3.bf16.xpose.msra.mxu1 %v12676_v2  ;;  %v26644_v2 = vld [vmem:[#allocation114_spill] sm:$0xff] }
0x15bc   :  { %v19675_v4 = vpop.f32.mrb[143].mxu1  ;;  %19696 = vmatprep.mubr.msk.bf16.mxu1 %vm20677_vm1, %v26416_v45  ;;  %19706 = vmatprep.subr.bf16.mxu1 %v26416_v45 }
0x15bd   :  { %v12721_v44 = vpop.permute.xlu1 %12720 }
0x15be   :  { %v12726_v54 = vsel %vm360_vm2, %v12721_v44, 0  ;;  %19691 = vmatmul.mubr.msk.bf16.vlgmr.msra.gmra.mrb[148].mxu0 %vm360_vm2, %v26643_v3 }
0x15bf   :  { %19701 = vmatpush3.bf16.xpose.msra.mxu0 %v12726_v54  ;;  %19702 = vmatprep.mubr.msk.bf16.mxu0 %vm20677_vm1, %v26416_v45  ;;  %v26645_v54 = vld [vmem:[#allocation118_spill] sm:$0xff] }
0x15c0   :  { %19712 = vmatprep.subr.bf16.mxu0 %v26416_v45 }
0x15c1   :  { %v12771_v18 = vpop.permute.xlu1 %12770 }
0x15c2   :  { %v12776_v63 = vsel %vm360_vm2, %v12771_v18, 0  ;;  %19697 = vmatmul.mubr.msk.bf16.vlgmr.msra.gmra.mrb[148].mxu1 %vm360_vm2, %v26644_v2 }
0x15c3   :  { %19707 = vmatpush3.bf16.xpose.msra.mxu1 %v12776_v63  ;;  %19708 = vmatprep.mubr.msk.bf16.mxu1 %vm20677_vm1, %v26416_v45 }
0x15c4   :  { %19718 = vmatprep.subr.bf16.mxu1 %v26416_v45 }
0x15c5   :  { %v12821_v12 = vpop.permute.xlu1 %12820 }
0x15c6   :  { %v12826_v3 = vsel %vm360_vm2, %v12821_v12, 0  ;;  %19703 = vmatmul.mubr.msk.bf16.vlgmr.msra.gmra.mrb[152].mxu0 %vm360_vm2, %v26645_v54 }
0x15c7   :  { %19713 = vmatpush3.bf16.xpose.msra.mxu0 %v12826_v3  ;;  %19714 = vmatprep.mubr.msk.bf16.mxu0 %vm20677_vm1, %v26416_v45 }
0x15c8   :  { %19724 = vmatprep.subr.bf16.mxu0 %v26416_v45 }
0x15c9   :  { %v12871_v29 = vpop.permute.xlu1 %12870 }
0x15ca   :  { %v12876_v5 = vsel %vm360_vm2, %v12871_v29, 0  ;;  %19709 = vmatmul.mubr.msk.bf16.vlgmr.msra.gmra.mrb[152].mxu1 %vm360_vm2, %v23963_v47 }
0x15cb   :  { %19719 = vmatpush3.bf16.xpose.msra.mxu1 %v12876_v5  ;;  %19720 = vmatprep.mubr.msk.bf16.mxu1 %vm20677_vm1, %v26416_v45 }
0x15cc   :  { %19730 = vmatprep.subr.bf16.mxu1 %v26416_v45 }
0x15cd   :  { %v12921_v4 = vpop.permute.xlu1 %12920 }
0x15ce   :  { %v12926_v44 = vsel %vm360_vm2, %v12921_v4, 0  ;;  %19715 = vmatmul.mubr.msk.bf16.vlgmr.msra.gmra.mrb[156].mxu0 %vm360_vm2, %v24143_v40 }
0x15cf   :  { %19725 = vmatpush3.bf16.xpose.msra.mxu0 %v12926_v44  ;;  %19726 = vmatprep.mubr.msk.bf16.mxu0 %vm20677_vm1, %v26416_v45 }
0x15d0   :  { %19736 = vmatprep.subr.bf16.mxu0 %v26416_v45 }
0x15d1   :  { %v12971_v18 = vpop.permute.xlu1 %12970 }
0x15d2   :  { %v12976_v47 = vsel %vm360_vm2, %v12971_v18, 0  ;;  %19721 = vmatmul.mubr.msk.bf16.vlgmr.msra.gmra.mrb[156].mxu1 %vm360_vm2, %v24156_v26 }
0x15d3   :  { %19731 = vmatpush3.bf16.xpose.msra.mxu1 %v12976_v47  ;;  %19732 = vmatprep.mubr.msk.bf16.mxu1 %vm20677_vm1, %v26416_v45 }
0x15d4   :  { %19742 = vmatprep.subr.bf16.mxu1 %v26416_v45 }
0x15d5   :  { %v13021_v63 = vpop.permute.xlu1 %13020 }
0x15d6   :  { %v13026_v40 = vsel %vm360_vm2, %v13021_v63, 0  ;;  %19727 = vmatmul.mubr.msk.bf16.vlgmr.msra.gmra.mrb[160].mxu0 %vm360_vm2, %v24163_v55 }
0x15d7   :  { %19737 = vmatpush3.bf16.xpose.msra.mxu0 %v13026_v40  ;;  %19738 = vmatprep.mubr.msk.bf16.mxu0 %vm20677_vm1, %v26416_v45 }
0x15d8   :  { %19748 = vmatprep.subr.bf16.mxu0 %v26416_v45 }
0x15d9   :  { %v13071_v2 = vpop.permute.xlu1 %13070 }
0x15da   :  { %v13076_v26 = vsel %vm360_vm2, %v13071_v2, 0  ;;  %19733 = vmatmul.mubr.msk.bf16.vlgmr.msra.gmra.mrb[160].mxu1 %vm360_vm2, %v24170_v46 }
0x15db   :  { %19743 = vmatpush3.bf16.xpose.msra.mxu1 %v13076_v26  ;;  %19744 = vmatprep.mubr.msk.bf16.mxu1 %vm20677_vm1, %v26416_v45 }
0x15dc   :  { %19754 = vmatprep.subr.bf16.mxu1 %v26416_v45 }
0x15dd   :  { %v13121_v12 = vpop.permute.xlu1 %13120 }
0x15de   :  { %v13126_v55 = vsel %vm360_vm2, %v13121_v12, 0  ;;  %19739 = vmatmul.mubr.msk.bf16.vlgmr.msra.gmra.mrb[164].mxu0 %vm360_vm2, %v24177_v33 }
0x15df   :  { %19749 = vmatpush3.bf16.xpose.msra.mxu0 %v13126_v55  ;;  %19750 = vmatprep.mubr.msk.bf16.mxu0 %vm20677_vm1, %v26416_v45  ;;  %v26646_v55 = vld [vmem:[#allocation22_spill] sm:$0xff] }
0x15e0   :  { %19760 = vmatprep.subr.bf16.mxu0 %v26416_v45 }
0x15e1   :  { %v13171_v3 = vpop.permute.xlu1 %13170 }
0x15e2   :  { %v13176_v46 = vsel %vm360_vm2, %v13171_v3, 0  ;;  %19745 = vmatmul.mubr.msk.bf16.vlgmr.msra.gmra.mrb[164].mxu1 %vm360_vm2, %v24185_v53 }
0x15e3   :  { %19755 = vmatpush3.bf16.xpose.msra.mxu1 %v13176_v46  ;;  %19756 = vmatprep.mubr.msk.bf16.mxu1 %vm20677_vm1, %v26416_v45  ;;  %v26647_v46 = vld [vmem:[#allocation125_spill] sm:$0xff] }
0x15e4   :  { %19766 = vmatprep.subr.bf16.mxu1 %v26416_v45 }
0x15e5   :  { %v13221_v54 = vpop.permute.xlu1 %13220 }
0x15e6   :  { %v13226_v33 = vsel %vm360_vm2, %v13221_v54, 0  ;;  %19751 = vmatmul.mubr.msk.bf16.vlgmr.msra.gmra.mrb[168].mxu0 %vm360_vm2, %v24191_v19 }
0x15e7   :  { %19761 = vmatpush3.bf16.xpose.msra.mxu0 %v13226_v33  ;;  %19762 = vmatprep.mubr.msk.bf16.mxu0 %vm20677_vm1, %v26416_v45 }
0x15e8   :  { %19772 = vmatprep.subr.bf16.mxu0 %v26416_v45 }
0x15e9   :  { %v13271_v29 = vpop.permute.xlu1 %13270 }
0x15ea   :  { %v13276_v53 = vsel %vm360_vm2, %v13271_v29, 0  ;;  %19757 = vmatmul.mubr.msk.bf16.vlgmr.msra.gmra.mrb[168].mxu1 %vm360_vm2, %v24197_v43  ;;  %v26648_v29 = vld [vmem:[#allocation36_spill] sm:$0xff] }
0x15eb   :  { %19767 = vmatpush3.bf16.xpose.msra.mxu1 %v13276_v53  ;;  %19768 = vmatprep.mubr.msk.bf16.mxu1 %vm20677_vm1, %v26416_v45 }
0x15ec   :  { %19778 = vmatprep.subr.bf16.mxu1 %v26416_v45 }
0x15ed   :  { %v13321_v5 = vpop.permute.xlu1 %13320 }
0x15ee   :  { %v13326_v19 = vsel %vm360_vm2, %v13321_v5, 0  ;;  %19763 = vmatmul.mubr.msk.bf16.vlgmr.msra.gmra.mrb[172].mxu0 %vm360_vm2, %v24199_v28 }
0x15ef   :  { %19773 = vmatpush3.bf16.xpose.msra.mxu0 %v13326_v19  ;;  %19774 = vmatprep.mubr.msk.bf16.mxu0 %vm20677_vm1, %v26416_v45  ;;  %v26649_v19 = vld [vmem:[#allocation25_spill] sm:$0xff] }
0x15f0   :  { %19784 = vmatprep.subr.bf16.mxu0 %v26416_v45 }
0x15f1   :  { %v13371_v4 = vpop.permute.xlu1 %13370 }
0x15f2   :  { %v13376_v43 = vsel %vm360_vm2, %v13371_v4, 0  ;;  %19769 = vmatmul.mubr.msk.bf16.vlgmr.msra.gmra.mrb[172].mxu1 %vm360_vm2, %v24201_v23 }
0x15f3   :  { %19779 = vmatpush3.bf16.xpose.msra.mxu1 %v13376_v43  ;;  %19780 = vmatprep.mubr.msk.bf16.mxu1 %vm20677_vm1, %v26416_v45 }
0x15f4   :  { %19790 = vmatprep.subr.bf16.mxu1 %v26416_v45 }
0x15f5   :  { %v13421_v44 = vpop.permute.xlu1 %13420 }
0x15f6   :  { %v13426_v28 = vsel %vm360_vm2, %v13421_v44, 0  ;;  %19775 = vmatmul.mubr.msk.bf16.vlgmr.msra.gmra.mrb[176].mxu0 %vm360_vm2, %v24203_v22  ;;  %v26650_v44 = vld [vmem:[#allocation100_spill] sm:$0xff] }
0x15f7   :  { %19785 = vmatpush3.bf16.xpose.msra.mxu0 %v13426_v28  ;;  %19786 = vmatprep.mubr.msk.bf16.mxu0 %vm20677_vm1, %v26416_v45 }
0x15f8   :  { %19796 = vmatprep.subr.bf16.mxu0 %v26416_v45 }
0x15f9   :  { %v13471_v18 = vpop.permute.xlu1 %13470 }
0x15fa   :  { %v13476_v23 = vsel %vm360_vm2, %v13471_v18, 0  ;;  %19781 = vmatmul.mubr.msk.bf16.vlgmr.msra.gmra.mrb[176].mxu1 %vm360_vm2, %v24205_v48 }
0x15fb   :  { %19791 = vmatpush3.bf16.xpose.msra.mxu1 %v13476_v23  ;;  %19792 = vmatprep.mubr.msk.bf16.mxu1 %vm20677_vm1, %v26416_v45 }
0x15fc   :  { %19802 = vmatprep.subr.bf16.mxu1 %v26416_v45 }
0x15fd   :  { %v13521_v47 = vpop.permute.xlu1 %13520 }
0x15fe   :  { %v13526_v22 = vsel %vm360_vm2, %v13521_v47, 0  ;;  %19787 = vmatmul.mubr.msk.bf16.vlgmr.msra.gmra.mrb[180].mxu0 %vm360_vm2, %v24207_v0 }
0x15ff   :  { %19797 = vmatpush3.bf16.xpose.msra.mxu0 %v13526_v22  ;;  %19798 = vmatprep.mubr.msk.bf16.mxu0 %vm20677_vm1, %v26416_v45 }
0x1600   :  { %19808 = vmatprep.subr.bf16.mxu0 %v26416_v45 }
0x1601   :  { %v13571_v63 = vpop.permute.xlu1 %13570 }
0x1602   :  { %v13576_v48 = vsel %vm360_vm2, %v13571_v63, 0  ;;  %19793 = vmatmul.mubr.msk.bf16.vlgmr.msra.gmra.mrb[180].mxu1 %vm360_vm2, %v24209_v31 }
0x1603   :  { %19803 = vmatpush3.bf16.xpose.msra.mxu1 %v13576_v48  ;;  %19804 = vmatprep.mubr.msk.bf16.mxu1 %vm20677_vm1, %v26416_v45 }
0x1604   :  { %19814 = vmatprep.subr.bf16.mxu1 %v26416_v45 }
0x1605   :  { %v13621_v40 = vpop.permute.xlu1 %13620 }
0x1606   :  { %v13626_v0 = vsel %vm360_vm2, %v13621_v40, 0  ;;  %19799 = vmatmul.mubr.msk.bf16.vlgmr.msra.gmra.mrb[184].mxu0 %vm360_vm2, %v24211_v32 }
0x1607   :  { %19809 = vmatpush3.bf16.xpose.msra.mxu0 %v13626_v0  ;;  %19810 = vmatprep.mubr.msk.bf16.mxu0 %vm20677_vm1, %v26416_v45 }
0x1608   :  { %19820 = vmatprep.subr.bf16.mxu0 %v26416_v45 }
0x1609   :  { %v13671_v2 = vpop.permute.xlu1 %13670 }
0x160a   :  { %v13676_v31 = vsel %vm360_vm2, %v13671_v2, 0  ;;  %19805 = vmatmul.mubr.msk.bf16.vlgmr.msra.gmra.mrb[184].mxu1 %vm360_vm2, %v24213_v15 }
0x160b   :  { %19815 = vmatpush3.bf16.xpose.msra.mxu1 %v13676_v31  ;;  %19816 = vmatprep.mubr.msk.bf16.mxu1 %vm20677_vm1, %v26416_v45 }
0x160c   :  { %19826 = vmatprep.subr.bf16.mxu1 %v26416_v45 }
0x160d   :  { %v13721_v26 = vpop.permute.xlu1 %13720 }
0x160e   :  { %v13726_v32 = vsel %vm360_vm2, %v13721_v26, 0  ;;  %19811 = vmatmul.mubr.msk.bf16.vlgmr.msra.gmra.mrb[188].mxu0 %vm360_vm2, %v24215_v20 }
0x160f   :  { %19821 = vmatpush3.bf16.xpose.msra.mxu0 %v13726_v32  ;;  %19822 = vmatprep.mubr.msk.bf16.mxu0 %vm20677_vm1, %v26416_v45 }
0x1610   :  { %19832 = vmatprep.subr.bf16.mxu0 %v26416_v45 }
0x1611   :  { %v13771_v12 = vpop.permute.xlu1 %13770 }
0x1612   :  { %v13776_v15 = vsel %vm360_vm2, %v13771_v12, 0  ;;  %19817 = vmatmul.mubr.msk.bf16.vlgmr.msra.gmra.mrb[188].mxu1 %vm360_vm2, %v26646_v55 }
0x1613   :  { %19827 = vmatpush3.bf16.xpose.msra.mxu1 %v13776_v15  ;;  %19828 = vmatprep.mubr.msk.bf16.mxu1 %vm20677_vm1, %v26416_v45 }
0x1614   :  { %19838 = vmatprep.subr.bf16.mxu1 %v26416_v45 }
0x1615   :  { %v13821_v3 = vpop.permute.xlu1 %13820 }
0x1616   :  { %v13826_v20 = vsel %vm360_vm2, %v13821_v3, 0  ;;  %19823 = vmatmul.mubr.msk.bf16.vlgmr.msra.gmra.mrb[192].mxu0 %vm360_vm2, %v26647_v46 }
0x1617   :  { %19833 = vmatpush3.bf16.xpose.msra.mxu0 %v13826_v20  ;;  %19834 = vmatprep.mubr.msk.bf16.mxu0 %vm20677_vm1, %v26416_v45 }
0x1618   :  { %19844 = vmatprep.subr.bf16.mxu0 %v26416_v45 }
0x1619   :  { %v13871_v54 = vpop.permute.xlu1 %13870 }
0x161a   :  { %v13876_v33 = vsel %vm360_vm2, %v13871_v54, 0  ;;  %19829 = vmatmul.mubr.msk.bf16.vlgmr.msra.gmra.mrb[192].mxu1 %vm360_vm2, %v26648_v29 }
0x161b   :  { %19839 = vmatpush3.bf16.xpose.msra.mxu1 %v13876_v33  ;;  %19840 = vmatprep.mubr.msk.bf16.mxu1 %vm20677_vm1, %v26416_v45 }
0x161c   :  { %19850 = vmatprep.subr.bf16.mxu1 %v26416_v45 }
0x161d   :  { %v13921_v53 = vpop.permute.xlu1 %13920 }
0x161e   :  { %v13926_v5 = vsel %vm360_vm2, %v13921_v53, 0  ;;  %19835 = vmatmul.mubr.msk.bf16.vlgmr.msra.gmra.mrb[196].mxu0 %vm360_vm2, %v26649_v19 }
0x161f   :  { %19845 = vmatpush3.bf16.xpose.msra.mxu0 %v13926_v5  ;;  %19846 = vmatprep.mubr.msk.bf16.mxu0 %vm20677_vm1, %v26416_v45 }
0x1620   :  { %19856 = vmatprep.subr.bf16.mxu0 %v26416_v45 }
0x1621   :  { %v13971_v4 = vpop.permute.xlu1 %13970 }
0x1622   :  { %v13976_v43 = vsel %vm360_vm2, %v13971_v4, 0  ;;  %19841 = vmatmul.mubr.msk.bf16.vlgmr.msra.gmra.mrb[196].mxu1 %vm360_vm2, %v26650_v44 }
0x1623   :  { %19851 = vmatpush3.bf16.xpose.msra.mxu1 %v13976_v43  ;;  %19852 = vmatprep.mubr.msk.bf16.mxu1 %vm20677_vm1, %v26416_v45 }
0x1624   :  { %19862 = vmatprep.subr.bf16.mxu1 %v26416_v45 }
0x1625   :  { %v14021_v28 = vpop.permute.xlu1 %14020 }
0x1626   :  { %v14026_v18 = vsel %vm360_vm2, %v14021_v28, 0  ;;  %19847 = vmatmul.mubr.msk.bf16.vlgmr.msra.gmra.mrb[200].mxu0 %vm360_vm2, %v24237_v59 }
0x1627   :  { %19857 = vmatpush3.bf16.xpose.msra.mxu0 %v14026_v18  ;;  %19858 = vmatprep.mubr.msk.bf16.mxu0 %vm20677_vm1, %v26416_v45 }
0x1628   :  { %19868 = vmatprep.subr.bf16.mxu0 %v26416_v45 }
0x1629   :  { %v14071_v23 = vpop.permute.xlu1 %14070 }
0x162a   :  { %v14076_v47 = vsel %vm360_vm2, %v14071_v23, 0  ;;  %19853 = vmatmul.mubr.msk.bf16.vlgmr.msra.gmra.mrb[200].mxu1 %vm360_vm2, %v24241_v25 }
0x162b   :  { %19863 = vmatpush3.bf16.xpose.msra.mxu1 %v14076_v47  ;;  %19864 = vmatprep.mubr.msk.bf16.mxu1 %vm20677_vm1, %v26416_v45 }
0x162c   :  { %19874 = vmatprep.subr.bf16.mxu1 %v26416_v45 }
0x162d   :  { %v14633_v22 = vpop.permute.xlu1 %14632 }
0x162e   :  { %19859 = vmatmul.mubr.msk.bf16.vlgmr.msra.gmra.mrb[204].mxu0 %vm360_vm2, %v24243_v27  ;;  %14635 = vxpose.xlu1.c.b16.start.end [1/1] (short) (narrow) %v14633_v22, 16 }
0x162f   :  { %19870 = vmatprep.mubr.msk.bf16.mxu0 %vm20677_vm1, %v26416_v45 }
0x1632   :  { %19865 = vmatmul.mubr.msk.bf16.vlgmr.msra.gmra.mrb[204].mxu1 %vm360_vm2, %v24247_v24  ;;  %14762 = vrot.lane.b32.xlu1 %v26620_v30, %s20686_s20 }
0x1633   :  { %19876 = vmatprep.mubr.msk.bf16.mxu1 %vm20677_vm1, %v26416_v45 }
0x1689   :  { %v24561_v59 = vpop.f32.mrb[144].mxu0 }
0x168a   :  { %v19680_v25 = vpop.f32.mrb[145].mxu0  ;;  %v14118_v63 = vsel %vm360_vm2, %v24561_v59, -inf }
0x168b   :  { %14119 = vmax.xlane.f32.xlu0 %v14118_v63  ;;  %v12565_v27 = vpop.f32.mrb[146].mxu0 }
0x168c   :  { %v19681_v48 = vpop.f32.mrb[147].mxu0 }
0x168d   :  { %v24565_v40 = vpop.f32.mrb[144].mxu1 }
0x168e   :  { %v19686_v0 = vpop.f32.mrb[145].mxu1 }
0x168f   :  { %v12615_v2 = vpop.f32.mrb[146].mxu1 }
0x1690   :  { %v19687_v24 = vpop.f32.mrb[147].mxu1 }
0x1691   :  { %v24567_v31 = vpop.f32.mrb[148].mxu0 }
0x1692   :  { %v19692_v30 = vpop.f32.mrb[149].mxu0  ;;  %v14124_v26 = vsel %vm360_vm2, %v24567_v31, -inf }
0x1693   :  { %14125 = vmax.xlane.f32.xlu0 %v14124_v26  ;;  %v12665_v32 = vpop.f32.mrb[150].mxu0 }
0x1694   :  { %v19693_v12 = vpop.f32.mrb[151].mxu0  ;;  %v24581_v43 = vpop.trf.xlu1 }
0x1695   :  { %v24571_v15 = vpop.f32.mrb[148].mxu1 }
0x1696   :  { %v19698_v55 = vpop.f32.mrb[149].mxu1  ;;  %v14127_v3 = vsel %vm360_vm2, %v24571_v15, -inf }
0x1697   :  { %14128 = vmax.xlane.f32.xlu0 %v14127_v3  ;;  %v12715_v20 = vpop.f32.mrb[150].mxu1 }
0x1698   :  { %v19699_v46 = vpop.f32.mrb[151].mxu1 }
0x1699   :  { %v24575_v54 = vpop.f32.mrb[152].mxu0 }
0x169a   :  { %v19704_v33 = vpop.f32.mrb[153].mxu0  ;;  %v14130_v29 = vsel %vm360_vm2, %v24575_v54, -inf }
0x169b   :  { %14131 = vmax.xlane.f32.xlu0 %v14130_v29  ;;  %v12765_v53 = vpop.f32.mrb[154].mxu0 }
0x169c   :  { %v19705_v5 = vpop.f32.mrb[155].mxu0 }
0x169d   :  { %v24579_v19 = vpop.f32.mrb[152].mxu1 }
0x169e   :  { %v19710_v4 = vpop.f32.mrb[153].mxu1 }
0x169f   :  { %v12815_v44 = vpop.f32.mrb[154].mxu1 }
0x16a0   :  { %v19711_v28 = vpop.f32.mrb[155].mxu1 }
0x16a1   :  { %v24583_v18 = vpop.f32.mrb[156].mxu0 }
0x16a2   :  { %v19716_v23 = vpop.f32.mrb[157].mxu0  ;;  %v14136_v47 = vsel %vm360_vm2, %v24583_v18, -inf }
0x16a3   :  { %14137 = vmax.xlane.f32.xlu0 %v14136_v47  ;;  %v12865_v22 = vpop.f32.mrb[158].mxu0 }
0x16a4   :  { %v19717_v25 = vpop.f32.mrb[159].mxu0  ;;  %v14763_v63 = vpop.permute.xlu1 %14762 }
0x16a5   :  { %v24587_v27 = vpop.f32.mrb[156].mxu1  ;;  %14765 = vxpose.xlu1.c.b16.start.end [1/1] (short) (narrow) %v14763_v63, 16 }
0x16a6   :  { %v19722_v48 = vpop.f32.mrb[157].mxu1 }
0x16a7   :  { %v12915_v0 = vpop.f32.mrb[158].mxu1 }
0x16a8   :  { %v19723_v2 = vpop.f32.mrb[159].mxu1 }
0x16a9   :  { %v24589_v24 = vpop.f32.mrb[160].mxu0  ;;  %14892 = vrot.lane.b32.xlu1 %v26297_v58, %s20686_s20 }
0x16aa   :  { %v19728_v30 = vpop.f32.mrb[161].mxu0 }
0x16ab   :  { %v12965_v26 = vpop.f32.mrb[162].mxu0 }
0x16ac   :  { %v19729_v32 = vpop.f32.mrb[163].mxu0 }
0x16ad   :  { %v24593_v12 = vpop.f32.mrb[160].mxu1 }
0x16ae   :  { %v19734_v55 = vpop.f32.mrb[161].mxu1 }
0x16af   :  { %v13015_v3 = vpop.f32.mrb[162].mxu1 }
0x16b0   :  { %v19735_v20 = vpop.f32.mrb[163].mxu1 }
0x16b1   :  { %v24595_v46 = vpop.f32.mrb[164].mxu0 }
0x16b2   :  { %v19740_v33 = vpop.f32.mrb[165].mxu0 }
0x16b3   :  { %v13065_v29 = vpop.f32.mrb[166].mxu0 }
0x16b4   :  { %v19741_v53 = vpop.f32.mrb[167].mxu0 }
0x16b5   :  { %v24597_v5 = vpop.f32.mrb[164].mxu1 }
0x16b6   :  { %v19746_v4 = vpop.f32.mrb[165].mxu1 }
0x16b7   :  { %v13115_v44 = vpop.f32.mrb[166].mxu1  ;;  %v24611_v4 = vpop.trf.xlu0 }
0x16b8   :  { %v19747_v28 = vpop.f32.mrb[167].mxu1  ;;  %26651 = vst [vmem:[#allocation109_spill] sm:$0xff] %v24611_v4 }
0x16b9   :  { %16062 = vrot.lane.b32.xlu0 %v26578_v8, %s20686_s20  ;;  %v24601_v58 = vpop.f32.mrb[168].mxu0 }
0x16ba   :  { %v19752_v23 = vpop.f32.mrb[169].mxu0  ;;  %v14154_v34 = vsel %vm360_vm2, %v24601_v58, -inf }
0x16bb   :  { %v13165_v47 = vpop.f32.mrb[170].mxu0 }
0x16bc   :  { %v19753_v22 = vpop.f32.mrb[171].mxu0 }
0x16bd   :  { %v24603_v25 = vpop.f32.mrb[168].mxu1 }
0x16be   :  { %v19758_v63 = vpop.f32.mrb[169].mxu1 }
0x16bf   :  { %v13215_v48 = vpop.f32.mrb[170].mxu1 }
0x16c0   :  { %v19759_v0 = vpop.f32.mrb[171].mxu1  ;;  %v24617_v48 = vpop.trf.xlu0 }
0x16c1   :  { %v24605_v2 = vpop.f32.mrb[172].mxu0  ;;  %26652 = vst [vmem:[#allocation113_spill] sm:$0xff] %v24617_v48 }
0x16c2   :  { %v19764_v30 = vpop.f32.mrb[173].mxu0  ;;  %v14160_v41 = vsel %vm360_vm2, %v24605_v2, -inf }
0x16c3   :  { %v13265_v26 = vpop.f32.mrb[174].mxu0 }
0x16c4   :  { %v19765_v32 = vpop.f32.mrb[175].mxu0 }
0x16c5   :  { %v24607_v55 = vpop.f32.mrb[172].mxu1 }
0x16c6   :  { %v19770_v3 = vpop.f32.mrb[173].mxu1 }
0x16c7   :  { %v13315_v20 = vpop.f32.mrb[174].mxu1 }
0x16c8   :  { %v19771_v8 = vpop.f32.mrb[175].mxu1 }
0x16c9   :  { %v24609_v33 = vpop.f32.mrb[176].mxu0  ;;  %v14142_v8 = vsel %vm360_vm2, %v24589_v24, -inf }
0x16ca   :  { %v19776_v29 = vpop.f32.mrb[177].mxu0  ;;  %v14166_v11 = vsel %vm360_vm2, %v24609_v33, -inf }
0x16cb   :  { %v13365_v53 = vpop.f32.mrb[178].mxu0  ;;  %v24623_v29 = vpop.trf.xlu0 }
0x16cc   :  { %v19777_v44 = vpop.f32.mrb[179].mxu0  ;;  %26653 = vst [vmem:[#allocation117_spill] sm:$0xff] %v24623_v29 }
0x16cd   :  { %v24613_v28 = vpop.f32.mrb[176].mxu1 }
0x16ce   :  { %v19782_v23 = vpop.f32.mrb[177].mxu1 }
0x16cf   :  { %v13415_v47 = vpop.f32.mrb[178].mxu1 }
0x16d0   :  { %v19783_v22 = vpop.f32.mrb[179].mxu1 }
0x16d1   :  { %v24615_v63 = vpop.f32.mrb[180].mxu0  ;;  %v14148_v22 = vsel %vm360_vm2, %v24595_v46, -inf }
0x16d2   :  { %v19788_v0 = vpop.f32.mrb[181].mxu0  ;;  %v14172_v16 = vsel %vm360_vm2, %v24615_v63, -inf }
0x16d3   :  { %v13465_v30 = vpop.f32.mrb[182].mxu0 }
0x16d4   :  { %v19789_v26 = vpop.f32.mrb[183].mxu0 }
0x16d5   :  { %v24619_v32 = vpop.f32.mrb[180].mxu1  ;;  %v24631_v26 = vpop.trf.xlu0 }
0x16d6   :  { %v19794_v3 = vpop.f32.mrb[181].mxu1  ;;  %26654 = vst [vmem:[#allocation121_spill] sm:$0xff] %v24631_v26 }
0x16d7   :  { %v13515_v20 = vpop.f32.mrb[182].mxu1 }
0x16d8   :  { %14143 = vmax.xlane.f32.xlu0 %v14142_v8  ;;  %v19795_v53 = vpop.f32.mrb[183].mxu1 }
0x16d9   :  { %v24625_v44 = vpop.f32.mrb[184].mxu0 }
0x16da   :  { %v19800_v23 = vpop.f32.mrb[185].mxu0  ;;  %v14178_v39 = vsel %vm360_vm2, %v24625_v44, -inf }
0x16db   :  { %v13565_v47 = vpop.f32.mrb[186].mxu0 }
0x16dc   :  { %14149 = vmax.xlane.f32.xlu0 %v14148_v22  ;;  %v19801_v0 = vpop.f32.mrb[187].mxu0  ;;  %v24639_v22 = vpop.trf.xlu0 }
0x16dd   :  { %v24629_v30 = vpop.f32.mrb[184].mxu1  ;;  %26655 = vst [vmem:[#allocation126_spill] sm:$0xff] %v24639_v22 }
0x16de   :  { %v19806_v3 = vpop.f32.mrb[185].mxu1 }
0x16df   :  { %v13615_v20 = vpop.f32.mrb[186].mxu1 }
0x16e0   :  { %14155 = vmax.xlane.f32.xlu0 %v14154_v34  ;;  %v19807_v8 = vpop.f32.mrb[187].mxu1 }
0x16e1   :  { %v24635_v53 = vpop.f32.mrb[188].mxu0 }
0x16e2   :  { %v19812_v23 = vpop.f32.mrb[189].mxu0  ;;  %v14184_v50 = vsel %vm360_vm2, %v24635_v53, -inf }
0x16e3   :  { %v13665_v47 = vpop.f32.mrb[190].mxu0  ;;  %v24647_v23 = vpop.trf.xlu0 }
0x16e4   :  { %14161 = vmax.xlane.f32.xlu0 %v14160_v41  ;;  %v19813_v0 = vpop.f32.mrb[191].mxu0  ;;  %26656 = vst [vmem:[#allocation11_spill] sm:$0xff] %v24647_v23 }
0x16e5   :  { %v24641_v51 = vpop.f32.mrb[188].mxu1 }
0x16e6   :  { %v19818_v3 = vpop.f32.mrb[189].mxu1 }
0x16e7   :  { %v13715_v20 = vpop.f32.mrb[190].mxu1 }
0x16e8   :  { %14167 = vmax.xlane.f32.xlu0 %v14166_v11  ;;  %v19819_v34 = vpop.f32.mrb[191].mxu1  ;;  %v24655_v11 = vpop.trf.xlu0 }
0x16e9   :  { %v24645_v8 = vpop.f32.mrb[192].mxu0  ;;  %26657 = vst [vmem:[#allocation19_spill] sm:$0xff] %v24655_v11 }
0x16ea   :  { %v19824_v47 = vpop.f32.mrb[193].mxu0  ;;  %v14190_v52 = vsel %vm360_vm2, %v24645_v8, -inf }
0x16eb   :  { %v13765_v62 = vpop.f32.mrb[194].mxu0 }
0x16ec   :  { %14173 = vmax.xlane.f32.xlu0 %v14172_v16  ;;  %v19825_v41 = vpop.f32.mrb[195].mxu0 }
0x16ed   :  { %v24651_v0 = vpop.f32.mrb[192].mxu1 }
0x16ee   :  { %v19830_v3 = vpop.f32.mrb[193].mxu1 }
0x16ef   :  { %v13815_v20 = vpop.f32.mrb[194].mxu1  ;;  %v24663_v3 = vpop.trf.xlu0 }
0x16f0   :  { %14179 = vmax.xlane.f32.xlu0 %v14178_v39  ;;  %v19831_v34 = vpop.f32.mrb[195].mxu1  ;;  %26658 = vst [vmem:[#allocation106_spill] sm:$0xff] %v24663_v3 }
0x16f1   :  { %v24657_v60 = vpop.f32.mrb[196].mxu0 }
0x16f2   :  { %v19836_v47 = vpop.f32.mrb[197].mxu0  ;;  %v14196_v13 = vsel %vm360_vm2, %v24657_v60, -inf }
0x16f3   :  { %v13865_v62 = vpop.f32.mrb[198].mxu0 }
0x16f4   :  { %14185 = vmax.xlane.f32.xlu0 %v14184_v50  ;;  %v19837_v16 = vpop.f32.mrb[199].mxu0  ;;  %v24671_v50 = vpop.trf.xlu0 }
0x16f5   :  { %v24661_v41 = vpop.f32.mrb[196].mxu1  ;;  %26659 = vst [vmem:[#allocation108_spill] sm:$0xff] %v24671_v50 }
0x16f6   :  { %v19842_v20 = vpop.f32.mrb[197].mxu1 }
0x16f7   :  { %v13915_v37 = vpop.f32.mrb[198].mxu1 }
0x16f8   :  { %14191 = vmax.xlane.f32.xlu0 %v14190_v52  ;;  %v19843_v39 = vpop.f32.mrb[199].mxu1 }
0x16f9   :  { %v24667_v34 = vpop.f32.mrb[200].mxu0 }
0x16fa   :  { %v19848_v47 = vpop.f32.mrb[201].mxu0  ;;  %v14202_v3 = vsel %vm360_vm2, %v24667_v34, -inf }
0x16fb   :  { %v13965_v62 = vpop.f32.mrb[202].mxu0  ;;  %v24679_v47 = vpop.trf.xlu0 }
0x16fc   :  { %14197 = vmax.xlane.f32.xlu0 %v14196_v13  ;;  %v19849_v16 = vpop.f32.mrb[203].mxu0  ;;  %26660 = vst [vmem:[#allocation112_spill] sm:$0xff] %v24679_v47 }
0x16fd   :  { %v24673_v56 = vpop.f32.mrb[200].mxu1 }
0x16fe   :  { %v19854_v20 = vpop.f32.mrb[201].mxu1 }
0x16ff   :  { %v14015_v37 = vpop.f32.mrb[202].mxu1  ;;  %v24685_v23 = vpop.trf.xlu0 }
0x1700   :  { %14203 = vmax.xlane.f32.xlu0 %v14202_v3  ;;  %v19855_v52 = vpop.f32.mrb[203].mxu1  ;;  %26661 = vst [vmem:[#allocation114_spill] sm:$0xff] %v24685_v23 }
0x1701   :  { %v24677_v39 = vpop.f32.mrb[204].mxu0 }
0x1702   :  { %v19860_v62 = vpop.f32.mrb[205].mxu0  ;;  %v14208_v11 = vsel %vm360_vm2, %v24677_v39, -inf }
0x1703   :  { %v14065_v50 = vpop.f32.mrb[206].mxu0  ;;  %v24687_v3 = vpop.permute.xlu0 %15932 }
0x1704   :  { %14209 = vmax.xlane.f32.xlu0 %v14208_v11  ;;  %v19861_v13 = vpop.f32.mrb[207].mxu0  ;;  %26662 = vst [vmem:[#allocation118_spill] sm:$0xff] %v24687_v3 }
0x1705   :  { %v24683_v16 = vpop.f32.mrb[204].mxu1 }
0x1706   :  { %v19866_v20 = vpop.f32.mrb[205].mxu1 }
0x1707   :  { %v14115_v37 = vpop.f32.mrb[206].mxu1  ;;  %v24689_v52 = vpop.permute.xlu0 %15997 }
0x1708   :  { %v19867_v22 = vpop.f32.mrb[207].mxu1 }
0x170b   :  { %v24691_v26 = vpop.trf.xlu1 }
0x1718   :  { %v14120_v62 = vpop.xlane.xlu0 %14119 }
0x1719   :  { %v14214_v47 = vsub.f32 %v24561_v59, %v14120_v62 }
0x171b   :  { %v14246_v29 = vmul.f32 1.442695, %v14214_v47  ;;  %v14893_v50 = vpop.permute.xlu1 %14892 }
0x171c   :  { %14895 = vxpose.xlu1.c.b16.start.end [1/1] (short) (narrow) %v14893_v50, 16 }
0x171d   :  { %20470 = vpow2.f32 %v14246_v29 }
0x1720   :  { %v14126_v11 = vpop.xlane.xlu0 %14125  ;;  %15022 = vrot.lane.b32.xlu1 %v26298_v1, %s20686_s20 }
0x1721   :  { %v14216_v13 = vsub.f32 %v24567_v31, %v14126_v11 }
0x1723   :  { %v14250_v22 = vmul.f32 1.442695, %v14216_v13 }
0x1724   :  { %v24697_v20 = vpop.xlane.xlu0 %14128 }
0x1725   :  { %20472 = vpow2.f32 %v14250_v22 }
0x1727   :  { %v24699_v37 = vpop.eup %20470 }
0x1728   :  { %v14132_v23 = vpop.xlane.xlu0 %14131  ;;  %v14310_v59 = vsel %vm360_vm2, %v24699_v37, 0.0 }
0x1729   :  { %v14218_v47 = vsub.f32 %v24575_v54, %v14132_v23  ;;  %14311 = vadd.xlane.f32.xlu0 %v14310_v59 }
0x172b   :  { %v14254_v29 = vmul.f32 1.442695, %v14218_v47 }
0x172d   :  { %20474 = vpow2.f32 %v14254_v29 }
0x172f   :  { %v24704_v62 = vpop.eup %20472 }
0x1730   :  { %v14138_v1 = vpop.xlane.xlu0 %14137  ;;  %v14316_v31 = vsel %vm360_vm2, %v24704_v62, 0.0 }
0x1731   :  { %v14220_v50 = vsub.f32 %v24583_v18, %v14138_v1  ;;  %14317 = vadd.xlane.f32.xlu0 %v14316_v31 }
0x1733   :  { %v14258_v11 = vmul.f32 1.442695, %v14220_v50 }
0x1734   :  { %v24717_v59 = vpop.permute.xlu0 %16062 }
0x1735   :  { %20476 = vpow2.f32 %v14258_v11 }
0x1737   :  { %v24709_v13 = vpop.eup %20474 }
0x1738   :  { %v14322_v22 = vsel %vm360_vm2, %v24709_v13, 0.0 }
0x1739   :  { %14323 = vadd.xlane.f32.xlu0 %v14322_v22 }
0x173f   :  { %v24713_v54 = vpop.eup %20476 }
0x1740   :  { %v14328_v23 = vsel %vm360_vm2, %v24713_v54, 0.0 }
0x1741   :  { %14329 = vadd.xlane.f32.xlu0 %v14328_v23 }
0x1765   :  { %v14144_v47 = vpop.xlane.xlu0 %14143 }
0x1766   :  { %v14222_v18 = vsub.f32 %v24589_v24, %v14144_v47 }
0x1768   :  { %v14262_v29 = vmul.f32 1.442695, %v14222_v18 }
0x1769   :  { %v14150_v1 = vpop.xlane.xlu0 %14149 }
0x176a   :  { %20478 = vpow2.f32 %v14262_v29  ;;  %v14224_v31 = vsub.f32 %v24595_v46, %v14150_v1 }
0x176c   :  { %v14266_v50 = vmul.f32 1.442695, %v14224_v31 }
0x176d   :  { %v14156_v11 = vpop.xlane.xlu0 %14155 }
0x176e   :  { %20480 = vpow2.f32 %v14266_v50  ;;  %v14226_v22 = vsub.f32 %v24601_v58, %v14156_v11 }
0x1770   :  { %v14270_v3 = vmul.f32 1.442695, %v14226_v22 }
0x1771   :  { %v14162_v48 = vpop.xlane.xlu0 %14161 }
0x1772   :  { %20482 = vpow2.f32 %v14270_v3  ;;  %v14228_v23 = vsub.f32 %v24605_v2, %v14162_v48 }
0x1774   :  { %v24723_v4 = vpop.eup %20478  ;;  %v14274_v35 = vmul.f32 1.442695, %v14228_v23 }
0x1775   :  { %v14168_v17 = vpop.xlane.xlu0 %14167  ;;  %v14334_v24 = vsel %vm360_vm2, %v24723_v4, 0.0 }
0x1776   :  { %20484 = vpow2.f32 %v14274_v35  ;;  %v14230_v46 = vsub.f32 %v24609_v33, %v14168_v17  ;;  %14335 = vadd.xlane.f32.xlu0 %v14334_v24 }
0x1778   :  { %v24728_v47 = vpop.eup %20480  ;;  %v14278_v18 = vmul.f32 1.442695, %v14230_v46 }
0x1779   :  { %v14174_v58 = vpop.xlane.xlu0 %14173  ;;  %v14340_v3 = vsel %vm360_vm2, %v24728_v47, 0.0 }
0x177a   :  { %20486 = vpow2.f32 %v14278_v18  ;;  %v14232_v2 = vsub.f32 %v24615_v63, %v14174_v58  ;;  %14341 = vadd.xlane.f32.xlu0 %v14340_v3 }
0x177c   :  { %v24733_v48 = vpop.eup %20482  ;;  %v14282_v29 = vmul.f32 1.442695, %v14232_v2 }
0x177d   :  { %v14180_v1 = vpop.xlane.xlu0 %14179  ;;  %v14346_v35 = vsel %vm360_vm2, %v24733_v48, 0.0 }
0x177e   :  { %20488 = vpow2.f32 %v14282_v29  ;;  %v14234_v17 = vsub.f32 %v24625_v44, %v14180_v1  ;;  %14347 = vadd.xlane.f32.xlu0 %v14346_v35 }
0x1780   :  { %v24738_v33 = vpop.eup %20484  ;;  %v14286_v31 = vmul.f32 1.442695, %v14234_v17 }
0x1781   :  { %v14352_v50 = vsel %vm360_vm2, %v24738_v33, 0.0  ;;  %v14186_v58 = vpop.xlane.xlu0 %14185 }
0x1782   :  { %20490 = vpow2.f32 %v14286_v31  ;;  %14353 = vadd.xlane.f32.xlu0 %v14352_v50  ;;  %v24752_v24 = vpop.trf.xlu1  ;;  %v14236_v1 = vsub.f32 %v24635_v53, %v14186_v58 }
0x1784   :  { %v24742_v63 = vpop.eup %20486  ;;  %v14290_v35 = vmul.f32 1.442695, %v14236_v1 }
0x1785   :  { %v14358_v11 = vsel %vm360_vm2, %v24742_v63, 0.0  ;;  %v14192_v3 = vpop.xlane.xlu0 %14191 }
0x1786   :  { %14359 = vadd.xlane.f32.xlu0 %v14358_v11  ;;  %v14238_v17 = vsub.f32 %v24645_v8, %v14192_v3  ;;  %20492 = vpow2.f32 %v14290_v35 }
0x1788   :  { %v24746_v22 = vpop.eup %20488  ;;  %v14294_v50 = vmul.f32 1.442695, %v14238_v17 }
0x1789   :  { %v14364_v44 = vsel %vm360_vm2, %v24746_v22, 0.0  ;;  %v14198_v2 = vpop.xlane.xlu0 %14197 }
0x178a   :  { %14365 = vadd.xlane.f32.xlu0 %v14364_v44  ;;  %v14240_v11 = vsub.f32 %v24657_v60, %v14198_v2 }
0x178c   :  { %v24750_v23 = vpop.eup %20490 }
0x178d   :  { %v14370_v46 = vsel %vm360_vm2, %v24750_v23, 0.0  ;;  %v14204_v29 = vpop.xlane.xlu0 %14203 }
0x178e   :  { %14371 = vadd.xlane.f32.xlu0 %v14370_v46  ;;  %v14242_v46 = vsub.f32 %v24667_v34, %v14204_v29 }
0x1790   :  { %v24765_v53 = vpop.eup %20492 }
0x1791   :  { %v14210_v31 = vpop.xlane.xlu0 %14209  ;;  %v14376_v60 = vsel %vm360_vm2, %v24765_v53, 0.0 }
0x1792   :  { %v15023_v18 = vpop.permute.xlu1 %15022 }
0x1793   :  { %15025 = vxpose.xlu1.c.b16.start.end [1/1] (short) (narrow) %v15023_v18, 16  ;;  %v14244_v18 = vsub.f32 %v24677_v39, %v14210_v31 }
0x1795   :  { %v14306_v58 = vmul.f32 1.442695, %v14244_v18 }
0x1797   :  { %15152 = vrot.lane.b32.xlu1 %v26431_v7, %s20686_s20  ;;  %v14298_v7 = vmul.f32 1.442695, %v14240_v11 }
0x17a4   :  { %16127 = vrot.lane.b32.xlu0 %v26581_v36, %s20686_s20  ;;  %v14302_v36 = vmul.f32 1.442695, %v14242_v46 }
0x17b6   :  { %v14312_v44 = vpop.xlane.xlu0 %14311 }
0x17b7   :  { %20494 = vrcp.f32 %v14312_v44 }
0x17b8   :  { %20496 = vpow2.f32 %v14294_v50 }
0x17b9   :  { %20498 = vpow2.f32 %v14298_v7 }
0x17be   :  { %v14318_v6 = vpop.xlane.xlu0 %14317 }
0x17bf   :  { %20500 = vrcp.f32 %v14318_v6 }
0x17c0   :  { %20502 = vpow2.f32 %v14302_v36 }
0x17c1   :  { %v20495_v8 = vpop.eup %20494  ;;  %20504 = vpow2.f32 %v14306_v58 }
0x17c2   :  { %v14438_v3 = vmul.f32 %v20495_v8, %v24699_v37  ;;  %v24770_v2 = vpop.eup %20496 }
0x17c3   :  { %14377 = vadd.xlane.f32.xlu0 %v14376_v60  ;;  %v14382_v39 = vsel %vm360_vm2, %v24770_v2, 0.0  ;;  %v24775_v6 = vpop.eup %20498 }
0x17c4   :  { %v14470_v34 = vpack.c.bf16 %v14438_v3, %v14438_v3  ;;  %v14388_v37 = vsel %vm360_vm2, %v24775_v6, 0.0 }
0x17c6   :  { %v14324_v29 = vpop.xlane.xlu0 %14323  ;;  %v14525_v1 = vsel %vm360_vm2, %v14470_v34, 0 }
0x17c7   :  { %20506 = vrcp.f32 %v14324_v29  ;;  %14383 = vadd.xlane.f32.xlu0 %v14382_v39  ;;  %19869 = vmatpush3.bf16.xpose.msra.mxu0 %v14525_v1 }
0x17c8   :  { %19880 = vmatprep.subr.bf16.mxu0 %v26416_v45 }
0x17c9   :  { %v20501_v35 = vpop.eup %20500 }
0x17ca   :  { %v14440_v17 = vmul.f32 %v20501_v35, %v24704_v62  ;;  %v24781_v31 = vpop.eup %20502 }
0x17cb   :  { %14389 = vadd.xlane.f32.xlu0 %v14388_v37  ;;  %v14394_v44 = vsel %vm360_vm2, %v24781_v31, 0.0  ;;  %v24788_v46 = vpop.eup %20504 }
0x17cc   :  { %v14472_v50 = vpack.c.bf16 %v14440_v17, %v14440_v17 }
0x17ce   :  { %19871 = vmatmul.mubr.msk.bf16.vlgmr.msra.gmra.mrb[208].mxu0 %vm360_vm2, %v24349_v61  ;;  %v14330_v11 = vpop.xlane.xlu0 %14329  ;;  %v14655_v7 = vsel %vm360_vm2, %v14472_v50, 0  ;;  %v14400_v61 = vsel %vm360_vm2, %v24788_v46, 0.0 }
0x17cf   :  { %20508 = vrcp.f32 %v14330_v11  ;;  %14395 = vadd.xlane.f32.xlu0 %v14394_v44  ;;  %19881 = vmatpush3.bf16.xpose.msra.mxu0 %v14655_v7 }
0x17d0   :  { %19882 = vmatprep.mubr.msk.bf16.mxu0 %vm20677_vm1, %v26416_v45  ;;  %19892 = vmatprep.subr.bf16.mxu0 %v26416_v45 }
0x17d1   :  { %v20507_v62 = vpop.eup %20506 }
0x17d2   :  { %v14442_v36 = vmul.f32 %v20507_v62, %v24709_v13 }
0x17d3   :  { %14401 = vadd.xlane.f32.xlu0 %v14400_v61 }
0x17d4   :  { %v14474_v18 = vpack.c.bf16 %v14442_v36, %v14442_v36 }
0x17d6   :  { %19883 = vmatmul.mubr.msk.bf16.vlgmr.msra.gmra.mrb[212].mxu0 %vm360_vm2, %v24581_v43  ;;  %v14785_v8 = vsel %vm360_vm2, %v14474_v18, 0 }
0x17d7   :  { %19893 = vmatpush3.bf16.xpose.msra.mxu0 %v14785_v8  ;;  %19894 = vmatprep.mubr.msk.bf16.mxu0 %vm20677_vm1, %v26416_v45 }
0x17d8   :  { %19904 = vmatprep.subr.bf16.mxu0 %v26416_v45 }
0x17d9   :  { %v20509_v58 = vpop.eup %20508 }
0x17da   :  { %v14444_v60 = vmul.f32 %v20509_v58, %v24713_v54 }
0x17dc   :  { %v14476_v3 = vpack.c.bf16 %v14444_v60, %v14444_v60 }
0x17de   :  { %19895 = vmatmul.mubr.msk.bf16.vlgmr.msra.gmra.mrb[216].mxu0 %vm360_vm2, %v24691_v26  ;;  %v14915_v13 = vsel %vm360_vm2, %v14476_v3, 0 }
0x17df   :  { %19905 = vmatpush3.bf16.xpose.msra.mxu0 %v14915_v13  ;;  %19906 = vmatprep.mubr.msk.bf16.mxu0 %vm20677_vm1, %v26416_v45 }
0x17e0   :  { %19916 = vmatprep.subr.bf16.mxu0 %v26416_v45 }
0x17e6   :  { %19907 = vmatmul.mubr.msk.bf16.vlgmr.msra.gmra.mrb[220].mxu0 %vm360_vm2, %v24752_v24 }
0x17e7   :  { %19918 = vmatprep.mubr.msk.bf16.mxu0 %vm20677_vm1, %v26416_v45 }
0x17f9   :  { %v15033_v54 = vpop.trf.xlu1 }
0x1800   :  { %16000 = vxpose.xlu0.c.b16.start.end [1/1] (short) (narrow) %v24689_v52, 16 }
0x1803   :  { %v14336_v43 = vpop.xlane.xlu0 %14335 }
0x1804   :  { %20510 = vrcp.f32 %v14336_v43  ;;  %16065 = vxpose.xlu0.c.b16.start.end [1/1] (short) (narrow) %v24717_v59, 16 }
0x1807   :  { %v14342_v26 = vpop.xlane.xlu0 %14341 }
0x1808   :  { %20512 = vrcp.f32 %v14342_v26 }
0x1809   :  { %v15153_v34 = vpop.permute.xlu1 %15152 }
0x180a   :  { %15155 = vxpose.xlu1.c.b16.start.end [1/1] (short) (narrow) %v15153_v34, 16 }
0x180b   :  { %v14348_v29 = vpop.xlane.xlu0 %14347 }
0x180c   :  { %20514 = vrcp.f32 %v14348_v29 }
0x180e   :  { %v20511_v39 = vpop.eup %20510  ;;  %15282 = vrot.lane.b32.xlu1 %v26557_v14, %s20686_s20 }
0x180f   :  { %v14354_v24 = vpop.xlane.xlu0 %14353  ;;  %v14446_v1 = vmul.f32 %v20511_v39, %v24723_v4 }
0x1810   :  { %20516 = vrcp.f32 %v14354_v24 }
0x1811   :  { %v14478_v35 = vpack.c.bf16 %v14446_v1, %v14446_v1 }
0x1812   :  { %v20513_v37 = vpop.eup %20512 }
0x1813   :  { %v24818_v52 = vpop.xlane.xlu0 %14359  ;;  %v15045_v17 = vsel %vm360_vm2, %v14478_v35, 0  ;;  %v14448_v59 = vmul.f32 %v20513_v37, %v24728_v47 }
0x1814   :  { %19917 = vmatpush3.bf16.xpose.msra.mxu0 %v15045_v17  ;;  %20518 = vrcp.f32 %v24818_v52 }
0x1815   :  { %19928 = vmatprep.subr.bf16.mxu0 %v26416_v45  ;;  %v14480_v11 = vpack.c.bf16 %v14448_v59, %v14448_v59 }
0x1816   :  { %v20515_v47 = vpop.eup %20514 }
0x1817   :  { %v24823_v50 = vpop.xlane.xlu0 %14365  ;;  %v15175_v14 = vsel %vm360_vm2, %v14480_v11, 0  ;;  %v14450_v7 = vmul.f32 %v20515_v47, %v24733_v48 }
0x1818   :  { %20520 = vrcp.f32 %v24823_v50 }
0x1819   :  { %v14482_v62 = vpack.c.bf16 %v14450_v7, %v14450_v7 }
0x181a   :  { %v20517_v17 = vpop.eup %20516 }
0x181b   :  { %v24825_v44 = vpop.xlane.xlu0 %14371  ;;  %19919 = vmatmul.mubr.msk.bf16.vlgmr.msra.gmra.mrb[224].mxu0 %vm360_vm2, %v15033_v54  ;;  %v15305_v36 = vsel %vm360_vm2, %v14482_v62, 0  ;;  %v14452_v59 = vmul.f32 %v20517_v17, %v24738_v33 }
0x181c   :  { %19929 = vmatpush3.bf16.xpose.msra.mxu0 %v15175_v14  ;;  %19930 = vmatprep.mubr.msk.bf16.mxu0 %vm20677_vm1, %v26416_v45  ;;  %20522 = vrcp.f32 %v24825_v44  ;;  %v14121_v44 = vsel %vm360_vm2, %v24565_v40, -inf }
0x181d   :  { %19940 = vmatprep.subr.bf16.mxu0 %v26416_v45  ;;  %v14484_v11 = vpack.c.bf16 %v14452_v59, %v14452_v59 }
0x181f   :  { %v16128_v4 = vpop.permute.xlu0 %16127 }
0x1820   :  { %16130 = vxpose.xlu0.c.b16.start.end [1/1] (short) (narrow) %v16128_v4, 16  ;;  %v15435_v4 = vsel %vm360_vm2, %v14484_v11, 0 }
0x1870   :  { %v15163_v61 = vpop.trf.xlu1 }
0x1871   :  { %19931 = vmatmul.mubr.msk.bf16.vlgmr.msra.gmra.mrb[228].mxu0 %vm360_vm2, %v15163_v61 }
0x1872   :  { %19941 = vmatpush3.bf16.xpose.msra.mxu0 %v15305_v36  ;;  %19942 = vmatprep.mubr.msk.bf16.mxu0 %vm20677_vm1, %v26416_v45 }
0x1873   :  { %19952 = vmatprep.subr.bf16.mxu0 %v26416_v45 }
0x1880   :  { %v15283_v18 = vpop.permute.xlu1 %15282 }
0x1881   :  { %15285 = vxpose.xlu1.c.b16.start.end [1/1] (short) (narrow) %v15283_v18, 16 }
0x1885   :  { %15412 = vrot.lane.b32.xlu1 %v26560_v57, %s20686_s20 }
0x18a1   :  { %v24840_v8 = vpop.f32.mrb[208].mxu0 }
0x18a2   :  { %v19872_v48 = vpop.f32.mrb[209].mxu0 }
0x18a3   :  { %v14564_v58 = vpop.f32.mrb[210].mxu0 }
0x18a4   :  { %v19873_v60 = vpop.f32.mrb[211].mxu0  ;;  %v20519_v58 = vpop.eup %20518 }
0x18a5   :  { %v14454_v60 = vmul.f32 %v20519_v58, %v24742_v63  ;;  %v14163_v58 = vsel %vm360_vm2, %v24607_v55, -inf }
0x18a9   :  { %v24842_v3 = vpop.f32.mrb[212].mxu0 }
0x18aa   :  { %v19884_v13 = vpop.f32.mrb[213].mxu0 }
0x18ab   :  { %v14694_v43 = vpop.f32.mrb[214].mxu0  ;;  %v14486_v13 = vpack.c.bf16 %v14454_v60, %v14454_v60  ;;  %v14169_v60 = vsel %vm360_vm2, %v24613_v28, -inf }
0x18ac   :  { %v19885_v54 = vpop.f32.mrb[215].mxu0 }
0x18ad   :  { %v15565_v54 = vsel %vm360_vm2, %v14486_v13, 0  ;;  %v14175_v13 = vsel %vm360_vm2, %v24619_v32, -inf }
0x18b1   :  { %v24844_v26 = vpop.f32.mrb[216].mxu0 }
0x18b2   :  { %v19896_v34 = vpop.f32.mrb[217].mxu0 }
0x18b3   :  { %v14824_v29 = vpop.f32.mrb[218].mxu0 }
0x18b4   :  { %v19897_v39 = vpop.f32.mrb[219].mxu0 }
0x18b5   :  { %v20521_v39 = vpop.eup %20520 }
0x18b9   :  { %v24846_v1 = vpop.f32.mrb[220].mxu0 }
0x18ba   :  { %v19908_v35 = vpop.f32.mrb[221].mxu0 }
0x18bb   :  { %v14954_v37 = vpop.f32.mrb[222].mxu0  ;;  %v14456_v35 = vmul.f32 %v20521_v39, %v24746_v22 }
0x18bc   :  { %v19909_v57 = vpop.f32.mrb[223].mxu0 }
0x18bd   :  { %v14488_v37 = vpack.c.bf16 %v14456_v35, %v14456_v35 }
0x18bf   :  { %v15695_v17 = vsel %vm360_vm2, %v14488_v37, 0 }
0x18e7   :  { %v15293_v14 = vpop.trf.xlu1 }
0x18e8   :  { %19943 = vmatmul.mubr.msk.bf16.vlgmr.msra.gmra.mrb[232].mxu0 %vm360_vm2, %v15293_v14  ;;  %v20523_v14 = vpop.eup %20522 }
0x18e9   :  { %19953 = vmatpush3.bf16.xpose.msra.mxu0 %v15435_v4  ;;  %19954 = vmatprep.mubr.msk.bf16.mxu0 %vm20677_vm1, %v26416_v45  ;;  %v14458_v4 = vmul.f32 %v20523_v14, %v24750_v23  ;;  %v14133_v23 = vsel %vm360_vm2, %v24579_v19, -inf }
0x18ea   :  { %19964 = vmatprep.subr.bf16.mxu0 %v26416_v45 }
0x18ee   :  { %v24854_v47 = vpop.f32.mrb[224].mxu0 }
0x18ef   :  { %v19920_v7 = vpop.f32.mrb[225].mxu0 }
0x18f0   :  { %v15084_v62 = vpop.f32.mrb[226].mxu0  ;;  %v14490_v7 = vpack.c.bf16 %v14458_v4, %v14458_v4  ;;  %v14217_v4 = vsub.f32 %v24571_v15, %v24697_v20 }
0x18f1   :  { %v19921_v24 = vpop.f32.mrb[227].mxu0 }
0x18f2   :  { %v15825_v24 = vsel %vm360_vm2, %v14490_v7, 0 }
0x18f7   :  { %v15413_v61 = vpop.permute.xlu1 %15412 }
0x18f8   :  { %15415 = vxpose.xlu1.c.b16.start.end [1/1] (short) (narrow) %v15413_v61, 16  ;;  %v14139_v61 = vsel %vm360_vm2, %v24587_v27, -inf }
0x18fc   :  { %15542 = vrot.lane.b32.xlu1 %v26563_v9, %s20686_s20 }
0x1944   :  { %v24858_v33 = vpop.f32.mrb[228].mxu0 }
0x1945   :  { %v19932_v36 = vpop.f32.mrb[229].mxu0 }
0x1946   :  { %v15214_v18 = vpop.f32.mrb[230].mxu0  ;;  %v14145_v36 = vsel %vm360_vm2, %v24593_v12, -inf }
0x1947   :  { %v19933_v48 = vpop.f32.mrb[231].mxu0  ;;  %v14151_v18 = vsel %vm360_vm2, %v24597_v5, -inf }
0x1948   :  { %v14157_v48 = vsel %vm360_vm2, %v24603_v25, -inf }
0x195e   :  { %v15423_v43 = vpop.trf.xlu1 }
0x195f   :  { %19955 = vmatmul.mubr.msk.bf16.vlgmr.msra.gmra.mrb[236].mxu0 %vm360_vm2, %v15423_v43  ;;  %v14181_v43 = vsel %vm360_vm2, %v24629_v30, -inf }
0x1960   :  { %19965 = vmatpush3.bf16.xpose.msra.mxu0 %v15565_v54  ;;  %19966 = vmatprep.mubr.msk.bf16.mxu0 %vm20677_vm1, %v26416_v45  ;;  %v14187_v54 = vsel %vm360_vm2, %v24641_v51, -inf }
0x1961   :  { %19976 = vmatprep.subr.bf16.mxu0 %v26416_v45 }
0x196e   :  { %v15543_v9 = vpop.permute.xlu1 %15542 }
0x196f   :  { %15545 = vxpose.xlu1.c.b16.start.end [1/1] (short) (narrow) %v15543_v9, 16  ;;  %v14193_v9 = vsel %vm360_vm2, %v24651_v0, -inf }
0x1973   :  { %15672 = vrot.lane.b32.xlu1 %v26566_v42, %s20686_s20 }
0x19bb   :  { %v24869_v52 = vpop.f32.mrb[232].mxu0 }
0x19bc   :  { %v19944_v63 = vpop.f32.mrb[233].mxu0 }
0x19bd   :  { %v15344_v34 = vpop.f32.mrb[234].mxu0  ;;  %v14199_v63 = vsel %vm360_vm2, %v24661_v41, -inf }
0x19be   :  { %v19945_v29 = vpop.f32.mrb[235].mxu0  ;;  %v14205_v34 = vsel %vm360_vm2, %v24673_v56, -inf }
0x19bf   :  { %v14211_v29 = vsel %vm360_vm2, %v24683_v16, -inf }
0x19d5   :  { %v15553_v57 = vpop.trf.xlu1 }
0x19d6   :  { %19967 = vmatmul.mubr.msk.bf16.vlgmr.msra.gmra.mrb[240].mxu0 %vm360_vm2, %v15553_v57  ;;  %v14378_v57 = vpop.xlane.xlu0 %14377 }
0x19d7   :  { %19977 = vmatpush3.bf16.xpose.msra.mxu0 %v15695_v17  ;;  %19978 = vmatprep.mubr.msk.bf16.mxu0 %vm20677_vm1, %v26416_v45  ;;  %20524 = vrcp.f32 %v14378_v57 }
0x19d8   :  { %19988 = vmatprep.subr.bf16.mxu0 %v26416_v45 }
0x19e5   :  { %v15673_v42 = vpop.permute.xlu1 %15672 }
0x19e6   :  { %15675 = vxpose.xlu1.c.b16.start.end [1/1] (short) (narrow) %v15673_v42, 16  ;;  %v20525_v42 = vpop.eup %20524 }
0x19ea   :  { %15802 = vrot.lane.b32.xlu1 %v26570_v10, %s20686_s20 }
0x1a32   :  { %v24880_v50 = vpop.f32.mrb[236].mxu0 }
0x1a33   :  { %v19956_v22 = vpop.f32.mrb[237].mxu0 }
0x1a34   :  { %v15474_v59 = vpop.f32.mrb[238].mxu0  ;;  %v14460_v22 = vmul.f32 %v20525_v42, %v24765_v53 }
0x1a35   :  { %v19957_v11 = vpop.f32.mrb[239].mxu0 }
0x1a36   :  { %v14492_v59 = vpack.c.bf16 %v14460_v22, %v14460_v22 }
0x1a38   :  { %v15955_v14 = vsel %vm360_vm2, %v14492_v59, 0 }
0x1a4c   :  { %v15683_v62 = vpop.trf.xlu1 }
0x1a4d   :  { %19979 = vmatmul.mubr.msk.bf16.vlgmr.msra.gmra.mrb[244].mxu0 %vm360_vm2, %v15683_v62 }
0x1a4e   :  { %19989 = vmatpush3.bf16.xpose.msra.mxu0 %v15825_v24  ;;  %19990 = vmatprep.mubr.msk.bf16.mxu0 %vm20677_vm1, %v26416_v45  ;;  %v14252_v24 = vmul.f32 1.442695, %v14217_v4 }
0x1a4f   :  { %20000 = vmatprep.subr.bf16.mxu0 %v26416_v45 }
0x1a5c   :  { %v15803_v10 = vpop.permute.xlu1 %15802 }
0x1a5d   :  { %15805 = vxpose.xlu1.c.b16.start.end [1/1] (short) (narrow) %v15803_v10, 16 }
0x1a6a   :  { %14122 = vmax.xlane.f32.xlu1 %v14121_v44 }
0x1a6e   :  { %14134 = vmax.xlane.f32.xlu1 %v14133_v23 }
0x1a72   :  { %14140 = vmax.xlane.f32.xlu1 %v14139_v61 }
0x1a76   :  { %14146 = vmax.xlane.f32.xlu1 %v14145_v36 }
0x1a7a   :  { %14152 = vmax.xlane.f32.xlu1 %v14151_v18 }
0x1a7e   :  { %14158 = vmax.xlane.f32.xlu1 %v14157_v48 }
0x1a82   :  { %14164 = vmax.xlane.f32.xlu1 %v14163_v58 }
0x1a86   :  { %14170 = vmax.xlane.f32.xlu1 %v14169_v60 }
0x1a8a   :  { %14176 = vmax.xlane.f32.xlu1 %v14175_v13 }
0x1a8e   :  { %14182 = vmax.xlane.f32.xlu1 %v14181_v43 }
0x1a92   :  { %14188 = vmax.xlane.f32.xlu1 %v14187_v54 }
0x1a96   :  { %14194 = vmax.xlane.f32.xlu1 %v14193_v9 }
0x1a9a   :  { %14200 = vmax.xlane.f32.xlu1 %v14199_v63 }
0x1a9e   :  { %14206 = vmax.xlane.f32.xlu1 %v14205_v34 }
0x1aa2   :  { %14212 = vmax.xlane.f32.xlu1 %v14211_v29 }
0x1aa9   :  { %v24919_v39 = vpop.f32.mrb[240].mxu0 }
0x1aaa   :  { %v19968_v35 = vpop.f32.mrb[241].mxu0 }
0x1aab   :  { %v15604_v37 = vpop.f32.mrb[242].mxu0 }
0x1aac   :  { %v19969_v17 = vpop.f32.mrb[243].mxu0 }
0x1ac3   :  { %v15813_v11 = vpop.trf.xlu1 }
0x1ac4   :  { %19991 = vmatmul.mubr.msk.bf16.vlgmr.msra.gmra.mrb[248].mxu0 %vm360_vm2, %v15813_v11 }
0x1ac5   :  { %20001 = vmatpush3.bf16.xpose.msra.mxu0 %v15955_v14  ;;  %20002 = vmatprep.mubr.msk.bf16.mxu0 %vm20677_vm1, %v26416_v45 }
0x1ac6   :  { %20012 = vmatprep.subr.bf16.mxu0 %v26416_v45 }
0x1af7   :  { %v14123_v7 = vpop.xlane.xlu1 %14122 }
0x1af8   :  { %v14215_v62 = vsub.f32 %v24565_v40, %v14123_v7 }
0x1afa   :  { %v14248_v53 = vmul.f32 1.442695, %v14215_v62 }
0x1afb   :  { %v14135_v10 = vpop.xlane.xlu1 %14134 }
0x1afc   :  { %20526 = vpow2.f32 %v14248_v53  ;;  %v14219_v44 = vsub.f32 %v24579_v19, %v14135_v10 }
0x1afd   :  { %20528 = vpow2.f32 %v14252_v24 }
0x1afe   :  { %v14256_v23 = vmul.f32 1.442695, %v14219_v44 }
0x1aff   :  { %v14141_v61 = vpop.xlane.xlu1 %14140 }
0x1b00   :  { %v14221_v36 = vsub.f32 %v24587_v27, %v14141_v61  ;;  %20530 = vpow2.f32 %v14256_v23 }
0x1b02   :  { %v14260_v18 = vmul.f32 1.442695, %v14221_v36 }
0x1b03   :  { %v14147_v48 = vpop.xlane.xlu1 %14146 }
0x1b04   :  { %v14223_v58 = vsub.f32 %v24593_v12, %v14147_v48  ;;  %20532 = vpow2.f32 %v14260_v18 }
0x1b06   :  { %v24933_v15 = vpop.eup %20526  ;;  %v14264_v40 = vmul.f32 1.442695, %v14223_v58  ;;  %v26663_v58 = vld [vmem:[#allocation33_spill] sm:$0xff] }
0x1b07   :  { %v14153_v20 = vpop.xlane.xlu1 %14152  ;;  %v14313_v60 = vsel %vm360_vm2, %v24933_v15, 0.0  ;;  %v24937_v13 = vpop.eup %20528 }
0x1b08   :  { %v14225_v19 = vsub.f32 %v24597_v5, %v14153_v20  ;;  %14314 = vadd.xlane.f32.xlu1 %v14313_v60  ;;  %20534 = vpow2.f32 %v14264_v40  ;;  %v14319_v54 = vsel %vm360_vm2, %v24937_v13, 0.0  ;;  %v26664_v40 = vld [vmem:[#allocation41_spill] sm:$0xff]  ;;  %v26665_v20 = vld [vmem:[#allocation32_spill] sm:$0xff] }
0x1b0a   :  { %v14268_v27 = vmul.f32 1.442695, %v14225_v19  ;;  %v24942_v12 = vpop.eup %20530 }
0x1b0b   :  { %v14159_v43 = vpop.xlane.xlu1 %14158  ;;  %v14325_v29 = vsel %vm360_vm2, %v24942_v12, 0.0 }
0x1b0c   :  { %v14227_v9 = vsub.f32 %v24603_v25, %v14159_v43  ;;  %14320 = vadd.xlane.f32.xlu1 %v14319_v54  ;;  %20536 = vpow2.f32 %v14268_v27 }
0x1b0e   :  { %v14272_v63 = vmul.f32 1.442695, %v14227_v9  ;;  %v24947_v35 = vpop.eup %20532 }
0x1b0f   :  { %v14165_v34 = vpop.xlane.xlu1 %14164  ;;  %v14331_v17 = vsel %vm360_vm2, %v24947_v35, 0.0 }
0x1b10   :  { %v14229_v5 = vsub.f32 %v24607_v55, %v14165_v34  ;;  %14326 = vadd.xlane.f32.xlu1 %v14325_v29  ;;  %20538 = vpow2.f32 %v14272_v63 }
0x1b12   :  { %v14276_v37 = vmul.f32 1.442695, %v14229_v5  ;;  %v24952_v42 = vpop.eup %20534 }
0x1b13   :  { %v14171_v57 = vpop.xlane.xlu1 %14170  ;;  %v14337_v11 = vsel %vm360_vm2, %v24952_v42, 0.0 }
0x1b14   :  { %v14231_v25 = vsub.f32 %v24613_v28, %v14171_v57  ;;  %14332 = vadd.xlane.f32.xlu1 %v14331_v17  ;;  %20540 = vpow2.f32 %v14276_v37 }
0x1b16   :  { %v14280_v22 = vmul.f32 1.442695, %v14231_v25  ;;  %v24957_v14 = vpop.eup %20536 }
0x1b17   :  { %v14177_v59 = vpop.xlane.xlu1 %14176  ;;  %v14343_v7 = vsel %vm360_vm2, %v24957_v14, 0.0 }
0x1b18   :  { %v14233_v55 = vsub.f32 %v24619_v32, %v14177_v59  ;;  %14338 = vadd.xlane.f32.xlu1 %v14337_v11  ;;  %20542 = vpow2.f32 %v14280_v22 }
0x1b1a   :  { %v14284_v4 = vmul.f32 1.442695, %v14233_v55  ;;  %v24962_v62 = vpop.eup %20538 }
0x1b1b   :  { %v14349_v28 = vsel %vm360_vm2, %v24962_v62, 0.0  ;;  %v14183_v60 = vpop.xlane.xlu1 %14182 }
0x1b1c   :  { %14344 = vadd.xlane.f32.xlu1 %v14343_v7  ;;  %20544 = vpow2.f32 %v14284_v4 }
0x1b1e   :  { %v24966_v24 = vpop.eup %20540 }
0x1b1f   :  { %v14355_v44 = vsel %vm360_vm2, %v24966_v24, 0.0  ;;  %v14189_v19 = vpop.xlane.xlu1 %14188 }
0x1b20   :  { %14350 = vadd.xlane.f32.xlu1 %v14349_v28  ;;  %v24968_v53 = vpop.f32.mrb[244].mxu0 }
0x1b21   :  { %v19980_v10 = vpop.f32.mrb[245].mxu0 }
0x1b22   :  { %v15734_v32 = vpop.f32.mrb[246].mxu0  ;;  %v24972_v61 = vpop.eup %20542 }
0x1b23   :  { %v19981_v23 = vpop.f32.mrb[247].mxu0  ;;  %v14361_v36 = vsel %vm360_vm2, %v24972_v61, 0.0  ;;  %v14195_v27 = vpop.xlane.xlu1 %14194 }
0x1b24   :  { %14356 = vadd.xlane.f32.xlu1 %v14355_v44  ;;  %v14239_v9 = vsub.f32 %v24651_v0, %v14195_v27 }
0x1b26   :  { %v24976_v18 = vpop.eup %20544  ;;  %v14296_v34 = vmul.f32 1.442695, %v14239_v9 }
0x1b27   :  { %v14367_v48 = vsel %vm360_vm2, %v24976_v18, 0.0  ;;  %v14201_v54 = vpop.xlane.xlu1 %14200 }
0x1b28   :  { %14362 = vadd.xlane.f32.xlu1 %v14361_v36  ;;  %v14241_v29 = vsub.f32 %v24661_v41, %v14201_v54 }
0x1b2a   :  { %v14300_v5 = vmul.f32 1.442695, %v14241_v29 }
0x1b2b   :  { %v14207_v63 = vpop.xlane.xlu1 %14206 }
0x1b2c   :  { %14368 = vadd.xlane.f32.xlu1 %v14367_v48  ;;  %v14243_v37 = vsub.f32 %v24673_v56, %v14207_v63  ;;  %v26666_v63 = vld [vmem:[#allocation109_spill] sm:$0xff] }
0x1b2f   :  { %v14213_v57 = vpop.xlane.xlu1 %14212 }
0x1b3d   :  { %16192 = vrot.lane.b32.xlu1 %v26582_v49, %s20686_s20  ;;  %v14235_v49 = vsub.f32 %v24629_v30, %v14183_v60  ;;  %v14304_v30 = vmul.f32 1.442695, %v14243_v37 }
0x1b3f   :  { %v14288_v43 = vmul.f32 1.442695, %v14235_v49 }
0x1b41   :  { %16257 = vrot.lane.b32.xlu1 %v26585_v21, %s20686_s20  ;;  %v14237_v21 = vsub.f32 %v24641_v51, %v14189_v19  ;;  %20546 = vpow2.f32 %v14288_v43  ;;  %v14245_v51 = vsub.f32 %v24683_v16, %v14213_v57  ;;  %v26667_v57 = vld [vmem:[#allocation113_spill] sm:$0xff] }
0x1b43   :  { %v14308_v22 = vmul.f32 1.442695, %v14245_v51 }
0x1b45   :  { %16322 = vrot.lane.b32.xlu1 %v26586_v38, %s20686_s20  ;;  %v14292_v38 = vmul.f32 1.442695, %v14237_v21 }
0x1b47   :  { %20548 = vpow2.f32 %v14292_v38 }
0x1b48   :  { %20550 = vpow2.f32 %v14296_v34 }
0x1b49   :  { %16387 = vrot.lane.b32.xlu1 %v26663_v58, %s20686_s20  ;;  %20552 = vpow2.f32 %v14300_v5 }
0x1b4a   :  { %20554 = vpow2.f32 %v14304_v30 }
0x1b4b   :  { %v24997_v17 = vpop.eup %20546  ;;  %20556 = vpow2.f32 %v14308_v22  ;;  %v26668_v22 = vld [vmem:[#allocation118_spill] sm:$0xff] }
0x1b4c   :  { %v14373_v25 = vsel %vm360_vm2, %v24997_v17, 0.0 }
0x1b4d   :  { %16452 = vrot.lane.b32.xlu1 %v26664_v40, %s20686_s20 }
0x1b51   :  { %16517 = vrot.lane.b32.xlu1 %v26665_v20, %s20686_s20  ;;  %v25002_v0 = vpop.eup %20548 }
0x1b52   :  { %v14379_v41 = vsel %vm360_vm2, %v25002_v0, 0.0  ;;  %v25006_v59 = vpop.eup %20550 }
0x1b53   :  { %v14385_v56 = vsel %vm360_vm2, %v25006_v59, 0.0  ;;  %v25010_v11 = vpop.eup %20552 }
0x1b54   :  { %v14391_v16 = vsel %vm360_vm2, %v25010_v11, 0.0  ;;  %v25014_v55 = vpop.eup %20554 }
0x1b55   :  { %v14397_v4 = vsel %vm360_vm2, %v25014_v55, 0.0  ;;  %v25018_v7 = vpop.eup %20556 }
0x1b56   :  { %v14403_v28 = vsel %vm360_vm2, %v25018_v7, 0.0 }
0x1b75   :  { %14374 = vadd.xlane.f32.xlu1 %v14373_v25 }
0x1b79   :  { %14380 = vadd.xlane.f32.xlu1 %v14379_v41 }
0x1b7d   :  { %14386 = vadd.xlane.f32.xlu1 %v14385_v56 }
0x1b81   :  { %14392 = vadd.xlane.f32.xlu1 %v14391_v16  ;;  %v26669_v16 = vld [vmem:[#allocation18_spill] sm:$0xff] }
0x1b85   :  { %14398 = vadd.xlane.f32.xlu1 %v14397_v4  ;;  %v26670_v4 = vld [vmem:[#allocation117_spill] sm:$0xff] }
0x1b89   :  { %14404 = vadd.xlane.f32.xlu1 %v14403_v28 }
0x1b95   :  { %v14315_v10 = vpop.xlane.xlu1 %14314 }
0x1b96   :  { %20558 = vrcp.f32 %v14315_v10 }
0x1b97   :  { %v25022_v32 = vpop.f32.mrb[248].mxu0 }
0x1b98   :  { %v19992_v44 = vpop.f32.mrb[249].mxu0 }
0x1b99   :  { %v14321_v23 = vpop.xlane.xlu1 %14320  ;;  %v15864_v36 = vpop.f32.mrb[250].mxu0  ;;  %v26671_v44 = vld [vmem:[#allocation62_spill] sm:$0xff] }
0x1b9a   :  { %20560 = vrcp.f32 %v14321_v23  ;;  %v19993_v48 = vpop.f32.mrb[251].mxu0 }
0x1b9d   :  { %v14327_v58 = vpop.xlane.xlu1 %14326 }
0x1b9e   :  { %20562 = vrcp.f32 %v14327_v58  ;;  %v26672_v58 = vld [vmem:[#allocation50_spill] sm:$0xff] }
0x1ba0   :  { %v20559_v40 = vpop.eup %20558 }
0x1ba1   :  { %v14333_v20 = vpop.xlane.xlu1 %14332  ;;  %v14439_v60 = vmul.f32 %v20559_v40, %v24933_v15  ;;  %v26673_v40 = vld [vmem:[#allocation121_spill] sm:$0xff] }
0x1ba2   :  { %20564 = vrcp.f32 %v14333_v20 }
0x1ba3   :  { %v14471_v19 = vpack.c.bf16 %v14439_v60, %v14439_v60 }
0x1ba4   :  { %v20561_v27 = vpop.eup %20560 }
0x1ba5   :  { %v14339_v49 = vpop.xlane.xlu1 %14338  ;;  %v14590_v43 = vsel %vm360_vm2, %v14471_v19, 0  ;;  %v14441_v21 = vmul.f32 %v20561_v27, %v24937_v13  ;;  %v26674_v19 = vld [vmem:[#allocation63_spill] sm:$0xff] }
0x1ba6   :  { %19875 = vmatpush3.bf16.xpose.msra.mxu1 %v14590_v43  ;;  %20566 = vrcp.f32 %v14339_v49 }
0x1ba7   :  { %19886 = vmatprep.subr.bf16.mxu1 %v26416_v45  ;;  %v14473_v38 = vpack.c.bf16 %v14441_v21, %v14441_v21  ;;  %v26675_v21 = vld [vmem:[#allocation64_spill] sm:$0xff] }
0x1ba8   :  { %v20563_v9 = vpop.eup %20562 }
0x1ba9   :  { %v14345_v54 = vpop.xlane.xlu1 %14344  ;;  %v14720_v15 = vsel %vm360_vm2, %v14473_v38, 0  ;;  %v14443_v29 = vmul.f32 %v20563_v9, %v24942_v12 }
0x1baa   :  { %20568 = vrcp.f32 %v14345_v54  ;;  %v26676_v54 = vld [vmem:[#allocation126_spill] sm:$0xff] }
0x1bab   :  { %v14475_v5 = vpack.c.bf16 %v14443_v29, %v14443_v29 }
0x1bac   :  { %v20565_v37 = vpop.eup %20564 }
0x1bad   :  { %19877 = vmatmul.mubr.msk.bf16.vlgmr.msra.gmra.mrb[208].mxu1 %vm360_vm2, %v26666_v63  ;;  %v14351_v34 = vpop.xlane.xlu1 %14350  ;;  %v14850_v51 = vsel %vm360_vm2, %v14475_v5, 0  ;;  %v14445_v25 = vmul.f32 %v20565_v37, %v24947_v35  ;;  %v26677_v63 = vld [vmem:[#allocation65_spill] sm:$0xff]  ;;  %v26679_v5 = vld [vmem:[#allocation11_spill] sm:$0xff] }
0x1bae   :  { %19887 = vmatpush3.bf16.xpose.msra.mxu1 %v14720_v15  ;;  %19888 = vmatprep.mubr.msk.bf16.mxu1 %vm20677_vm1, %v26416_v45  ;;  %20570 = vrcp.f32 %v14351_v34 }
0x1baf   :  { %19898 = vmatprep.subr.bf16.mxu1 %v26416_v45  ;;  %v14477_v41 = vpack.c.bf16 %v14445_v25, %v14445_v25  ;;  %v26681_v25 = vld [vmem:[#allocation91_spill] sm:$0xff] }
0x1bb0   :  { %v20567_v56 = vpop.eup %20566 }
0x1bb1   :  { %v14357_v13 = vpop.xlane.xlu1 %14356  ;;  %v14980_v35 = vsel %vm360_vm2, %v14477_v41, 0  ;;  %v14447_v10 = vmul.f32 %v20567_v56, %v24952_v42  ;;  %v26683_v41 = vld [vmem:[#allocation19_spill] sm:$0xff] }
0x1bb2   :  { %20572 = vrcp.f32 %v14357_v13  ;;  %v26678_v13 = vld [vmem:[#allocation89_spill] sm:$0xff] }
0x1bb3   :  { %v14479_v36 = vpack.c.bf16 %v14447_v10, %v14447_v10  ;;  %v26687_v10 = vld [vmem:[#allocation52_spill] sm:$0xff] }
0x1bb4   :  { %v20569_v48 = vpop.eup %20568 }
0x1bb5   :  { %19889 = vmatmul.mubr.msk.bf16.vlgmr.msra.gmra.mrb[212].mxu1 %vm360_vm2, %v26667_v57  ;;  %v14363_v30 = vpop.xlane.xlu1 %14362  ;;  %v15110_v20 = vsel %vm360_vm2, %v14479_v36, 0  ;;  %v14449_v60 = vmul.f32 %v20569_v48, %v24957_v14  ;;  %v26680_v57 = vld [vmem:[#allocation90_spill] sm:$0xff]  ;;  %v26690_v48 = vld [vmem:[#allocation53_spill] sm:$0xff] }
0x1bb6   :  { %15935 = vxpose.xlu1.c.b16.start.end [1/1] (short) (narrow) %v26668_v22, 16  ;;  %19899 = vmatpush3.bf16.xpose.msra.mxu1 %v14850_v51  ;;  %20574 = vrcp.f32 %v14363_v30  ;;  %v26682_v22 = vld [vmem:[#allocation49_spill] sm:$0xff]  ;;  %v26689_v36 = vld [vmem:[#allocation94_spill] sm:$0xff] }
0x1bb7   :  { %19900 = vmatprep.mubr.msk.bf16.mxu1 %vm20677_vm1, %v26416_v45  ;;  %19910 = vmatprep.subr.bf16.mxu1 %v26416_v45  ;;  %v14481_v49 = vpack.c.bf16 %v14449_v60, %v14449_v60  ;;  %v26694_v60 = vld [vmem:[#allocation96_spill] sm:$0xff] }
0x1bb8   :  { %v20571_v43 = vpop.eup %20570 }
0x1bb9   :  { %v14369_v12 = vpop.xlane.xlu1 %14368  ;;  %v15240_v38 = vsel %vm360_vm2, %v14481_v49, 0  ;;  %v14451_v9 = vmul.f32 %v20571_v43, %v24962_v62  ;;  %v26697_v49 = vld [vmem:[#allocation56_spill] sm:$0xff] }
0x1bba   :  { %16614 = vrot.lane.b32.xlu1 %v26669_v16, %s20672_s23  ;;  %20576 = vrcp.f32 %v14369_v12  ;;  %v26684_v16 = vld [vmem:[#allocation92_spill] sm:$0xff]  ;;  %v26685_v12 = vld [vmem:[#allocation51_spill] sm:$0xff] }
0x1bbb   :  { %v14483_v15 = vpack.c.bf16 %v14451_v9, %v14451_v9  ;;  %v26698_v43 = vld [vmem:[#allocation112_spill] sm:$0xff]  ;;  %v14384_v9 = vpop.xlane.xlu0 %14383 }
0x1bbc   :  { %v20573_v29 = vpop.eup %20572 }
0x1bbd   :  { %19901 = vmatmul.mubr.msk.bf16.vlgmr.msra.gmra.mrb[216].mxu1 %vm360_vm2, %v26670_v4  ;;  %v16193_v28 = vpop.permute.xlu1 %16192  ;;  %v15370_v62 = vsel %vm360_vm2, %v14483_v15, 0  ;;  %v14453_v37 = vmul.f32 %v20573_v29, %v24966_v24  ;;  %v26705_v15 = vld [vmem:[#allocation120_spill] sm:$0xff] }
0x1bbe   :  { %16618 = vrot.lane.b32.xlu1 %v26671_v44, %s20672_s23  ;;  %19911 = vmatpush3.bf16.xpose.msra.mxu1 %v14980_v35  ;;  %v26686_v35 = vld [vmem:[#allocation93_spill] sm:$0xff] }
0x1bbf   :  { %16195 = vxpose.xlu0.c.b16.start.end [1/1] (short) (narrow) %v16193_v28, 16  ;;  %19912 = vmatprep.mubr.msk.bf16.mxu1 %vm20677_vm1, %v26416_v45  ;;  %v14485_v30 = vpack.c.bf16 %v14453_v37, %v14453_v37 }
0x1bc0   :  { %19922 = vmatprep.subr.bf16.mxu1 %v26416_v45  ;;  %v20575_v51 = vpop.eup %20574 }
0x1bc1   :  { %v16258_v23 = vpop.permute.xlu1 %16257  ;;  %v15500_v24 = vsel %vm360_vm2, %v14485_v30, 0  ;;  %v14455_v56 = vmul.f32 %v20575_v51, %v24972_v61  ;;  %v26688_v61 = vld [vmem:[#allocation106_spill] sm:$0xff]  ;;  %v26709_v51 = vld [vmem:[#allocation35_spill] sm:$0xff] }
0x1bc2   :  { %16620 = vrot.lane.b32.xlu1 %v26672_v58, %s20672_s23 }
0x1bc3   :  { %16260 = vxpose.xlu0.c.b16.start.end [1/1] (short) (narrow) %v16258_v23, 16  ;;  %v14487_v4 = vpack.c.bf16 %v14455_v56, %v14455_v56 }
0x1bc4   :  { %v20577_v28 = vpop.eup %20576 }
0x1bc5   :  { %19913 = vmatmul.mubr.msk.bf16.vlgmr.msra.gmra.mrb[220].mxu1 %vm360_vm2, %v26673_v40  ;;  %v16323_v42 = vpop.permute.xlu1 %16322  ;;  %v15630_v44 = vsel %vm360_vm2, %v14487_v4, 0  ;;  %v14457_v23 = vmul.f32 %v20577_v28, %v24976_v18  ;;  %v26691_v40 = vld [vmem:[#allocation95_spill] sm:$0xff]  ;;  %v26693_v18 = vld [vmem:[#allocation108_spill] sm:$0xff] }
0x1bc6   :  { %16622 = vrot.lane.b32.xlu1 %v26674_v19, %s20672_s23  ;;  %19923 = vmatpush3.bf16.xpose.msra.mxu1 %v15110_v20  ;;  %v26695_v19 = vld [vmem:[#allocation55_spill] sm:$0xff] }
0x1bc7   :  { %16325 = vxpose.xlu0.c.b16.start.end [1/1] (short) (narrow) %v16323_v42, 16  ;;  %19924 = vmatprep.mubr.msk.bf16.mxu1 %vm20677_vm1, %v26416_v45  ;;  %v14489_v58 = vpack.c.bf16 %v14457_v23, %v14457_v23  ;;  %v26692_v42 = vld [vmem:[#allocation54_spill] sm:$0xff]  ;;  %v26712_v4 = vld [vmem:[#allocation23_spill] sm:$0xff] }
0x1bc8   :  { %19934 = vmatprep.subr.bf16.mxu1 %v26416_v45 }
0x1bc9   :  { %v16388_v27 = vpop.permute.xlu1 %16387  ;;  %v15760_v20 = vsel %vm360_vm2, %v14489_v58, 0 }
0x1bca   :  { %16626 = vrot.lane.b32.xlu1 %v26675_v21, %s20672_s23  ;;  %v26699_v21 = vld [vmem:[#allocation97_spill] sm:$0xff] }
0x1bcb   :  { %16390 = vxpose.xlu0.c.b16.start.end [1/1] (short) (narrow) %v16388_v27, 16  ;;  %v26696_v27 = vld [vmem:[#allocation99_spill] sm:$0xff] }
0x1bcd   :  { %19925 = vmatmul.mubr.msk.bf16.vlgmr.msra.gmra.mrb[224].mxu1 %vm360_vm2, %v26676_v54  ;;  %v16453_v14 = vpop.permute.xlu1 %16452  ;;  %v26700_v54 = vld [vmem:[#allocation57_spill] sm:$0xff] }
0x1bce   :  { %16630 = vrot.lane.b32.xlu1 %v26677_v63, %s20672_s23  ;;  %19935 = vmatpush3.bf16.xpose.msra.mxu1 %v15240_v38  ;;  %v26702_v38 = vld [vmem:[#allocation58_spill] sm:$0xff] }
0x1bcf   :  { %16455 = vxpose.xlu0.c.b16.start.end [1/1] (short) (narrow) %v16453_v14, 16  ;;  %19936 = vmatprep.mubr.msk.bf16.mxu1 %vm20677_vm1, %v26416_v45  ;;  %v26701_v14 = vld [vmem:[#allocation102_spill] sm:$0xff] }
0x1bd0   :  { %19946 = vmatprep.subr.bf16.mxu1 %v26416_v45  ;;  %v26703_v63 = vld [vmem:[#allocation34_spill] sm:$0xff] }
0x1bd1   :  { %v16518_v34 = vpop.permute.xlu1 %16517 }
0x1bd2   :  { %16634 = vrot.lane.b32.xlu1 %v26678_v13, %s20672_s23  ;;  %v14390_v13 = vpop.xlane.xlu0 %14389 }
0x1bd3   :  { %16520 = vxpose.xlu0.c.b16.start.end [1/1] (short) (narrow) %v16518_v34, 16  ;;  %v26704_v34 = vld [vmem:[#allocation59_spill] sm:$0xff] }
0x1bd5   :  { %19937 = vmatmul.mubr.msk.bf16.vlgmr.msra.gmra.mrb[228].mxu1 %vm360_vm2, %v26679_v5  ;;  %v26706_v5 = vld [vmem:[#allocation60_spill] sm:$0xff] }
0x1bd6   :  { %16638 = vrot.lane.b32.xlu1 %v26680_v57, %s20672_s23  ;;  %19947 = vmatpush3.bf16.xpose.msra.mxu1 %v15370_v62  ;;  %v26707_v62 = vld [vmem:[#allocation21_spill] sm:$0xff]  ;;  %v26708_v57 = vld [vmem:[#allocation71_spill] sm:$0xff]  ;;  %v14396_v30 = vpop.xlane.xlu0 %14395 }
0x1bd7   :  { %19948 = vmatprep.mubr.msk.bf16.mxu1 %vm20677_vm1, %v26416_v45  ;;  %19958 = vmatprep.subr.bf16.mxu1 %v26416_v45 }
0x1bda   :  { %16642 = vrot.lane.b32.xlu1 %v26681_v25, %s20672_s23 }
0x1bdc   :  { %16616 = vrot.lane.b32.xlu0 %v26682_v22, %s20672_s23  ;;  %v26710_v22 = vld [vmem:[#allocation48_spill] sm:$0xff] }
0x1bdd   :  { %19949 = vmatmul.mubr.msk.bf16.vlgmr.msra.gmra.mrb[232].mxu1 %vm360_vm2, %v26683_v41 }
0x1bde   :  { %16646 = vrot.lane.b32.xlu1 %v26684_v16, %s20672_s23  ;;  %19959 = vmatpush3.bf16.xpose.msra.mxu1 %v15500_v24  ;;  %v26711_v24 = vld [vmem:[#allocation24_spill] sm:$0xff] }
0x1bdf   :  { %19960 = vmatprep.mubr.msk.bf16.mxu1 %vm20677_vm1, %v26416_v45  ;;  %19970 = vmatprep.subr.bf16.mxu1 %v26416_v45 }
0x1be0   :  { %16624 = vrot.lane.b32.xlu0 %v26685_v12, %s20672_s23  ;;  %v14402_v12 = vpop.xlane.xlu0 %14401 }
0x1be2   :  { %16650 = vrot.lane.b32.xlu1 %v26686_v35, %s20672_s23 }
0x1be4   :  { %16628 = vrot.lane.b32.xlu0 %v26687_v10, %s20672_s23 }
0x1be5   :  { %19961 = vmatmul.mubr.msk.bf16.vlgmr.msra.gmra.mrb[236].mxu1 %vm360_vm2, %v26688_v61  ;;  %v26713_v61 = vld [vmem:[#allocation38_spill] sm:$0xff] }
0x1be6   :  { %16654 = vrot.lane.b32.xlu1 %v26689_v36, %s20672_s23  ;;  %19971 = vmatpush3.bf16.xpose.msra.mxu1 %v15630_v44 }
0x1be7   :  { %19972 = vmatprep.mubr.msk.bf16.mxu1 %vm20677_vm1, %v26416_v45  ;;  %19982 = vmatprep.subr.bf16.mxu1 %v26416_v45 }
0x1be8   :  { %16632 = vrot.lane.b32.xlu0 %v26690_v48, %s20672_s23  ;;  %v16008_v48 = vpop.trf.xlu0 }
0x1bea   :  { %16658 = vrot.lane.b32.xlu1 %v26691_v40, %s20672_s23  ;;  %v26715_v40 = vld [vmem:[#allocation107_spill] sm:$0xff] }
0x1bec   :  { %16636 = vrot.lane.b32.xlu0 %v26692_v42, %s20672_s23 }
0x1bed   :  { %19973 = vmatmul.mubr.msk.bf16.vlgmr.msra.gmra.mrb[240].mxu1 %vm360_vm2, %v26693_v18 }
0x1bee   :  { %16662 = vrot.lane.b32.xlu1 %v26694_v60, %s20672_s23  ;;  %19983 = vmatpush3.bf16.xpose.msra.mxu1 %v15760_v20  ;;  %v26716_v60 = vld [vmem:[#allocation31_spill] sm:$0xff] }
0x1bef   :  { %19984 = vmatprep.mubr.msk.bf16.mxu1 %vm20677_vm1, %v26416_v45  ;;  %19994 = vmatprep.subr.bf16.mxu1 %v26416_v45 }
0x1bf0   :  { %16640 = vrot.lane.b32.xlu0 %v26695_v19, %s20672_s23  ;;  %v16073_v19 = vpop.trf.xlu0 }
0x1bf2   :  { %16666 = vrot.lane.b32.xlu1 %v26696_v27, %s20672_s23 }
0x1bf4   :  { %16644 = vrot.lane.b32.xlu0 %v26697_v49, %s20672_s23  ;;  %v26717_v49 = vld [vmem:[#allocation104_spill] sm:$0xff] }
0x1bf5   :  { %19985 = vmatmul.mubr.msk.bf16.vlgmr.msra.gmra.mrb[244].mxu1 %vm360_vm2, %v26698_v43  ;;  %v26718_v43 = vld [vmem:[#allocation114_spill] sm:$0xff] }
0x1bf6   :  { %16670 = vrot.lane.b32.xlu1 %v26699_v21, %s20672_s23  ;;  %19996 = vmatprep.mubr.msk.bf16.mxu1 %vm20677_vm1, %v26416_v45 }
0x1bf8   :  { %16648 = vrot.lane.b32.xlu0 %v26700_v54, %s20672_s23  ;;  %v26719_v54 = vld [vmem:[#allocation124_spill] sm:$0xff] }
0x1bfa   :  { %16674 = vrot.lane.b32.xlu1 %v26701_v14, %s20672_s23 }
0x1bfc   :  { %16652 = vrot.lane.b32.xlu0 %v26702_v38, %s20672_s23 }
0x1bfe   :  { %16742 = vrot.lane.b32.xlu1 %v26703_v63, %s20688_s22 }
0x1c00   :  { %16656 = vrot.lane.b32.xlu0 %v26704_v34, %s20672_s23 }
0x1c02   :  { %16746 = vrot.lane.b32.xlu1 %v26705_v15, %s20688_s22  ;;  %v14375_v29 = vpop.xlane.xlu1 %14374  ;;  %v16138_v15 = vpop.trf.xlu0 }
0x1c03   :  { %20578 = vrcp.f32 %v14375_v29  ;;  %v26721_v29 = vld [vmem:[#allocation98_spill] sm:$0xff] }
0x1c04   :  { %16660 = vrot.lane.b32.xlu0 %v26706_v5, %s20672_s23 }
0x1c06   :  { %16750 = vrot.lane.b32.xlu1 %v26707_v62, %s20688_s22  ;;  %v14381_v37 = vpop.xlane.xlu1 %14380 }
0x1c07   :  { %20580 = vrcp.f32 %v14381_v37 }
0x1c08   :  { %20582 = vrcp.f32 %v14384_v9  ;;  %16664 = vrot.lane.b32.xlu0 %v26708_v57, %s20672_s23  ;;  %v26723_v57 = vld [vmem:[#allocation110_spill] sm:$0xff] }
0x1c0a   :  { %16754 = vrot.lane.b32.xlu1 %v26709_v51, %s20688_s22  ;;  %v14387_v25 = vpop.xlane.xlu1 %14386 }
0x1c0b   :  { %20584 = vrcp.f32 %v14387_v25 }
0x1c0c   :  { %16668 = vrot.lane.b32.xlu0 %v26710_v22, %s20672_s23  ;;  %20586 = vrcp.f32 %v14390_v13 }
0x1c0d   :  { %v20579_v41 = vpop.eup %20578 }
0x1c0e   :  { %16758 = vrot.lane.b32.xlu1 %v26711_v24, %s20688_s22  ;;  %v14393_v56 = vpop.xlane.xlu1 %14392  ;;  %v14459_v16 = vmul.f32 %v20579_v41, %v24997_v17  ;;  %v26714_v17 = vld [vmem:[#allocation101_spill] sm:$0xff]  ;;  %v26725_v24 = vld [vmem:[#allocation40_spill] sm:$0xff] }
0x1c0f   :  { %20588 = vrcp.f32 %v14393_v56 }
0x1c10   :  { %16672 = vrot.lane.b32.xlu0 %v26712_v4, %s20672_s23  ;;  %v14491_v28 = vpack.c.bf16 %v14459_v16, %v14459_v16  ;;  %20590 = vrcp.f32 %v14396_v30  ;;  %v26726_v4 = vld [vmem:[#allocation26_spill] sm:$0xff] }
0x1c11   :  { %v20581_v35 = vpop.eup %20580 }
0x1c12   :  { %v20583_v10 = vpop.eup %20582  ;;  %16762 = vrot.lane.b32.xlu1 %v26713_v61, %s20688_s22  ;;  %v14399_v44 = vpop.xlane.xlu1 %14398  ;;  %v15890_v23 = vsel %vm360_vm2, %v14491_v28, 0  ;;  %v14461_v36 = vmul.f32 %v20581_v35, %v25002_v0  ;;  %v26727_v35 = vld [vmem:[#allocation116_spill] sm:$0xff] }
0x1c13   :  { %19995 = vmatpush3.bf16.xpose.msra.mxu1 %v15890_v23  ;;  %v14462_v58 = vmul.f32 %v20583_v10, %v24770_v2  ;;  %20592 = vrcp.f32 %v14399_v44 }
0x1c14   :  { %16676 = vrot.lane.b32.xlu0 %v26714_v17, %s20672_s23  ;;  %20006 = vmatprep.subr.bf16.mxu1 %v26416_v45  ;;  %v14493_v42 = vpack.c.bf16 %v14461_v36, %v14461_v36  ;;  %20594 = vrcp.f32 %v14402_v12  ;;  %v26729_v17 = vld [vmem:[#allocation39_spill] sm:$0xff]  ;;  %s20689_s23 = smov 24  }
0x1c15   :  { %v20585_v18 = vpop.eup %20584  ;;  %v14494_v0 = vpack.c.bf16 %v14462_v58, %v14462_v58 }
0x1c16   :  { %16766 = vrot.lane.b32.xlu1 %v26715_v40, %s20688_s22  ;;  %v14405_v20 = vpop.xlane.xlu1 %14404  ;;  %v20587_v27 = vpop.eup %20586  ;;  %v16020_v2 = vsel %vm360_vm2, %v14493_v42, 0  ;;  %v14463_v21 = vmul.f32 %v20585_v18, %v25006_v59  ;;  %v26720_v59 = vld [vmem:[#allocation28_spill] sm:$0xff]  ;;  %v26730_v42 = vld [vmem:[#allocation30_spill] sm:$0xff] }
0x1c17   :  { %v16085_v38 = vsel %vm360_vm2, %v14494_v0, 0  ;;  %v14464_v9 = vmul.f32 %v20587_v27, %v24775_v6  ;;  %v26722_v6 = vld [vmem:[#allocation37_spill] sm:$0xff]  ;;  %20596 = vrcp.f32 %v14405_v20  ;;  %v26732_v27 = vld [vmem:[#allocation119_spill] sm:$0xff] }
0x1c18   :  { %16744 = vrot.lane.b32.xlu0 %v26716_v60, %s20688_s22  ;;  %v14495_v63 = vpack.c.bf16 %v14463_v21, %v14463_v21  ;;  %v26731_v60 = vld [vmem:[#allocation122_spill] sm:$0xff]  ;;  %v26734_v21 = vld [vmem:[#allocation29_spill] sm:$0xff] }
0x1c19   :  { %v20589_v34 = vpop.eup %20588  ;;  %v14496_v13 = vpack.c.bf16 %v14464_v9, %v14464_v9 }
0x1c1a   :  { %16770 = vrot.lane.b32.xlu1 %v26717_v49, %s20688_s22  ;;  %19997 = vmatmul.mubr.msk.bf16.vlgmr.msra.gmra.mrb[248].mxu1 %vm360_vm2, %v26718_v43  ;;  %v20591_v5 = vpop.eup %20590  ;;  %v16150_v62 = vsel %vm360_vm2, %v14495_v63, 0  ;;  %v14465_v37 = vmul.f32 %v20589_v34, %v25010_v11  ;;  %v26724_v11 = vld [vmem:[#allocation111_spill] sm:$0xff]  ;;  %v26733_v49 = vld [vmem:[#allocation42_spill] sm:$0xff] }
0x1c1b   :  { %20007 = vmatpush3.bf16.xpose.msra.mxu1 %v16020_v2  ;;  %20008 = vmatprep.mubr.msk.bf16.mxu1 %vm20677_vm1, %v26416_v45  ;;  %v16215_v30 = vsel %vm360_vm2, %v14496_v13, 0  ;;  %v14466_v25 = vmul.f32 %v20591_v5, %v24781_v31 }
0x1c1c   :  { %16748 = vrot.lane.b32.xlu0 %v26719_v54, %s20688_s22  ;;  %v15943_v14 = vpop.trf.xlu1  ;;  %20018 = vmatprep.subr.bf16.mxu1 %v26416_v45  ;;  %v14497_v22 = vpack.c.bf16 %v14465_v37, %v14465_v37 }
0x1c1d   :  { %20003 = vmatmul.mubr.msk.bf16.vlgmr.msra.gmra.mrb[252].mxu0 %vm360_vm2, %v15943_v14  ;;  %v20593_v41 = vpop.eup %20592  ;;  %v14498_v56 = vpack.c.bf16 %v14466_v25, %v14466_v25  ;;  %v26735_v14 = vld [vmem:[#allocation123_spill] sm:$0xff] }
0x1c1e   :  { %20013 = vmatpush3.bf16.xpose.msra.mxu0 %v16085_v38  ;;  %16774 = vrot.lane.b32.xlu1 %v26720_v59, %s20688_s22  ;;  %v20595_v12 = vpop.eup %20594  ;;  %v16280_v31 = vsel %vm360_vm2, %v14497_v22, 0  ;;  %v14467_v28 = vmul.f32 %v20593_v41, %v25014_v55  ;;  %v26728_v55 = vld [vmem:[#allocation115_spill] sm:$0xff]  ;;  %v26736_v59 = vld [vmem:[#allocation61_spill] sm:$0xff] }
0x1c1f   :  { %20014 = vmatprep.mubr.msk.bf16.mxu0 %vm20677_vm1, %v26416_v45  ;;  %20024 = vmatprep.subr.bf16.mxu0 %v26416_v45  ;;  %v16345_v61 = vsel %vm360_vm2, %v14498_v56, 0  ;;  %v14468_v23 = vmul.f32 %v20595_v12, %v24788_v46  ;;  %v26743_v22 = vld [vmem:[#allocation79_spill] sm:$0xff] }
0x1c20   :  { %16752 = vrot.lane.b32.xlu0 %v26721_v29, %s20688_s22  ;;  %v14499_v36 = vpack.c.bf16 %v14467_v28, %v14467_v28  ;;  %v26745_v12 = vld [vmem:[#allocation87_spill] sm:$0xff] }
0x1c21   :  { %v14500_v40 = vpack.c.bf16 %v14468_v23, %v14468_v23 }
0x1c22   :  { %16778 = vrot.lane.b32.xlu1 %v26722_v6, %s20688_s22  ;;  %20009 = vmatmul.mubr.msk.bf16.vlgmr.msra.gmra.mrb[252].mxu1 %vm360_vm2, %v16008_v48  ;;  %v20597_v48 = vpop.eup %20596  ;;  %v16410_v46 = vsel %vm360_vm2, %v14499_v36, 0 }
0x1c23   :  { %20019 = vmatpush3.bf16.xpose.msra.mxu1 %v16150_v62  ;;  %20020 = vmatprep.mubr.msk.bf16.mxu1 %vm20677_vm1, %v26416_v45  ;;  %v14469_v18 = vmul.f32 %v20597_v48, %v25018_v7  ;;  %v26748_v48 = vld [vmem:[#allocation17_spill] sm:$0xff] }
0x1c24   :  { %16756 = vrot.lane.b32.xlu0 %v26723_v57, %s20688_s22  ;;  %20030 = vmatprep.subr.bf16.mxu1 %v26416_v45 }
0x1c25   :  { %20015 = vmatmul.mubr.msk.bf16.vlgmr.msra.gmra.mrb[0].mxu0 %vm360_vm2, %v16073_v19  ;;  %v16203_v51 = vpop.trf.xlu0  ;;  %v16475_v19 = vsel %vm360_vm2, %v14500_v40, 0  ;;  %v14501_v7 = vpack.c.bf16 %v14469_v18, %v14469_v18  ;;  %v26749_v18 = vld [vmem:[#allocation43_spill] sm:$0xff] }
0x1c26   :  { %20025 = vmatpush3.bf16.xpose.msra.mxu0 %v16215_v30  ;;  %16782 = vrot.lane.b32.xlu1 %v26724_v11, %s20688_s22 }
0x1c27   :  { %20026 = vmatprep.mubr.msk.bf16.mxu0 %vm20677_vm1, %v26416_v45  ;;  %20036 = vmatprep.subr.bf16.mxu0 %v26416_v45  ;;  %v16540_v54 = vsel %vm360_vm2, %v14501_v7, 0 }
0x1c28   :  { %16760 = vrot.lane.b32.xlu0 %v26725_v24, %s20688_s22  ;;  %v26744_v24 = vld [vmem:[#allocation83_spill] sm:$0xff] }
0x1c29   :  { %v16268_v16 = vpop.trf.xlu0 }
0x1c2a   :  { %16786 = vrot.lane.b32.xlu1 %v26726_v4, %s20688_s22  ;;  %20021 = vmatmul.mubr.msk.bf16.vlgmr.msra.gmra.mrb[0].mxu1 %vm360_vm2, %v16138_v15 }
0x1c2b   :  { %20031 = vmatpush3.bf16.xpose.msra.mxu1 %v16280_v31  ;;  %20032 = vmatprep.mubr.msk.bf16.mxu1 %vm20677_vm1, %v26416_v45 }
0x1c2c   :  { %16764 = vrot.lane.b32.xlu0 %v26727_v35, %s20688_s22  ;;  %v25230_v10 = vpop.permute.xlu1 %16614  ;;  %20042 = vmatprep.subr.bf16.mxu1 %v26416_v45  ;;  %v26746_v35 = vld [vmem:[#allocation27_spill] sm:$0xff] }
0x1c2d   :  { %20027 = vmatmul.mubr.msk.bf16.vlgmr.msra.gmra.mrb[4].mxu0 %vm360_vm2, %v16203_v51  ;;  %v16333_v44 = vpop.trf.xlu0  ;;  %v26742_v51 = vld [vmem:[#allocation80_spill] sm:$0xff] }
0x1c2e   :  { %20037 = vmatpush3.bf16.xpose.msra.mxu0 %v16345_v61  ;;  %16790 = vrot.lane.b32.xlu1 %v26728_v55, %s20688_s22 }
0x1c2f   :  { %20038 = vmatprep.mubr.msk.bf16.mxu0 %vm20677_vm1, %v26416_v45  ;;  %20048 = vmatprep.subr.bf16.mxu0 %v26416_v45 }
0x1c30   :  { %16768 = vrot.lane.b32.xlu0 %v26729_v17, %s20688_s22  ;;  %v25243_v58 = vpop.permute.xlu1 %16618 }
0x1c31   :  { %v16398_v20 = vpop.trf.xlu0  ;;  %v16968_v17 = vsel %vm360_vm2, %v26748_v48, %v25243_v58 }
0x1c32   :  { %16794 = vrot.lane.b32.xlu1 %v26730_v42, %s20688_s22  ;;  %20033 = vmatmul.mubr.msk.bf16.vlgmr.msra.gmra.mrb[4].mxu1 %vm360_vm2, %v16268_v16 }
0x1c33   :  { %20043 = vmatpush3.bf16.xpose.msra.mxu1 %v16410_v46  ;;  %20044 = vmatprep.mubr.msk.bf16.mxu1 %vm20677_vm1, %v26416_v45 }
0x1c34   :  { %16772 = vrot.lane.b32.xlu0 %v26731_v60, %s20688_s22  ;;  %v25254_v0 = vpop.permute.xlu1 %16620  ;;  %20054 = vmatprep.subr.bf16.mxu1 %v26416_v45 }
0x1c35   :  { %20039 = vmatmul.mubr.msk.bf16.vlgmr.msra.gmra.mrb[8].mxu0 %vm360_vm2, %v16333_v44  ;;  %v16463_v2 = vpop.trf.xlu0  ;;  %v26747_v44 = vld [vmem:[#allocation70_spill] sm:$0xff] }
0x1c36   :  { %20049 = vmatpush3.bf16.xpose.msra.mxu0 %v16475_v19  ;;  %16798 = vrot.lane.b32.xlu1 %v26732_v27, %s20688_s22  ;;  %v16966_v23 = vsel %vm360_vm2, %v26747_v44, %v25230_v10  ;;  %v26750_v10 = vld [vmem:[#allocation66_spill] sm:$0xff] }
0x1c37   :  { %20050 = vmatprep.mubr.msk.bf16.mxu0 %vm20677_vm1, %v26416_v45 }
0x1c38   :  { %16776 = vrot.lane.b32.xlu0 %v26733_v49, %s20688_s22  ;;  %v25265_v43 = vpop.permute.xlu1 %16622  ;;  %v26751_v49 = vld [vmem:[#allocation44_spill] sm:$0xff] }
0x1c39   :  { %v16528_v9 = vpop.trf.xlu0  ;;  %v16970_v60 = vsel %vm360_vm2, %v26750_v10, %v25265_v43 }
0x1c3a   :  { %16802 = vrot.lane.b32.xlu1 %v26734_v21, %s20688_s22  ;;  %20045 = vmatmul.mubr.msk.bf16.vlgmr.msra.gmra.mrb[8].mxu1 %vm360_vm2, %v16398_v20 }
0x1c3b   :  { %20055 = vmatpush3.bf16.xpose.msra.mxu1 %v16540_v54  ;;  %20056 = vmatprep.mubr.msk.bf16.mxu1 %vm20677_vm1, %v26416_v45  ;;  %v26737_v45 = vld [vmem:[#allocation103_spill] sm:$0xff]  ;;  %v26752_v54 = vld [vmem:[#allocation45_spill] sm:$0xff] }
0x1c3c   :  { %16780 = vrot.lane.b32.xlu0 %v26735_v14, %s20688_s22  ;;  %v25275_v38 = vpop.permute.xlu1 %16626 }
0x1c3d   :  { %20051 = vmatmul.mubr.msk.bf16.vlgmr.msra.gmra.mrb[12].mxu0 %vm360_vm2, %v16463_v2 }
0x1c3e   :  { %16870 = vrot.lane.b32.xlu1 %v24840_v8, %s20689_s23  ;;  %v26738_v8 = vld [vmem:[#allocation12_spill] sm:$0xff] }
0x1c40   :  { %16784 = vrot.lane.b32.xlu0 %v26736_v59, %s20688_s22  ;;  %v16631_v63 = vpop.permute.xlu1 %16630 }
0x1c42   :  { %16874 = vrot.lane.b32.xlu1 %v24842_v3, %s20689_s23  ;;  %20057 = vmatmul.mubr.msk.bf16.vlgmr.msra.gmra.mrb[12].mxu1 %vm360_vm2, %v16528_v9  ;;  %v26739_v3 = vld [vmem:[#allocation105_spill] sm:$0xff]  ;;  %v26753_v9 = vld [vmem:[#allocation68_spill] sm:$0xff] }
0x1c43   :  { %v16974_v59 = vsel %vm360_vm2, %v26753_v9, %v16631_v63 }
0x1c44   :  { %16788 = vrot.lane.b32.xlu0 %v26737_v45, %s20688_s22  ;;  %v25287_v34 = vpop.permute.xlu1 %16634 }
0x1c46   :  { %16878 = vrot.lane.b32.xlu1 %v24844_v26, %s20689_s23  ;;  %v26740_v26 = vld [vmem:[#allocation14_spill] sm:$0xff] }
0x1c48   :  { %16792 = vrot.lane.b32.xlu0 %v26738_v8, %s20688_s22  ;;  %v25293_v15 = vpop.permute.xlu1 %16638 }
0x1c4a   :  { %16882 = vrot.lane.b32.xlu1 %v24846_v1, %s20689_s23  ;;  %v26741_v1 = vld [vmem:[#allocation13_spill] sm:$0xff] }
0x1c4c   :  { %16796 = vrot.lane.b32.xlu0 %v26739_v3, %s20688_s22  ;;  %v25299_v29 = vpop.permute.xlu1 %16642 }
0x1c4e   :  { %v25301_v13 = vpop.permute.xlu0 %16616  ;;  %16886 = vrot.lane.b32.xlu1 %v24854_v47, %s20689_s23 }
0x1c50   :  { %16800 = vrot.lane.b32.xlu0 %v26740_v26, %s20688_s22  ;;  %v25307_v5 = vpop.permute.xlu1 %16646 }
0x1c52   :  { %v25309_v6 = vpop.permute.xlu0 %16624  ;;  %16890 = vrot.lane.b32.xlu1 %v24858_v33, %s20689_s23 }
0x1c54   :  { %16804 = vrot.lane.b32.xlu0 %v26741_v1, %s20688_s22  ;;  %v25315_v62 = vpop.permute.xlu1 %16650 }
0x1c56   :  { %v25317_v37 = vpop.permute.xlu0 %16628  ;;  %16894 = vrot.lane.b32.xlu1 %v24869_v52, %s20689_s23 }
0x1c58   :  { %v25321_v47 = vpop.permute.xlu1 %16654 }
0x1c5a   :  { %v25323_v57 = vpop.permute.xlu0 %16632  ;;  %16898 = vrot.lane.b32.xlu1 %v24880_v50, %s20689_s23 }
0x1c5c   :  { %v16659_v30 = vpop.permute.xlu1 %16658 }
0x1c5d   :  { %v25329_v33 = vsel %vm360_vm2, %v26742_v51, %v16659_v30  ;;  %v26754_v30 = vld [vmem:[#allocation46_spill] sm:$0xff] }
0x1c5e   :  { %v25331_v25 = vpop.permute.xlu0 %16636  ;;  %16902 = vrot.lane.b32.xlu1 %v24919_v39, %s20689_s23 }
0x1c60   :  { %v16663_v11 = vpop.permute.xlu1 %16662 }
0x1c61   :  { %v25337_v52 = vsel %vm360_vm2, %v26743_v22, %v16663_v11  ;;  %v26755_v22 = vld [vmem:[#allocation73_spill] sm:$0xff] }
0x1c62   :  { %v25339_v41 = vpop.permute.xlu0 %16640  ;;  %16906 = vrot.lane.b32.xlu1 %v24968_v53, %s20689_s23 }
0x1c64   :  { %v16667_v50 = vpop.permute.xlu1 %16666 }
0x1c65   :  { %v25345_v56 = vsel %vm360_vm2, %v26744_v24, %v16667_v50  ;;  %v16976_v50 = vsel %vm360_vm2, %v26755_v22, %v25287_v34  ;;  %v26758_v34 = vld [vmem:[#allocation69_spill] sm:$0xff] }
0x1c66   :  { %v25347_v16 = vpop.permute.xlu0 %16644  ;;  %16910 = vrot.lane.b32.xlu1 %v25022_v32, %s20689_s23 }
0x1c68   :  { %v16671_v39 = vpop.permute.xlu1 %16670 }
0x1c69   :  { %v25353_v4 = vsel %vm360_vm2, %v26745_v12, %v16671_v39  ;;  %v26756_v12 = vld [vmem:[#allocation47_spill] sm:$0xff] }
0x1c6a   :  { %v25355_v31 = vpop.permute.xlu0 %16648 }
0x1c6c   :  { %v16675_v28 = vpop.permute.xlu1 %16674 }
0x1c6d   :  { %v25359_v53 = vsel %vm360_vm2, %v26746_v35, %v16675_v28  ;;  %v26757_v35 = vld [vmem:[#allocation67_spill] sm:$0xff] }
0x1c6e   :  { %v25361_v61 = vpop.permute.xlu0 %16652  ;;  %v16978_v44 = vsel %vm360_vm2, %v26757_v35, %v25293_v15  ;;  %v26759_v15 = vld [vmem:[#allocation78_spill] sm:$0xff] }
0x1c70   :  { %v16743_v32 = vpop.permute.xlu1 %16742 }
0x1c71   :  { %v25367_v55 = vsel %vm16998_vm3, %v16966_v23, %v16743_v32 }
0x1c72   :  { %v25369_v36 = vpop.permute.xlu0 %16656 }
0x1c74   :  { %v16747_v40 = vpop.permute.xlu1 %16746 }
0x1c75   :  { %v25375_v42 = vsel %vm16998_vm3, %v16968_v17, %v16747_v40  ;;  %v16967_v40 = vsel %vm360_vm2, %v26758_v34, %v25301_v13 }
0x1c76   :  { %v16661_v46 = vpop.permute.xlu0 %16660 }
0x1c77   :  { %v25379_v20 = vsel %vm360_vm2, %v26749_v18, %v16661_v46 }
0x1c78   :  { %v16751_v19 = vpop.permute.xlu1 %16750 }
0x1c79   :  { %v25385_v27 = vsel %vm16998_vm3, %v16970_v60, %v16751_v19  ;;  %v16980_v19 = vsel %vm360_vm2, %v26759_v15, %v25299_v29  ;;  %v26765_v15 = vld [vmem:[#allocation81_spill] sm:$0xff] }
0x1c7a   :  { %v16665_v7 = vpop.permute.xlu0 %16664 }
0x1c7b   :  { %v25389_v58 = vsel %vm360_vm2, %v26751_v49, %v16665_v7 }
0x1c7c   :  { %v25391_v2 = vpop.permute.xlu1 %16754 }
0x1c7e   :  { %v16669_v21 = vpop.permute.xlu0 %16668 }
0x1c7f   :  { %v25395_v14 = vsel %vm360_vm2, %v26752_v54, %v16669_v21  ;;  %v26760_v21 = vld [vmem:[#allocation16_spill] sm:$0xff] }
0x1c80   :  { %v14626_v43 = vpop.f32.mrb[208].mxu1  ;;  %v16759_v45 = vpop.permute.xlu1 %16758  ;;  %v16969_v54 = vsel %vm360_vm2, %v26760_v21, %v25254_v0 }
0x1c81   :  { %v25400_v8 = vsel %vm16998_vm3, %v16974_v59, %v16759_v45  ;;  %v19878_v3 = vpop.f32.mrb[209].mxu1  ;;  %16872 = vrot.lane.b32.xlu0 %v14626_v43, %s20689_s23  ;;  %v26761_v59 = vld [vmem:[#allocation77_spill] sm:$0xff] }
0x1c82   :  { %v16673_v26 = vpop.permute.xlu0 %16672  ;;  %v14629_v1 = vpop.f32.mrb[210].mxu1  ;;  %v16982_v43 = vsel %vm360_vm2, %v26761_v59, %v25307_v5 }
0x1c83   :  { %v25405_v51 = vsel %vm360_vm2, %v26754_v30, %v16673_v26  ;;  %v19879_v11 = vpop.f32.mrb[211].mxu1 }
0x1c84   :  { %v16763_v63 = vpop.permute.xlu1 %16762  ;;  %v26762_v11 = vld [vmem:[#allocation76_spill] sm:$0xff] }
0x1c85   :  { %v25411_v24 = vsel %vm16998_vm3, %v16976_v50, %v16763_v63  ;;  %v16984_v22 = vsel %vm360_vm2, %v26762_v11, %v25315_v62  ;;  %v26764_v62 = vld [vmem:[#allocation82_spill] sm:$0xff] }
0x1c86   :  { %v16677_v39 = vpop.permute.xlu0 %16676 }
0x1c87   :  { %v25415_v28 = vsel %vm360_vm2, %v26756_v12, %v16677_v39  ;;  %v26763_v39 = vld [vmem:[#allocation75_spill] sm:$0xff] }
0x1c88   :  { %v14756_v23 = vpop.f32.mrb[212].mxu1  ;;  %v16767_v32 = vpop.permute.xlu1 %16766  ;;  %v16986_v12 = vsel %vm360_vm2, %v26763_v39, %v25321_v47 }
0x1c89   :  { %v25421_v48 = vsel %vm16998_vm3, %v16978_v44, %v16767_v32  ;;  %v19890_v17 = vpop.f32.mrb[213].mxu1  ;;  %16876 = vrot.lane.b32.xlu0 %v14756_v23, %s20689_s23 }
0x1c8a   :  { %v16745_v46 = vpop.permute.xlu0 %16744  ;;  %v14759_v18 = vpop.f32.mrb[214].mxu1  ;;  %v16975_v17 = vsel %vm360_vm2, %v26764_v62, %v25323_v57 }
0x1c8b   :  { %v25428_v10 = vsel %vm16998_vm3, %v16967_v40, %v16745_v46  ;;  %v19891_v60 = vpop.f32.mrb[215].mxu1 }
0x1c8c   :  { %v16771_v7 = vpop.permute.xlu1 %16770 }
0x1c8d   :  { %v25434_v49 = vsel %vm16998_vm3, %v16980_v19, %v16771_v7  ;;  %v16977_v19 = vsel %vm360_vm2, %v26765_v15, %v25331_v25 }
0x1c8e   :  { %v16749_v9 = vpop.permute.xlu0 %16748 }
0x1c8f   :  { %v25440_v13 = vsel %vm16998_vm3, %v16969_v54, %v16749_v9 }
0x1c90   :  { %v14886_v45 = vpop.f32.mrb[216].mxu1  ;;  %v16775_v3 = vpop.permute.xlu1 %16774 }
0x1c91   :  { %v25446_v29 = vsel %vm16998_vm3, %v16982_v43, %v16775_v3  ;;  %v19902_v26 = vpop.f32.mrb[217].mxu1  ;;  %16880 = vrot.lane.b32.xlu0 %v14886_v45, %s20689_s23 }
0x1c92   :  { %v25449_v1 = vpop.permute.xlu0 %16752  ;;  %v14889_v30 = vpop.f32.mrb[218].mxu1 }
0x1c93   :  { %v19903_v0 = vpop.f32.mrb[219].mxu1 }
0x1c94   :  { %v16779_v50 = vpop.permute.xlu1 %16778 }
0x1c95   :  { %v25455_v63 = vsel %vm16998_vm3, %v16984_v22, %v16779_v50 }
0x1c96   :  { %v25457_v5 = vpop.permute.xlu0 %16756 }
0x1c98   :  { %v15016_v35 = vpop.f32.mrb[220].mxu1  ;;  %v16783_v44 = vpop.permute.xlu1 %16782 }
0x1c99   :  { %v25463_v23 = vsel %vm16998_vm3, %v16986_v12, %v16783_v44  ;;  %v19914_v32 = vpop.f32.mrb[221].mxu1  ;;  %16884 = vrot.lane.b32.xlu0 %v15016_v35, %s20689_s23 }
0x1c9a   :  { %v16761_v34 = vpop.permute.xlu0 %16760  ;;  %v15019_v40 = vpop.f32.mrb[222].mxu1 }
0x1c9b   :  { %v25470_v46 = vsel %vm16998_vm3, %v16975_v17, %v16761_v34  ;;  %v19915_v18 = vpop.f32.mrb[223].mxu1 }
0x1c9c   :  { %v16787_v60 = vpop.permute.xlu1 %16786 }
0x1c9d   :  { %v25474_v47 = vsel %vm16998_vm3, %v25329_v33, %v16787_v60  ;;  %v26766_v33 = vld [vmem:[#allocation86_spill] sm:$0xff] }
0x1c9e   :  { %v16765_v7 = vpop.permute.xlu0 %16764  ;;  %v16979_v43 = vsel %vm360_vm2, %v26766_v33, %v25339_v41 }
0x1c9f   :  { %v25480_v21 = vsel %vm16998_vm3, %v16977_v19, %v16765_v7  ;;  %v26770_v7 = vld [vmem:[#allocation15_spill] sm:$0xff] }
0x1ca0   :  { %v15146_v57 = vpop.f32.mrb[224].mxu1  ;;  %v16791_v54 = vpop.permute.xlu1 %16790 }
0x1ca1   :  { %v25484_v9 = vsel %vm16998_vm3, %v25337_v52, %v16791_v54  ;;  %v19926_v59 = vpop.f32.mrb[225].mxu1  ;;  %16888 = vrot.lane.b32.xlu0 %v15146_v57, %s20689_s23  ;;  %v26767_v52 = vld [vmem:[#allocation85_spill] sm:$0xff]  ;;  %v16987_v57 = vsel %vm360_vm2, %v26770_v7, %v25369_v36 }
0x1ca2   :  { %v16769_v45 = vpop.permute.xlu0 %16768  ;;  %v15149_v3 = vpop.f32.mrb[226].mxu1  ;;  %v16981_v11 = vsel %vm360_vm2, %v26767_v52, %v25347_v16 }
0x1ca3   :  { %v25491_v25 = vsel %vm16998_vm3, %v16979_v43, %v16769_v45  ;;  %v19927_v26 = vpop.f32.mrb[227].mxu1 }
0x1ca4   :  { %v16795_v30 = vpop.permute.xlu1 %16794 }
0x1ca5   :  { %v25495_v0 = vsel %vm16998_vm3, %v25345_v56, %v16795_v30  ;;  %v26768_v56 = vld [vmem:[#allocation84_spill] sm:$0xff] }
0x1ca6   :  { %v16773_v22 = vpop.permute.xlu0 %16772  ;;  %v16983_v44 = vsel %vm360_vm2, %v26768_v56, %v25355_v31 }
0x1ca7   :  { %v25501_v50 = vsel %vm16998_vm3, %v16981_v11, %v16773_v22 }
0x1ca8   :  { %v15276_v41 = vpop.f32.mrb[228].mxu1  ;;  %v16799_v39 = vpop.permute.xlu1 %16798 }
0x1ca9   :  { %v25505_v12 = vsel %vm16998_vm3, %v25353_v4, %v16799_v39  ;;  %v19938_v35 = vpop.f32.mrb[229].mxu1  ;;  %16892 = vrot.lane.b32.xlu0 %v15276_v41, %s20689_s23  ;;  %v26769_v4 = vld [vmem:[#allocation88_spill] sm:$0xff] }
0x1caa   :  { %v16777_v32 = vpop.permute.xlu0 %16776  ;;  %v15279_v62 = vpop.f32.mrb[230].mxu1  ;;  %v16985_v18 = vsel %vm360_vm2, %v26769_v4, %v25361_v61 }
0x1cab   :  { %v25512_v16 = vsel %vm16998_vm3, %v16983_v44, %v16777_v32  ;;  %v19939_v17 = vpop.f32.mrb[231].mxu1 }
0x1cac   :  { %v16803_v34 = vpop.permute.xlu1 %16802 }
0x1cad   :  { %v25516_v40 = vsel %vm16998_vm3, %v25359_v53, %v16803_v34 }
0x1cae   :  { %v16781_v60 = vpop.permute.xlu0 %16780 }
0x1caf   :  { %v25522_v15 = vsel %vm16998_vm3, %v16985_v18, %v16781_v60 }
0x1cb0   :  { %v15406_v31 = vpop.f32.mrb[232].mxu1  ;;  %v16871_v4 = vpop.permute.xlu1 %16870 }
0x1cb1   :  { %v19950_v19 = vpop.f32.mrb[233].mxu1  ;;  %16896 = vrot.lane.b32.xlu0 %v15406_v31, %s20689_s23 }
0x1cb2   :  { %v16785_v54 = vpop.permute.xlu0 %16784  ;;  %v15409_v59 = vpop.f32.mrb[234].mxu1  ;;  %v25557_v19 = vsel %vm17031_vm4, %v25367_v55, %v16871_v4 }
0x1cb3   :  { %v25529_v53 = vsel %vm16998_vm3, %v16987_v57, %v16785_v54  ;;  %v19951_v33 = vpop.f32.mrb[235].mxu1  ;;  %v26771_v57 = vld [vmem:[#allocation74_spill] sm:$0xff]  ;;  %v26772_v59 = vld [vmem:[#allocation20_spill] sm:$0xff] }
0x1cb4   :  { %v16875_v18 = vpop.permute.xlu1 %16874  ;;  %v16972_v54 = vsel %vm360_vm2, %v26771_v57, %v25275_v38  ;;  %v16971_v33 = vsel %vm360_vm2, %v26772_v59, %v25309_v6 }
0x1cb5   :  { %v17005_v55 = vsel %vm16998_vm3, %v16972_v54, %v25391_v2 }
0x1cb6   :  { %v16789_v43 = vpop.permute.xlu0 %16788 }
0x1cb7   :  { %v25533_v61 = vsel %vm16998_vm3, %v25379_v20, %v16789_v43  ;;  %v26773_v43 = vld [vmem:[#allocation72_spill] sm:$0xff] }
0x1cb8   :  { %v15536_v45 = vpop.f32.mrb[236].mxu1 }
0x1cb9   :  { %v19962_v3 = vpop.f32.mrb[237].mxu1  ;;  %16900 = vrot.lane.b32.xlu0 %v15536_v45, %s20689_s23  ;;  %v16973_v45 = vsel %vm360_vm2, %v26773_v43, %v25317_v37  ;;  %v17163_v37 = vrot.slane %v25557_v19, 1 }
0x1cba   :  { %v16793_v26 = vpop.permute.xlu0 %16792  ;;  %v15539_v30 = vpop.f32.mrb[238].mxu1  ;;  %v25577_v6 = vsel %vm16998_vm3, %v16973_v45, %v25457_v5 }
0x1cbb   :  { %v25538_v36 = vsel %vm16998_vm3, %v25389_v58, %v16793_v26  ;;  %v19963_v52 = vpop.f32.mrb[239].mxu1  ;;  %v16879_v3 = vpop.permute.xlu1 %16878  ;;  %v25573_v30 = vsel %vm16998_vm3, %v16971_v33, %v25449_v1  ;;  %v17299_v1 = vrot.slane %v25557_v19, 3 }
0x1cbc   :  { %v17231_v52 = vrot.slane %v25557_v19, 2 }
0x1cbe   :  { %v16797_v11 = vpop.permute.xlu0 %16796 }
0x1cbf   :  { %v25542_v22 = vsel %vm16998_vm3, %v25395_v14, %v16797_v11  ;;  %v25583_v11 = vsel %vm17031_vm4, %v25375_v42, %v16875_v18 }
0x1cc0   :  { %v15666_v41 = vpop.f32.mrb[240].mxu1  ;;  %v17099_v42 = vrot.slane %v25583_v11, 6 }
0x1cc1   :  { %v19974_v39 = vpop.f32.mrb[241].mxu1  ;;  %16904 = vrot.lane.b32.xlu0 %v15666_v41, %s20689_s23 }
0x1cc2   :  { %v16801_v20 = vpop.permute.xlu0 %16800  ;;  %v15669_v35 = vpop.f32.mrb[242].mxu1  ;;  %v17367_v39 = vrot.slane %v25557_v19, 4 }
0x1cc3   :  { %v25547_v56 = vsel %vm16998_vm3, %v25405_v51, %v16801_v20  ;;  %v19975_v44 = vpop.f32.mrb[243].mxu1  ;;  %v17427_v20 = vrot.slane %v25557_v19, 5  ;;  %v17495_v35 = vrot.slane %v25557_v19, 6 }
0x1cc4   :  { %v17563_v44 = vrot.slane %v25557_v19, 7 }
0x1cc6   :  { %v16805_v32 = vpop.permute.xlu0 %16804 }
0x1cc7   :  { %v25551_v58 = vsel %vm16998_vm3, %v25415_v28, %v16805_v32 }
0x1cc8   :  { %v15796_v62 = vpop.f32.mrb[244].mxu1 }
0x1cc9   :  { %v19986_v17 = vpop.f32.mrb[245].mxu1  ;;  %16908 = vrot.lane.b32.xlu0 %v15796_v62, %s20689_s23 }
0x1cca   :  { %v15799_v14 = vpop.f32.mrb[246].mxu1 }
0x1ccb   :  { %v19987_v34 = vpop.f32.mrb[247].mxu1  ;;  %v17165_v14 = vrot.slane %v25583_v11, 7 }
0x1ccc   :  { %v17302_v34 = vrot.slane %v25583_v11, 1 }
0x1ced   :  { %v15926_v60 = vpop.f32.mrb[248].mxu1 }
0x1cee   :  { %16912 = vrot.lane.b32.xlu0 %v15926_v60, %s20689_s23  ;;  %v19998_v51 = vpop.f32.mrb[249].mxu1  ;;  %v16883_v60 = vpop.permute.xlu1 %16882 }
0x1cef   :  { %v15929_v31 = vpop.f32.mrb[250].mxu1 }
0x1cf0   :  { %v19999_v28 = vpop.f32.mrb[251].mxu1  ;;  %v15991_v7 = vpop.f32.mrb[252].mxu0 }
0x1cf1   :  { %16914 = vrot.lane.b32.xlu1 %v15991_v7, %s20689_s23  ;;  %v20004_v26 = vpop.f32.mrb[253].mxu0 }
0x1cf2   :  { %v15994_v38 = vpop.f32.mrb[254].mxu0  ;;  %v17370_v26 = vrot.slane %v25583_v11, 2 }
0x1cf3   :  { %v16873_v2 = vpop.permute.xlu0 %16872  ;;  %v20005_v41 = vpop.f32.mrb[255].mxu0 }
0x1cf4   :  { %v17033_v5 = vsel %vm17031_vm4, %v25428_v10, %v16873_v2  ;;  %v25598_v10 = vsel %vm17031_vm4, %v25385_v27, %v16879_v3  ;;  %v17430_v27 = vrot.slane %v25583_v11, 3  ;;  %v17566_v3 = vrot.slane %v25583_v11, 5 }
0x1cf5   :  { %v17232_v32 = vrot.slane %v17033_v5, 1  ;;  %v17300_v62 = vrot.slane %v17033_v5, 2  ;;  %v16056_v17 = vpop.f32.mrb[252].mxu1  ;;  %v17564_v4 = vrot.slane %v17033_v5, 6  ;;  %v17096_v51 = vrot.slane %v17033_v5, 7 }
0x1cf6   :  { %16916 = vrot.lane.b32.xlu0 %v16056_v17, %s20689_s23  ;;  %v20010_v18 = vpop.f32.mrb[253].mxu1  ;;  %v17428_v31 = vrot.slane %v17033_v5, 4  ;;  %v17164_v7 = vsel %vm17097_vm5, %v17033_v5, %v17163_v37  ;;  %v17368_v57 = vrot.slane %v17033_v5, 3  ;;  %v17496_v54 = vrot.slane %v17033_v5, 5 }
0x1cf7   :  { %v16059_v28 = vpop.f32.mrb[254].mxu1  ;;  %v17233_v43 = vsel %vm17097_vm5, %v17232_v32, %v17231_v52  ;;  %v17301_v45 = vsel %vm17097_vm5, %v17300_v62, %v17299_v1  ;;  %v17565_v37 = vsel %vm17097_vm5, %v17564_v4, %v17563_v44  ;;  %v25609_v2 = vsel %vm17031_vm4, %v17005_v55, %v16883_v60 }
0x1cf8   :  { %v20011_v59 = vpop.f32.mrb[255].mxu1  ;;  %v16121_v33 = vpop.f32.mrb[0].mxu0  ;;  %v17570_v5 = vrot.slane %v25598_v10, 3  ;;  %v17166_v52 = vsel %vm17100_vm6, %v17165_v14, %v17164_v7  ;;  %v17498_v1 = vrot.slane %v25583_v11, 4  ;;  %v17234_v17 = vsel %vm17100_vm6, %v25583_v11, %v17233_v43 }
0x1cf9   :  { %16918 = vrot.lane.b32.xlu1 %v16121_v33, %s20689_s23  ;;  %v20016_v38 = vpop.f32.mrb[1].mxu0  ;;  %v17303_v18 = vsel %vm17100_vm6, %v17302_v34, %v17301_v45  ;;  %v17429_v44 = vsel %vm17097_vm5, %v17428_v31, %v17427_v20  ;;  %v17098_v55 = vsel %vm17097_vm5, %v17096_v51, %v25557_v19  ;;  %v17567_v14 = vsel %vm17100_vm6, %v17566_v3, %v17565_v37 }
0x1cfa   :  { %v16124_v41 = vpop.f32.mrb[2].mxu0  ;;  %v17497_v60 = vsel %vm17097_vm5, %v17496_v54, %v17495_v35  ;;  %v17369_v28 = vsel %vm17097_vm5, %v17368_v57, %v17367_v39  ;;  %v17431_v19 = vsel %vm17100_vm6, %v17430_v27, %v17429_v44 }
0x1cfb   :  { %v16877_v32 = vpop.permute.xlu0 %16876  ;;  %v20017_v62 = vpop.f32.mrb[3].mxu0  ;;  %v17499_v37 = vsel %vm17100_vm6, %v17498_v1, %v17497_v60  ;;  %v17101_v41 = vsel %vm17100_vm6, %v17099_v42, %v17098_v55  ;;  %v17371_v27 = vsel %vm17100_vm6, %v17370_v26, %v17369_v28  ;;  %v17169_v1 = vrot.slane %v25598_v10, 5 }
0x1cfc   :  { %v17035_v4 = vsel %vm17031_vm4, %v25440_v13, %v16877_v32  ;;  %v17305_v62 = vrot.slane %v25598_v10, 7  ;;  %v17237_v42 = vrot.slane %v25598_v10, 6  ;;  %v17434_v26 = vrot.slane %v25598_v10, 1 }
0x1cfd   :  { %v16186_v7 = vpop.f32.mrb[0].mxu1  ;;  %v17568_v59 = vrot.slane %v17035_v4, 4  ;;  %v17167_v33 = vrot.slane %v17035_v4, 6  ;;  %v17235_v11 = vrot.slane %v17035_v4, 7  ;;  %v17304_v34 = vsel %vm17103_vm7, %v17035_v4, %v17303_v18 }
0x1cfe   :  { %16920 = vrot.lane.b32.xlu0 %v16186_v7, %s20689_s23  ;;  %v20022_v20 = vpop.f32.mrb[1].mxu1  ;;  %v17432_v51 = vrot.slane %v17035_v4, 2  ;;  %v17500_v31 = vrot.slane %v17035_v4, 3  ;;  %v17102_v13 = vrot.slane %v17035_v4, 5  ;;  %v17372_v57 = vrot.slane %v17035_v4, 1 }
0x1cff   :  { %v16189_v43 = vpop.f32.mrb[2].mxu1  ;;  %v17569_v45 = vsel %vm17103_vm7, %v17568_v59, %v17567_v14  ;;  %v17168_v35 = vsel %vm17103_vm7, %v17167_v33, %v17166_v52  ;;  %v17236_v39 = vsel %vm17103_vm7, %v17235_v11, %v17234_v17  ;;  %v17502_v55 = vrot.slane %v25598_v10, 2  ;;  %v16887_v33 = vpop.permute.xlu1 %16886 }
0x1d00   :  { %v20023_v54 = vpop.f32.mrb[3].mxu1  ;;  %v16251_v3 = vpop.f32.mrb[4].mxu0  ;;  %v17433_v38 = vsel %vm17103_vm7, %v17432_v51, %v17431_v19  ;;  %v17501_v52 = vsel %vm17103_vm7, %v17500_v31, %v17499_v37  ;;  %v17104_v17 = vsel %vm17103_vm7, %v17102_v13, %v17101_v41  ;;  %v17373_v18 = vsel %vm17103_vm7, %v17372_v57, %v17371_v27 }
0x1d01   :  { %16922 = vrot.lane.b32.xlu1 %v16251_v3, %s20689_s23  ;;  %v20028_v32 = vpop.f32.mrb[5].mxu0  ;;  %v17571_v60 = vsel %vm17106_vm8, %v17570_v5, %v17569_v45  ;;  %v17574_v28 = vrot.slane %v25609_v2, 1  ;;  %v17306_v7 = vsel %vm17106_vm8, %v17305_v62, %v17304_v34  ;;  %v17105_v59 = vrot.slane %v25598_v10, 4 }
0x1d02   :  { %v16254_v44 = vpop.f32.mrb[6].mxu0  ;;  %v17170_v20 = vsel %vm17106_vm8, %v17169_v1, %v17168_v35  ;;  %v17238_v19 = vsel %vm17106_vm8, %v17237_v42, %v17236_v39  ;;  %v17435_v51 = vsel %vm17106_vm8, %v17434_v26, %v17433_v38  ;;  %v17173_v62 = vrot.slane %v25609_v2, 3 }
0x1d03   :  { %v16881_v4 = vpop.permute.xlu0 %16880  ;;  %v20029_v14 = vpop.f32.mrb[7].mxu0  ;;  %v17503_v44 = vsel %vm17106_vm8, %v17502_v55, %v17501_v52  ;;  %v17107_v1 = vsel %vm17106_vm8, %v17105_v59, %v17104_v17  ;;  %v17374_v42 = vsel %vm17106_vm8, %v25598_v10, %v17373_v18  ;;  %v17309_v52 = vrot.slane %v25609_v2, 5 }
0x1d04   :  { %v17037_v11 = vsel %vm17031_vm4, %v25573_v30, %v16881_v4  ;;  %v17241_v4 = vrot.slane %v25609_v2, 4  ;;  %v17437_v17 = vrot.slane %v25609_v2, 7  ;;  %v17111_v55 = vrot.slane %v25609_v2, 2 }
0x1d05   :  { %v16316_v31 = vpop.f32.mrb[4].mxu1  ;;  %v17572_v13 = vrot.slane %v17037_v11, 2  ;;  %v17171_v43 = vrot.slane %v17037_v11, 4  ;;  %v17239_v5 = vrot.slane %v17037_v11, 5  ;;  %v17307_v45 = vrot.slane %v17037_v11, 6 }
0x1d06   :  { %16924 = vrot.lane.b32.xlu0 %v16316_v31, %s20689_s23  ;;  %v20034_v34 = vpop.f32.mrb[5].mxu1  ;;  %v17436_v57 = vsel %vm17109_vm9, %v17037_v11, %v17435_v51  ;;  %v17504_v54 = vrot.slane %v17037_v11, 1  ;;  %v17108_v3 = vrot.slane %v17037_v11, 3  ;;  %v17375_v37 = vrot.slane %v17037_v11, 7  ;;  %v16891_v11 = vpop.permute.xlu1 %16890 }
0x1d07   :  { %v16319_v30 = vpop.f32.mrb[6].mxu1  ;;  %v17573_v35 = vsel %vm17109_vm9, %v17572_v13, %v17571_v60  ;;  %v17172_v39 = vsel %vm17109_vm9, %v17171_v43, %v17170_v20  ;;  %v17240_v38 = vsel %vm17109_vm9, %v17239_v5, %v17238_v19  ;;  %v17308_v41 = vsel %vm17109_vm9, %v17307_v45, %v17306_v7 }
0x1d08   :  { %v20035_v27 = vpop.f32.mrb[7].mxu1  ;;  %v16381_v32 = vpop.f32.mrb[8].mxu0  ;;  %v17505_v14 = vsel %vm17109_vm9, %v17504_v54, %v17503_v44  ;;  %v17110_v60 = vsel %vm17109_vm9, %v17108_v3, %v17107_v1  ;;  %v17376_v7 = vsel %vm17109_vm9, %v17375_v37, %v17374_v42  ;;  %v17377_v10 = vrot.slane %v25609_v2, 6 }
0x1d09   :  { %16926 = vrot.lane.b32.xlu1 %v16381_v32, %s20689_s23  ;;  %v20040_v26 = vpop.f32.mrb[9].mxu0  ;;  %v25675_v18 = vsel %vm17031_vm4, %v25400_v8, %v16887_v33  ;;  %v17575_v51 = vsel %vm17112_vm10, %v17574_v28, %v17573_v35  ;;  %v17174_v31 = vsel %vm17112_vm10, %v17173_v62, %v17172_v39  ;;  %v17242_v13 = vsel %vm17112_vm10, %v17241_v4, %v17240_v38 }
0x1d0a   :  { %v16384_v20 = vpop.f32.mrb[10].mxu0  ;;  %v17310_v5 = vsel %vm17112_vm10, %v17309_v52, %v17308_v41  ;;  %v17438_v45 = vsel %vm17112_vm10, %v17437_v17, %v17436_v57  ;;  %v17506_v34 = vsel %vm17112_vm10, %v25609_v2, %v17505_v14  ;;  %v17378_v26 = vsel %vm17112_vm10, %v17377_v10, %v17376_v7  ;;  %v16895_v4 = vpop.permute.xlu1 %16894 }
0x1d0b   :  { %v16885_v59 = vpop.permute.xlu0 %16884  ;;  %v20041_v19 = vpop.f32.mrb[11].mxu0  ;;  %v25712_v20 = vsel %vm17031_vm4, %v25411_v24, %v16891_v11  ;;  %v17177_v17 = vrot.slane %v25675_v18, 1  ;;  %v17381_v10 = vrot.slane %v25675_v18, 4  ;;  %v17577_v24 = vrot.slane %v25675_v18, 7 }
0x1d0c   :  { %v17039_v43 = vsel %vm17031_vm4, %v25577_v6, %v16885_v59  ;;  %v17113_v6 = vsel %vm17112_vm10, %v17111_v55, %v17110_v60  ;;  %v17245_v55 = vrot.slane %v25675_v18, 2  ;;  %v17313_v59 = vrot.slane %v25675_v18, 3 }
0x1d0d   :  { %v16446_v8 = vpop.f32.mrb[8].mxu1  ;;  %v17576_v33 = vsel %vm17115_vm11, %v17039_v43, %v17575_v51  ;;  %v17175_v54 = vrot.slane %v17039_v43, 2  ;;  %v17243_v3 = vrot.slane %v17039_v43, 3  ;;  %v17311_v28 = vrot.slane %v17039_v43, 4 }
0x1d0e   :  { %16928 = vrot.lane.b32.xlu0 %v16446_v8, %s20689_s23  ;;  %v20046_v37 = vpop.f32.mrb[9].mxu1  ;;  %v17439_v30 = vrot.slane %v17039_v43, 6  ;;  %v17507_v35 = vrot.slane %v17039_v43, 7  ;;  %v17114_v39 = vrot.slane %v17039_v43, 1  ;;  %v17379_v27 = vrot.slane %v17039_v43, 5 }
0x1d0f   :  { %v16449_v38 = vpop.f32.mrb[10].mxu1  ;;  %v17176_v57 = vsel %vm17115_vm11, %v17175_v54, %v17174_v31  ;;  %v25691_v41 = vsel %vm17115_vm11, %v17243_v3, %v17242_v13  ;;  %v25694_v2 = vsel %vm17115_vm11, %v17311_v28, %v17310_v5  ;;  %v17441_v51 = vrot.slane %v25675_v18, 5  ;;  %v16899_v37 = vpop.permute.xlu1 %16898 }
0x1d10   :  { %v20047_v32 = vpop.f32.mrb[11].mxu1  ;;  %v16511_v62 = vpop.f32.mrb[12].mxu0  ;;  %v25697_v44 = vsel %vm17115_vm11, %v17439_v30, %v17438_v45  ;;  %v25700_v1 = vsel %vm17115_vm11, %v17507_v35, %v17506_v34  ;;  %v25703_v42 = vsel %vm17115_vm11, %v17114_v39, %v17113_v6  ;;  %v25708_v60 = vsel %vm17115_vm11, %v17379_v27, %v17378_v26 }
0x1d11   :  { %16930 = vrot.lane.b32.xlu1 %v16511_v62, %s20689_s23  ;;  %v20052_v14 = vpop.f32.mrb[13].mxu0  ;;  %v17509_v31 = vrot.slane %v25675_v18, 6  ;;  %v17119_v11 = vrot.slane %v25712_v20, 6  ;;  %v17179_v34 = vrot.slane %v25712_v20, 7  ;;  %v17316_v8 = vrot.slane %v25712_v20, 1 }
0x1d12   :  { %v16514_v52 = vpop.f32.mrb[14].mxu0  ;;  %v17384_v54 = vrot.slane %v25712_v20, 2  ;;  %v17444_v26 = vrot.slane %v25712_v20, 3  ;;  %v17580_v14 = vrot.slane %v25712_v20, 5 }
0x1d13   :  { %v16889_v19 = vpop.permute.xlu0 %16888  ;;  %v20053_v7 = vpop.f32.mrb[15].mxu0  ;;  %v25743_v52 = vsel %vm17031_vm4, %v25434_v49, %v16899_v37 }
0x1d14   :  { %v17041_v13 = vsel %vm17031_vm4, %v25470_v46, %v16889_v19  ;;  %v25731_v46 = vsel %vm17031_vm4, %v25421_v48, %v16895_v4  ;;  %v17512_v4 = vrot.slane %v25712_v20, 4 }
0x1d15   :  { %v17246_v43 = vrot.slane %v17041_v13, 1  ;;  %v17314_v5 = vrot.slane %v17041_v13, 2  ;;  %v16576_v45 = vpop.f32.mrb[12].mxu1  ;;  %17619 = vrot.lane.b32.xlu1 %v17576_v33, %s20678_s2  ;;  %v17578_v3 = vrot.slane %v17041_v13, 6  ;;  %v17117_v30 = vrot.slane %v17041_v13, 7 }
0x1d16   :  { %16932 = vrot.lane.b32.xlu0 %v16576_v45, %s20689_s23  ;;  %v20058_v28 = vpop.f32.mrb[13].mxu1  ;;  %v17442_v35 = vrot.slane %v17041_v13, 4  ;;  %v17178_v33 = vsel %vm17097_vm5, %v17041_v13, %v17177_v17  ;;  %v17382_v39 = vrot.slane %v17041_v13, 3  ;;  %v17510_v38 = vrot.slane %v17041_v13, 5 }
0x1d17   :  { %v16579_v6 = vpop.f32.mrb[14].mxu1  ;;  %v17247_v32 = vsel %vm17097_vm5, %v17246_v43, %v17245_v55  ;;  %v17315_v62 = vsel %vm17097_vm5, %v17314_v5, %v17313_v59  ;;  %v17579_v48 = vsel %vm17097_vm5, %v17578_v3, %v17577_v24  ;;  %v17584_v17 = vrot.slane %v25731_v46, 3 }
0x1d18   :  { %v20059_v27 = vpop.f32.mrb[15].mxu1  ;;  %v17180_v55 = vsel %vm17100_vm6, %v17179_v34, %v17178_v33  ;;  %v17183_v59 = vrot.slane %v25731_v46, 5  ;;  %v17248_v7 = vsel %vm17100_vm6, %v25712_v20, %v17247_v32  ;;  %v17443_v13 = vsel %vm17097_vm5, %v17442_v35, %v17441_v51 }
0x1d19   :  { %17219 = vrot.lane.b32.xlu1 %v17176_v57, %s20690_s24  ;;  %v17317_v57 = vsel %vm17100_vm6, %v17316_v8, %v17315_v62  ;;  %v17118_v24 = vsel %vm17097_vm5, %v17117_v30, %v25675_v18  ;;  %v17581_v43 = vsel %vm17100_vm6, %v17580_v14, %v17579_v48  ;;  %v17511_v5 = vsel %vm17097_vm5, %v17510_v38, %v17509_v31 }
0x1d1a   :  { %v17383_v45 = vsel %vm17097_vm5, %v17382_v39, %v17381_v10  ;;  %v17445_v3 = vsel %vm17100_vm6, %v17444_v26, %v17443_v13  ;;  %v17120_v6 = vsel %vm17100_vm6, %v17119_v11, %v17118_v24  ;;  %v17319_v39 = vrot.slane %v25731_v46, 7 }
0x1d1b   :  { %v16893_v19 = vpop.permute.xlu0 %16892  ;;  %v17385_v33 = vsel %vm17100_vm6, %v17384_v54, %v17383_v45  ;;  %v17251_v62 = vrot.slane %v25731_v46, 6  ;;  %v17448_v26 = vrot.slane %v25731_v46, 1  ;;  %v17516_v14 = vrot.slane %v25731_v46, 2 }
0x1d1c   :  { %v17043_v49 = vsel %vm17031_vm4, %v25480_v21, %v16893_v19  ;;  %v17123_v11 = vrot.slane %v25731_v46, 4 }
0x1d1d   :  { %17287 = vrot.lane.b32.xlu1 %v25691_v41, %s20674_s0  ;;  %v17582_v20 = vrot.slane %v17043_v49, 4  ;;  %v17181_v34 = vrot.slane %v17043_v49, 6  ;;  %v17249_v8 = vrot.slane %v17043_v49, 7  ;;  %v17318_v51 = vsel %vm17103_vm7, %v17043_v49, %v17317_v57 }
0x1d1e   :  { %v17446_v18 = vrot.slane %v17043_v49, 2  ;;  %v17514_v28 = vrot.slane %v17043_v49, 3  ;;  %v17121_v37 = vrot.slane %v17043_v49, 5  ;;  %v17386_v10 = vrot.slane %v17043_v49, 1 }
0x1d1f   :  { %v17583_v21 = vsel %vm17103_vm7, %v17582_v20, %v17581_v43  ;;  %v17182_v30 = vsel %vm17103_vm7, %v17181_v34, %v17180_v55  ;;  %v17250_v31 = vsel %vm17103_vm7, %v17249_v8, %v17248_v7  ;;  %v17513_v41 = vsel %vm17100_vm6, %v17512_v4, %v17511_v5 }
0x1d20   :  { %v17447_v35 = vsel %vm17103_vm7, %v17446_v18, %v17445_v3  ;;  %v17515_v38 = vsel %vm17103_vm7, %v17514_v28, %v17513_v41  ;;  %v17122_v27 = vsel %vm17103_vm7, %v17121_v37, %v17120_v6  ;;  %v17387_v32 = vsel %vm17103_vm7, %v17386_v10, %v17385_v33  ;;  %v16903_v6 = vpop.permute.xlu1 %16902 }
0x1d21   :  { %17355 = vrot.lane.b32.xlu1 %v25694_v2, %s20678_s2  ;;  %v17585_v48 = vsel %vm17106_vm8, %v17584_v17, %v17583_v21  ;;  %v17588_v2 = vrot.slane %v25743_v52, 1  ;;  %v17187_v4 = vrot.slane %v25743_v52, 3  ;;  %v17320_v55 = vsel %vm17106_vm8, %v17319_v39, %v17318_v51 }
0x1d22   :  { %v17184_v7 = vsel %vm17106_vm8, %v17183_v59, %v17182_v30  ;;  %v17252_v57 = vsel %vm17106_vm8, %v17251_v62, %v17250_v31  ;;  %v17449_v13 = vsel %vm17106_vm8, %v17448_v26, %v17447_v35  ;;  %v17255_v3 = vrot.slane %v25743_v52, 4 }
0x1d23   :  { %v16897_v54 = vpop.permute.xlu0 %16896  ;;  %v17124_v18 = vsel %vm17106_vm8, %v17123_v11, %v17122_v27  ;;  %v17388_v28 = vsel %vm17106_vm8, %v25731_v46, %v17387_v32  ;;  %v17323_v37 = vrot.slane %v25743_v52, 5  ;;  %v17451_v10 = vrot.slane %v25743_v52, 7 }
0x1d24   :  { %v17045_v19 = vsel %vm17031_vm4, %v25491_v25, %v16897_v54  ;;  %v17127_v35 = vrot.slane %v25743_v52, 2  ;;  %v17391_v41 = vrot.slane %v25743_v52, 6 }
0x1d25   :  { %17483 = vrot.lane.b32.xlu1 %v25697_v44, %s20690_s24  ;;  %v17586_v24 = vrot.slane %v17045_v19, 2  ;;  %v17185_v17 = vrot.slane %v17045_v19, 4  ;;  %v17253_v49 = vrot.slane %v17045_v19, 5  ;;  %v17321_v43 = vrot.slane %v17045_v19, 6 }
0x1d26   :  { %v17450_v5 = vsel %vm17109_vm9, %v17045_v19, %v17449_v13  ;;  %v17518_v45 = vrot.slane %v17045_v19, 1  ;;  %v17125_v20 = vrot.slane %v17045_v19, 3  ;;  %v17389_v34 = vrot.slane %v17045_v19, 7 }
0x1d27   :  { %v17587_v25 = vsel %vm17109_vm9, %v17586_v24, %v17585_v48  ;;  %v17186_v59 = vsel %vm17109_vm9, %v17185_v17, %v17184_v7  ;;  %v17254_v8 = vsel %vm17109_vm9, %v17253_v49, %v17252_v57  ;;  %v17322_v51 = vsel %vm17109_vm9, %v17321_v43, %v17320_v55 }
0x1d28   :  { %v17517_v44 = vsel %vm17106_vm8, %v17516_v14, %v17515_v38  ;;  %v17126_v30 = vsel %vm17109_vm9, %v17125_v20, %v17124_v18  ;;  %v17390_v31 = vsel %vm17109_vm9, %v17389_v34, %v17388_v28  ;;  %v17589_v46 = vsel %vm17112_vm10, %v17588_v2, %v17587_v25 }
0x1d29   :  { %17551 = vrot.lane.b32.xlu1 %v25700_v1, %s20674_s0  ;;  %v17519_v21 = vsel %vm17109_vm9, %v17518_v45, %v17517_v44  ;;  %v17188_v1 = vsel %vm17112_vm10, %v17187_v4, %v17186_v59  ;;  %v17256_v39 = vsel %vm17112_vm10, %v17255_v3, %v17254_v8  ;;  %v17324_v38 = vsel %vm17112_vm10, %v17323_v37, %v17322_v51 }
0x1d2a   :  { %v17452_v32 = vsel %vm17112_vm10, %v17451_v10, %v17450_v5  ;;  %v17520_v62 = vsel %vm17112_vm10, %v25743_v52, %v17519_v21  ;;  %v17128_v26 = vsel %vm17112_vm10, %v17127_v35, %v17126_v30  ;;  %v17392_v52 = vsel %vm17112_vm10, %v17391_v41, %v17390_v31  ;;  %v16907_v5 = vpop.permute.xlu1 %16906 }
0x1d2b   :  { %v16901_v33 = vpop.permute.xlu0 %16900  ;;  %v17048_v43 = vsel %vm17031_vm4, %v25446_v29, %v16903_v6  ;;  %v17050_v25 = vsel %vm17031_vm4, %v25455_v63, %v16907_v5 }
0x1d2c   :  { %v17047_v27 = vsel %vm17031_vm4, %v25501_v50, %v16901_v33  ;;  %v17191_v20 = vrot.slane %v17048_v43, 1  ;;  %v17259_v34 = vrot.slane %v17048_v43, 2  ;;  %v17327_v8 = vrot.slane %v17048_v43, 3 }
0x1d2d   :  { %v17590_v14 = vsel %vm17115_vm11, %v17047_v27, %v17589_v46  ;;  %v17189_v11 = vrot.slane %v17047_v27, 2  ;;  %v17257_v54 = vrot.slane %v17047_v27, 3  ;;  %v17325_v48 = vrot.slane %v17047_v27, 4 }
0x1d2e   :  { %17621 = vrot.lane.b32.xlu0 %v17590_v14, %s20678_s2  ;;  %v17453_v2 = vrot.slane %v17047_v27, 6  ;;  %v17521_v4 = vrot.slane %v17047_v27, 7  ;;  %v17129_v55 = vrot.slane %v17047_v27, 1  ;;  %v17393_v19 = vrot.slane %v17047_v27, 5 }
0x1d2f   :  { %v17190_v50 = vsel %vm17115_vm11, %v17189_v11, %v17188_v1  ;;  %v17258_v7 = vsel %vm17115_vm11, %v17257_v54, %v17256_v39  ;;  %v17326_v57 = vsel %vm17115_vm11, %v17325_v48, %v17324_v38  ;;  %v17395_v51 = vrot.slane %v17048_v43, 4 }
0x1d30   :  { %v17454_v13 = vsel %vm17115_vm11, %v17453_v2, %v17452_v32  ;;  %v25828_v24 = vsel %vm17115_vm11, %v17521_v4, %v17520_v62  ;;  %v25831_v17 = vsel %vm17115_vm11, %v17129_v55, %v17128_v26  ;;  %v25834_v49 = vsel %vm17115_vm11, %v17393_v19, %v17392_v52 }
0x1d31   :  { %v17455_v18 = vrot.slane %v17048_v43, 5  ;;  %v17523_v28 = vrot.slane %v17048_v43, 6  ;;  %v17591_v37 = vrot.slane %v17048_v43, 7  ;;  %v17193_v21 = vrot.slane %v17050_v25, 7 }
0x1d32   :  { %17221 = vrot.lane.b32.xlu0 %v17190_v50, %s20690_s24  ;;  %v17133_v6 = vrot.slane %v17050_v25, 6  ;;  %v17330_v33 = vrot.slane %v17050_v25, 1  ;;  %v17398_v46 = vrot.slane %v17050_v25, 2  ;;  %v17458_v39 = vrot.slane %v17050_v25, 3 }
0x1d33   :  { %v16905_v45 = vpop.permute.xlu0 %16904  ;;  %v17594_v38 = vrot.slane %v17050_v25, 5  ;;  %v17526_v32 = vrot.slane %v17050_v25, 4 }
0x1d34   :  { %v17049_v59 = vsel %vm17031_vm4, %v25512_v16, %v16905_v45 }
0x1d35   :  { %v17260_v3 = vrot.slane %v17049_v59, 1  ;;  %v17328_v44 = vrot.slane %v17049_v59, 2  ;;  %v17456_v29 = vrot.slane %v17049_v59, 4  ;;  %v17131_v30 = vrot.slane %v17049_v59, 7 }
0x1d36   :  { %17289 = vrot.lane.b32.xlu0 %v17258_v7, %s20674_s0  ;;  %v17524_v31 = vrot.slane %v17049_v59, 5  ;;  %v17192_v10 = vsel %vm17097_vm5, %v17049_v59, %v17191_v20  ;;  %v17396_v35 = vrot.slane %v17049_v59, 3  ;;  %v17592_v63 = vrot.slane %v17049_v59, 6 }
0x1d37   :  { %v17261_v41 = vsel %vm17097_vm5, %v17260_v3, %v17259_v34  ;;  %v17329_v16 = vsel %vm17097_vm5, %v17328_v44, %v17327_v8  ;;  %v17457_v1 = vsel %vm17097_vm5, %v17456_v29, %v17455_v18  ;;  %v17194_v27 = vsel %vm17100_vm6, %v17193_v21, %v17192_v10 }
0x1d38   :  { %v17262_v26 = vsel %vm17100_vm6, %v17050_v25, %v17261_v41  ;;  %v17331_v14 = vsel %vm17100_vm6, %v17330_v33, %v17329_v16  ;;  %v17525_v11 = vsel %vm17097_vm5, %v17524_v31, %v17523_v28  ;;  %v17132_v54 = vsel %vm17097_vm5, %v17131_v30, %v17048_v43  ;;  %v16911_v28 = vpop.permute.xlu1 %16910 }
0x1d39   :  { %v17459_v2 = vsel %vm17100_vm6, %v17458_v39, %v17457_v1  ;;  %v17593_v4 = vsel %vm17097_vm5, %v17592_v63, %v17591_v37  ;;  %v17397_v55 = vsel %vm17097_vm5, %v17396_v35, %v17395_v51  ;;  %v17527_v52 = vsel %vm17100_vm6, %v17526_v32, %v17525_v11 }
0x1d3a   :  { %17357 = vrot.lane.b32.xlu0 %v17326_v57, %s20678_s2  ;;  %v17595_v8 = vsel %vm17100_vm6, %v17594_v38, %v17593_v4  ;;  %v17134_v51 = vsel %vm17100_vm6, %v17133_v6, %v17132_v54  ;;  %v17052_v37 = vsel %vm17031_vm4, %v25463_v23, %v16911_v28 }
0x1d3b   :  { %v16909_v62 = vpop.permute.xlu0 %16908  ;;  %v17333_v29 = vrot.slane %v17052_v37, 7  ;;  %v17197_v21 = vrot.slane %v17052_v37, 5  ;;  %v17265_v30 = vrot.slane %v17052_v37, 6  ;;  %v17462_v31 = vrot.slane %v17052_v37, 1 }
0x1d3c   :  { %v17051_v48 = vsel %vm17031_vm4, %v25522_v15, %v16909_v62  ;;  %v17530_v10 = vrot.slane %v17052_v37, 2  ;;  %v17598_v63 = vrot.slane %v17052_v37, 3  ;;  %v17137_v41 = vrot.slane %v17052_v37, 4 }
0x1d3d   :  { %v17195_v19 = vrot.slane %v17051_v48, 6  ;;  %v17263_v50 = vrot.slane %v17051_v48, 7  ;;  %v17332_v7 = vsel %vm17103_vm7, %v17051_v48, %v17331_v14  ;;  %v17460_v57 = vrot.slane %v17051_v48, 2 }
0x1d3e   :  { %17485 = vrot.lane.b32.xlu0 %v17454_v13, %s20690_s24  ;;  %v17528_v5 = vrot.slane %v17051_v48, 3  ;;  %v17596_v43 = vrot.slane %v17051_v48, 4  ;;  %v17135_v45 = vrot.slane %v17051_v48, 5  ;;  %v17400_v25 = vrot.slane %v17051_v48, 1 }
0x1d3f   :  { %v17196_v15 = vsel %vm17103_vm7, %v17195_v19, %v17194_v27  ;;  %v17264_v20 = vsel %vm17103_vm7, %v17263_v50, %v17262_v26  ;;  %v17461_v34 = vsel %vm17103_vm7, %v17460_v57, %v17459_v2  ;;  %v17399_v13 = vsel %vm17100_vm6, %v17398_v46, %v17397_v55 }
0x1d40   :  { %v17529_v59 = vsel %vm17103_vm7, %v17528_v5, %v17527_v52  ;;  %v17597_v3 = vsel %vm17103_vm7, %v17596_v43, %v17595_v8  ;;  %v17136_v44 = vsel %vm17103_vm7, %v17135_v45, %v17134_v51  ;;  %v17401_v18 = vsel %vm17103_vm7, %v17400_v25, %v17399_v13 }
0x1d41   :  { %v17334_v35 = vsel %vm17106_vm8, %v17333_v29, %v17332_v7  ;;  %v17198_v6 = vsel %vm17106_vm8, %v17197_v21, %v17196_v15  ;;  %v17266_v33 = vsel %vm17106_vm8, %v17265_v30, %v17264_v20  ;;  %v17531_v46 = vsel %vm17106_vm8, %v17530_v10, %v17529_v59 }
0x1d42   :  { %17553 = vrot.lane.b32.xlu0 %v25828_v24, %s20674_s0  ;;  %v17463_v24 = vsel %vm17106_vm8, %v17462_v31, %v17461_v34  ;;  %v17599_v1 = vsel %vm17106_vm8, %v17598_v63, %v17597_v3  ;;  %v17138_v39 = vsel %vm17106_vm8, %v17137_v41, %v17136_v44  ;;  %v17402_v38 = vsel %vm17106_vm8, %v17052_v37, %v17401_v18 }
0x1d60   :  { %v16913_v16 = vpop.permute.xlu0 %16912 }
0x1d61   :  { %v17053_v23 = vsel %vm17031_vm4, %v25529_v53, %v16913_v16 }
0x1d62   :  { %v17199_v27 = vrot.slane %v17053_v23, 4  ;;  %v17267_v32 = vrot.slane %v17053_v23, 5  ;;  %v17335_v62 = vrot.slane %v17053_v23, 6  ;;  %v17464_v26 = vsel %vm17109_vm9, %v17053_v23, %v17463_v24 }
0x1d63   :  { %v16915_v14 = vpop.permute.xlu1 %16914  ;;  %v17532_v11 = vrot.slane %v17053_v23, 1  ;;  %v17600_v54 = vrot.slane %v17053_v23, 2  ;;  %v17139_v48 = vrot.slane %v17053_v23, 3  ;;  %v17403_v2 = vrot.slane %v17053_v23, 7 }
0x1d64   :  { %v17054_v4 = vsel %vm17031_vm4, %v25474_v47, %v16915_v14  ;;  %v17200_v53 = vsel %vm17109_vm9, %v17199_v27, %v17198_v6  ;;  %v17268_v55 = vsel %vm17109_vm9, %v17267_v32, %v17266_v33  ;;  %v17336_v19 = vsel %vm17109_vm9, %v17335_v62, %v17334_v35 }
0x1d65   :  { %v17201_v50 = vrot.slane %v17054_v4, 3  ;;  %v17269_v7 = vrot.slane %v17054_v4, 4  ;;  %v17337_v57 = vrot.slane %v17054_v4, 5  ;;  %v17465_v52 = vrot.slane %v17054_v4, 7 }
0x1d66   :  { %v17533_v5 = vsel %vm17109_vm9, %v17532_v11, %v17531_v46  ;;  %v17601_v43 = vsel %vm17109_vm9, %v17600_v54, %v17599_v1  ;;  %v17602_v45 = vrot.slane %v17054_v4, 1  ;;  %v17140_v15 = vsel %vm17109_vm9, %v17139_v48, %v17138_v39 }
0x1d67   :  { %v17202_v20 = vsel %vm17112_vm10, %v17201_v50, %v17200_v53  ;;  %v17270_v47 = vsel %vm17112_vm10, %v17269_v7, %v17268_v55  ;;  %v17338_v34 = vsel %vm17112_vm10, %v17337_v57, %v17336_v19  ;;  %v17466_v25 = vsel %vm17112_vm10, %v17465_v52, %v17464_v26 }
0x1d68   :  { %v16917_v59 = vpop.permute.xlu0 %16916  ;;  %v17534_v8 = vsel %vm17112_vm10, %v17054_v4, %v17533_v5  ;;  %v17603_v51 = vsel %vm17112_vm10, %v17602_v45, %v17601_v43  ;;  %v17141_v13 = vrot.slane %v17054_v4, 2  ;;  %v17404_v3 = vsel %vm17109_vm9, %v17403_v2, %v17402_v38 }
0x1d69   :  { %v17055_v44 = vsel %vm17031_vm4, %v25533_v61, %v16917_v59  ;;  %v17405_v18 = vrot.slane %v17054_v4, 6 }
0x1d6a   :  { %v17203_v28 = vrot.slane %v17055_v44, 2  ;;  %v17271_v37 = vrot.slane %v17055_v44, 3  ;;  %v17339_v29 = vrot.slane %v17055_v44, 4  ;;  %v17467_v21 = vrot.slane %v17055_v44, 6 }
0x1d6b   :  { %v16919_v30 = vpop.permute.xlu1 %16918  ;;  %v17535_v31 = vrot.slane %v17055_v44, 7  ;;  %v25905_v10 = vsel %vm17115_vm11, %v17055_v44, %v17603_v51  ;;  %v17142_v35 = vsel %vm17112_vm10, %v17141_v13, %v17140_v15  ;;  %v17143_v63 = vrot.slane %v17055_v44, 1 }
0x1d6c   :  { %v17056_v41 = vsel %vm17031_vm4, %v25484_v9, %v16919_v30  ;;  %v17204_v16 = vsel %vm17115_vm11, %v17203_v28, %v17202_v20  ;;  %v17272_v61 = vsel %vm17115_vm11, %v17271_v37, %v17270_v47  ;;  %v17340_v6 = vsel %vm17115_vm11, %v17339_v29, %v17338_v34 }
0x1d6d   :  { %17223 = vrot.lane.b32.xlu1 %v17204_v16, %s20690_s24  ;;  %v17205_v33 = vrot.slane %v17056_v41, 1  ;;  %v17468_v24 = vsel %vm17115_vm11, %v17467_v21, %v17466_v25  ;;  %v25916_v46 = vsel %vm17115_vm11, %v17535_v31, %v17534_v8  ;;  %v25919_v23 = vsel %vm17115_vm11, %v17143_v63, %v17142_v35 }
0x1d6e   :  { %v17406_v1 = vsel %vm17112_vm10, %v17405_v18, %v17404_v3  ;;  %v17407_v9 = vrot.slane %v17055_v44, 5  ;;  %v17273_v39 = vrot.slane %v17056_v41, 2  ;;  %v17341_v38 = vrot.slane %v17056_v41, 3 }
0x1d6f   :  { %v17409_v27 = vrot.slane %v17056_v41, 4  ;;  %v17469_v32 = vrot.slane %v17056_v41, 5  ;;  %v17537_v26 = vrot.slane %v17056_v41, 6  ;;  %v17605_v14 = vrot.slane %v17056_v41, 7 }
0x1d70   :  { %v16921_v62 = vpop.permute.xlu0 %16920  ;;  %v25926_v54 = vsel %vm17115_vm11, %v17407_v9, %v17406_v1 }
0x1d71   :  { %v17057_v11 = vsel %vm17031_vm4, %v25538_v36, %v16921_v62  ;;  %17291 = vrot.lane.b32.xlu1 %v17272_v61, %s20674_s0 }
0x1d72   :  { %v17145_v48 = vrot.slane %v17057_v11, 7  ;;  %v17274_v2 = vrot.slane %v17057_v11, 1  ;;  %v17342_v4 = vrot.slane %v17057_v11, 2  ;;  %v17410_v53 = vrot.slane %v17057_v11, 3 }
0x1d73   :  { %v17470_v55 = vrot.slane %v17057_v11, 4  ;;  %v17538_v19 = vrot.slane %v17057_v11, 5  ;;  %v17606_v50 = vrot.slane %v17057_v11, 6  ;;  %v16923_v7 = vpop.permute.xlu1 %16922  ;;  %v17206_v57 = vsel %vm17097_vm5, %v17057_v11, %v17205_v33 }
0x1d74   :  { %v17058_v52 = vsel %vm17031_vm4, %v25495_v0, %v16923_v7  ;;  %v17275_v36 = vsel %vm17097_vm5, %v17274_v2, %v17273_v39  ;;  %v17343_v5 = vsel %vm17097_vm5, %v17342_v4, %v17341_v38  ;;  %v17146_v43 = vsel %vm17097_vm5, %v17145_v48, %v17056_v41 }
0x1d75   :  { %v17147_v45 = vrot.slane %v17058_v52, 6  ;;  %v17207_v15 = vrot.slane %v17058_v52, 7  ;;  %v17344_v20 = vrot.slane %v17058_v52, 1  ;;  %v17412_v47 = vrot.slane %v17058_v52, 2  ;;  %17359 = vrot.lane.b32.xlu1 %v17340_v6, %s20678_s2 }
0x1d76   :  { %v17472_v34 = vrot.slane %v17058_v52, 3  ;;  %v17608_v25 = vrot.slane %v17058_v52, 5  ;;  %v17276_v59 = vsel %vm17100_vm6, %v17058_v52, %v17275_v36  ;;  %v17471_v8 = vsel %vm17097_vm5, %v17470_v55, %v17469_v32 }
0x1d77   :  { %v17208_v0 = vsel %vm17100_vm6, %v17207_v15, %v17206_v57  ;;  %v17345_v51 = vsel %vm17100_vm6, %v17344_v20, %v17343_v5  ;;  %v17539_v13 = vsel %vm17097_vm5, %v17538_v19, %v17537_v26  ;;  %v17540_v3 = vrot.slane %v17058_v52, 4 }
0x1d78   :  { %v16925_v44 = vpop.permute.xlu0 %16924  ;;  %v17473_v18 = vsel %vm17100_vm6, %v17472_v34, %v17471_v8  ;;  %v17607_v28 = vsel %vm17097_vm5, %v17606_v50, %v17605_v14  ;;  %v17148_v37 = vsel %vm17100_vm6, %v17147_v45, %v17146_v43  ;;  %v17411_v29 = vsel %vm17097_vm5, %v17410_v53, %v17409_v27 }
0x1d79   :  { %v17059_v21 = vsel %vm17031_vm4, %v25542_v22, %v16925_v44  ;;  %17487 = vrot.lane.b32.xlu1 %v17468_v24, %s20690_s24  ;;  %v17541_v30 = vsel %vm17100_vm6, %v17540_v3, %v17539_v13  ;;  %v17609_v31 = vsel %vm17100_vm6, %v17608_v25, %v17607_v28  ;;  %v17413_v35 = vsel %vm17100_vm6, %v17412_v47, %v17411_v29 }
0x1d7a   :  { %v17209_v63 = vrot.slane %v17059_v21, 6  ;;  %v17277_v41 = vrot.slane %v17059_v21, 7  ;;  %v17346_v16 = vsel %vm17103_vm7, %v17059_v21, %v17345_v51  ;;  %v17474_v61 = vrot.slane %v17059_v21, 2 }
0x1d7b   :  { %v16927_v6 = vpop.permute.xlu1 %16926  ;;  %v17542_v33 = vrot.slane %v17059_v21, 3  ;;  %v17610_v1 = vrot.slane %v17059_v21, 4  ;;  %v17149_v9 = vrot.slane %v17059_v21, 5  ;;  %v17414_v39 = vrot.slane %v17059_v21, 1 }
0x1d7c   :  { %v17060_v22 = vsel %vm17031_vm4, %v25505_v12, %v16927_v6  ;;  %v17210_v24 = vsel %vm17103_vm7, %v17209_v63, %v17208_v0  ;;  %v17278_v38 = vsel %vm17103_vm7, %v17277_v41, %v17276_v59  ;;  %v17475_v27 = vsel %vm17103_vm7, %v17474_v61, %v17473_v18 }
0x1d7d   :  { %17555 = vrot.lane.b32.xlu1 %v25916_v46, %s20674_s0  ;;  %v17211_v32 = vrot.slane %v17060_v22, 5  ;;  %v17279_v62 = vrot.slane %v17060_v22, 6  ;;  %v17347_v26 = vrot.slane %v17060_v22, 7  ;;  %v17476_v14 = vrot.slane %v17060_v22, 1 }
0x1d7e   :  { %v17543_v11 = vsel %vm17103_vm7, %v17542_v33, %v17541_v30  ;;  %v17544_v48 = vrot.slane %v17060_v22, 2  ;;  %v17611_v2 = vsel %vm17103_vm7, %v17610_v1, %v17609_v31  ;;  %v17612_v4 = vrot.slane %v17060_v22, 3 }
0x1d7f   :  { %v17212_v12 = vsel %vm17106_vm8, %v17211_v32, %v17210_v24  ;;  %v17280_v53 = vsel %vm17106_vm8, %v17279_v62, %v17278_v38  ;;  %v17348_v55 = vsel %vm17106_vm8, %v17347_v26, %v17346_v16  ;;  %v17477_v19 = vsel %vm17106_vm8, %v17476_v14, %v17475_v27 }
0x1d80   :  { %v16929_v50 = vpop.permute.xlu0 %16928  ;;  %v17545_v46 = vsel %vm17106_vm8, %v17544_v48, %v17543_v11  ;;  %v17613_v7 = vsel %vm17106_vm8, %v17612_v4, %v17611_v2  ;;  %v17150_v57 = vsel %vm17103_vm7, %v17149_v9, %v17148_v37  ;;  %v17151_v52 = vrot.slane %v17060_v22, 4 }
0x1d81   :  { %v17061_v36 = vsel %vm17031_vm4, %v25547_v56, %v16929_v50  ;;  %17623 = vrot.lane.b32.xlu1 %v25905_v10, %s20678_s2  ;;  %v17415_v5 = vsel %vm17103_vm7, %v17414_v39, %v17413_v35 }
0x1d82   :  { %v17213_v43 = vrot.slane %v17061_v36, 4  ;;  %v17281_v45 = vrot.slane %v17061_v36, 5  ;;  %v17349_v15 = vrot.slane %v17061_v36, 6  ;;  %v17478_v20 = vsel %vm17109_vm9, %v17061_v36, %v17477_v19 }
0x1d83   :  { %v16931_v47 = vpop.permute.xlu1 %16930  ;;  %v17546_v34 = vrot.slane %v17061_v36, 1  ;;  %v17614_v25 = vrot.slane %v17061_v36, 2  ;;  %v17152_v59 = vsel %vm17106_vm8, %v17151_v52, %v17150_v57  ;;  %v17153_v8 = vrot.slane %v17061_v36, 3 }
0x1d84   :  { %v17062_v0 = vsel %vm17031_vm4, %v25516_v40, %v16931_v47  ;;  %v17214_v56 = vsel %vm17109_vm9, %v17213_v43, %v17212_v12  ;;  %v17282_v10 = vsel %vm17109_vm9, %v17281_v45, %v17280_v53  ;;  %v17350_v51 = vsel %vm17109_vm9, %v17349_v15, %v17348_v55 }
0x1d85   :  { %v17215_v13 = vrot.slane %v17062_v0, 3  ;;  %v17283_v3 = vrot.slane %v17062_v0, 4  ;;  %v17351_v44 = vrot.slane %v17062_v0, 5  ;;  %v17479_v18 = vrot.slane %v17062_v0, 7 }
0x1d86   :  { %v17547_v28 = vsel %vm17109_vm9, %v17546_v34, %v17545_v46  ;;  %v17615_v37 = vsel %vm17109_vm9, %v17614_v25, %v17613_v7  ;;  %v17616_v29 = vrot.slane %v17062_v0, 1  ;;  %v17154_v21 = vsel %vm17109_vm9, %v17153_v8, %v17152_v59 }
0x1d87   :  { %v17620_v30 = vpop.permute.xlu1 %17619  ;;  %v17216_v40 = vsel %vm17112_vm10, %v17215_v13, %v17214_v56  ;;  %v17284_v31 = vsel %vm17112_vm10, %v17283_v3, %v17282_v10  ;;  %v17352_v35 = vsel %vm17112_vm10, %v17351_v44, %v17350_v51  ;;  %v17480_v63 = vsel %vm17112_vm10, %v17479_v18, %v17478_v20 }
0x1d88   :  { %v16933_v41 = vpop.permute.xlu0 %16932  ;;  %v17548_v16 = vsel %vm17112_vm10, %v17062_v0, %v17547_v28  ;;  %v17617_v61 = vsel %vm17112_vm10, %v17616_v29, %v17615_v37  ;;  %v17155_v6 = vrot.slane %v17062_v0, 2  ;;  %v17416_v33 = vsel %vm17106_vm8, %v17060_v22, %v17415_v5 }
0x1d89   :  { %v17063_v1 = vsel %vm17031_vm4, %v25551_v58, %v16933_v41  ;;  %v17417_v9 = vrot.slane %v17061_v36, 7  ;;  %v17419_v39 = vrot.slane %v17062_v0, 6 }
0x1d8a   :  { %v17217_v24 = vrot.slane %v17063_v1, 2  ;;  %v17285_v38 = vrot.slane %v17063_v1, 3  ;;  %v17353_v27 = vrot.slane %v17063_v1, 4  ;;  %v17481_v32 = vrot.slane %v17063_v1, 6 }
0x1d8b   :  { %v17220_v62 = vpop.permute.xlu1 %17219  ;;  %v17549_v26 = vrot.slane %v17063_v1, 7  ;;  %v17618_v14 = vsel %vm17115_vm11, %v17063_v1, %v17617_v61  ;;  %v17157_v11 = vrot.slane %v17063_v1, 1  ;;  %v17156_v48 = vsel %vm17112_vm10, %v17155_v6, %v17154_v21 }
0x1d8c   :  { %v17218_v2 = vsel %vm17115_vm11, %v17217_v24, %v17216_v40  ;;  %v17286_v22 = vsel %vm17115_vm11, %v17285_v38, %v17284_v31  ;;  %v17354_v4 = vsel %vm17115_vm11, %v17353_v27, %v17352_v35  ;;  %v17482_v58 = vsel %vm17115_vm11, %v17481_v32, %v17480_v63 }
0x1d8d   :  { %17225 = vrot.lane.b32.xlu0 %v17218_v2, %s20690_s24  ;;  %v17550_v12 = vsel %vm17115_vm11, %v17549_v26, %v17548_v16  ;;  %v17158_v53 = vsel %vm17115_vm11, %v17157_v11, %v17156_v48  ;;  %v17418_v55 = vsel %vm17109_vm9, %v17417_v9, %v17416_v33  ;;  %v17421_v50 = vrot.slane %v17063_v1, 5 }
0x1d8e   :  { %v17420_v19 = vsel %vm17112_vm10, %v17419_v39, %v17418_v55  ;;  %v17631_v57 = vsel %vm115_vm0, %v25703_v42, %v17220_v62 }
0x1d8f   :  { %v17288_v46 = vpop.permute.xlu1 %17287  ;;  %v17422_v7 = vsel %vm17115_vm11, %v17421_v50, %v17420_v19 }
0x1d90   :  { %v17636_v52 = vsel %vm17635_vm12, %v17631_v57, %v17288_v46 }
0x1d91   :  { %17293 = vrot.lane.b32.xlu0 %v17286_v22, %s20674_s0 }
0x1d93   :  { %v17356_v36 = vpop.permute.xlu1 %17355 }
0x1d94   :  { %v17641_v5 = vsel %vm17640_vm13, %v17636_v52, %v17356_v36 }
0x1d95   :  { %17657 = vst [vmem:[#allocation7] sm:$0xff] %v17641_v5  ;;  %17361 = vrot.lane.b32.xlu0 %v17354_v4, %s20678_s2 }
0x1d97   :  { %v17484_v43 = vpop.permute.xlu1 %17483 }
0x1d98   :  { %v17645_v45 = vsel %vm115_vm0, %v25708_v60, %v17484_v43 }
0x1d99   :  { %17489 = vrot.lane.b32.xlu0 %v17482_v58, %s20690_s24 }
0x1d9b   :  { %v17552_v15 = vpop.permute.xlu1 %17551 }
0x1d9c   :  { %v17649_v20 = vsel %vm17635_vm12, %v17645_v45, %v17552_v15 }
0x1d9d   :  { %v17653_v47 = vsel %vm17640_vm13, %v17649_v20, %v17620_v30  ;;  %17557 = vrot.lane.b32.xlu0 %v17550_v12, %s20674_s0 }
0x1d9e   :  { %17658 = vst [vmem:[#allocation7 + $0x8] sm:$0xff] %v17653_v47 }
0x1da0   :  { %v17622_v42 = vpop.permute.xlu0 %17621 }
0x1da1   :  { %17625 = vrot.lane.b32.xlu0 %v17618_v14, %s20678_s2 }
0x1da4   :  { %v17222_v34 = vpop.permute.xlu0 %17221 }
0x1da5   :  { %v17632_v59 = vsel %vm115_vm0, %v25831_v17, %v17222_v34 }
0x1da8   :  { %v17290_v25 = vpop.permute.xlu0 %17289 }
0x1da9   :  { %v17637_v8 = vsel %vm17635_vm12, %v17632_v59, %v17290_v25 }
0x1dac   :  { %v17358_v0 = vpop.permute.xlu0 %17357 }
0x1dad   :  { %v17642_v60 = vsel %vm17640_vm13, %v17637_v8, %v17358_v0 }
0x1dae   :  { %17659 = vst [vmem:[#allocation7 + $0x10] sm:$0xff] %v17642_v60 }
0x1db0   :  { %v17486_v56 = vpop.permute.xlu0 %17485 }
0x1db1   :  { %v17646_v10 = vsel %vm115_vm0, %v25834_v49, %v17486_v56 }
0x1db4   :  { %v17554_v51 = vpop.permute.xlu0 %17553 }
0x1db5   :  { %v17650_v13 = vsel %vm17635_vm12, %v17646_v10, %v17554_v51 }
0x1db6   :  { %v17654_v3 = vsel %vm17640_vm13, %v17650_v13, %v17622_v42 }
0x1db7   :  { %17660 = vst [vmem:[#allocation7 + $0x18] sm:$0xff] %v17654_v3 }
0x1ddf   :  { %v17224_v44 = vpop.permute.xlu1 %17223 }
0x1de0   :  { %v17633_v17 = vsel %vm115_vm0, %v25919_v23, %v17224_v44 }
0x1de3   :  { %v17292_v18 = vpop.permute.xlu1 %17291 }
0x1de4   :  { %v17638_v28 = vsel %vm17635_vm12, %v17633_v17, %v17292_v18 }
0x1de7   :  { %v17360_v37 = vpop.permute.xlu1 %17359 }
0x1de8   :  { %v17643_v29 = vsel %vm17640_vm13, %v17638_v28, %v17360_v37 }
0x1de9   :  { %17661 = vst [vmem:[#allocation7 + $0x20] sm:$0xff] %v17643_v29 }
0x1deb   :  { %v17488_v21 = vpop.permute.xlu1 %17487 }
0x1dec   :  { %v17647_v49 = vsel %vm115_vm0, %v25926_v54, %v17488_v21 }
0x1def   :  { %v17556_v30 = vpop.permute.xlu1 %17555 }
0x1df0   :  { %v17651_v40 = vsel %vm17635_vm12, %v17647_v49, %v17556_v30 }
0x1df3   :  { %v17624_v31 = vpop.permute.xlu1 %17623 }
0x1df4   :  { %v17655_v35 = vsel %vm17640_vm13, %v17651_v40, %v17624_v31 }
0x1df5   :  { %17662 = vst [vmem:[#allocation7 + $0x28] sm:$0xff] %v17655_v35 }
0x1dff   :  { %v17226_v63 = vpop.permute.xlu0 %17225 }
0x1e00   :  { %v17634_v23 = vsel %vm115_vm0, %v17158_v53, %v17226_v63 }
0x1e03   :  { %v17294_v41 = vpop.permute.xlu0 %17293 }
0x1e04   :  { %v17639_v16 = vsel %vm17635_vm12, %v17634_v23, %v17294_v41 }
0x1e07   :  { %v17362_v61 = vpop.permute.xlu0 %17361 }
0x1e08   :  { %v17644_v6 = vsel %vm17640_vm13, %v17639_v16, %v17362_v61 }
0x1e09   :  { %17663 = vst [vmem:[#allocation7 + $0x30] sm:$0xff] %v17644_v6 }
0x1e0b   :  { %v17490_v33 = vpop.permute.xlu0 %17489 }
0x1e0c   :  { %v17648_v54 = vsel %vm115_vm0, %v17422_v7, %v17490_v33 }
0x1e0f   :  { %v17558_v1 = vpop.permute.xlu0 %17557 }
0x1e10   :  { %v17652_v9 = vsel %vm17635_vm12, %v17648_v54, %v17558_v1 }
0x1e13   :  { %v17626_v39 = vpop.permute.xlu0 %17625 }
0x1e14   :  { %v17656_v24 = vsel %vm17640_vm13, %v17652_v9, %v17626_v39 }
0x1e15   :  { %17664 = vst [vmem:[#allocation7 + $0x38] sm:$0xff] %v17656_v24 }
0x1e16   :  { %20653 = shalt.err (!%p20650_p6)
}
0x1e17   :  { %s20654_s30 = scalar_lea.hbm %s26054_s3, 1024 }
0x1e18   :  { %p20655_p7 = scmp.ne.s32.totalorder %s26054_s3, %s20654_s30  ;;  %p20658_p8 = scmp.lt.u32.totalorder %s20654_s30, %s26054_s3 }
0x1e1a   :  { %p20660_p9 = pnand %p20658_p8, %p20655_p7 }
0x1e1c   :  { %20663 = shalt.err (!%p20660_p9)
}
0x1e1d   :  { %s20692_s8 = smov 256  }
0x1e1e   :  { %17676 = dma.vmem_to_hbm [thread:$0]  %s17671_s26, 1024, %s26054_s3, [#allocation4], %s20692_s8, %s20692_s8, %s20688_s22  }
0x1e1f   :  { %20668 = dma.done.wait [#allocation4], 1024  }
0x1e20   :  { %20669 = vsyncadd [#allocation4], 4294966272 }
0x1e21   :  { %17680 = vsyncpa [#allocation3], 1 }
0x1e22   :  { %17681 = vsyncpa [#allocation6], 1 }
0x1e23   :  { %17682 = vsyncpa [#allocation4], 1 }

</bundles_post_ra>
